<compile_context>
chip_gen: v6e
topology: v6e:2x2x1
jax: 0.10.0
libtpu: 0.0.40
codegen_flags: <defaults>
</compile_context>

<pallas_src>
import numpy as np
import jax
import jax.numpy as jnp
from jax import lax
from jax.experimental import pallas as pl
from jax.experimental.pallas import tpu as pltpu

_LRELU = 0.2
_LN_EPS = 1e-5

# MXU operand dtype.  Keep f32 (v5e guidance); set to jnp.bfloat16 on v6e/v7x
# for ~2x MXU throughput (accumulation stays f32).
_MXU_DTYPE = jnp.float32


# ---------------------------------------------------------------------------
# in-kernel helpers (traced inside the fused kernel; values only, no ref games)
# ---------------------------------------------------------------------------

def _leaky(x):
    return jnp.where(x > 0, x, _LRELU * x)


def _layernorm(y, g, b):
    """PyTorch nn.LayerNorm([C,H,W]) for one sample, with the activation laid
    out as (B, H, W*C) and gamma/beta prepacked to (H, W*C).  Normalizes over
    all C*H*W elements per sample (biased variance, eps inside rsqrt)."""
    inv_n = 1.0 / float(y.shape[1] * y.shape[2])
    m = jnp.sum(jnp.sum(y, axis=2, keepdims=True), axis=1, keepdims=True) * inv_n
    c = y - m
    v = jnp.sum(jnp.sum(c * c, axis=2, keepdims=True), axis=1, keepdims=True) * inv_n
    return c * lax.rsqrt(v + _LN_EPS) * g[None] + b[None]


def _conv_layer(E, D, Me, Mo):
    """One 4x4 / stride-2 / pad-1 conv as two lane-dense MXU matmuls.

    E, D: (B, R, (S+2)*Cin) -- even / odd rows of the zero-padded input; each
          row is width-padded and flattened channels-last (R = S/2 + 1).
    Me = [M_0 | M_2], Mo = [M_1 | M_3]: banded matrices that fold the kernel's
          width taps and channel mixing into the K dimension (built once in
          pack_params), so the whole width axis is handled inside the MXU.
    Returns y: (B, O, O*Cout), O = S/2, lane index = pw*Cout + cout.
    """
    b, r, k = E.shape
    o = r - 1
    n = Me.shape[1] // 2                                   # = O * Cout
    ue = jnp.dot(E.reshape(b * r, k).astype(_MXU_DTYPE), Me.astype(_MXU_DTYPE),
                 preferred_element_type=jnp.float32).reshape(b, r, 2 * n)
    ud = jnp.dot(D.reshape(b * r, k).astype(_MXU_DTYPE), Mo.astype(_MXU_DTYPE),
                 preferred_element_type=jnp.float32).reshape(b, r, 2 * n)
    # y[ph] = E[ph]@M0 + D[ph]@M1 + E[ph+1]@M2 + D[ph+1]@M3  (unit-stride slices;
    # all lane slices fall on 256-lane boundaries).
    return (ue[:, 0:o, 0:n] + ud[:, 0:o, 0:n]
            + ue[:, 1:o + 1, n:2 * n] + ud[:, 1:o + 1, n:2 * n])


def _next_parity(h, P):
    """Width-pad the activation and split its (row-padded) rows into the
    even/odd padded-row halves consumed by the next layer.  The stride-2 row
    shuffle (+ insertion of the top/bottom zero-pad rows) is a single 0/1
    permutation matmul, so no strided or gathered memory access is issued."""
    b, o, oc = h.shape
    c = oc // o
    zp = jnp.zeros((b, o, c), dtype=h.dtype)
    hw = jnp.concatenate([zp, h, zp], axis=2)              # (B, O, (O+2)*C)
    z = jnp.dot(P.astype(jnp.float32), hw.reshape(b * o, (o + 2) * c),
                preferred_element_type=jnp.float32)
    z = z.reshape(b, 2, o // 2 + 1, (o + 2) * c)
    return z[:, 0], z[:, 1]


# ---------------------------------------------------------------------------
# the fused kernel: one grid step == B_tile full forward passes
# ---------------------------------------------------------------------------

def _fused_kernel(e1_ref, d1_ref,
                  m1e_ref, m1o_ref, p1_ref,
                  m2e_ref, m2o_ref, g2_ref, b2_ref, p2_ref,
                  m3e_ref, m3o_ref, g3_ref, b3_ref, p3_ref,
                  m4e_ref, m4o_ref, g4_ref, b4_ref,
                  w5_ref, out_ref):
    e, d = e1_ref[...], d1_ref[...]                              # (B, 33, 198)

    # conv1 (nc -> ndf, 4,2,1) + LeakyReLU(0.2)
    h = _leaky(_conv_layer(e, d, m1e_ref[...], m1o_ref[...]))    # (B, 32, 256)
    e, d = _next_parity(h, p1_ref[...])                          # (B, 17, 272)

    # conv2 (ndf -> 2ndf) + LayerNorm([2ndf,16,16]) + LeakyReLU
    h = _leaky(_layernorm(_conv_layer(e, d, m2e_ref[...], m2o_ref[...]),
                          g2_ref[...], b2_ref[...]))             # (B, 16, 256)
    e, d = _next_parity(h, p2_ref[...])                          # (B, 9, 288)

    # conv3 (2ndf -> 4ndf) + LayerNorm([4ndf,8,8]) + LeakyReLU
    h = _leaky(_layernorm(_conv_layer(e, d, m3e_ref[...], m3o_ref[...]),
                          g3_ref[...], b3_ref[...]))             # (B, 8, 256)
    e, d = _next_parity(h, p3_ref[...])                          # (B, 5, 320)

    # conv4 (4ndf -> 8ndf) + LayerNorm([8ndf,4,4]) + LeakyReLU
    h = _leaky(_layernorm(_conv_layer(e, d, m4e_ref[...], m4o_ref[...]),
                          g4_ref[...], b4_ref[...]))             # (B, 4, 256)

    # conv5 (8ndf -> 1, kernel 4, stride 1, pad 0): single output position
    # -> plain VPU multiply + reduction.
    prod = h * w5_ref[...][None]                                 # (B, 4, 256)
    s = jnp.sum(prod, axis=2, keepdims=True)                     # (B, 4, 1)
    out_ref[...] = jnp.sum(s, axis=1, keepdims=True)             # (B, 1, 1)


# ---------------------------------------------------------------------------
# one-time parameter packing (outside the jitted forward)
# ---------------------------------------------------------------------------

def _banded_pair(w, s):
    """Fold the width taps (j) + channel mixing of a 4x4/stride-2/pad-1 conv
    into banded matrices, one per kernel row i, grouped by the parity of the
    padded input row feeding them: Me = [M_0 | M_2], Mo = [M_1 | M_3]."""
    w = np.asarray(w, np.float32)                       # (Cout, Cin, 4, 4)
    cout, cin = w.shape[0], w.shape[1]
    o = s // 2
    mats = []
    for i in range(4):
        m = np.zeros(((s + 2) * cin, o * cout), np.float32)
        for pw in range(o):
            for j in range(4):
                beta = 2 * pw + j                       # padded-width position of this tap
                m[beta * cin:(beta + 1) * cin, pw * cout:(pw + 1) * cout] = w[:, :, i, j].T
        mats.append(m)
    return (jnp.asarray(np.concatenate([mats[0], mats[2]], axis=1)),
            jnp.asarray(np.concatenate([mats[1], mats[3]], axis=1)))


def _pack_ln(p):
    """(C, H, W) LayerNorm affine param -> (H, W*C), matching the kernel's
    activation layout [ph, pw*C + c]."""
    p = np.asarray(p, np.float32)
    c, h, w = p.shape
    return jnp.asarray(np.transpose(p, (1, 2, 0)).reshape(h, w * c))


def pack_params(raw):
    """One-time prep of all conv / LayerNorm parameters into the kernel's
    lane-dense layouts (hoisted out of the jitted forward)."""
    w5 = np.asarray(raw["w5"], np.float32)              # (1, 8*ndf, 4, 4)
    m1e, m1o = _banded_pair(raw["w1"], 64)
    m2e, m2o = _banded_pair(raw["w2"], 32)
    m3e, m3o = _banded_pair(raw["w3"], 16)
    m4e, m4o = _banded_pair(raw["w4"], 8)
    return {
        "m1e": m1e, "m1o": m1o, "m2e": m2e, "m2o": m2o,
        "m3e": m3e, "m3o": m3o, "m4e": m4e, "m4o": m4o,
        "g2": _pack_ln(raw["g2"]), "b2": _pack_ln(raw["b2"]),
        "g3": _pack_ln(raw["g3"]), "b3": _pack_ln(raw["b3"]),
        "g4": _pack_ln(raw["g4"]), "b4": _pack_ln(raw["b4"]),
        "w5": jnp.asarray(np.transpose(w5[0], (1, 2, 0)).reshape(4, 4 * w5.shape[1])),
    }


def _parity_matrix(b_tile, o):
    """0/1 matrix mapping the B*O naturally-ordered output rows of a layer to
    the next layer's (B, {even,odd}, O/2+1) padded-row-parity rows; all-zero
    rows realize the next layer's top/bottom zero padding."""
    hh = o // 2 + 1
    p = np.zeros((b_tile * 2 * hh, b_tile * o), np.float32)
    for b in range(b_tile):
        for q in range(hh):
            if q >= 1:                                   # even padded row 2q   = y[2q-1]
                p[(b * 2 + 0) * hh + q, b * o + 2 * q - 1] = 1.0
            if q < o // 2:                               # odd  padded row 2q+1 = y[2q]
                p[(b * 2 + 1) * hh + q, b * o + 2 * q] = 1.0
    return jnp.asarray(p)


def _pack_input(x_nchw):
    """NCHW image -> (E, D): even / odd rows of the zero-padded image, each row
    width-padded and flattened channels-last ((W+2)*C lanes).  This is the one
    (cheap, jit-fused) XLA layout pass producing the kernel's packed layout."""
    n, c, h, w = x_nchw.shape
    x = jnp.transpose(x_nchw, (0, 2, 3, 1)).astype(jnp.float32)
    x = jnp.pad(x, ((0, 0), (1, 1), (1, 1), (0, 0)))
    rows = x.reshape(n, h + 2, (w + 2) * c)
    return rows[:, 0::2, :], rows[:, 1::2, :]


def _pick_btile(n):
    for bt in (8, 4, 2):
        if n % bt == 0:
            return bt
    return 1


# ---------------------------------------------------------------------------
# forward wrapper
# ---------------------------------------------------------------------------

def netlocalD_wgangp_forward(x_nchw, packed):
    """x_nchw: (N, nc, 64, 64) float32 (PyTorch layout); packed: pack_params(...)."""
    n, nc, hh, ww = x_nchw.shape
    assert hh == 64 and ww == 64, "the module's LayerNorm shapes imply a 64x64 input"
    b_tile = _pick_btile(n)

    e1, d1 = _pack_input(x_nchw)
    p1 = _parity_matrix(b_tile, 32)
    p2 = _parity_matrix(b_tile, 16)
    p3 = _parity_matrix(b_tile, 8)

    operands = [e1, d1,
                packed["m1e"], packed["m1o"], p1,
                packed["m2e"], packed["m2o"], packed["g2"], packed["b2"], p2,
                packed["m3e"], packed["m3o"], packed["g3"], packed["b3"], p3,
                packed["m4e"], packed["m4o"], packed["g4"], packed["b4"],
                packed["w5"]]

    def bcast(a):
        nd = a.ndim
        return pl.BlockSpec(a.shape, lambda i, _nd=nd: (0,) * _nd)

    in_specs = [pl.BlockSpec((b_tile,) + e1.shape[1:], lambda i: (i, 0, 0)),
                pl.BlockSpec((b_tile,) + d1.shape[1:], lambda i: (i, 0, 0))]
    in_specs += [bcast(a) for a in operands[2:]]

    out = pl.pallas_call(
        _fused_kernel,
        out_shape=jax.ShapeDtypeStruct((n, 1, 1), jnp.float32),
        grid_spec=pltpu.PrefetchScalarGridSpec(
            num_scalar_prefetch=0,
            grid=(n // b_tile,),
            in_specs=in_specs,
            out_specs=pl.BlockSpec((b_tile, 1, 1), lambda i: (i, 0, 0)),
        ),
        compiler_params=pltpu.CompilerParams(
            dimension_semantics=("parallel",),
            vmem_limit_bytes=32 * 1024 * 1024,
        ),
    )(*operands)
    return out.reshape(-1)                                # output.view(-1)


# ---------------------------------------------------------------------------
# deterministic synthetic parameters (bias-free, like the module) + reference
# ---------------------------------------------------------------------------

def init_params(key, nc=3, ndf=8):
    ks = jax.random.split(key, 11)
    nrm = lambda k, s, scale=0.02: scale * jax.random.normal(k, s, jnp.float32)
    return {
        "w1": nrm(ks[0], (ndf, nc, 4, 4)),
        "w2": nrm(ks[1], (ndf * 2, ndf, 4, 4)),
        "g2": 1.0 + nrm(ks[2], (ndf * 2, 16, 16)),
        "b2": nrm(ks[3], (ndf * 2, 16, 16)),
        "w3": nrm(ks[4], (ndf * 4, ndf * 2, 4, 4)),
        "g3": 1.0 + nrm(ks[5], (ndf * 4, 8, 8)),
        "b3": nrm(ks[6], (ndf * 4, 8, 8)),
        "w4": nrm(ks[7], (ndf * 8, ndf * 4, 4, 4)),
        "g4": 1.0 + nrm(ks[8], (ndf * 8, 4, 4)),
        "b4": nrm(ks[9], (ndf * 8, 4, 4)),
        "w5": nrm(ks[10], (1, ndf * 8, 4, 4)),
    }


def _reference_forward(x, raw):
    """Plain-XLA reference of the same forward pass (self-check only)."""
    dn = ("NCHW", "OIHW", "NCHW")
    prec = lax.Precision.HIGHEST

    def conv(h, w, stride, pad):
        return lax.conv_general_dilated(h, w, (stride, stride),
                                        [(pad, pad), (pad, pad)],
                                        dimension_numbers=dn, precision=prec)

    def lrelu(h):
        return jnp.where(h > 0, h, _LRELU * h)

    def ln(h, g, b):
        m = jnp.mean(h, axis=(1, 2, 3), keepdims=True)
        v = jnp.mean((h - m) ** 2, axis=(1, 2, 3), keepdims=True)
        return (h - m) * lax.rsqrt(v + _LN_EPS) * g[None] + b[None]

    h = lrelu(conv(x, raw["w1"], 2, 1))
    h = lrelu(ln(conv(h, raw["w2"], 2, 1), raw["g2"], raw["b2"]))
    h = lrelu(ln(conv(h, raw["w3"], 2, 1), raw["g3"], raw["b3"]))
    h = lrelu(ln(conv(h, raw["w4"], 2, 1), raw["g4"], raw["b4"]))
    h = conv(h, raw["w5"], 1, 0)
    return h.reshape(-1)


# TODO(synk): the ngpu>1 nn.parallel.data_parallel branch is host-side device
# placement, not an op; it has no in-kernel equivalent and is omitted.

if __name__ == "__main__":
    key = jax.random.PRNGKey(0)
    k_params, k_x = jax.random.split(key)
    nc, ndf, batch = 3, 8, 2
    raw = init_params(k_params, nc=nc, ndf=ndf)
    packed = pack_params(raw)                       # one-time prep, outside jit
    x = jax.random.normal(k_x, (batch, nc, 64, 64), jnp.float32)  # NCHW, like PyTorch

    fwd = jax.jit(netlocalD_wgangp_forward)
    out = jax.block_until_ready(fwd(x, packed))

    assert out.shape == (batch,), out.shape
    assert out.dtype == jnp.float32
    assert bool(jnp.all(jnp.isfinite(out)))

    # self-check against a plain-XLA reference of the same module
    ref = jax.block_until_ready(jax.jit(_reference_forward)(x, raw))
    err = float(jnp.max(jnp.abs(out - ref)))
    scale = max(1.0, float(jnp.max(jnp.abs(ref))))
    assert err <= 5e-2 * scale, (err, scale)

    print("KERNEL_OK")
</pallas_src>

<mosaic_0001>
module attributes {stable_mosaic.version = 11 : i64} {
  func.func @_fused_kernel(%arg0: i32, %arg1: memref<2x33x198xf32, #tpu.memory_space<vmem>>, %arg2: memref<2x33x198xf32, #tpu.memory_space<vmem>>, %arg3: memref<198x512xf32, #tpu.memory_space<vmem>>, %arg4: memref<198x512xf32, #tpu.memory_space<vmem>>, %arg5: memref<68x64xf32, #tpu.memory_space<vmem>>, %arg6: memref<272x512xf32, #tpu.memory_space<vmem>>, %arg7: memref<272x512xf32, #tpu.memory_space<vmem>>, %arg8: memref<16x256xf32, #tpu.memory_space<vmem>>, %arg9: memref<16x256xf32, #tpu.memory_space<vmem>>, %arg10: memref<36x32xf32, #tpu.memory_space<vmem>>, %arg11: memref<288x512xf32, #tpu.memory_space<vmem>>, %arg12: memref<288x512xf32, #tpu.memory_space<vmem>>, %arg13: memref<8x256xf32, #tpu.memory_space<vmem>>, %arg14: memref<8x256xf32, #tpu.memory_space<vmem>>, %arg15: memref<20x16xf32, #tpu.memory_space<vmem>>, %arg16: memref<320x512xf32, #tpu.memory_space<vmem>>, %arg17: memref<320x512xf32, #tpu.memory_space<vmem>>, %arg18: memref<4x256xf32, #tpu.memory_space<vmem>>, %arg19: memref<4x256xf32, #tpu.memory_space<vmem>>, %arg20: memref<4x256xf32, #tpu.memory_space<vmem>>, %arg21: memref<2x1x1xf32, #tpu.memory_space<vmem>>) attributes {dimension_semantics = [#tpu.dimension_semantics<parallel>], iteration_bounds = array<i64: 1>, scalar_prefetch = 0 : i64, scratch_operands = 0 : i64, tpu.core_type = #tpu.core_type<tc>, window_params = [{transform_indices = @transform_0, window_bounds = array<i64: 2, 33, 198>}, {transform_indices = @transform_1, window_bounds = array<i64: 2, 33, 198>}, {pipeline_mode = #tpu.pipeline_mode<synchronous>, transform_indices = @transform_2, window_bounds = array<i64: 198, 512>}, {pipeline_mode = #tpu.pipeline_mode<synchronous>, transform_indices = @transform_3, window_bounds = array<i64: 198, 512>}, {pipeline_mode = #tpu.pipeline_mode<synchronous>, transform_indices = @transform_4, window_bounds = array<i64: 68, 64>}, {pipeline_mode = #tpu.pipeline_mode<synchronous>, transform_indices = @transform_5, window_bounds = array<i64: 272, 512>}, {pipeline_mode = #tpu.pipeline_mode<synchronous>, transform_indices = @transform_6, window_bounds = array<i64: 272, 512>}, {pipeline_mode = #tpu.pipeline_mode<synchronous>, transform_indices = @transform_7, window_bounds = array<i64: 16, 256>}, {pipeline_mode = #tpu.pipeline_mode<synchronous>, transform_indices = @transform_8, window_bounds = array<i64: 16, 256>}, {pipeline_mode = #tpu.pipeline_mode<synchronous>, transform_indices = @transform_9, window_bounds = array<i64: 36, 32>}, {pipeline_mode = #tpu.pipeline_mode<synchronous>, transform_indices = @transform_10, window_bounds = array<i64: 288, 512>}, {pipeline_mode = #tpu.pipeline_mode<synchronous>, transform_indices = @transform_11, window_bounds = array<i64: 288, 512>}, {pipeline_mode = #tpu.pipeline_mode<synchronous>, transform_indices = @transform_12, window_bounds = array<i64: 8, 256>}, {pipeline_mode = #tpu.pipeline_mode<synchronous>, transform_indices = @transform_13, window_bounds = array<i64: 8, 256>}, {pipeline_mode = #tpu.pipeline_mode<synchronous>, transform_indices = @transform_14, window_bounds = array<i64: 20, 16>}, {pipeline_mode = #tpu.pipeline_mode<synchronous>, transform_indices = @transform_15, window_bounds = array<i64: 320, 512>}, {pipeline_mode = #tpu.pipeline_mode<synchronous>, transform_indices = @transform_16, window_bounds = array<i64: 320, 512>}, {pipeline_mode = #tpu.pipeline_mode<synchronous>, transform_indices = @transform_17, window_bounds = array<i64: 4, 256>}, {pipeline_mode = #tpu.pipeline_mode<synchronous>, transform_indices = @transform_18, window_bounds = array<i64: 4, 256>}, {pipeline_mode = #tpu.pipeline_mode<synchronous>, transform_indices = @transform_19, window_bounds = array<i64: 4, 256>}, {transform_indices = @transform_20, window_bounds = array<i64: 2, 1, 1>}]} {
    %c0 = arith.constant 0 : index
    %c0_0 = arith.constant 0 : index
    %c0_1 = arith.constant 0 : index
    %0 = vector.load %arg1[%c0, %c0_0, %c0_1] : memref<2x33x198xf32, #tpu.memory_space<vmem>>, vector<2x33x198xf32>
    %c0_2 = arith.constant 0 : index
    %c0_3 = arith.constant 0 : index
    %c0_4 = arith.constant 0 : index
    %1 = vector.load %arg2[%c0_2, %c0_3, %c0_4] : memref<2x33x198xf32, #tpu.memory_space<vmem>>, vector<2x33x198xf32>
    %c0_5 = arith.constant 0 : index
    %c0_6 = arith.constant 0 : index
    %2 = vector.load %arg3[%c0_5, %c0_6] : memref<198x512xf32, #tpu.memory_space<vmem>>, vector<198x512xf32>
    %c0_7 = arith.constant 0 : index
    %c0_8 = arith.constant 0 : index
    %3 = vector.load %arg4[%c0_7, %c0_8] : memref<198x512xf32, #tpu.memory_space<vmem>>, vector<198x512xf32>
    %4 = vector.shape_cast %0 : vector<2x33x198xf32> to vector<66x198xf32>
    %cst = arith.constant dense<0.000000e+00> : vector<66x512xf32>
    %5 = tpu.matmul %4, %2, %cst {dimension_numbers = #tpu.dot_dimension_numbers<[1], [0], [0], [1], [0, 0, 1, 1], [], []>} : vector<66x198xf32>, vector<198x512xf32>, vector<66x512xf32> -> vector<66x512xf32>
    %6 = vector.shape_cast %5 : vector<66x512xf32> to vector<2x33x512xf32>
    %7 = vector.shape_cast %1 : vector<2x33x198xf32> to vector<66x198xf32>
    %cst_9 = arith.constant dense<0.000000e+00> : vector<66x512xf32>
    %8 = tpu.matmul %7, %3, %cst_9 {dimension_numbers = #tpu.dot_dimension_numbers<[1], [0], [0], [1], [0, 0, 1, 1], [], []>} : vector<66x198xf32>, vector<198x512xf32>, vector<66x512xf32> -> vector<66x512xf32>
    %9 = vector.shape_cast %8 : vector<66x512xf32> to vector<2x33x512xf32>
    %10 = vector.extract_strided_slice %6 {offsets = [0, 0, 0], sizes = [2, 32, 256], strides = [1, 1, 1]} : vector<2x33x512xf32> to vector<2x32x256xf32>
    %11 = vector.extract_strided_slice %9 {offsets = [0, 0, 0], sizes = [2, 32, 256], strides = [1, 1, 1]} : vector<2x33x512xf32> to vector<2x32x256xf32>
    %12 = arith.addf %10, %11 : vector<2x32x256xf32>
    %13 = vector.extract_strided_slice %6 {offsets = [0, 1, 256], sizes = [2, 32, 256], strides = [1, 1, 1]} : vector<2x33x512xf32> to vector<2x32x256xf32>
    %14 = arith.addf %12, %13 : vector<2x32x256xf32>
    %15 = vector.extract_strided_slice %9 {offsets = [0, 1, 256], sizes = [2, 32, 256], strides = [1, 1, 1]} : vector<2x33x512xf32> to vector<2x32x256xf32>
    %16 = arith.addf %14, %15 : vector<2x32x256xf32>
    %cst_10 = arith.constant 0.000000e+00 : f32
    %17 = vector.broadcast %cst_10 : f32 to vector<2x32x256xf32>
    %18 = arith.cmpf ogt, %16, %17 : vector<2x32x256xf32>
    %cst_11 = arith.constant 2.000000e-01 : f32
    %19 = vector.broadcast %cst_11 : f32 to vector<2x32x256xf32>
    %20 = arith.mulf %19, %16 : vector<2x32x256xf32>
    %21 = arith.select %18, %16, %20 : vector<2x32x256xi1>, vector<2x32x256xf32>
    %c0_12 = arith.constant 0 : index
    %c0_13 = arith.constant 0 : index
    %22 = vector.load %arg5[%c0_12, %c0_13] : memref<68x64xf32, #tpu.memory_space<vmem>>, vector<68x64xf32>
    %cst_14 = arith.constant 0.000000e+00 : f32
    %23 = vector.broadcast %cst_14 : f32 to vector<2x32x8xf32>
    %24 = tpu.concatenate %23, %21, %23 in 2 : vector<2x32x8xf32>, vector<2x32x256xf32>, vector<2x32x8xf32> -> vector<2x32x272xf32>
    %25 = vector.shape_cast %24 : vector<2x32x272xf32> to vector<64x272xf32>
    %cst_15 = arith.constant dense<0.000000e+00> : vector<68x272xf32>
    %26 = tpu.matmul %22, %25, %cst_15 {dimension_numbers = #tpu.dot_dimension_numbers<[1], [0], [0], [1], [0, 0, 1, 1], [], []>} : vector<68x64xf32>, vector<64x272xf32>, vector<68x272xf32> -> vector<68x272xf32>
    %27 = vector.shape_cast %26 : vector<68x272xf32> to vector<2x2x17x272xf32>
    %28 = vector.extract_strided_slice %27 {offsets = [0, 0, 0, 0], sizes = [2, 1, 17, 272], strides = [1, 1, 1, 1]} : vector<2x2x17x272xf32> to vector<2x1x17x272xf32>
    %29 = vector.shape_cast %28 : vector<2x1x17x272xf32> to vector<2x17x272xf32>
    %30 = vector.extract_strided_slice %27 {offsets = [0, 1, 0, 0], sizes = [2, 1, 17, 272], strides = [1, 1, 1, 1]} : vector<2x2x17x272xf32> to vector<2x1x17x272xf32>
    %31 = vector.shape_cast %30 : vector<2x1x17x272xf32> to vector<2x17x272xf32>
    %c0_16 = arith.constant 0 : index
    %c0_17 = arith.constant 0 : index
    %32 = vector.load %arg6[%c0_16, %c0_17] : memref<272x512xf32, #tpu.memory_space<vmem>>, vector<272x512xf32>
    %c0_18 = arith.constant 0 : index
    %c0_19 = arith.constant 0 : index
    %33 = vector.load %arg7[%c0_18, %c0_19] : memref<272x512xf32, #tpu.memory_space<vmem>>, vector<272x512xf32>
    %34 = vector.shape_cast %29 : vector<2x17x272xf32> to vector<34x272xf32>
    %cst_20 = arith.constant dense<0.000000e+00> : vector<34x512xf32>
    %35 = tpu.matmul %34, %32, %cst_20 {dimension_numbers = #tpu.dot_dimension_numbers<[1], [0], [0], [1], [0, 0, 1, 1], [], []>} : vector<34x272xf32>, vector<272x512xf32>, vector<34x512xf32> -> vector<34x512xf32>
    %36 = vector.shape_cast %35 : vector<34x512xf32> to vector<2x17x512xf32>
    %37 = vector.shape_cast %31 : vector<2x17x272xf32> to vector<34x272xf32>
    %cst_21 = arith.constant dense<0.000000e+00> : vector<34x512xf32>
    %38 = tpu.matmul %37, %33, %cst_21 {dimension_numbers = #tpu.dot_dimension_numbers<[1], [0], [0], [1], [0, 0, 1, 1], [], []>} : vector<34x272xf32>, vector<272x512xf32>, vector<34x512xf32> -> vector<34x512xf32>
    %39 = vector.shape_cast %38 : vector<34x512xf32> to vector<2x17x512xf32>
    %40 = vector.extract_strided_slice %36 {offsets = [0, 0, 0], sizes = [2, 16, 256], strides = [1, 1, 1]} : vector<2x17x512xf32> to vector<2x16x256xf32>
    %41 = vector.extract_strided_slice %39 {offsets = [0, 0, 0], sizes = [2, 16, 256], strides = [1, 1, 1]} : vector<2x17x512xf32> to vector<2x16x256xf32>
    %42 = arith.addf %40, %41 : vector<2x16x256xf32>
    %43 = vector.extract_strided_slice %36 {offsets = [0, 1, 256], sizes = [2, 16, 256], strides = [1, 1, 1]} : vector<2x17x512xf32> to vector<2x16x256xf32>
    %44 = arith.addf %42, %43 : vector<2x16x256xf32>
    %45 = vector.extract_strided_slice %39 {offsets = [0, 1, 256], sizes = [2, 16, 256], strides = [1, 1, 1]} : vector<2x17x512xf32> to vector<2x16x256xf32>
    %46 = arith.addf %44, %45 : vector<2x16x256xf32>
    %c0_22 = arith.constant 0 : index
    %c0_23 = arith.constant 0 : index
    %47 = vector.load %arg8[%c0_22, %c0_23] : memref<16x256xf32, #tpu.memory_space<vmem>>, vector<16x256xf32>
    %c0_24 = arith.constant 0 : index
    %c0_25 = arith.constant 0 : index
    %48 = vector.load %arg9[%c0_24, %c0_25] : memref<16x256xf32, #tpu.memory_space<vmem>>, vector<16x256xf32>
    %cst_26 = arith.constant dense<0.000000e+00> : vector<2x16xf32>
    %49 = vector.multi_reduction <add>, %46, %cst_26 [2] : vector<2x16x256xf32> to vector<2x16xf32>
    %50 = vector.shape_cast %49 : vector<2x16xf32> to vector<2x16x1xf32>
    %cst_27 = arith.constant dense<0.000000e+00> : vector<2x1xf32>
    %51 = vector.multi_reduction <add>, %50, %cst_27 [1] : vector<2x16x1xf32> to vector<2x1xf32>
    %52 = vector.shape_cast %51 : vector<2x1xf32> to vector<2x1x1xf32>
    %cst_28 = arith.constant 2.44140625E-4 : f32
    %53 = vector.broadcast %cst_28 : f32 to vector<2x1x1xf32>
    %54 = arith.mulf %52, %53 : vector<2x1x1xf32>
    %55 = vector.broadcast %54 : vector<2x1x1xf32> to vector<2x16x256xf32>
    %56 = arith.subf %46, %55 : vector<2x16x256xf32>
    %57 = arith.mulf %56, %56 : vector<2x16x256xf32>
    %cst_29 = arith.constant dense<0.000000e+00> : vector<2x16xf32>
    %58 = vector.multi_reduction <add>, %57, %cst_29 [2] : vector<2x16x256xf32> to vector<2x16xf32>
    %59 = vector.shape_cast %58 : vector<2x16xf32> to vector<2x16x1xf32>
    %cst_30 = arith.constant dense<0.000000e+00> : vector<2x1xf32>
    %60 = vector.multi_reduction <add>, %59, %cst_30 [1] : vector<2x16x1xf32> to vector<2x1xf32>
    %61 = vector.shape_cast %60 : vector<2x1xf32> to vector<2x1x1xf32>
    %cst_31 = arith.constant 2.44140625E-4 : f32
    %62 = vector.broadcast %cst_31 : f32 to vector<2x1x1xf32>
    %63 = arith.mulf %61, %62 : vector<2x1x1xf32>
    %cst_32 = arith.constant 9.99999974E-6 : f32
    %64 = vector.broadcast %cst_32 : f32 to vector<2x1x1xf32>
    %65 = arith.addf %63, %64 : vector<2x1x1xf32>
    %66 = math.rsqrt %65 : vector<2x1x1xf32>
    %67 = vector.broadcast %66 : vector<2x1x1xf32> to vector<2x16x256xf32>
    %68 = arith.mulf %56, %67 : vector<2x16x256xf32>
    %69 = vector.shape_cast %47 : vector<16x256xf32> to vector<1x16x256xf32>
    %70 = vector.broadcast %69 : vector<1x16x256xf32> to vector<2x16x256xf32>
    %71 = arith.mulf %68, %70 : vector<2x16x256xf32>
    %72 = vector.shape_cast %48 : vector<16x256xf32> to vector<1x16x256xf32>
    %73 = vector.broadcast %72 : vector<1x16x256xf32> to vector<2x16x256xf32>
    %74 = arith.addf %71, %73 : vector<2x16x256xf32>
    %cst_33 = arith.constant 0.000000e+00 : f32
    %75 = vector.broadcast %cst_33 : f32 to vector<2x16x256xf32>
    %76 = arith.cmpf ogt, %74, %75 : vector<2x16x256xf32>
    %cst_34 = arith.constant 2.000000e-01 : f32
    %77 = vector.broadcast %cst_34 : f32 to vector<2x16x256xf32>
    %78 = arith.mulf %77, %74 : vector<2x16x256xf32>
    %79 = arith.select %76, %74, %78 : vector<2x16x256xi1>, vector<2x16x256xf32>
    %c0_35 = arith.constant 0 : index
    %c0_36 = arith.constant 0 : index
    %80 = vector.load %arg10[%c0_35, %c0_36] : memref<36x32xf32, #tpu.memory_space<vmem>>, vector<36x32xf32>
    %cst_37 = arith.constant 0.000000e+00 : f32
    %81 = vector.broadcast %cst_37 : f32 to vector<2x16x16xf32>
    %82 = tpu.concatenate %81, %79, %81 in 2 : vector<2x16x16xf32>, vector<2x16x256xf32>, vector<2x16x16xf32> -> vector<2x16x288xf32>
    %83 = vector.shape_cast %82 : vector<2x16x288xf32> to vector<32x288xf32>
    %cst_38 = arith.constant dense<0.000000e+00> : vector<36x288xf32>
    %84 = tpu.matmul %80, %83, %cst_38 {dimension_numbers = #tpu.dot_dimension_numbers<[1], [0], [0], [1], [0, 0, 1, 1], [], []>} : vector<36x32xf32>, vector<32x288xf32>, vector<36x288xf32> -> vector<36x288xf32>
    %85 = vector.shape_cast %84 : vector<36x288xf32> to vector<2x2x9x288xf32>
    %86 = vector.extract_strided_slice %85 {offsets = [0, 0, 0, 0], sizes = [2, 1, 9, 288], strides = [1, 1, 1, 1]} : vector<2x2x9x288xf32> to vector<2x1x9x288xf32>
    %87 = vector.shape_cast %86 : vector<2x1x9x288xf32> to vector<2x9x288xf32>
    %88 = vector.extract_strided_slice %85 {offsets = [0, 1, 0, 0], sizes = [2, 1, 9, 288], strides = [1, 1, 1, 1]} : vector<2x2x9x288xf32> to vector<2x1x9x288xf32>
    %89 = vector.shape_cast %88 : vector<2x1x9x288xf32> to vector<2x9x288xf32>
    %c0_39 = arith.constant 0 : index
    %c0_40 = arith.constant 0 : index
    %90 = vector.load %arg11[%c0_39, %c0_40] : memref<288x512xf32, #tpu.memory_space<vmem>>, vector<288x512xf32>
    %c0_41 = arith.constant 0 : index
    %c0_42 = arith.constant 0 : index
    %91 = vector.load %arg12[%c0_41, %c0_42] : memref<288x512xf32, #tpu.memory_space<vmem>>, vector<288x512xf32>
    %92 = vector.shape_cast %87 : vector<2x9x288xf32> to vector<18x288xf32>
    %cst_43 = arith.constant dense<0.000000e+00> : vector<18x512xf32>
    %93 = tpu.matmul %92, %90, %cst_43 {dimension_numbers = #tpu.dot_dimension_numbers<[1], [0], [0], [1], [0, 0, 1, 1], [], []>} : vector<18x288xf32>, vector<288x512xf32>, vector<18x512xf32> -> vector<18x512xf32>
    %94 = vector.shape_cast %93 : vector<18x512xf32> to vector<2x9x512xf32>
    %95 = vector.shape_cast %89 : vector<2x9x288xf32> to vector<18x288xf32>
    %cst_44 = arith.constant dense<0.000000e+00> : vector<18x512xf32>
    %96 = tpu.matmul %95, %91, %cst_44 {dimension_numbers = #tpu.dot_dimension_numbers<[1], [0], [0], [1], [0, 0, 1, 1], [], []>} : vector<18x288xf32>, vector<288x512xf32>, vector<18x512xf32> -> vector<18x512xf32>
    %97 = vector.shape_cast %96 : vector<18x512xf32> to vector<2x9x512xf32>
    %98 = vector.extract_strided_slice %94 {offsets = [0, 0, 0], sizes = [2, 8, 256], strides = [1, 1, 1]} : vector<2x9x512xf32> to vector<2x8x256xf32>
    %99 = vector.extract_strided_slice %97 {offsets = [0, 0, 0], sizes = [2, 8, 256], strides = [1, 1, 1]} : vector<2x9x512xf32> to vector<2x8x256xf32>
    %100 = arith.addf %98, %99 : vector<2x8x256xf32>
    %101 = vector.extract_strided_slice %94 {offsets = [0, 1, 256], sizes = [2, 8, 256], strides = [1, 1, 1]} : vector<2x9x512xf32> to vector<2x8x256xf32>
    %102 = arith.addf %100, %101 : vector<2x8x256xf32>
    %103 = vector.extract_strided_slice %97 {offsets = [0, 1, 256], sizes = [2, 8, 256], strides = [1, 1, 1]} : vector<2x9x512xf32> to vector<2x8x256xf32>
    %104 = arith.addf %102, %103 : vector<2x8x256xf32>
    %c0_45 = arith.constant 0 : index
    %c0_46 = arith.constant 0 : index
    %105 = vector.load %arg13[%c0_45, %c0_46] : memref<8x256xf32, #tpu.memory_space<vmem>>, vector<8x256xf32>
    %c0_47 = arith.constant 0 : index
    %c0_48 = arith.constant 0 : index
    %106 = vector.load %arg14[%c0_47, %c0_48] : memref<8x256xf32, #tpu.memory_space<vmem>>, vector<8x256xf32>
    %cst_49 = arith.constant dense<0.000000e+00> : vector<2x8xf32>
    %107 = vector.multi_reduction <add>, %104, %cst_49 [2] : vector<2x8x256xf32> to vector<2x8xf32>
    %108 = vector.shape_cast %107 : vector<2x8xf32> to vector<2x8x1xf32>
    %cst_50 = arith.constant dense<0.000000e+00> : vector<2x1xf32>
    %109 = vector.multi_reduction <add>, %108, %cst_50 [1] : vector<2x8x1xf32> to vector<2x1xf32>
    %110 = vector.shape_cast %109 : vector<2x1xf32> to vector<2x1x1xf32>
    %cst_51 = arith.constant 4.8828125E-4 : f32
    %111 = vector.broadcast %cst_51 : f32 to vector<2x1x1xf32>
    %112 = arith.mulf %110, %111 : vector<2x1x1xf32>
    %113 = vector.broadcast %112 : vector<2x1x1xf32> to vector<2x8x256xf32>
    %114 = arith.subf %104, %113 : vector<2x8x256xf32>
    %115 = arith.mulf %114, %114 : vector<2x8x256xf32>
    %cst_52 = arith.constant dense<0.000000e+00> : vector<2x8xf32>
    %116 = vector.multi_reduction <add>, %115, %cst_52 [2] : vector<2x8x256xf32> to vector<2x8xf32>
    %117 = vector.shape_cast %116 : vector<2x8xf32> to vector<2x8x1xf32>
    %cst_53 = arith.constant dense<0.000000e+00> : vector<2x1xf32>
    %118 = vector.multi_reduction <add>, %117, %cst_53 [1] : vector<2x8x1xf32> to vector<2x1xf32>
    %119 = vector.shape_cast %118 : vector<2x1xf32> to vector<2x1x1xf32>
    %cst_54 = arith.constant 4.8828125E-4 : f32
    %120 = vector.broadcast %cst_54 : f32 to vector<2x1x1xf32>
    %121 = arith.mulf %119, %120 : vector<2x1x1xf32>
    %cst_55 = arith.constant 9.99999974E-6 : f32
    %122 = vector.broadcast %cst_55 : f32 to vector<2x1x1xf32>
    %123 = arith.addf %121, %122 : vector<2x1x1xf32>
    %124 = math.rsqrt %123 : vector<2x1x1xf32>
    %125 = vector.broadcast %124 : vector<2x1x1xf32> to vector<2x8x256xf32>
    %126 = arith.mulf %114, %125 : vector<2x8x256xf32>
    %127 = vector.shape_cast %105 : vector<8x256xf32> to vector<1x8x256xf32>
    %128 = vector.broadcast %127 : vector<1x8x256xf32> to vector<2x8x256xf32>
    %129 = arith.mulf %126, %128 : vector<2x8x256xf32>
    %130 = vector.shape_cast %106 : vector<8x256xf32> to vector<1x8x256xf32>
    %131 = vector.broadcast %130 : vector<1x8x256xf32> to vector<2x8x256xf32>
    %132 = arith.addf %129, %131 : vector<2x8x256xf32>
    %cst_56 = arith.constant 0.000000e+00 : f32
    %133 = vector.broadcast %cst_56 : f32 to vector<2x8x256xf32>
    %134 = arith.cmpf ogt, %132, %133 : vector<2x8x256xf32>
    %cst_57 = arith.constant 2.000000e-01 : f32
    %135 = vector.broadcast %cst_57 : f32 to vector<2x8x256xf32>
    %136 = arith.mulf %135, %132 : vector<2x8x256xf32>
    %137 = arith.select %134, %132, %136 : vector<2x8x256xi1>, vector<2x8x256xf32>
    %c0_58 = arith.constant 0 : index
    %c0_59 = arith.constant 0 : index
    %138 = vector.load %arg15[%c0_58, %c0_59] : memref<20x16xf32, #tpu.memory_space<vmem>>, vector<20x16xf32>
    %cst_60 = arith.constant 0.000000e+00 : f32
    %139 = vector.broadcast %cst_60 : f32 to vector<2x8x32xf32>
    %140 = tpu.concatenate %139, %137, %139 in 2 : vector<2x8x32xf32>, vector<2x8x256xf32>, vector<2x8x32xf32> -> vector<2x8x320xf32>
    %141 = vector.shape_cast %140 : vector<2x8x320xf32> to vector<16x320xf32>
    %cst_61 = arith.constant dense<0.000000e+00> : vector<20x320xf32>
    %142 = tpu.matmul %138, %141, %cst_61 {dimension_numbers = #tpu.dot_dimension_numbers<[1], [0], [0], [1], [0, 0, 1, 1], [], []>} : vector<20x16xf32>, vector<16x320xf32>, vector<20x320xf32> -> vector<20x320xf32>
    %143 = vector.shape_cast %142 : vector<20x320xf32> to vector<2x2x5x320xf32>
    %144 = vector.extract_strided_slice %143 {offsets = [0, 0, 0, 0], sizes = [2, 1, 5, 320], strides = [1, 1, 1, 1]} : vector<2x2x5x320xf32> to vector<2x1x5x320xf32>
    %145 = vector.shape_cast %144 : vector<2x1x5x320xf32> to vector<2x5x320xf32>
    %146 = vector.extract_strided_slice %143 {offsets = [0, 1, 0, 0], sizes = [2, 1, 5, 320], strides = [1, 1, 1, 1]} : vector<2x2x5x320xf32> to vector<2x1x5x320xf32>
    %147 = vector.shape_cast %146 : vector<2x1x5x320xf32> to vector<2x5x320xf32>
    %c0_62 = arith.constant 0 : index
    %c0_63 = arith.constant 0 : index
    %148 = vector.load %arg16[%c0_62, %c0_63] : memref<320x512xf32, #tpu.memory_space<vmem>>, vector<320x512xf32>
    %c0_64 = arith.constant 0 : index
    %c0_65 = arith.constant 0 : index
    %149 = vector.load %arg17[%c0_64, %c0_65] : memref<320x512xf32, #tpu.memory_space<vmem>>, vector<320x512xf32>
    %150 = vector.shape_cast %145 : vector<2x5x320xf32> to vector<10x320xf32>
    %cst_66 = arith.constant dense<0.000000e+00> : vector<10x512xf32>
    %151 = tpu.matmul %150, %148, %cst_66 {dimension_numbers = #tpu.dot_dimension_numbers<[1], [0], [0], [1], [0, 0, 1, 1], [], []>} : vector<10x320xf32>, vector<320x512xf32>, vector<10x512xf32> -> vector<10x512xf32>
    %152 = vector.shape_cast %151 : vector<10x512xf32> to vector<2x5x512xf32>
    %153 = vector.shape_cast %147 : vector<2x5x320xf32> to vector<10x320xf32>
    %cst_67 = arith.constant dense<0.000000e+00> : vector<10x512xf32>
    %154 = tpu.matmul %153, %149, %cst_67 {dimension_numbers = #tpu.dot_dimension_numbers<[1], [0], [0], [1], [0, 0, 1, 1], [], []>} : vector<10x320xf32>, vector<320x512xf32>, vector<10x512xf32> -> vector<10x512xf32>
    %155 = vector.shape_cast %154 : vector<10x512xf32> to vector<2x5x512xf32>
    %156 = vector.extract_strided_slice %152 {offsets = [0, 0, 0], sizes = [2, 4, 256], strides = [1, 1, 1]} : vector<2x5x512xf32> to vector<2x4x256xf32>
    %157 = vector.extract_strided_slice %155 {offsets = [0, 0, 0], sizes = [2, 4, 256], strides = [1, 1, 1]} : vector<2x5x512xf32> to vector<2x4x256xf32>
    %158 = arith.addf %156, %157 : vector<2x4x256xf32>
    %159 = vector.extract_strided_slice %152 {offsets = [0, 1, 256], sizes = [2, 4, 256], strides = [1, 1, 1]} : vector<2x5x512xf32> to vector<2x4x256xf32>
    %160 = arith.addf %158, %159 : vector<2x4x256xf32>
    %161 = vector.extract_strided_slice %155 {offsets = [0, 1, 256], sizes = [2, 4, 256], strides = [1, 1, 1]} : vector<2x5x512xf32> to vector<2x4x256xf32>
    %162 = arith.addf %160, %161 : vector<2x4x256xf32>
    %c0_68 = arith.constant 0 : index
    %c0_69 = arith.constant 0 : index
    %163 = vector.load %arg18[%c0_68, %c0_69] : memref<4x256xf32, #tpu.memory_space<vmem>>, vector<4x256xf32>
    %c0_70 = arith.constant 0 : index
    %c0_71 = arith.constant 0 : index
    %164 = vector.load %arg19[%c0_70, %c0_71] : memref<4x256xf32, #tpu.memory_space<vmem>>, vector<4x256xf32>
    %cst_72 = arith.constant dense<0.000000e+00> : vector<2x4xf32>
    %165 = vector.multi_reduction <add>, %162, %cst_72 [2] : vector<2x4x256xf32> to vector<2x4xf32>
    %166 = vector.shape_cast %165 : vector<2x4xf32> to vector<2x4x1xf32>
    %cst_73 = arith.constant dense<0.000000e+00> : vector<2x1xf32>
    %167 = vector.multi_reduction <add>, %166, %cst_73 [1] : vector<2x4x1xf32> to vector<2x1xf32>
    %168 = vector.shape_cast %167 : vector<2x1xf32> to vector<2x1x1xf32>
    %cst_74 = arith.constant 9.765625E-4 : f32
    %169 = vector.broadcast %cst_74 : f32 to vector<2x1x1xf32>
    %170 = arith.mulf %168, %169 : vector<2x1x1xf32>
    %171 = vector.broadcast %170 : vector<2x1x1xf32> to vector<2x4x256xf32>
    %172 = arith.subf %162, %171 : vector<2x4x256xf32>
    %173 = arith.mulf %172, %172 : vector<2x4x256xf32>
    %cst_75 = arith.constant dense<0.000000e+00> : vector<2x4xf32>
    %174 = vector.multi_reduction <add>, %173, %cst_75 [2] : vector<2x4x256xf32> to vector<2x4xf32>
    %175 = vector.shape_cast %174 : vector<2x4xf32> to vector<2x4x1xf32>
    %cst_76 = arith.constant dense<0.000000e+00> : vector<2x1xf32>
    %176 = vector.multi_reduction <add>, %175, %cst_76 [1] : vector<2x4x1xf32> to vector<2x1xf32>
    %177 = vector.shape_cast %176 : vector<2x1xf32> to vector<2x1x1xf32>
    %cst_77 = arith.constant 9.765625E-4 : f32
    %178 = vector.broadcast %cst_77 : f32 to vector<2x1x1xf32>
    %179 = arith.mulf %177, %178 : vector<2x1x1xf32>
    %cst_78 = arith.constant 9.99999974E-6 : f32
    %180 = vector.broadcast %cst_78 : f32 to vector<2x1x1xf32>
    %181 = arith.addf %179, %180 : vector<2x1x1xf32>
    %182 = math.rsqrt %181 : vector<2x1x1xf32>
    %183 = vector.broadcast %182 : vector<2x1x1xf32> to vector<2x4x256xf32>
    %184 = arith.mulf %172, %183 : vector<2x4x256xf32>
    %185 = vector.shape_cast %163 : vector<4x256xf32> to vector<1x4x256xf32>
    %186 = vector.broadcast %185 : vector<1x4x256xf32> to vector<2x4x256xf32>
    %187 = arith.mulf %184, %186 : vector<2x4x256xf32>
    %188 = vector.shape_cast %164 : vector<4x256xf32> to vector<1x4x256xf32>
    %189 = vector.broadcast %188 : vector<1x4x256xf32> to vector<2x4x256xf32>
    %190 = arith.addf %187, %189 : vector<2x4x256xf32>
    %cst_79 = arith.constant 0.000000e+00 : f32
    %191 = vector.broadcast %cst_79 : f32 to vector<2x4x256xf32>
    %192 = arith.cmpf ogt, %190, %191 : vector<2x4x256xf32>
    %cst_80 = arith.constant 2.000000e-01 : f32
    %193 = vector.broadcast %cst_80 : f32 to vector<2x4x256xf32>
    %194 = arith.mulf %193, %190 : vector<2x4x256xf32>
    %195 = arith.select %192, %190, %194 : vector<2x4x256xi1>, vector<2x4x256xf32>
    %c0_81 = arith.constant 0 : index
    %c0_82 = arith.constant 0 : index
    %196 = vector.load %arg20[%c0_81, %c0_82] : memref<4x256xf32, #tpu.memory_space<vmem>>, vector<4x256xf32>
    %197 = vector.shape_cast %196 : vector<4x256xf32> to vector<1x4x256xf32>
    %198 = vector.broadcast %197 : vector<1x4x256xf32> to vector<2x4x256xf32>
    %199 = arith.mulf %195, %198 : vector<2x4x256xf32>
    %cst_83 = arith.constant dense<0.000000e+00> : vector<2x4xf32>
    %200 = vector.multi_reduction <add>, %199, %cst_83 [2] : vector<2x4x256xf32> to vector<2x4xf32>
    %201 = vector.shape_cast %200 : vector<2x4xf32> to vector<2x4x1xf32>
    %cst_84 = arith.constant dense<0.000000e+00> : vector<2x1xf32>
    %202 = vector.multi_reduction <add>, %201, %cst_84 [1] : vector<2x4x1xf32> to vector<2x1xf32>
    %203 = vector.shape_cast %202 : vector<2x1xf32> to vector<2x1x1xf32>
    %c0_85 = arith.constant 0 : index
    %c0_86 = arith.constant 0 : index
    %c0_87 = arith.constant 0 : index
    %204 = vector.load %arg21[%c0_85, %c0_86, %c0_87] : memref<2x1x1xf32, #tpu.memory_space<vmem>>, vector<2x1x1xf32>
    tpu.vector_store %arg21[%c0_85, %c0_86, %c0_87], %203 {strides = array<i32>} : memref<2x1x1xf32, #tpu.memory_space<vmem>>, vector<2x1x1xf32>,
    return
  }
  func.func @transform_0(%arg0: i32) -> (i32, i32, i32) {
    %c0_i32 = arith.constant 0 : i32
    %c0_i32_0 = arith.constant 0 : i32
    %c0_i32_1 = arith.constant 0 : i32
    return %arg0, %c0_i32, %c0_i32_0 : i32, i32, i32
  }
  func.func @transform_1(%arg0: i32) -> (i32, i32, i32) {
    %c0_i32 = arith.constant 0 : i32
    %c0_i32_0 = arith.constant 0 : i32
    %c0_i32_1 = arith.constant 0 : i32
    return %arg0, %c0_i32, %c0_i32_0 : i32, i32, i32
  }
  func.func @transform_2(%arg0: i32) -> (i32, i32) {
    %c0_i32 = arith.constant 0 : i32
    %c0_i32_0 = arith.constant 0 : i32
    %c0_i32_1 = arith.constant 0 : i32
    return %c0_i32, %c0_i32_0 : i32, i32
  }
  func.func @transform_3(%arg0: i32) -> (i32, i32) {
    %c0_i32 = arith.constant 0 : i32
    %c0_i32_0 = arith.constant 0 : i32
    %c0_i32_1 = arith.constant 0 : i32
    return %c0_i32, %c0_i32_0 : i32, i32
  }
  func.func @transform_4(%arg0: i32) -> (i32, i32) {
    %c0_i32 = arith.constant 0 : i32
    %c0_i32_0 = arith.constant 0 : i32
    %c0_i32_1 = arith.constant 0 : i32
    return %c0_i32, %c0_i32_0 : i32, i32
  }
  func.func @transform_5(%arg0: i32) -> (i32, i32) {
    %c0_i32 = arith.constant 0 : i32
    %c0_i32_0 = arith.constant 0 : i32
    %c0_i32_1 = arith.constant 0 : i32
    return %c0_i32, %c0_i32_0 : i32, i32
  }
  func.func @transform_6(%arg0: i32) -> (i32, i32) {
    %c0_i32 = arith.constant 0 : i32
    %c0_i32_0 = arith.constant 0 : i32
    %c0_i32_1 = arith.constant 0 : i32
    return %c0_i32, %c0_i32_0 : i32, i32
  }
  func.func @transform_7(%arg0: i32) -> (i32, i32) {
    %c0_i32 = arith.constant 0 : i32
    %c0_i32_0 = arith.constant 0 : i32
    %c0_i32_1 = arith.constant 0 : i32
    return %c0_i32, %c0_i32_0 : i32, i32
  }
  func.func @transform_8(%arg0: i32) -> (i32, i32) {
    %c0_i32 = arith.constant 0 : i32
    %c0_i32_0 = arith.constant 0 : i32
    %c0_i32_1 = arith.constant 0 : i32
    return %c0_i32, %c0_i32_0 : i32, i32
  }
  func.func @transform_9(%arg0: i32) -> (i32, i32) {
    %c0_i32 = arith.constant 0 : i32
    %c0_i32_0 = arith.constant 0 : i32
    %c0_i32_1 = arith.constant 0 : i32
    return %c0_i32, %c0_i32_0 : i32, i32
  }
  func.func @transform_10(%arg0: i32) -> (i32, i32) {
    %c0_i32 = arith.constant 0 : i32
    %c0_i32_0 = arith.constant 0 : i32
    %c0_i32_1 = arith.constant 0 : i32
    return %c0_i32, %c0_i32_0 : i32, i32
  }
  func.func @transform_11(%arg0: i32) -> (i32, i32) {
    %c0_i32 = arith.constant 0 : i32
    %c0_i32_0 = arith.constant 0 : i32
    %c0_i32_1 = arith.constant 0 : i32
    return %c0_i32, %c0_i32_0 : i32, i32
  }
  func.func @transform_12(%arg0: i32) -> (i32, i32) {
    %c0_i32 = arith.constant 0 : i32
    %c0_i32_0 = arith.constant 0 : i32
    %c0_i32_1 = arith.constant 0 : i32
    return %c0_i32, %c0_i32_0 : i32, i32
  }
  func.func @transform_13(%arg0: i32) -> (i32, i32) {
    %c0_i32 = arith.constant 0 : i32
    %c0_i32_0 = arith.constant 0 : i32
    %c0_i32_1 = arith.constant 0 : i32
    return %c0_i32, %c0_i32_0 : i32, i32
  }
  func.func @transform_14(%arg0: i32) -> (i32, i32) {
    %c0_i32 = arith.constant 0 : i32
    %c0_i32_0 = arith.constant 0 : i32
    %c0_i32_1 = arith.constant 0 : i32
    return %c0_i32, %c0_i32_0 : i32, i32
  }
  func.func @transform_15(%arg0: i32) -> (i32, i32) {
    %c0_i32 = arith.constant 0 : i32
    %c0_i32_0 = arith.constant 0 : i32
    %c0_i32_1 = arith.constant 0 : i32
    return %c0_i32, %c0_i32_0 : i32, i32
  }
  func.func @transform_16(%arg0: i32) -> (i32, i32) {
    %c0_i32 = arith.constant 0 : i32
    %c0_i32_0 = arith.constant 0 : i32
    %c0_i32_1 = arith.constant 0 : i32
    return %c0_i32, %c0_i32_0 : i32, i32
  }
  func.func @transform_17(%arg0: i32) -> (i32, i32) {
    %c0_i32 = arith.constant 0 : i32
    %c0_i32_0 = arith.constant 0 : i32
    %c0_i32_1 = arith.constant 0 : i32
    return %c0_i32, %c0_i32_0 : i32, i32
  }
  func.func @transform_18(%arg0: i32) -> (i32, i32) {
    %c0_i32 = arith.constant 0 : i32
    %c0_i32_0 = arith.constant 0 : i32
    %c0_i32_1 = arith.constant 0 : i32
    return %c0_i32, %c0_i32_0 : i32, i32
  }
  func.func @transform_19(%arg0: i32) -> (i32, i32) {
    %c0_i32 = arith.constant 0 : i32
    %c0_i32_0 = arith.constant 0 : i32
    %c0_i32_1 = arith.constant 0 : i32
    return %c0_i32, %c0_i32_0 : i32, i32
  }
  func.func @transform_20(%arg0: i32) -> (i32, i32, i32) {
    %c0_i32 = arith.constant 0 : i32
    %c0_i32_0 = arith.constant 0 : i32
    %c0_i32_1 = arith.constant 0 : i32
    return %arg0, %c0_i32, %c0_i32_0 : i32, i32, i32
  }
}

</mosaic_0001>

<bundles_post_ra>
// kernel: netlocalD_wgangp_forward.1
= control target key start
LH: loop header
LB: loop body
LE: loop exit
PB: predicated region body
PF: predicated region fallthrough
CT: control target
= control target key end

     0   :  { %s22862_s0 = inlined_call_operand.vmem [shape: f32[2,33,198], index: 0, kind: input, shape index: {}]   ;;  %s22863_s1 = inlined_call_operand.vmem [shape: f32[2,33,198], index: 1, kind: input, shape index: {}]   ;;  %s22864_s2 = inlined_call_operand.hbm [shape: f32[198,512], index: 2, kind: input, shape index: {}]   ;;  %s22865_s3 = inlined_call_operand.hbm [shape: f32[198,512], index: 3, kind: input, shape index: {}]   ;;  %s22866_s4 = inlined_call_operand.vmem [shape: f32[68,64], index: 4, kind: input, shape index: {}]   ;;  %s22867_s5 = inlined_call_operand.hbm [shape: f32[272,512], index: 5, kind: input, shape index: {}]   ;;  %s22868_s6 = inlined_call_operand.hbm [shape: f32[272,512], index: 6, kind: input, shape index: {}]   ;;  %s22869_s7 = inlined_call_operand.vmem [shape: f32[16,256], index: 7, kind: input, shape index: {}]   ;;  %s22870_s8 = inlined_call_operand.vmem [shape: f32[16,256], index: 8, kind: input, shape index: {}]   ;;  %s22871_s9 = inlined_call_operand.vmem [shape: f32[36,32], index: 9, kind: input, shape index: {}]   ;;  %s22872_s10 = inlined_call_operand.vmem [shape: f32[288,512], index: 10, kind: input, shape index: {}]   ;;  %s22873_s11 = inlined_call_operand.hbm [shape: f32[288,512], index: 11, kind: input, shape index: {}]   ;;  %s22874_s12 = inlined_call_operand.vmem [shape: f32[8,256], index: 12, kind: input, shape index: {}]   ;;  %s22875_s13 = inlined_call_operand.vmem [shape: f32[8,256], index: 13, kind: input, shape index: {}]   ;;  %s22876_s14 = inlined_call_operand.vmem [shape: f32[20,16], index: 14, kind: input, shape index: {}]   ;;  %s22877_s15 = inlined_call_operand.vmem [shape: f32[320,512], index: 15, kind: input, shape index: {}]   ;;  %s22878_s16 = inlined_call_operand.vmem [shape: f32[320,512], index: 16, kind: input, shape index: {}]   ;;  %s22879_s17 = inlined_call_operand.vmem [shape: f32[4,256], index: 17, kind: input, shape index: {}]   ;;  %s22880_s18 = inlined_call_operand.vmem [shape: f32[4,256], index: 18, kind: input, shape index: {}]   ;;  %s22881_s19 = inlined_call_operand.vmem [shape: f32[4,256], index: 19, kind: input, shape index: {}]   ;;  %s22882_s20 = inlined_call_operand.vmem [shape: f32[2,1,1], index: 20, kind: output, shape index: {}]  }
   0x1   :  { %23050 = sst [smem:[#allocation92_spill]] %s22862_s0 }
   0x2   :  { %23051 = sst [smem:[#allocation93_spill]] %s22863_s1 }
   0x3   :  { %23052 = sst [smem:[#allocation94_spill]] %s22864_s2 }
   0x4   :  { %23053 = sst [smem:[#allocation95_spill]] %s22865_s3 }
   0x5   :  { %23054 = sst [smem:[#allocation96_spill]] %s22866_s4 }
   0x6   :  { %25 = vsyncpa [#allocation3], 0 }
   0x7   :  { %26 = vsyncpa [#allocation5], 0 }
   0x8   :  { %27 = vsyncpa [#allocation8], 0  ;;  %s16402_s1 = smov [#allocation4]   ;;  %s16403_s23 = smov [#allocation7]  }
   0x9   :  { %s49_s22 = sshll.u32 %s16402_s1, 4  ;;  %s75_s24 = sshll.u32 %s16403_s23, 4  ;;  %s50_s22 = int_to_ptr.vmem [resolvable:$true] %s49_s22  ;;  %s76_s24 = int_to_ptr.vmem [resolvable:$true] %s75_s24 }
   0xa   :  { %s16304_s2 = scalar_lea.vmem %s50_s22, 12800  ;;  %p16309_p1 = scmp.lt.s32.totalorder %s50_s22, %s50_s22 }
   0xb   :  { %p16305_p0 = scmp.ne.s32.totalorder %s50_s22, %s16304_s2  ;;  %p16310_p2 = scmp.lt.s32.totalorder %s16304_s2, %s16304_s2 }
   0xd   :  { %p16311_p3 = por %p16310_p2, %p16309_p1 }
   0xf   :  { %p16312_p4 = pnand %p16311_p3, %p16305_p0 }
  0x11   :  { %16315 = shalt.err (!%p16312_p4)
}
  0x12   :  { %s16404_s25 = smov 512   ;;  %s16405_s3 = smov 32  }
  0x13   :  { %s23055_s28 = sld [smem:[#allocation95_spill]]  ;;  %s16324_s4 = scalar_lea.vmem %s76_s24, 17408 }
  0x14   :  { %p16325_p5 = scmp.ne.s32.totalorder %s76_s24, %s16324_s4  ;;  %p16329_p6 = scmp.lt.s32.totalorder %s76_s24, %s76_s24 }
  0x15   :  { %p16330_p7 = scmp.lt.s32.totalorder %s16324_s4, %s16324_s4 }
  0x17   :  { %p16331_p8 = por %p16330_p7, %p16329_p6 }
  0x19   :  { %55 = dma.hbm_to_vmem [thread:$0]  %s23055_s28, 12800, %s50_s22, [#allocation5], %s16404_s25, %s16404_s25, %s16405_s3  }
  0x1a   :  { %p16332_p9 = pnand %p16331_p8, %p16325_p5 }
  0x1c   :  { %16335 = shalt.err (!%p16332_p9)
}
  0x1d   :  { %81 = dma.hbm_to_vmem [thread:$0]  %s22868_s6, 17408, %s76_s24, [#allocation8], %s16404_s25, %s16404_s25, %s16405_s3  }
  0x1e   :  { %s16406_s0 = smov [#allocation2]   ;;  %s16407_s1 = smov [#allocation6]  }
  0x1f   :  { %s37_s21 = sshll.u32 %s16406_s0, 4  ;;  %s63_s23 = sshll.u32 %s16407_s1, 4  ;;  %s38_s21 = int_to_ptr.vmem [resolvable:$true] %s37_s21  ;;  %s64_s23 = int_to_ptr.vmem [resolvable:$true] %s63_s23 }
  0x20   :  { %s16344_s22 = scalar_lea.vmem %s38_s21, 12800  ;;  %p16349_p11 = scmp.lt.s32.totalorder %s38_s21, %s38_s21 }
  0x21   :  { %p16345_p10 = scmp.ne.s32.totalorder %s38_s21, %s16344_s22  ;;  %p16350_p12 = scmp.lt.s32.totalorder %s16344_s22, %s16344_s22 }
  0x23   :  { %p16351_p13 = por %p16350_p12, %p16349_p11 }
  0x25   :  { %p16352_p0 = pnand %p16351_p13, %p16345_p10 }
  0x27   :  { %16355 = shalt.err (!%p16352_p0)
}
  0x28   :  { %s23056_s27 = sld [smem:[#allocation94_spill]]  ;;  %s16364_s6 = scalar_lea.vmem %s64_s23, 17408 }
  0x29   :  { %p16365_p1 = scmp.ne.s32.totalorder %s64_s23, %s16364_s6  ;;  %p16369_p2 = scmp.lt.s32.totalorder %s64_s23, %s64_s23 }
  0x2a   :  { %p16370_p3 = scmp.lt.s32.totalorder %s16364_s6, %s16364_s6 }
  0x2c   :  { %p16371_p4 = por %p16370_p3, %p16369_p2 }
  0x2e   :  { %43 = dma.hbm_to_vmem [thread:$0]  %s23056_s27, 12800, %s38_s21, [#allocation3], %s16404_s25, %s16404_s25, %s16405_s3  }
  0x2f   :  { %p16372_p5 = pnand %p16371_p4, %p16365_p1 }
  0x31   :  { %16375 = shalt.err (!%p16372_p5)
}
  0x32   :  { %69 = dma.hbm_to_vmem [thread:$0]  %s22867_s5, 17408, %s64_s23, [#allocation5], %s16404_s25, %s16404_s25, %s16405_s3  }
  0x33   :  { %s16408_s4 = smov [#allocation9]  }
  0x34   :  { %s95_s29 = sshll.u32 %s16408_s4, 4  ;;  %s96_s29 = int_to_ptr.vmem [resolvable:$true] %s95_s29 }
  0x35   :  { %s16384_s30 = scalar_lea.vmem %s96_s29, 18432  ;;  %p16389_p7 = scmp.lt.s32.totalorder %s96_s29, %s96_s29 }
  0x36   :  { %p16385_p6 = scmp.ne.s32.totalorder %s96_s29, %s16384_s30  ;;  %p16390_p8 = scmp.lt.s32.totalorder %s16384_s30, %s16384_s30 }
  0x38   :  { %p16391_p9 = por %p16390_p8, %p16389_p7 }
  0x3a   :  { %p16392_p10 = pnand %p16391_p9, %p16385_p6 }
  0x3c   :  { %16395 = shalt.err (!%p16392_p10)
}
  0x3d   :  { %101 = dma.hbm_to_vmem [thread:$0]  %s22873_s11, 18432, %s96_s29, [#allocation8], %s16404_s25, %s16404_s25, %s16405_s3  }
  0x3e   :  { %16396 = dma.done.wait [#allocation3], 12800  }
  0x3f   :  { %16397 = vsyncadd [#allocation3], 4294954496 }
  0x40   :  { %16398 = dma.done.wait [#allocation5], 30208  }
  0x41   :  { %16399 = vsyncadd [#allocation5], 4294937088 }
  0x42   :  { %16400 = dma.done.wait [#allocation8], 35840  }
  0x43   :  { %16401 = vsyncadd [#allocation8], 4294931456  ;;  %v234_v0 = vld [vmem:[#allocation2 + $0x1e8] sm:$0xff]  ;;  %v236_v1 = vld [vmem:[#allocation2 + $0x1f8] sm:$0xff]  ;;  %v16409_v52 = vmov 1966171168   ;;  %v398_v54 = vlaneseq }
  0x44   :  { %v233_v2 = vld [vmem:[#allocation2 + $0x1e0] sm:$0xff]  ;;  %1415 = vmatprep.subr.mxu0 %v234_v0  ;;  %1534 = vmatprep.subr.mxu1 %v236_v1  ;;  %v235_v3 = vld [vmem:[#allocation2 + $0x1f0] sm:$0xff]  ;;  %v230_v4 = vld [vmem:[#allocation2 + $0x1c8] sm:$0xff]  ;;  %v396_v53 = vunpack.c.l.s4 %v16409_v52  ;;  %vm1402_vm0 = vcmask 1045504   ;;  %s23057_s25 = sld [smem:[#allocation92_spill]]  ;;  %vm1383_vm1 = vcmask 572416  }
  0x45   :  { %v232_v5 = vld [vmem:[#allocation2 + $0x1d8] sm:$0xff]  ;;  %1416 = vmatpush1.msra.mxu0 %v233_v2  ;;  %1535 = vmatpush1.msra.mxu1 %v235_v3  ;;  %v229_v6 = vld [vmem:[#allocation2 + $0x1c0] sm:$0xff]  ;;  %v231_v7 = vld [vmem:[#allocation2 + $0x1d0] sm:$0xff]  ;;  %v399_v0 = vshrl.u32 %v398_v54, 7  ;;  %s23058_s26 = sld [smem:[#allocation93_spill]] }
  0x46   :  { %v226_v8 = vld [vmem:[#allocation2 + $0x1a8] sm:$0xff]  ;;  %1417 = vmatprep.subr.mxu0 %v230_v4  ;;  %1536 = vmatprep.subr.mxu1 %v232_v5  ;;  %v228_v9 = vld [vmem:[#allocation2 + $0x1b8] sm:$0xff]  ;;  %v225_v10 = vld [vmem:[#allocation2 + $0x1a0] sm:$0xff]  ;;  %v397_v63 = vunpack.c.0.s8 %v396_v53  ;;  %s23357_s28 = sld [smem:[#allocation96_spill]] }
  0x47   :  { %v227_v11 = vld [vmem:[#allocation2 + $0x1b0] sm:$0xff]  ;;  %1418 = vmatpush1.msra.mxu0 %v229_v6  ;;  %1537 = vmatpush1.msra.mxu1 %v231_v7  ;;  %v222_v12 = vld [vmem:[#allocation2 + $0x188] sm:$0xff]  ;;  %v224_v13 = vld [vmem:[#allocation2 + $0x198] sm:$0xff] }
  0x48   :  { %1419 = vmatprep.subr.mxu0 %v226_v8  ;;  %1538 = vmatprep.subr.mxu1 %v228_v9  ;;  %v221_v14 = vld [vmem:[#allocation2 + $0x180] sm:$0xff]  ;;  %v223_v15 = vld [vmem:[#allocation2 + $0x190] sm:$0xff]  ;;  %v218_v16 = vld [vmem:[#allocation2 + $0x168] sm:$0xff] }
  0x49   :  { %1420 = vmatpush1.msra.mxu0 %v225_v10  ;;  %1539 = vmatpush1.msra.mxu1 %v227_v11  ;;  %v220_v17 = vld [vmem:[#allocation2 + $0x178] sm:$0xff]  ;;  %v217_v18 = vld [vmem:[#allocation2 + $0x160] sm:$0xff]  ;;  %v219_v19 = vld [vmem:[#allocation2 + $0x170] sm:$0xff]  ;;  %v16549_v10 = vsub.s32 %v397_v63, %v399_v0 }
  0x4a   :  { %1421 = vmatprep.subr.mxu0 %v222_v12  ;;  %1540 = vmatprep.subr.mxu1 %v224_v13  ;;  %v214_v20 = vld [vmem:[#allocation2 + $0x148] sm:$0xff]  ;;  %v216_v21 = vld [vmem:[#allocation2 + $0x158] sm:$0xff]  ;;  %v213_v22 = vld [vmem:[#allocation2 + $0x140] sm:$0xff] }
  0x4b   :  { %1422 = vmatpush1.msra.mxu0 %v221_v14  ;;  %1541 = vmatpush1.msra.mxu1 %v223_v15  ;;  %v215_v23 = vld [vmem:[#allocation2 + $0x150] sm:$0xff]  ;;  %v210_v24 = vld [vmem:[#allocation2 + $0x128] sm:$0xff]  ;;  %v212_v25 = vld [vmem:[#allocation2 + $0x138] sm:$0xff] }
  0x4c   :  { %1423 = vmatprep.subr.mxu0 %v218_v16  ;;  %1542 = vmatprep.subr.mxu1 %v220_v17  ;;  %v209_v26 = vld [vmem:[#allocation2 + $0x120] sm:$0xff]  ;;  %v211_v27 = vld [vmem:[#allocation2 + $0x130] sm:$0xff]  ;;  %v206_v28 = vld [vmem:[#allocation2 + $0x108] sm:$0xff] }
  0x4d   :  { %1424 = vmatpush1.msra.mxu0 %v217_v18  ;;  %1543 = vmatpush1.msra.mxu1 %v219_v19  ;;  %v208_v29 = vld [vmem:[#allocation2 + $0x118] sm:$0xff]  ;;  %v205_v30 = vld [vmem:[#allocation2 + $0x100] sm:$0xff]  ;;  %v207_v31 = vld [vmem:[#allocation2 + $0x110] sm:$0xff] }
  0x4e   :  { %1425 = vmatprep.subr.mxu0 %v214_v20  ;;  %1544 = vmatprep.subr.mxu1 %v216_v21  ;;  %v202_v32 = vld [vmem:[#allocation2 + $0xe8] sm:$0xff]  ;;  %v204_v33 = vld [vmem:[#allocation2 + $0xf8] sm:$0xff]  ;;  %v201_v34 = vld [vmem:[#allocation2 + $0xe0] sm:$0xff] }
  0x4f   :  { %1426 = vmatpush1.msra.mxu0 %v213_v22  ;;  %1545 = vmatpush1.msra.mxu1 %v215_v23  ;;  %v203_v35 = vld [vmem:[#allocation2 + $0xf0] sm:$0xff]  ;;  %v198_v36 = vld [vmem:[#allocation2 + $0xc8] sm:$0xff]  ;;  %v200_v37 = vld [vmem:[#allocation2 + $0xd8] sm:$0xff] }
  0x50   :  { %1427 = vmatprep.subr.mxu0 %v210_v24  ;;  %1546 = vmatprep.subr.mxu1 %v212_v25  ;;  %v197_v38 = vld [vmem:[#allocation2 + $0xc0] sm:$0xff]  ;;  %v199_v39 = vld [vmem:[#allocation2 + $0xd0] sm:$0xff]  ;;  %v194_v40 = vld [vmem:[#allocation2 + $0xa8] sm:$0xff] }
  0x51   :  { %1428 = vmatpush1.msra.mxu0 %v209_v26  ;;  %1547 = vmatpush1.msra.mxu1 %v211_v27  ;;  %v196_v41 = vld [vmem:[#allocation2 + $0xb8] sm:$0xff]  ;;  %v193_v42 = vld [vmem:[#allocation2 + $0xa0] sm:$0xff]  ;;  %v195_v43 = vld [vmem:[#allocation2 + $0xb0] sm:$0xff] }
  0x52   :  { %1429 = vmatprep.subr.mxu0 %v206_v28  ;;  %1548 = vmatprep.subr.mxu1 %v208_v29  ;;  %v190_v44 = vld [vmem:[#allocation2 + $0x88] sm:$0xff]  ;;  %v192_v45 = vld [vmem:[#allocation2 + $0x98] sm:$0xff]  ;;  %v189_v46 = vld [vmem:[#allocation2 + $0x80] sm:$0xff] }
  0x53   :  { %1430 = vmatpush1.msra.mxu0 %v205_v30  ;;  %1549 = vmatpush1.msra.mxu1 %v207_v31  ;;  %v191_v47 = vld [vmem:[#allocation2 + $0x90] sm:$0xff]  ;;  %v186_v48 = vld [vmem:[#allocation2 + $0x68] sm:$0xff]  ;;  %v188_v49 = vld [vmem:[#allocation2 + $0x78] sm:$0xff] }
  0x54   :  { %1431 = vmatprep.subr.mxu0 %v202_v32  ;;  %1550 = vmatprep.subr.mxu1 %v204_v33  ;;  %v185_v50 = vld [vmem:[#allocation2 + $0x60] sm:$0xff]  ;;  %v187_v51 = vld [vmem:[#allocation2 + $0x70] sm:$0xff]  ;;  %v182_v55 = vld [vmem:[#allocation2 + $0x48] sm:$0xff] }
  0x55   :  { %1432 = vmatpush1.msra.mxu0 %v201_v34  ;;  %1551 = vmatpush1.msra.mxu1 %v203_v35  ;;  %v184_v56 = vld [vmem:[#allocation2 + $0x58] sm:$0xff]  ;;  %v181_v57 = vld [vmem:[#allocation2 + $0x40] sm:$0xff]  ;;  %v183_v58 = vld [vmem:[#allocation2 + $0x50] sm:$0xff] }
  0x56   :  { %1433 = vmatprep.subr.mxu0 %v198_v36  ;;  %1552 = vmatprep.subr.mxu1 %v200_v37  ;;  %v178_v59 = vld [vmem:[#allocation2 + $0x28] sm:$0xff]  ;;  %v180_v60 = vld [vmem:[#allocation2 + $0x38] sm:$0xff]  ;;  %v177_v61 = vld [vmem:[#allocation2 + $0x20] sm:$0xff] }
  0x57   :  { %1434 = vmatpush1.msra.mxu0 %v197_v38  ;;  %1553 = vmatpush1.msra.mxu1 %v199_v39  ;;  %v179_v62 = vld [vmem:[#allocation2 + $0x30] sm:$0xff]  ;;  %v174_v1 = vld [vmem:[#allocation2 + $0x8] sm:$0xff]  ;;  %v176_v2 = vld [vmem:[#allocation2 + $0x18] sm:$0xff] }
  0x58   :  { %1435 = vmatprep.subr.mxu0 %v194_v40  ;;  %1554 = vmatprep.subr.mxu1 %v196_v41  ;;  %v173_v3 = vld [vmem:[#allocation2] sm:$0xff]  ;;  %v175_v4 = vld [vmem:[#allocation2 + $0x10] sm:$0xff]  ;;  %v270_v5 = vld [vmem:[#allocation2 + $0x308] sm:$0x3f] }
  0x59   :  { %1436 = vmatpush1.msra.mxu0 %v193_v42  ;;  %1555 = vmatpush1.msra.mxu1 %v195_v43  ;;  %v272_v6 = vld [vmem:[#allocation2 + $0x318] sm:$0x3f]  ;;  %v269_v7 = vld [vmem:[#allocation2 + $0x300] sm:$0x3f]  ;;  %v271_v8 = vld [vmem:[#allocation2 + $0x310] sm:$0x3f] }
  0x5a   :  { %1437 = vmatprep.subr.mxu0 %v190_v44  ;;  %1556 = vmatprep.subr.mxu1 %v192_v45  ;;  %v266_v9 = vld [vmem:[#allocation2 + $0x2e8] sm:$0xff]  ;;  %v268_v11 = vld [vmem:[#allocation2 + $0x2f8] sm:$0xff]  ;;  %v265_v12 = vld [vmem:[#allocation2 + $0x2e0] sm:$0xff] }
  0x5b   :  { %1438 = vmatpush1.msra.mxu0 %v189_v46  ;;  %1557 = vmatpush1.msra.mxu1 %v191_v47  ;;  %v267_v13 = vld [vmem:[#allocation2 + $0x2f0] sm:$0xff]  ;;  %v16214_v14 = vld [vmem:[%s23057_s25] ss:$8 sps:$4 sm:$0xff]   ;;  %v264_v16 = vld [vmem:[#allocation2 + $0x2d8] sm:$0xff] }
  0x5c   :  { %1439 = vmatprep.subr.mxu0 %v186_v48  ;;  %1558 = vmatprep.subr.mxu1 %v188_v49  ;;  %v262_v15 = vld [vmem:[#allocation2 + $0x2c8] sm:$0xff]  ;;  %v261_v18 = vld [vmem:[#allocation2 + $0x2c0] sm:$0xff]  ;;  %v263_v19 = vld [vmem:[#allocation2 + $0x2d0] sm:$0xff]  ;;  %v401_v20 = vrot.slane %v16214_v14, %v16549_v10 }
  0x5d   :  { %1440 = vmatpush1.msra.mxu0 %v185_v50  ;;  %1559 = vmatpush1.msra.mxu1 %v187_v51  ;;  %v16216_v17 = vld [vmem:[%s23057_s25 + $0x4] ss:$8 sps:$4 sm:$0xff]   ;;  %v260_v22 = vld [vmem:[#allocation2 + $0x2b8] sm:$0xff]  ;;  %v259_v25 = vld [vmem:[#allocation2 + $0x2b0] sm:$0xff] }
  0x5e   :  { %1441 = vmatprep.subr.mxu0 %v182_v55  ;;  %1560 = vmatprep.subr.mxu1 %v184_v56  ;;  %v258_v21 = vld [vmem:[#allocation2 + $0x2a8] sm:$0xff]  ;;  %v408_v23 = vrot.slane %v16216_v17, %v16549_v10  ;;  %v257_v24 = vld [vmem:[#allocation2 + $0x2a0] sm:$0xff]  ;;  %v409_v26 = vcombine.high %v401_v20, %v401_v20  ;;  %v417_v27 = vrot.slane %v401_v20, %v16549_v10  ;;  %v256_v29 = vld [vmem:[#allocation2 + $0x298] sm:$0xff] }
  0x5f   :  { %1442 = vmatpush1.msra.mxu0 %v181_v57  ;;  %1561 = vmatpush1.msra.mxu1 %v183_v58  ;;  %v254_v28 = vld [vmem:[#allocation2 + $0x288] sm:$0xff]  ;;  %v253_v32 = vld [vmem:[#allocation2 + $0x280] sm:$0xff]  ;;  %v255_v33 = vld [vmem:[#allocation2 + $0x290] sm:$0xff] }
  0x60   :  { %1443 = vmatprep.subr.mxu0 %v178_v59  ;;  %1562 = vmatprep.subr.mxu1 %v180_v60  ;;  %v410_v30 = vcombine.high %v408_v23, %v408_v23  ;;  %v424_v31 = vrot.slane %v408_v23, %v16549_v10  ;;  %v431_v34 = vrot.slane %v409_v26, %v16549_v10  ;;  %v250_v35 = vld [vmem:[#allocation2 + $0x268] sm:$0xff]  ;;  %v252_v36 = vld [vmem:[#allocation2 + $0x278] sm:$0xff]  ;;  %v249_v38 = vld [vmem:[#allocation2 + $0x260] sm:$0xff] }
  0x61   :  { %1444 = vmatpush1.msra.mxu0 %v177_v61  ;;  %1563 = vmatpush1.msra.mxu1 %v179_v62  ;;  %v251_v39 = vld [vmem:[#allocation2 + $0x270] sm:$0xff]  ;;  %v246_v42 = vld [vmem:[#allocation2 + $0x248] sm:$0xff]  ;;  %v248_v43 = vld [vmem:[#allocation2 + $0x258] sm:$0xff] }
  0x62   :  { %1445 = vmatprep.subr.mxu0 %v174_v1  ;;  %1564 = vmatprep.subr.mxu1 %v176_v2  ;;  %v438_v37 = vrot.slane %v410_v30, %v16549_v10  ;;  %v823_v40 = vcombine.low %v417_v27, %v431_v34  ;;  %v15899_v41 = vcombine.high %v417_v27, %v431_v34  ;;  %v245_v44 = vld [vmem:[#allocation2 + $0x240] sm:$0xff]  ;;  %v247_v47 = vld [vmem:[#allocation2 + $0x250] sm:$0xff]  ;;  %v242_v48 = vld [vmem:[#allocation2 + $0x228] sm:$0xff] }
  0x63   :  { %1446 = vmatpush1.msra.mxu0 %v173_v3  ;;  %1565 = vmatpush1.msra.mxu1 %v175_v4  ;;  %v244_v49 = vld [vmem:[#allocation2 + $0x238] sm:$0xff]  ;;  %v241_v52 = vld [vmem:[#allocation2 + $0x220] sm:$0xff]  ;;  %v243_v53 = vld [vmem:[#allocation2 + $0x230] sm:$0xff] }
  0x64   :  { %15907 = vmatprep.subr.msk.mxu0 %vm1402_vm0, %v270_v5  ;;  %15918 = vmatprep.subr.msk.mxu1 %vm1402_vm0, %v272_v6  ;;  %v825_v45 = vcombine.low %v424_v31, %v438_v37  ;;  %v15900_v46 = vcombine.high %v424_v31, %v438_v37  ;;  %v833_v50 = vrot.slane %v823_v40, %v16549_v10  ;;  %v16217_v58 = vld [vmem:[%s23057_s25 + $0x10] ss:$8 sps:$4 sm:$0xff]   ;;  %v16219_v59 = vld [vmem:[%s23057_s25 + $0x14] ss:$8 sps:$4 sm:$0xff]   ;;  %v238_v60 = vld [vmem:[#allocation2 + $0x208] sm:$0xff] }
  0x65   :  { %15908 = vmatpush2.msk.msra.mxu0 %vm1402_vm0, %v269_v7  ;;  %15919 = vmatpush2.msk.msra.mxu1 %vm1402_vm0, %v271_v8  ;;  %v840_v51 = vrot.slane %v15899_v41, %v16549_v10  ;;  %v240_v61 = vld [vmem:[#allocation2 + $0x218] sm:$0xff]  ;;  %v237_v0 = vld [vmem:[#allocation2 + $0x200] sm:$0xff]  ;;  %v239_v2 = vld [vmem:[#allocation2 + $0x210] sm:$0xff]  ;;  %v451_v4 = vrot.slane %v16217_v58, %v16549_v10 }
  0x66   :  { %1463 = vmatprep.subr.mxu0 %v266_v9  ;;  %1582 = vmatprep.subr.mxu1 %v268_v11  ;;  %v847_v54 = vrot.slane %v825_v45, %v16549_v10  ;;  %v854_v55 = vrot.slane %v15900_v46, %v16549_v10  ;;  %v334_v7 = vld [vmem:[#allocation4 + $0x1e8] sm:$0xff]  ;;  %v336_v8 = vld [vmem:[#allocation4 + $0x1f8] sm:$0xff]  ;;  %v458_v9 = vrot.slane %v16219_v59, %v16549_v10  ;;  %v329_v27 = vld [vmem:[#allocation4 + $0x1c0] sm:$0xff] }
  0x67   :  { %1464 = vmatpush2.msra.mxu0 %v265_v12  ;;  %1583 = vmatpush2.msra.mxu1 %v267_v13  ;;  %v856_v56 = vcombine.high %v833_v50, %v840_v51  ;;  %v855_v57 = vcombine.low %v833_v50, %v840_v51  ;;  %v459_v11 = vcombine.high %v451_v4, %v451_v4  ;;  %v16220_v13 = vld [vmem:[%s23057_s25 + $0x20] ss:$8 sps:$4 sm:$0xff]   ;;  %v16222_v14 = vld [vmem:[%s23057_s25 + $0x24] ss:$8 sps:$4 sm:$0xff]   ;;  %v324_v40 = vld [vmem:[#allocation4 + $0x198] sm:$0xff] }
  0x68   :  { %1465 = vmatprep.subr.mxu0 %v262_v15  ;;  %1584 = vmatprep.subr.mxu1 %v264_v16  ;;  %v858_v62 = vcombine.high %v847_v54, %v854_v55  ;;  %v857_v63 = vcombine.low %v847_v54, %v854_v55  ;;  %v467_v12 = vrot.slane %v451_v4, %v16549_v10  ;;  %v330_v23 = vld [vmem:[#allocation4 + $0x1c8] sm:$0xff]  ;;  %v325_v34 = vld [vmem:[#allocation4 + $0x1a0] sm:$0xff]  ;;  %v323_v45 = vld [vmem:[#allocation4 + $0x190] sm:$0xff] }
  0x69   :  { %1466 = vmatpush2.msra.mxu0 %v261_v18  ;;  %1585 = vmatpush2.msra.mxu1 %v263_v19  ;;  %v872_v1 = vrot.slane %v856_v56, %v16549_v10  ;;  %v865_v3 = vrot.slane %v855_v57, %v16549_v10  ;;  %v460_v17 = vcombine.high %v458_v9, %v458_v9  ;;  %v333_v18 = vld [vmem:[#allocation4 + $0x1e0] sm:$0xff]  ;;  %v335_v19 = vld [vmem:[#allocation4 + $0x1f0] sm:$0xff] }
  0x6a   :  { %1467 = vmatprep.subr.mxu0 %v258_v21  ;;  %1586 = vmatprep.subr.mxu1 %v260_v22  ;;  %v886_v5 = vrot.slane %v858_v62, %v16549_v10  ;;  %v879_v6 = vrot.slane %v857_v63, %v16549_v10  ;;  %v474_v20 = vrot.slane %v458_v9, %v16549_v10  ;;  %v317_v57 = vld [vmem:[#allocation4 + $0x160] sm:$0xff]  ;;  %v319_v58 = vld [vmem:[#allocation4 + $0x170] sm:$0xff]  ;;  %v314_v63 = vld [vmem:[#allocation4 + $0x148] sm:$0xff] }
  0x6b   :  { %1468 = vmatpush2.msra.mxu0 %v257_v24  ;;  %1587 = vmatpush2.msra.mxu1 %v259_v25  ;;  %v481_v21 = vrot.slane %v459_v11, %v16549_v10  ;;  %v501_v22 = vrot.slane %v16220_v13, %v16549_v10  ;;  %v332_v24 = vld [vmem:[#allocation4 + $0x1d8] sm:$0xff]  ;;  %v488_v25 = vrot.slane %v460_v17, %v16549_v10  ;;  %v310_v11 = vld [vmem:[#allocation4 + $0x128] sm:$0xff]  ;;  %v311_v17 = vld [vmem:[#allocation4 + $0x130] sm:$0xff] }
  0x6c   :  { %1469 = vmatprep.subr.mxu0 %v254_v28  ;;  %1588 = vmatprep.subr.mxu1 %v256_v29  ;;  %v888_v15 = vcombine.low %v872_v1, %v886_v5  ;;  %v887_v16 = vcombine.low %v865_v3, %v879_v6  ;;  %v508_v26 = vrot.slane %v16222_v14, %v16549_v10  ;;  %v331_v28 = vld [vmem:[#allocation4 + $0x1d0] sm:$0xff]  ;;  %v313_v5 = vld [vmem:[#allocation4 + $0x140] sm:$0xff] }
  0x6d   :  { %1470 = vmatpush2.msra.mxu0 %v253_v32  ;;  %1589 = vmatpush2.msra.mxu1 %v255_v33  ;;  %v889_v29 = vcombine.low %v467_v12, %v481_v21  ;;  %v15901_v30 = vcombine.high %v467_v12, %v481_v21  ;;  %v509_v31 = vcombine.high %v501_v22, %v501_v22  ;;  %v326_v32 = vld [vmem:[#allocation4 + $0x1a8] sm:$0xff]  ;;  %v328_v33 = vld [vmem:[#allocation4 + $0x1b8] sm:$0xff]  ;;  %v315_v6 = vld [vmem:[#allocation4 + $0x150] sm:$0xff] }
  0x6e   :  { %1471 = vmatprep.subr.mxu0 %v250_v35  ;;  %1590 = vmatprep.subr.mxu1 %v252_v36  ;;  %v891_v35 = vcombine.low %v474_v20, %v488_v25  ;;  %v15902_v36 = vcombine.high %v474_v20, %v488_v25  ;;  %v510_v37 = vcombine.high %v508_v26, %v508_v26  ;;  %v16223_v62 = vld [vmem:[%s23057_s25 + $0x30] ss:$8 sps:$4 sm:$0xff]   ;;  %v16225_v4 = vld [vmem:[%s23057_s25 + $0x34] ss:$8 sps:$4 sm:$0xff]   ;;  %v306_v21 = vld [vmem:[#allocation4 + $0x108] sm:$0xff] }
  0x6f   :  { %1472 = vmatpush2.msra.mxu0 %v249_v38  ;;  %1591 = vmatpush2.msra.mxu1 %v251_v39  ;;  %v327_v38 = vld [vmem:[#allocation4 + $0x1b0] sm:$0xff]  ;;  %v322_v39 = vld [vmem:[#allocation4 + $0x188] sm:$0xff]  ;;  %v899_v41 = vrot.slane %v889_v29, %v16549_v10  ;;  %v531_v51 = vrot.slane %v509_v31, %v16549_v10  ;;  %v312_v12 = vld [vmem:[#allocation4 + $0x138] sm:$0xff]  ;;  %v551_v20 = vrot.slane %v16223_v62, %v16549_v10 }
  0x70   :  { %1473 = vmatprep.subr.mxu0 %v246_v42  ;;  %1592 = vmatprep.subr.mxu1 %v248_v43  ;;  %v906_v42 = vrot.slane %v15901_v30, %v16549_v10  ;;  %v517_v43 = vrot.slane %v501_v22, %v16549_v10  ;;  %v913_v46 = vrot.slane %v891_v35, %v16549_v10  ;;  %v308_v22 = vld [vmem:[#allocation4 + $0x118] sm:$0xff]  ;;  %v16226_v29 = vld [vmem:[%s23057_s25 + $0x40] ss:$8 sps:$4 sm:$0x11]   ;;  %v307_v31 = vld [vmem:[#allocation4 + $0x110] sm:$0xff] }
  0x71   :  { %1474 = vmatpush2.msra.mxu0 %v245_v44  ;;  %1593 = vmatpush2.msra.mxu1 %v247_v47  ;;  %v321_v44 = vld [vmem:[#allocation4 + $0x180] sm:$0xff]  ;;  %v920_v47 = vrot.slane %v15902_v36, %v16549_v10  ;;  %v538_v56 = vrot.slane %v510_v37, %v16549_v10  ;;  %v558_v25 = vrot.slane %v16225_v4, %v16549_v10 }
  0x72   :  { %1475 = vmatprep.subr.mxu0 %v242_v48  ;;  %1594 = vmatprep.subr.mxu1 %v244_v49  ;;  %v524_v48 = vrot.slane %v508_v26, %v16549_v10  ;;  %v922_v49 = vcombine.high %v899_v41, %v906_v42  ;;  %v921_v50 = vcombine.low %v899_v41, %v906_v42  ;;  %v305_v30 = vld [vmem:[#allocation4 + $0x100] sm:$0xff] }
  0x73   :  { %1476 = vmatpush2.msra.mxu0 %v241_v52  ;;  %1595 = vmatpush2.msra.mxu1 %v243_v53  ;;  %v318_v52 = vld [vmem:[#allocation4 + $0x168] sm:$0xff]  ;;  %v320_v53 = vld [vmem:[#allocation4 + $0x178] sm:$0xff]  ;;  %v924_v54 = vcombine.high %v913_v46, %v920_v47  ;;  %v923_v55 = vcombine.low %v913_v46, %v920_v47  ;;  %v15903_v3 = vcombine.high %v517_v43, %v531_v51  ;;  %v301_v41 = vld [vmem:[#allocation4 + $0xe0] sm:$0xff] }
  0x74   :  { %1477 = vmatprep.subr.mxu0 %v238_v60  ;;  %1596 = vmatprep.subr.mxu1 %v240_v61  ;;  %v938_v59 = vrot.slane %v922_v49, %v16549_v10  ;;  %v931_v60 = vrot.slane %v921_v50, %v16549_v10  ;;  %v955_v61 = vcombine.low %v517_v43, %v531_v51  ;;  %v16229_v49 = vld [vmem:[%s23057_s25 + $0x54] ss:$8 sps:$4 sm:$0xff]   ;;  %v298_v50 = vld [vmem:[#allocation4 + $0xc8] sm:$0xff] }
  0x75   :  { %1478 = vmatpush2.msra.mxu0 %v237_v0  ;;  %1597 = vmatpush2.msra.mxu1 %v239_v2  ;;  %v316_v0 = vld [vmem:[#allocation4 + $0x158] sm:$0xff]  ;;  %v952_v1 = vrot.slane %v924_v54, %v16549_v10  ;;  %v945_v2 = vrot.slane %v923_v55, %v16549_v10  ;;  %v567_v37 = vrot.slane %v551_v20, %v16549_v10 }
  0x76   :  { %3369 = vmatprep.subr.mxu0 %v334_v7  ;;  %3488 = vmatprep.subr.mxu1 %v336_v8  ;;  %v957_v7 = vcombine.low %v524_v48, %v538_v56  ;;  %v15904_v8 = vcombine.high %v524_v48, %v538_v56  ;;  %v965_v9 = vrot.slane %v955_v61, %v16549_v10  ;;  %v300_v51 = vld [vmem:[#allocation4 + $0xd8] sm:$0xff] }
  0x77   :  { %15909 = vmatprep.mubr.msk.f32.mxu0 %vm1383_vm1, %v888_v15  ;;  %15920 = vmatprep.mubr.msk.f32.mxu1 %vm1383_vm1, %v888_v15  ;;  %v954_v13 = vcombine.low %v938_v59, %v952_v1  ;;  %v953_v14 = vcombine.low %v931_v60, %v945_v2  ;;  %v972_v15 = vrot.slane %v15903_v3, %v16549_v10  ;;  %v299_v59 = vld [vmem:[#allocation4 + $0xd0] sm:$0xff]  ;;  %v294_v2 = vld [vmem:[#allocation4 + $0xa8] sm:$0xff]  ;;  %v296_v3 = vld [vmem:[#allocation4 + $0xb8] sm:$0xff] }
  0x78   :  { %1480 = vmatmul.mubr.f32.vlgmr.msra.gmra.mxu0 %v887_v16  ;;  %1599 = vmatmul.mubr.f32.vlgmr.msra.gmra.mxu1 %v887_v16  ;;  %v309_v16 = vld [vmem:[#allocation4 + $0x120] sm:$0xff]  ;;  %v574_v42 = vrot.slane %v558_v25, %v16549_v10  ;;  %v600_v48 = vrot.slane %v16226_v29, %v16549_v10 }
  0x79   :  { %3370 = vmatpush1.msra.mxu0 %v333_v18  ;;  %3489 = vmatpush1.msra.mxu1 %v335_v19  ;;  %v979_v18 = vrot.slane %v957_v7, %v16549_v10  ;;  %v986_v19 = vrot.slane %v15904_v8, %v16549_v10  ;;  %v293_v7 = vld [vmem:[#allocation4 + $0xa0] sm:$0xff]  ;;  %v295_v8 = vld [vmem:[#allocation4 + $0xb0] sm:$0xff] }
  0x7a   :  { %3371 = vmatprep.subr.mxu0 %v330_v23  ;;  %3490 = vmatprep.subr.mxu1 %v332_v24  ;;  %v988_v23 = vcombine.high %v965_v9, %v972_v15  ;;  %v987_v24 = vcombine.low %v965_v9, %v972_v15  ;;  %v16642_v56 = vrot.slane %v600_v48, %v16549_v10  ;;  %v278_v48 = vld [vmem:[#allocation4 + $0x28] sm:$0xff] }
  0x7b   :  { %3372 = vmatpush1.msra.mxu0 %v329_v27  ;;  %3491 = vmatpush1.msra.mxu1 %v331_v28  ;;  %v990_v26 = vcombine.high %v979_v18, %v986_v19  ;;  %v989_v27 = vcombine.low %v979_v18, %v986_v19  ;;  %v559_v28 = vcombine.high %v551_v20, %v551_v20  ;;  %v289_v19 = vld [vmem:[#allocation4 + $0x80] sm:$0xff]  ;;  %v291_v20 = vld [vmem:[#allocation4 + $0x90] sm:$0xff] }
  0x7c   :  { %3373 = vmatprep.subr.mxu0 %v326_v32  ;;  %3492 = vmatprep.subr.mxu1 %v328_v33  ;;  %v1004_v32 = vrot.slane %v988_v23, %v16549_v10  ;;  %v997_v33 = vrot.slane %v987_v24, %v16549_v10  ;;  %v16230_v23 = vld [vmem:[%s23057_s25 + $0x60] ss:$8 sps:$4 sm:$0xff]  }
  0x7d   :  { %3374 = vmatpush1.msra.mxu0 %v325_v34  ;;  %3493 = vmatpush1.msra.mxu1 %v327_v38  ;;  %v560_v34 = vcombine.high %v558_v25, %v558_v25  ;;  %v1018_v35 = vrot.slane %v990_v26, %v16549_v10  ;;  %v1011_v36 = vrot.slane %v989_v27, %v16549_v10  ;;  %v16227_v38 = vld [vmem:[%s23057_s25 + $0x50] ss:$8 sps:$4 sm:$0xff]   ;;  %v286_v24 = vld [vmem:[#allocation4 + $0x68] sm:$0xff] }
  0x7e   :  { %3375 = vmatprep.subr.mxu0 %v322_v39  ;;  %3494 = vmatprep.subr.mxu1 %v324_v40  ;;  %v302_v39 = vld [vmem:[#allocation4 + $0xe8] sm:$0xff]  ;;  %v304_v40 = vld [vmem:[#allocation4 + $0xf8] sm:$0xff]  ;;  %v581_v43 = vrot.slane %v559_v28, %v16549_v10 }
  0x7f   :  { %3376 = vmatpush1.msra.mxu0 %v321_v44  ;;  %3495 = vmatpush1.msra.mxu1 %v323_v45  ;;  %v588_v44 = vrot.slane %v560_v34, %v16549_v10  ;;  %v303_v45 = vld [vmem:[#allocation4 + $0xf0] sm:$0xff]  ;;  %v1020_v46 = vcombine.low %v1004_v32, %v1018_v35  ;;  %v1019_v47 = vcombine.low %v997_v33, %v1011_v36  ;;  %v288_v25 = vld [vmem:[#allocation4 + $0x78] sm:$0xff]  ;;  %v16232_v34 = vld [vmem:[%s23057_s25 + $0x64] ss:$8 sps:$4 sm:$0xff]  }
  0x80   :  { %3377 = vmatprep.subr.mxu0 %v318_v52  ;;  %3496 = vmatprep.subr.mxu1 %v320_v53  ;;  %v1021_v52 = vcombine.low %v567_v37, %v581_v43  ;;  %v15905_v53 = vcombine.high %v567_v37, %v581_v43  ;;  %v287_v32 = vld [vmem:[#allocation4 + $0x70] sm:$0xff]  ;;  %v282_v35 = vld [vmem:[#allocation4 + $0x48] sm:$0xff]  ;;  %v284_v36 = vld [vmem:[#allocation4 + $0x58] sm:$0xff] }
  0x81   :  { %3378 = vmatpush1.msra.mxu0 %v317_v57  ;;  %3497 = vmatpush1.msra.mxu1 %v319_v58  ;;  %v1023_v54 = vcombine.low %v574_v42, %v588_v44  ;;  %v15906_v55 = vcombine.high %v574_v42, %v588_v44  ;;  %v616_v57 = vrot.slane %v16227_v38, %v16549_v10  ;;  %v297_v58 = vld [vmem:[#allocation4 + $0xc0] sm:$0xff]  ;;  %v283_v42 = vld [vmem:[#allocation4 + $0x50] sm:$0xff] }
  0x82   :  { %3379 = vmatprep.subr.mxu0 %v314_v63  ;;  %3498 = vmatprep.subr.mxu1 %v316_v0  ;;  %v1031_v60 = vrot.slane %v1021_v52, %v16549_v10  ;;  %v1038_v61 = vrot.slane %v15905_v53, %v16549_v10  ;;  %v623_v0 = vrot.slane %v16229_v49, %v16549_v10  ;;  %v280_v49 = vld [vmem:[#allocation4 + $0x38] sm:$0xff] }
  0x83   :  { %3380 = vmatpush1.msra.mxu0 %v313_v5  ;;  %3499 = vmatpush1.msra.mxu1 %v315_v6  ;;  %v1045_v62 = vrot.slane %v1023_v54, %v16549_v10  ;;  %v1052_v63 = vrot.slane %v15906_v55, %v16549_v10  ;;  %v624_v1 = vcombine.high %v616_v57, %v616_v57 }
  0x84   :  { %3381 = vmatprep.subr.mxu0 %v310_v11  ;;  %3500 = vmatprep.subr.mxu1 %v312_v12  ;;  %v1054_v4 = vcombine.high %v1031_v60, %v1038_v61  ;;  %v1053_v5 = vcombine.low %v1031_v60, %v1038_v61  ;;  %v632_v6 = vrot.slane %v616_v57, %v16549_v10  ;;  %v274_v57 = vld [vmem:[#allocation4 + $0x8] sm:$0xff] }
  0x85   :  { %3382 = vmatpush1.msra.mxu0 %v309_v16  ;;  %3501 = vmatpush1.msra.mxu1 %v311_v17  ;;  %v1056_v9 = vcombine.high %v1045_v62, %v1052_v63  ;;  %v1055_v11 = vcombine.low %v1045_v62, %v1052_v63  ;;  %v625_v12 = vcombine.high %v623_v0, %v623_v0 }
  0x86   :  { %3383 = vmatprep.subr.mxu0 %v306_v21  ;;  %3502 = vmatprep.subr.mxu1 %v308_v22  ;;  %v1070_v15 = vrot.slane %v1054_v4, %v16549_v10  ;;  %v1063_v16 = vrot.slane %v1053_v5, %v16549_v10  ;;  %v639_v17 = vrot.slane %v623_v0, %v16549_v10  ;;  %v276_v0 = vld [vmem:[#allocation4 + $0x18] sm:$0xff] }
  0x87   :  { %15910 = vmatprep.mubr.msk.f32.mxu0 %vm1383_vm1, %v954_v13  ;;  %15921 = vmatprep.mubr.msk.f32.mxu1 %vm1383_vm1, %v954_v13  ;;  %v290_v13 = vld [vmem:[#allocation4 + $0x88] sm:$0xff]  ;;  %v1084_v18 = vrot.slane %v1056_v9, %v16549_v10  ;;  %v1077_v21 = vrot.slane %v1055_v11, %v16549_v10  ;;  %v646_v22 = vrot.slane %v624_v1, %v16549_v10 }
  0x88   :  { %3384 = vmatpush1.msra.mxu0 %v305_v30  ;;  %3503 = vmatpush1.msra.mxu1 %v307_v31  ;;  %v16663_v26 = vrot.slane %v625_v12, %v16549_v10  ;;  %v654_v27 = vcombine.high %v632_v6, %v632_v6  ;;  %v655_v28 = vcombine.high %v639_v17, %v639_v17  ;;  %v285_v31 = vld [vmem:[#allocation4 + $0x60] sm:$0xff]  ;;  %v370_v12 = vld [vmem:[#allocation4 + $0x308] sm:$0x3f] }
  0x89   :  { %1486 = vmatmul.mubr.f32.gmra.mxu0 %v953_v14  ;;  %1605 = vmatmul.mubr.f32.gmra.mxu1 %v953_v14  ;;  %v292_v14 = vld [vmem:[#allocation4 + $0x98] sm:$0xff]  ;;  %v1086_v29 = vcombine.low %v1070_v15, %v1084_v18  ;;  %v1085_v30 = vcombine.low %v1063_v16, %v1077_v21  ;;  %v656_v33 = vcombine.high %v646_v22, %v646_v22  ;;  %v371_v18 = vld [vmem:[#allocation4 + $0x310] sm:$0x3f] }
  0x8a   :  { %3385 = vmatprep.subr.mxu0 %v302_v39  ;;  %3504 = vmatprep.subr.mxu1 %v304_v40  ;;  %v1087_v37 = vcombine.low %v16642_v56, %v632_v6  ;;  %v1088_v38 = vcombine.low %v646_v22, %v654_v27  ;;  %v1090_v39 = vcombine.low %v16663_v26, %v655_v28  ;;  %v279_v56 = vld [vmem:[#allocation4 + $0x30] sm:$0xff]  ;;  %v365_v28 = vld [vmem:[#allocation4 + $0x2e0] sm:$0xff] }
  0x8b   :  { %3386 = vmatpush1.msra.mxu0 %v301_v41  ;;  %3505 = vmatpush1.msra.mxu1 %v303_v45  ;;  %v1089_v40 = vcombine.low %v656_v33, %v639_v17  ;;  %v281_v41 = vld [vmem:[#allocation4 + $0x40] sm:$0xff]  ;;  %v657_v43 = vcombine.high %v16663_v26, %v16663_v26  ;;  %v666_v44 = vrot.slane %v16230_v23, %v16549_v10  ;;  %v275_v6 = vld [vmem:[#allocation4 + $0x10] sm:$0xff]  ;;  %v366_v23 = vld [vmem:[#allocation4 + $0x2e8] sm:$0xff] }
  0x8c   :  { %3387 = vmatprep.subr.mxu0 %v298_v50  ;;  %3506 = vmatprep.subr.mxu1 %v300_v51  ;;  %v1097_v45 = vrot.slane %v1087_v37, %v16549_v10  ;;  %v277_v51 = vld [vmem:[#allocation4 + $0x20] sm:$0xff]  ;;  %v673_v52 = vrot.slane %v16232_v34, %v16549_v10  ;;  %v364_v37 = vld [vmem:[#allocation4 + $0x2d8] sm:$0xff] }
  0x8d   :  { %15911 = vmatprep.mubr.msk.f32.mxu0 %vm1383_vm1, %v1020_v46  ;;  %15922 = vmatprep.mubr.msk.f32.mxu1 %vm1383_vm1, %v1020_v46  ;;  %v1104_v46 = vrot.slane %v1088_v38, %v16549_v10  ;;  %v1111_v50 = vrot.slane %v1089_v40, %v16549_v10  ;;  %v674_v53 = vcombine.high %v666_v44, %v666_v44  ;;  %v369_v17 = vld [vmem:[#allocation4 + $0x300] sm:$0x3f] }
  0x8e   :  { %3388 = vmatpush1.msra.mxu0 %v297_v58  ;;  %3507 = vmatpush1.msra.mxu1 %v299_v59  ;;  %v682_v58 = vrot.slane %v666_v44, %v16549_v10  ;;  %v675_v61 = vcombine.high %v673_v52, %v673_v52  ;;  %v689_v1 = vrot.slane %v673_v52, %v16549_v10 }
  0x8f   :  { %1492 = vmatmul.mubr.f32.gmra.mxu0 %v1019_v47  ;;  %1611 = vmatmul.mubr.f32.gmra.mxu1 %v1019_v47  ;;  %v1118_v47 = vrot.slane %v1090_v39, %v16549_v10  ;;  %v1120_v54 = vcombine.high %v1097_v45, %v1104_v46  ;;  %v1119_v55 = vcombine.low %v1097_v45, %v1104_v46 }
  0x90   :  { %3389 = vmatprep.subr.mxu0 %v294_v2  ;;  %3508 = vmatprep.subr.mxu1 %v296_v3  ;;  %v273_v2 = vld [vmem:[#allocation4] sm:$0xff]  ;;  %v696_v5 = vrot.slane %v674_v53, %v16549_v10  ;;  %v704_v9 = vcombine.high %v682_v58, %v682_v58  ;;  %v705_v11 = vcombine.high %v689_v1, %v689_v1 }
  0x91   :  { %3390 = vmatpush1.msra.mxu0 %v293_v7  ;;  %3509 = vmatpush1.msra.mxu1 %v295_v8  ;;  %v1122_v59 = vcombine.high %v1111_v50, %v1118_v47  ;;  %v1121_v60 = vcombine.low %v1111_v50, %v1118_v47  ;;  %v1136_v62 = vrot.slane %v1120_v54, %v16549_v10  ;;  %v16233_v7 = vld [vmem:[%s23057_s25 + $0x70] ss:$8 sps:$4 sm:$0xff]   ;;  %v358_v54 = vld [vmem:[#allocation4 + $0x2a8] sm:$0xff] }
  0x92   :  { %3391 = vmatprep.subr.mxu0 %v290_v13  ;;  %3510 = vmatprep.subr.mxu1 %v292_v14  ;;  %v1129_v63 = vrot.slane %v1119_v55, %v16549_v10  ;;  %v16691_v8 = vrot.slane %v675_v61, %v16549_v10  ;;  %v372_v13 = vld [vmem:[#allocation4 + $0x318] sm:$0x3f]  ;;  %v706_v16 = vcombine.high %v696_v5, %v696_v5 }
  0x93   :  { %3392 = vmatpush1.msra.mxu0 %v289_v19  ;;  %3511 = vmatpush1.msra.mxu1 %v291_v20  ;;  %v1150_v3 = vrot.slane %v1122_v59, %v16549_v10  ;;  %v1143_v4 = vrot.slane %v1121_v60, %v16549_v10  ;;  %v16235_v19 = vld [vmem:[%s23057_s25 + $0x74] ss:$8 sps:$4 sm:$0xff]   ;;  %v1153_v20 = vcombine.low %v657_v43, %v682_v58  ;;  %v16238_v60 = vld [vmem:[%s23057_s25 + $0x84] ss:$8 sps:$4 sm:$0xff]  }
  0x94   :  { %15912 = vmatprep.mubr.msk.f32.mxu0 %vm1383_vm1, %v1086_v29  ;;  %15923 = vmatprep.mubr.msk.f32.mxu1 %vm1383_vm1, %v1086_v29  ;;  %v1154_v21 = vcombine.low %v696_v5, %v704_v9  ;;  %v1156_v22 = vcombine.low %v16691_v8, %v705_v11  ;;  %v707_v26 = vcombine.high %v16691_v8, %v16691_v8  ;;  %v360_v55 = vld [vmem:[#allocation4 + $0x2b8] sm:$0xff] }
  0x95   :  { %1498 = vmatmul.mubr.f32.gmra.mxu0 %v1085_v30  ;;  %1617 = vmatmul.mubr.f32.gmra.mxu1 %v1085_v30  ;;  %v1152_v14 = vcombine.low %v1136_v62, %v1150_v3  ;;  %v1151_v15 = vcombine.low %v1129_v63, %v1143_v4  ;;  %v716_v27 = vrot.slane %v16233_v7, %v16549_v10  ;;  %v357_v3 = vld [vmem:[#allocation4 + $0x2a0] sm:$0xff]  ;;  %v359_v7 = vld [vmem:[#allocation4 + $0x2b0] sm:$0xff] }
  0x96   :  { %3393 = vmatprep.subr.mxu0 %v286_v24  ;;  %3512 = vmatprep.subr.mxu1 %v288_v25  ;;  %v368_v24 = vld [vmem:[#allocation4 + $0x2f8] sm:$0xff]  ;;  %v1155_v25 = vcombine.low %v706_v16, %v689_v1  ;;  %v1163_v29 = vrot.slane %v1153_v20, %v16549_v10  ;;  %v1170_v30 = vrot.slane %v1154_v21, %v16549_v10 }
  0x97   :  { %3394 = vmatpush1.msra.mxu0 %v285_v31  ;;  %3513 = vmatpush1.msra.mxu1 %v287_v32  ;;  %v1184_v31 = vrot.slane %v1156_v22, %v16549_v10  ;;  %v367_v32 = vld [vmem:[#allocation4 + $0x2f0] sm:$0xff]  ;;  %v723_v34 = vrot.slane %v16235_v19, %v16549_v10  ;;  %v732_v40 = vrot.slane %v716_v27, %v16549_v10  ;;  %v353_v22 = vld [vmem:[#allocation4 + $0x280] sm:$0xff] }
  0x98   :  { %3395 = vmatprep.subr.mxu0 %v282_v35  ;;  %3514 = vmatprep.subr.mxu1 %v284_v36  ;;  %v1177_v33 = vrot.slane %v1155_v25, %v16549_v10  ;;  %v724_v35 = vcombine.high %v716_v27, %v716_v27  ;;  %v362_v36 = vld [vmem:[#allocation4 + $0x2c8] sm:$0xff]  ;;  %v1186_v38 = vcombine.high %v1163_v29, %v1170_v30 }
  0x99   :  { %3396 = vmatpush1.msra.mxu0 %v281_v41  ;;  %3515 = vmatpush1.msra.mxu1 %v283_v42  ;;  %v1185_v39 = vcombine.low %v1163_v29, %v1170_v30  ;;  %v725_v43 = vcombine.high %v723_v34, %v723_v34  ;;  %v739_v46 = vrot.slane %v723_v34, %v16549_v10  ;;  %v352_v29 = vld [vmem:[#allocation4 + $0x278] sm:$0xff] }
  0x9a   :  { %3397 = vmatprep.subr.mxu0 %v278_v48  ;;  %3516 = vmatprep.subr.mxu1 %v280_v49  ;;  %v1188_v41 = vcombine.high %v1177_v33, %v1184_v31  ;;  %v1187_v42 = vcombine.low %v1177_v33, %v1184_v31  ;;  %v1202_v44 = vrot.slane %v1186_v38, %v16549_v10  ;;  %v361_v48 = vld [vmem:[#allocation4 + $0x2c0] sm:$0xff]  ;;  %v363_v49 = vld [vmem:[#allocation4 + $0x2d0] sm:$0xff] }
  0x9b   :  { %3398 = vmatpush1.msra.mxu0 %v277_v51  ;;  %3517 = vmatpush1.msra.mxu1 %v279_v56  ;;  %v1195_v45 = vrot.slane %v1185_v39, %v16549_v10  ;;  %v746_v47 = vrot.slane %v724_v35, %v16549_v10  ;;  %v16719_v52 = vrot.slane %v725_v43, %v16549_v10  ;;  %v16236_v56 = vld [vmem:[%s23057_s25 + $0x80] ss:$8 sps:$4 sm:$0xff]   ;;  %v16239_v34 = vld [vmem:[%s23057_s25 + $0x90] ss:$8 sps:$4 sm:$0x11]  }
  0x9c   :  { %3399 = vmatprep.subr.mxu0 %v274_v57  ;;  %3518 = vmatprep.subr.mxu1 %v276_v0  ;;  %v1216_v50 = vrot.slane %v1188_v41, %v16549_v10  ;;  %v1209_v51 = vrot.slane %v1187_v42, %v16549_v10  ;;  %v754_v53 = vcombine.high %v732_v40, %v732_v40  ;;  %v349_v35 = vld [vmem:[#allocation4 + $0x260] sm:$0xff] }
  0x9d   :  { %3400 = vmatpush1.msra.mxu0 %v273_v2  ;;  %3519 = vmatpush1.msra.mxu1 %v275_v6  ;;  %v755_v57 = vcombine.high %v739_v46, %v739_v46  ;;  %v756_v58 = vcombine.high %v746_v47, %v746_v47  ;;  %v1219_v59 = vcombine.low %v707_v26, %v732_v40  ;;  %v16242_v43 = vld [vmem:[%s23058_s26 + $0x4] ss:$8 sps:$4 sm:$0xff]  }
  0x9e   :  { %15913 = vmatprep.mubr.msk.f32.mxu0 %vm1383_vm1, %v1152_v14  ;;  %15924 = vmatprep.mubr.msk.f32.mxu1 %vm1383_vm1, %v1152_v14  ;;  %v1218_v61 = vcombine.low %v1202_v44, %v1216_v50  ;;  %v1217_v62 = vcombine.low %v1195_v45, %v1209_v51  ;;  %v1220_v63 = vcombine.low %v746_v47, %v754_v53 }
  0x9f   :  { %1504 = vmatmul.mubr.f32.gmra.mxu0 %v1151_v15  ;;  %1623 = vmatmul.mubr.f32.gmra.mxu1 %v1151_v15  ;;  %v1221_v0 = vcombine.low %v756_v58, %v739_v46  ;;  %v1222_v1 = vcombine.low %v16719_v52, %v755_v57  ;;  %v1229_v2 = vrot.slane %v1219_v59, %v16549_v10  ;;  %v345_v57 = vld [vmem:[#allocation4 + $0x240] sm:$0xff]  ;;  %v347_v58 = vld [vmem:[#allocation4 + $0x250] sm:$0xff] }
  0xa0   :  { %15937 = vmatprep.subr.msk.mxu0 %vm1402_vm0, %v370_v12  ;;  %15948 = vmatprep.subr.msk.mxu1 %vm1402_vm0, %v372_v13  ;;  %v1236_v4 = vrot.slane %v1220_v63, %v16549_v10  ;;  %v757_v5 = vcombine.high %v16719_v52, %v16719_v52  ;;  %v766_v6 = vrot.slane %v16236_v56, %v16549_v10  ;;  %v354_v12 = vld [vmem:[#allocation4 + $0x288] sm:$0xff]  ;;  %v348_v52 = vld [vmem:[#allocation4 + $0x258] sm:$0xff] }
  0xa1   :  { %15938 = vmatpush2.msk.msra.mxu0 %vm1402_vm0, %v369_v17  ;;  %15949 = vmatpush2.msk.msra.mxu1 %vm1402_vm0, %v371_v18  ;;  %v1243_v8 = vrot.slane %v1221_v0, %v16549_v10  ;;  %v1250_v9 = vrot.slane %v1222_v1, %v16549_v10  ;;  %v773_v11 = vrot.slane %v16238_v60, %v16549_v10  ;;  %v356_v17 = vld [vmem:[#allocation4 + $0x298] sm:$0xff]  ;;  %v342_v60 = vld [vmem:[#allocation4 + $0x228] sm:$0xff] }
  0xa2   :  { %3417 = vmatprep.subr.mxu0 %v366_v23  ;;  %3536 = vmatprep.subr.mxu1 %v368_v24  ;;  %v1252_v13 = vcombine.high %v1229_v2, %v1236_v4  ;;  %v1251_v14 = vcombine.low %v1229_v2, %v1236_v4  ;;  %v774_v15 = vcombine.high %v766_v6, %v766_v6  ;;  %v355_v23 = vld [vmem:[#allocation4 + $0x290] sm:$0xff]  ;;  %v341_v4 = vld [vmem:[#allocation4 + $0x220] sm:$0xff] }
  0xa3   :  { %3418 = vmatpush2.msra.mxu0 %v365_v28  ;;  %3537 = vmatpush2.msra.mxu1 %v367_v32  ;;  %v782_v16 = vrot.slane %v766_v6, %v16549_v10  ;;  %v1254_v18 = vcombine.high %v1243_v8, %v1250_v9  ;;  %v1253_v19 = vcombine.low %v1243_v8, %v1250_v9  ;;  %v350_v28 = vld [vmem:[#allocation4 + $0x268] sm:$0xff]  ;;  %v16243_v6 = vld [vmem:[%s23058_s26 + $0x10] ss:$8 sps:$4 sm:$0xff]  }
  0xa4   :  { %3419 = vmatprep.subr.mxu0 %v362_v36  ;;  %3538 = vmatprep.subr.mxu1 %v364_v37  ;;  %v775_v20 = vcombine.high %v773_v11, %v773_v11  ;;  %v789_v21 = vrot.slane %v773_v11, %v16549_v10  ;;  %v1268_v24 = vrot.slane %v1252_v13, %v16549_v10  ;;  %v16240_v36 = vld [vmem:[%s23058_s26] ss:$8 sps:$4 sm:$0xff]   ;;  %v340_v9 = vld [vmem:[#allocation4 + $0x218] sm:$0xff] }
  0xa5   :  { %3420 = vmatpush2.msra.mxu0 %v361_v48  ;;  %3539 = vmatpush2.msra.mxu1 %v363_v49  ;;  %v1261_v25 = vrot.slane %v1251_v14, %v16549_v10  ;;  %v796_v26 = vrot.slane %v774_v15, %v16549_v10  ;;  %v804_v27 = vcombine.high %v782_v16, %v782_v16  ;;  %v351_v48 = vld [vmem:[#allocation4 + $0x270] sm:$0xff]  ;;  %v346_v49 = vld [vmem:[#allocation4 + $0x248] sm:$0xff]  ;;  %v337_v15 = vld [vmem:[#allocation4 + $0x200] sm:$0xff] }
  0xa6   :  { %3421 = vmatprep.subr.mxu0 %v358_v54  ;;  %3540 = vmatprep.subr.mxu1 %v360_v55  ;;  %v1282_v30 = vrot.slane %v1254_v18, %v16549_v10  ;;  %v1275_v31 = vrot.slane %v1253_v19, %v16549_v10  ;;  %v803_v32 = vrot.slane %v775_v20, %v16549_v10  ;;  %v338_v8 = vld [vmem:[#allocation4 + $0x208] sm:$0xff] }
  0xa7   :  { %15914 = vmatprep.mubr.msk.f32.mxu0 %vm1383_vm1, %v1218_v61  ;;  %15925 = vmatprep.mubr.msk.f32.mxu1 %vm1383_vm1, %v1218_v61  ;;  %v805_v33 = vcombine.high %v789_v21, %v789_v21  ;;  %v806_v37 = vcombine.high %v796_v26, %v796_v26  ;;  %v1285_v38 = vcombine.low %v757_v5, %v782_v16  ;;  %v344_v61 = vld [vmem:[#allocation4 + $0x238] sm:$0xff]  ;;  %v343_v5 = vld [vmem:[#allocation4 + $0x230] sm:$0xff] }
  0xa8   :  { %1510 = vmatmul.mubr.f32.gmra.mxu0 %v1217_v62  ;;  %1629 = vmatmul.mubr.f32.gmra.mxu1 %v1217_v62  ;;  %v1286_v39 = vcombine.low %v796_v26, %v804_v27  ;;  %v1284_v40 = vcombine.low %v1268_v24, %v1282_v30  ;;  %v1283_v41 = vcombine.low %v1261_v25, %v1275_v31 }
  0xa9   :  { %3422 = vmatpush2.msra.mxu0 %v357_v3  ;;  %3541 = vmatpush2.msra.mxu1 %v359_v7  ;;  %v1288_v42 = vcombine.low %v803_v32, %v805_v33  ;;  %v1287_v44 = vcombine.low %v806_v37, %v789_v21  ;;  %v1295_v45 = vrot.slane %v1285_v38, %v16549_v10 }
  0xaa   :  { %3423 = vmatprep.subr.mxu0 %v354_v12  ;;  %3542 = vmatprep.subr.mxu1 %v356_v17  ;;  %v1302_v46 = vrot.slane %v1286_v39, %v16549_v10  ;;  %v807_v47 = vcombine.high %v803_v32, %v803_v32  ;;  %v815_v51 = vrot.slane %v16239_v34, %v16549_v10  ;;  %v16245_v17 = vld [vmem:[%s23058_s26 + $0x14] ss:$8 sps:$4 sm:$0xff]  }
  0xab   :  { %3424 = vmatpush2.msra.mxu0 %v353_v22  ;;  %3543 = vmatpush2.msra.mxu1 %v355_v23  ;;  %v1316_v50 = vrot.slane %v1288_v42, %v16549_v10  ;;  %v2357_v53 = vrot.slane %v16240_v36, %v16549_v10  ;;  %v1309_v54 = vrot.slane %v1287_v44, %v16549_v10  ;;  %v16246_v42 = vld [vmem:[%s23058_s26 + $0x20] ss:$8 sps:$4 sm:$0xff]  }
  0xac   :  { %3425 = vmatprep.subr.mxu0 %v350_v28  ;;  %3544 = vmatprep.subr.mxu1 %v352_v29  ;;  %v1318_v55 = vcombine.high %v1295_v45, %v1302_v46  ;;  %v1317_v56 = vcombine.low %v1295_v45, %v1302_v46  ;;  %v822_v59 = vrot.slane %v815_v51, %v16549_v10  ;;  %v339_v28 = vld [vmem:[#allocation4 + $0x210] sm:$0xff] }
  0xad   :  { %3426 = vmatpush2.msra.mxu0 %v349_v35  ;;  %15915 = vmatprep.mubr.msk.f32.mxu0 %vm1383_vm1, %v1284_v40  ;;  %v2364_v62 = vrot.slane %v16242_v43, %v16549_v10  ;;  %v2365_v63 = vcombine.high %v2357_v53, %v2357_v53  ;;  %v1320_v0 = vcombine.high %v1309_v54, %v1316_v50  ;;  %v16248_v43 = vld [vmem:[%s23058_s26 + $0x24] ss:$8 sps:$4 sm:$0xff]  }
  0xae   :  { %15926 = vmatprep.mubr.msk.f32.mxu1 %vm1383_vm1, %v1284_v40  ;;  %1516 = vmatmul.mubr.f32.gmra.mxu0 %v1283_v41  ;;  %v1334_v1 = vrot.slane %v1318_v55, %v16549_v10  ;;  %v1319_v2 = vcombine.low %v1309_v54, %v1316_v50  ;;  %v1327_v3 = vrot.slane %v1317_v56, %v16549_v10 }
  0xaf   :  { %1635 = vmatmul.mubr.f32.gmra.mxu1 %v1283_v41  ;;  %3427 = vmatprep.subr.mxu0 %v346_v49  ;;  %v1351_v7 = vcombine.low %v807_v47, %v822_v59  ;;  %v2366_v11 = vcombine.high %v2364_v62, %v2364_v62  ;;  %v2373_v12 = vrot.slane %v2357_v53, %v16549_v10 }
  0xb0   :  { %3545 = vmatpush2.msra.mxu1 %v351_v48  ;;  %3428 = vmatpush2.msra.mxu0 %v345_v57  ;;  %v1348_v13 = vrot.slane %v1320_v0, %v16549_v10  ;;  %v1341_v14 = vrot.slane %v1319_v2, %v16549_v10  ;;  %v2380_v16 = vrot.slane %v2364_v62, %v16549_v10 }
  0xb1   :  { %3546 = vmatprep.subr.mxu1 %v348_v52  ;;  %3429 = vmatprep.subr.mxu0 %v342_v60  ;;  %v1358_v18 = vrot.slane %v1351_v7, %v16549_v10  ;;  %v2387_v19 = vrot.slane %v2365_v63, %v16549_v10  ;;  %v2394_v20 = vrot.slane %v2366_v11, %v16549_v10 }
  0xb2   :  { %3547 = vmatpush2.msra.mxu1 %v347_v58  ;;  %3430 = vmatpush2.msra.mxu0 %v341_v4  ;;  %v1350_v21 = vcombine.low %v1334_v1, %v1348_v13  ;;  %v1349_v22 = vcombine.low %v1327_v3, %v1341_v14  ;;  %v2407_v23 = vrot.slane %v16243_v6, %v16549_v10  ;;  %v16249_v3 = vld [vmem:[%s23058_s26 + $0x30] ss:$8 sps:$4 sm:$0xff]   ;;  %v16251_v4 = vld [vmem:[%s23058_s26 + $0x34] ss:$8 sps:$4 sm:$0xff]  }
  0xb3   :  { %3548 = vmatprep.subr.mxu1 %v344_v61  ;;  %3431 = vmatprep.subr.mxu0 %v338_v8  ;;  %v1359_v24 = vcombine.high %v1358_v18, %v1358_v18  ;;  %v1366_v25 = vrot.slane %v1358_v18, %v16549_v10  ;;  %v2779_v26 = vcombine.low %v2373_v12, %v2387_v19 }
  0xb4   :  { %3549 = vmatpush2.msra.mxu1 %v343_v5  ;;  %3432 = vmatpush2.msra.mxu0 %v337_v15  ;;  %v15929_v27 = vcombine.high %v2373_v12, %v2387_v19  ;;  %v2781_v29 = vcombine.low %v2380_v16, %v2394_v20  ;;  %v15930_v30 = vcombine.high %v2380_v16, %v2394_v20 }
  0xb5   :  { %3550 = vmatprep.subr.mxu1 %v340_v9  ;;  %15916 = vmatprep.mubr.msk.f32.mxu0 %vm1383_vm1, %v1350_v21  ;;  %v2414_v31 = vrot.slane %v16245_v17, %v16549_v10  ;;  %v1373_v32 = vrot.slane %v1359_v24, %v16549_v10  ;;  %v2789_v33 = vrot.slane %v2779_v26, %v16549_v10 }
  0xb6   :  { %15927 = vmatprep.mubr.msk.f32.mxu1 %vm1383_vm1, %v1350_v21  ;;  %1522 = vmatmul.mubr.f32.gmra.mxu0 %v1349_v22  ;;  %v2796_v34 = vrot.slane %v15929_v27, %v16549_v10  ;;  %v2803_v35 = vrot.slane %v2781_v29, %v16549_v10  ;;  %v2810_v36 = vrot.slane %v15930_v30, %v16549_v10 }
  0xb7   :  { %1641 = vmatmul.mubr.f32.gmra.mxu1 %v1349_v22  ;;  %v2415_v37 = vcombine.high %v2407_v23, %v2407_v23  ;;  %v2416_v38 = vcombine.high %v2414_v31, %v2414_v31  ;;  %15917 = vmatprep.mubr.msk.f32.mxu0 %vm1383_vm1, %v1373_v32  ;;  %v2423_v41 = vrot.slane %v2407_v23, %v16549_v10 }
  0xb8   :  { %3551 = vmatpush2.msra.mxu1 %v339_v28  ;;  %15928 = vmatprep.mubr.msk.f32.mxu1 %vm1383_vm1, %v1373_v32  ;;  %v2811_v39 = vcombine.low %v2789_v33, %v2796_v34  ;;  %v2812_v40 = vcombine.high %v2789_v33, %v2796_v34  ;;  %v2813_v44 = vcombine.low %v2803_v35, %v2810_v36  ;;  %v16252_v32 = vld [vmem:[%s23058_s26 + $0x40] ss:$8 sps:$4 sm:$0x11]  }
  0xb9   :  { %v2814_v45 = vcombine.high %v2803_v35, %v2810_v36  ;;  %v2430_v46 = vrot.slane %v2414_v31, %v16549_v10  ;;  %v2437_v47 = vrot.slane %v2415_v37, %v16549_v10  ;;  %v2444_v50 = vrot.slane %v2416_v38, %v16549_v10 }
  0xba   :  { %1528 = vmatmul.mubr.f32.gmra.mxu0 %v1366_v25  ;;  %v2828_v48 = vrot.slane %v2812_v40, %v16549_v10  ;;  %v2821_v49 = vrot.slane %v2811_v39, %v16549_v10  ;;  %v2835_v52 = vrot.slane %v2813_v44, %v16549_v10  ;;  %v2457_v57 = vrot.slane %v16246_v42, %v16549_v10  ;;  %v16253_v39 = vld [vmem:[%s23058_s26 + $0x50] ss:$8 sps:$4 sm:$0xff]   ;;  %v16255_v44 = vld [vmem:[%s23058_s26 + $0x54] ss:$8 sps:$4 sm:$0xff]  }
  0xbb   :  { %1647 = vmatmul.mubr.f32.gmra.mxu1 %v1366_v25  ;;  %v2842_v51 = vrot.slane %v2814_v45, %v16549_v10  ;;  %v2845_v53 = vcombine.low %v2423_v41, %v2437_v47  ;;  %v15931_v54 = vcombine.high %v2423_v41, %v2437_v47  ;;  %v2847_v55 = vcombine.low %v2430_v46, %v2444_v50 }
  0xbc   :  { %v15932_v56 = vcombine.high %v2430_v46, %v2444_v50  ;;  %v2464_v58 = vrot.slane %v16248_v43, %v16549_v10  ;;  %v2843_v60 = vcombine.low %v2821_v49, %v2835_v52  ;;  %v2465_v1 = vcombine.high %v2457_v57, %v2457_v57 }
  0xbd   :  { %v2844_v59 = vcombine.low %v2828_v48, %v2842_v51  ;;  %v2855_v61 = vrot.slane %v2845_v53, %v16549_v10  ;;  %v2862_v62 = vrot.slane %v15931_v54, %v16549_v10  ;;  %v2869_v63 = vrot.slane %v2847_v55, %v16549_v10 }
  0xbe   :  { %v2876_v0 = vrot.slane %v15932_v56, %v16549_v10  ;;  %v2466_v2 = vcombine.high %v2464_v58, %v2464_v58  ;;  %v2473_v7 = vrot.slane %v2457_v57, %v16549_v10  ;;  %v2480_v11 = vrot.slane %v2464_v58, %v16549_v10 }
  0xbf   :  { %15939 = vmatprep.mubr.msk.f32.mxu0 %vm1383_vm1, %v2844_v59  ;;  %15950 = vmatprep.mubr.msk.f32.mxu1 %vm1383_vm1, %v2844_v59  ;;  %v2878_v5 = vcombine.high %v2855_v61, %v2862_v62  ;;  %v2877_v6 = vcombine.low %v2855_v61, %v2862_v62  ;;  %v2487_v14 = vrot.slane %v2465_v1, %v16549_v10 }
  0xc0   :  { %3434 = vmatmul.mubr.f32.vlgmr.msra.gmra.mxu0 %v2843_v60  ;;  %3553 = vmatmul.mubr.f32.vlgmr.msra.gmra.mxu1 %v2843_v60  ;;  %v2880_v8 = vcombine.high %v2869_v63, %v2876_v0  ;;  %v2879_v9 = vcombine.low %v2869_v63, %v2876_v0  ;;  %v2494_v15 = vrot.slane %v2466_v2, %v16549_v10  ;;  %v16256_v0 = vld [vmem:[%s23058_s26 + $0x60] ss:$8 sps:$4 sm:$0xff]  }
  0xc1   :  { %v2894_v12 = vrot.slane %v2878_v5, %v16549_v10  ;;  %v2887_v13 = vrot.slane %v2877_v6, %v16549_v10  ;;  %v2507_v18 = vrot.slane %v16249_v3, %v16549_v10  ;;  %v2514_v19 = vrot.slane %v16251_v4, %v16549_v10 }
  0xc2   :  { %v2908_v16 = vrot.slane %v2880_v8, %v16549_v10  ;;  %v2901_v17 = vrot.slane %v2879_v9, %v16549_v10  ;;  %v2911_v20 = vcombine.low %v2473_v7, %v2487_v14  ;;  %v15933_v21 = vcombine.high %v2473_v7, %v2487_v14  ;;  %v16258_v8 = vld [vmem:[%s23058_s26 + $0x64] ss:$8 sps:$4 sm:$0xff]  }
  0xc3   :  { %v2913_v22 = vcombine.low %v2480_v11, %v2494_v15  ;;  %v15934_v23 = vcombine.high %v2480_v11, %v2494_v15  ;;  %v2515_v26 = vcombine.high %v2507_v18, %v2507_v18  ;;  %v2516_v27 = vcombine.high %v2514_v19, %v2514_v19 }
  0xc4   :  { %v2910_v24 = vcombine.low %v2894_v12, %v2908_v16  ;;  %v2909_v25 = vcombine.low %v2887_v13, %v2901_v17  ;;  %v2921_v28 = vrot.slane %v2911_v20, %v16549_v10  ;;  %v2928_v29 = vrot.slane %v15933_v21, %v16549_v10 }
  0xc5   :  { %v2935_v30 = vrot.slane %v2913_v22, %v16549_v10  ;;  %v2942_v31 = vrot.slane %v15934_v23, %v16549_v10  ;;  %v2523_v33 = vrot.slane %v2507_v18, %v16549_v10  ;;  %v2530_v34 = vrot.slane %v2514_v19, %v16549_v10 }
  0xc6   :  { %15940 = vmatprep.mubr.msk.f32.mxu0 %vm1383_vm1, %v2910_v24  ;;  %15951 = vmatprep.mubr.msk.f32.mxu1 %vm1383_vm1, %v2910_v24  ;;  %v2537_v35 = vrot.slane %v2515_v26, %v16549_v10  ;;  %v2944_v36 = vcombine.high %v2921_v28, %v2928_v29  ;;  %v2943_v38 = vcombine.low %v2921_v28, %v2928_v29 }
  0xc7   :  { %3440 = vmatmul.mubr.f32.gmra.mxu0 %v2909_v25  ;;  %3559 = vmatmul.mubr.f32.gmra.mxu1 %v2909_v25  ;;  %v2946_v37 = vcombine.high %v2935_v30, %v2942_v31  ;;  %v2945_v40 = vcombine.low %v2935_v30, %v2942_v31  ;;  %v2544_v41 = vrot.slane %v2516_v27, %v16549_v10 }
  0xc8   :  { %v2977_v42 = vcombine.low %v2523_v33, %v2537_v35  ;;  %v15935_v43 = vcombine.high %v2523_v33, %v2537_v35  ;;  %v2960_v45 = vrot.slane %v2944_v36, %v16549_v10  ;;  %v2953_v47 = vrot.slane %v2943_v38, %v16549_v10 }
  0xc9   :  { %v2974_v46 = vrot.slane %v2946_v37, %v16549_v10  ;;  %v2556_v48 = vrot.slane %v16252_v32, %v16549_v10  ;;  %v2967_v49 = vrot.slane %v2945_v40, %v16549_v10  ;;  %v2979_v50 = vcombine.low %v2530_v34, %v2544_v41  ;;  %v16259_v40 = vld [vmem:[%s23058_s26 + $0x70] ss:$8 sps:$4 sm:$0xff]  }
  0xca   :  { %v15936_v51 = vcombine.high %v2530_v34, %v2544_v41  ;;  %v2987_v52 = vrot.slane %v2977_v42, %v16549_v10  ;;  %v2994_v54 = vrot.slane %v15935_v43, %v16549_v10  ;;  %v2572_v56 = vrot.slane %v16253_v39, %v16549_v10  ;;  %v16261_v41 = vld [vmem:[%s23058_s26 + $0x74] ss:$8 sps:$4 sm:$0xff]  }
  0xcb   :  { %v2976_v53 = vcombine.low %v2960_v45, %v2974_v46  ;;  %v2563_v55 = vrot.slane %v2556_v48, %v16549_v10  ;;  %v2975_v57 = vcombine.low %v2953_v47, %v2967_v49  ;;  %v3001_v58 = vrot.slane %v2979_v50, %v16549_v10 }
  0xcc   :  { %v3008_v59 = vrot.slane %v15936_v51, %v16549_v10  ;;  %v2579_v60 = vrot.slane %v16255_v44, %v16549_v10  ;;  %v3010_v61 = vcombine.high %v2987_v52, %v2994_v54  ;;  %v3009_v62 = vcombine.low %v2987_v52, %v2994_v54 }
  0xcd   :  { %15941 = vmatprep.mubr.msk.f32.mxu0 %vm1383_vm1, %v2976_v53  ;;  %15952 = vmatprep.mubr.msk.f32.mxu1 %vm1383_vm1, %v2976_v53  ;;  %v2580_v63 = vcombine.high %v2572_v56, %v2572_v56  ;;  %v2588_v6 = vrot.slane %v2572_v56, %v16549_v10  ;;  %v2622_v17 = vrot.slane %v16256_v0, %v16549_v10 }
  0xce   :  { %3446 = vmatmul.mubr.f32.gmra.mxu0 %v2975_v57  ;;  %3565 = vmatmul.mubr.f32.gmra.mxu1 %v2975_v57  ;;  %v3012_v1 = vcombine.high %v3001_v58, %v3008_v59  ;;  %v3011_v2 = vcombine.low %v3001_v58, %v3008_v59  ;;  %v2581_v3 = vcombine.high %v2579_v60, %v2579_v60 }
  0xcf   :  { %v3026_v4 = vrot.slane %v3010_v61, %v16549_v10  ;;  %v3019_v5 = vrot.slane %v3009_v62, %v16549_v10  ;;  %v2595_v7 = vrot.slane %v2579_v60, %v16549_v10  ;;  %v2602_v12 = vrot.slane %v2580_v63, %v16549_v10 }
  0xd0   :  { %v3040_v9 = vrot.slane %v3012_v1, %v16549_v10  ;;  %v3033_v11 = vrot.slane %v3011_v2, %v16549_v10  ;;  %v2609_v13 = vrot.slane %v2581_v3, %v16549_v10  ;;  %v2610_v14 = vcombine.high %v2588_v6, %v2588_v6  ;;  %v16262_v2 = vld [vmem:[%s23058_s26 + $0x80] ss:$8 sps:$4 sm:$0xff]  }
  0xd1   :  { %v2611_v15 = vcombine.high %v2595_v7, %v2595_v7  ;;  %v3043_v16 = vcombine.low %v2563_v55, %v2588_v6  ;;  %v2612_v20 = vcombine.high %v2602_v12, %v2602_v12  ;;  %v2629_v25 = vrot.slane %v16258_v8, %v16549_v10 }
  0xd2   :  { %v3042_v18 = vcombine.low %v3026_v4, %v3040_v9  ;;  %v3041_v19 = vcombine.low %v3019_v5, %v3033_v11  ;;  %v2613_v21 = vcombine.high %v2609_v13, %v2609_v13  ;;  %v3044_v22 = vcombine.low %v2602_v12, %v2610_v14  ;;  %v16264_v9 = vld [vmem:[%s23058_s26 + $0x84] ss:$8 sps:$4 sm:$0xff]  }
  0xd3   :  { %v3046_v23 = vcombine.low %v2609_v13, %v2611_v15  ;;  %v3053_v24 = vrot.slane %v3043_v16, %v16549_v10  ;;  %v3045_v26 = vcombine.low %v2612_v20, %v2595_v7  ;;  %v2630_v27 = vcombine.high %v2622_v17, %v2622_v17 }
  0xd4   :  { %15942 = vmatprep.mubr.msk.f32.mxu0 %vm1383_vm1, %v3042_v18  ;;  %15953 = vmatprep.mubr.msk.f32.mxu1 %vm1383_vm1, %v3042_v18  ;;  %v2638_v28 = vrot.slane %v2622_v17, %v16549_v10  ;;  %v3060_v29 = vrot.slane %v3044_v22, %v16549_v10  ;;  %v2631_v31 = vcombine.high %v2629_v25, %v2629_v25 }
  0xd5   :  { %3452 = vmatmul.mubr.f32.gmra.mxu0 %v3041_v19  ;;  %3571 = vmatmul.mubr.f32.gmra.mxu1 %v3041_v19  ;;  %v3074_v30 = vrot.slane %v3046_v23, %v16549_v10  ;;  %v3067_v32 = vrot.slane %v3045_v26, %v16549_v10  ;;  %v2645_v33 = vrot.slane %v2629_v25, %v16549_v10 }
  0xd6   :  { %v2652_v34 = vrot.slane %v2630_v27, %v16549_v10  ;;  %v2660_v35 = vcombine.high %v2638_v28, %v2638_v28  ;;  %v3076_v36 = vcombine.high %v3053_v24, %v3060_v29  ;;  %v3075_v37 = vcombine.low %v3053_v24, %v3060_v29 }
  0xd7   :  { %v2659_v38 = vrot.slane %v2631_v31, %v16549_v10  ;;  %v3109_v39 = vcombine.low %v2613_v21, %v2638_v28  ;;  %v3078_v42 = vcombine.high %v3067_v32, %v3074_v30  ;;  %v3077_v43 = vcombine.low %v3067_v32, %v3074_v30 }
  0xd8   :  { %v2661_v44 = vcombine.high %v2645_v33, %v2645_v33  ;;  %v2662_v45 = vcombine.high %v2652_v34, %v2652_v34  ;;  %v3092_v46 = vrot.slane %v3076_v36, %v16549_v10  ;;  %v3085_v47 = vrot.slane %v3075_v37, %v16549_v10 }
  0xd9   :  { %v3110_v48 = vcombine.low %v2652_v34, %v2660_v35  ;;  %v3119_v49 = vrot.slane %v3109_v39, %v16549_v10  ;;  %v3106_v50 = vrot.slane %v3078_v42, %v16549_v10  ;;  %v3099_v51 = vrot.slane %v3077_v43, %v16549_v10 }
  0xda   :  { %v3111_v52 = vcombine.low %v2662_v45, %v2645_v33  ;;  %v3112_v53 = vcombine.low %v2659_v38, %v2661_v44  ;;  %v2663_v55 = vcombine.high %v2659_v38, %v2659_v38  ;;  %v2672_v56 = vrot.slane %v16259_v40, %v16549_v10 }
  0xdb   :  { %v3126_v54 = vrot.slane %v3110_v48, %v16549_v10  ;;  %v2679_v57 = vrot.slane %v16261_v41, %v16549_v10  ;;  %v3108_v58 = vcombine.low %v3092_v46, %v3106_v50  ;;  %v3107_v59 = vcombine.low %v3085_v47, %v3099_v51  ;;  %v16265_v41 = vld [vmem:[%s23058_s26 + $0x90] ss:$8 sps:$4 sm:$0x11]   ;;  %s16410_s26 = smov 8  }
  0xdc   :  { %v3133_v60 = vrot.slane %v3111_v52, %v16549_v10  ;;  %v3140_v61 = vrot.slane %v3112_v53, %v16549_v10  ;;  %v2680_v0 = vcombine.high %v2672_v56, %v2672_v56  ;;  %v2688_v5 = vrot.slane %v2672_v56, %v16549_v10 }
  0xdd   :  { %v3142_v62 = vcombine.high %v3119_v49, %v3126_v54  ;;  %v3141_v63 = vcombine.low %v3119_v49, %v3126_v54  ;;  %v2681_v1 = vcombine.high %v2679_v57, %v2679_v57  ;;  %15943 = vmatprep.mubr.msk.f32.mxu0 %vm1383_vm1, %v3108_v58  ;;  %15954 = vmatprep.mubr.msk.f32.mxu1 %vm1383_vm1, %v3108_v58 }
  0xde   :  { %v3144_v3 = vcombine.high %v3133_v60, %v3140_v61  ;;  %v3143_v4 = vcombine.low %v3133_v60, %v3140_v61  ;;  %3458 = vmatmul.mubr.f32.gmra.mxu0 %v3107_v59  ;;  %3577 = vmatmul.mubr.f32.gmra.mxu1 %v3107_v59  ;;  %v2695_v8 = vrot.slane %v2679_v57, %v16549_v10 }
  0xdf   :  { %v3158_v6 = vrot.slane %v3142_v62, %v16549_v10  ;;  %v3151_v7 = vrot.slane %v3141_v63, %v16549_v10  ;;  %v2702_v13 = vrot.slane %v2680_v0, %v16549_v10  ;;  %v2709_v14 = vrot.slane %v2681_v1, %v16549_v10 }
  0xe0   :  { %v3172_v11 = vrot.slane %v3144_v3, %v16549_v10  ;;  %v3165_v12 = vrot.slane %v3143_v4, %v16549_v10  ;;  %v2710_v15 = vcombine.high %v2688_v5, %v2688_v5  ;;  %v2711_v16 = vcombine.high %v2695_v8, %v2695_v8 }
  0xe1   :  { %v3175_v17 = vcombine.low %v2663_v55, %v2688_v5  ;;  %v2722_v18 = vrot.slane %v16262_v2, %v16549_v10  ;;  %v2712_v21 = vcombine.high %v2702_v13, %v2702_v13  ;;  %v2713_v22 = vcombine.high %v2709_v14, %v2709_v14 }
  0xe2   :  { %v3174_v19 = vcombine.low %v3158_v6, %v3172_v11  ;;  %v3173_v20 = vcombine.low %v3151_v7, %v3165_v12  ;;  %v3176_v23 = vcombine.low %v2702_v13, %v2710_v15  ;;  %v3178_v24 = vcombine.low %v2709_v14, %v2711_v16 }
  0xe3   :  { %v3185_v25 = vrot.slane %v3175_v17, %v16549_v10  ;;  %v2729_v26 = vrot.slane %v16264_v9, %v16549_v10  ;;  %v3177_v27 = vcombine.low %v2712_v21, %v2695_v8  ;;  %v2730_v28 = vcombine.high %v2722_v18, %v2722_v18 }
  0xe4   :  { %15944 = vmatprep.mubr.msk.f32.mxu0 %vm1383_vm1, %v3174_v19  ;;  %15955 = vmatprep.mubr.msk.f32.mxu1 %vm1383_vm1, %v3174_v19  ;;  %v2738_v29 = vrot.slane %v2722_v18, %v16549_v10  ;;  %v3192_v30 = vrot.slane %v3176_v23, %v16549_v10  ;;  %v3206_v31 = vrot.slane %v3178_v24, %v16549_v10 }
  0xe5   :  { %3464 = vmatmul.mubr.f32.gmra.mxu0 %v3173_v20  ;;  %3583 = vmatmul.mubr.f32.gmra.mxu1 %v3173_v20  ;;  %v2731_v32 = vcombine.high %v2729_v26, %v2729_v26  ;;  %v3199_v33 = vrot.slane %v3177_v27, %v16549_v10  ;;  %v2745_v34 = vrot.slane %v2729_v26, %v16549_v10 }
  0xe6   :  { %v2752_v35 = vrot.slane %v2730_v28, %v16549_v10  ;;  %v2760_v36 = vcombine.high %v2738_v29, %v2738_v29  ;;  %v3208_v37 = vcombine.high %v3185_v25, %v3192_v30  ;;  %v3207_v38 = vcombine.low %v3185_v25, %v3192_v30 }
  0xe7   :  { %v2759_v39 = vrot.slane %v2731_v32, %v16549_v10  ;;  %v3241_v40 = vcombine.low %v2713_v22, %v2738_v29  ;;  %v3210_v42 = vcombine.high %v3199_v33, %v3206_v31  ;;  %v3209_v43 = vcombine.low %v3199_v33, %v3206_v31 }
  0xe8   :  { %v2761_v44 = vcombine.high %v2745_v34, %v2745_v34  ;;  %v2762_v45 = vcombine.high %v2752_v35, %v2752_v35  ;;  %v3224_v46 = vrot.slane %v3208_v37, %v16549_v10  ;;  %v3217_v47 = vrot.slane %v3207_v38, %v16549_v10 }
  0xe9   :  { %v3242_v48 = vcombine.low %v2752_v35, %v2760_v36  ;;  %v3251_v49 = vrot.slane %v3241_v40, %v16549_v10  ;;  %v3238_v50 = vrot.slane %v3210_v42, %v16549_v10  ;;  %v3231_v51 = vrot.slane %v3209_v43, %v16549_v10 }
  0xea   :  { %v3243_v52 = vcombine.low %v2762_v45, %v2745_v34  ;;  %v3244_v53 = vcombine.low %v2759_v39, %v2761_v44  ;;  %v2763_v55 = vcombine.high %v2759_v39, %v2759_v39  ;;  %v2771_v56 = vrot.slane %v16265_v41, %v16549_v10 }
  0xeb   :  { %v3258_v54 = vrot.slane %v3242_v48, %v16549_v10  ;;  %v3240_v57 = vcombine.low %v3224_v46, %v3238_v50  ;;  %v3239_v58 = vcombine.low %v3217_v47, %v3231_v51 }
  0xec   :  { %v3265_v59 = vrot.slane %v3243_v52, %v16549_v10  ;;  %v3272_v60 = vrot.slane %v3244_v53, %v16549_v10  ;;  %v2778_v63 = vrot.slane %v2771_v56, %v16549_v10 }
  0xed   :  { %v3274_v61 = vcombine.high %v3251_v49, %v3258_v54  ;;  %v3273_v62 = vcombine.low %v3251_v49, %v3258_v54  ;;  %15945 = vmatprep.mubr.msk.f32.mxu0 %vm1383_vm1, %v3240_v57  ;;  %15956 = vmatprep.mubr.msk.f32.mxu1 %vm1383_vm1, %v3240_v57 }
  0xee   :  { %v3276_v0 = vcombine.high %v3265_v59, %v3272_v60  ;;  %v3275_v1 = vcombine.low %v3265_v59, %v3272_v60  ;;  %3470 = vmatmul.mubr.f32.gmra.mxu0 %v3239_v58  ;;  %3589 = vmatmul.mubr.f32.gmra.mxu1 %v3239_v58  ;;  %v3307_v4 = vcombine.low %v2763_v55, %v2778_v63 }
  0xef   :  { %v3290_v2 = vrot.slane %v3274_v61, %v16549_v10  ;;  %v3283_v3 = vrot.slane %v3273_v62, %v16549_v10 }
  0xf0   :  { %v3304_v5 = vrot.slane %v3276_v0, %v16549_v10  ;;  %v3297_v6 = vrot.slane %v3275_v1, %v16549_v10  ;;  %v3314_v7 = vrot.slane %v3307_v4, %v16549_v10 }
  0xf2   :  { %v3306_v8 = vcombine.low %v3290_v2, %v3304_v5  ;;  %v3305_v9 = vcombine.low %v3283_v3, %v3297_v6  ;;  %v3315_v11 = vcombine.high %v3314_v7, %v3314_v7  ;;  %v3322_v13 = vrot.slane %v3314_v7, %v16549_v10 }
  0xf4   :  { %15946 = vmatprep.mubr.msk.f32.mxu0 %vm1383_vm1, %v3306_v8  ;;  %15957 = vmatprep.mubr.msk.f32.mxu1 %vm1383_vm1, %v3306_v8  ;;  %v3329_v12 = vrot.slane %v3315_v11, %v16549_v10 }
  0xf5   :  { %3476 = vmatmul.mubr.f32.gmra.mxu0 %v3305_v9  ;;  %3595 = vmatmul.mubr.f32.gmra.mxu1 %v3305_v9 }
  0xf6   :  { %15947 = vmatprep.mubr.msk.f32.mxu0 %vm1383_vm1, %v3329_v12  ;;  %15958 = vmatprep.mubr.msk.f32.mxu1 %vm1383_vm1, %v3329_v12 }
  0xf9   :  { %3482 = vmatmul.mubr.f32.gmra.mxu0 %v3322_v13  ;;  %3601 = vmatmul.mubr.f32.gmra.mxu1 %v3322_v13 }
 0x138   :  { %v1481_v14 = vpop.f32.mrf.mxu0  ;;  %v1600_v15 = vpop.f32.mrf.mxu1 }
 0x13a   :  { %v1483_v16 = vpop.f32.mrf.mxu0  ;;  %v1602_v17 = vpop.f32.mrf.mxu1 }
 0x13b   :  { %v1689_v18 = vcombine.low %v1481_v14, %v1483_v16  ;;  %v1690_v19 = vcombine.high %v1481_v14, %v1483_v16  ;;  %v1691_v20 = vcombine.low %v1600_v15, %v1602_v17  ;;  %v1692_v21 = vcombine.high %v1600_v15, %v1602_v17 }
 0x13d   :  { %v1699_v22 = vrot.slane %v1689_v18, %v16549_v10  ;;  %v1706_v23 = vrot.slane %v1690_v19, %v16549_v10  ;;  %v1713_v24 = vrot.slane %v1691_v20, %v16549_v10  ;;  %v1720_v25 = vrot.slane %v1692_v21, %v16549_v10 }
 0x13f   :  { %v1721_v26 = vcombine.low %v1699_v22, %v1713_v24  ;;  %v1722_v27 = vcombine.high %v1699_v22, %v1713_v24  ;;  %v1723_v28 = vcombine.low %v1706_v23, %v1720_v25  ;;  %v1724_v29 = vcombine.high %v1706_v23, %v1720_v25 }
 0x141   :  { %v16984_v11 = vrot.slane %v1721_v26, %v16549_v10  ;;  %v16987_v12 = vrot.slane %v1723_v28, %v16549_v10  ;;  %v16990_v13 = vrot.slane %v1722_v27, %v16549_v10  ;;  %v16993_v14 = vrot.slane %v1724_v29, %v16549_v10 }
 0x143   :  { %v17005_v19 = vcombine.high %v16984_v11, %v16984_v11  ;;  %v17009_v20 = vcombine.high %v16987_v12, %v16987_v12  ;;  %v17013_v21 = vcombine.high %v16990_v13, %v16990_v13  ;;  %v17017_v22 = vcombine.high %v16993_v14, %v16993_v14 }
 0x149   :  { %v1487_v30 = vpop.f32.mrf.mxu0  ;;  %v1606_v31 = vpop.f32.mrf.mxu1 }
 0x14b   :  { %v1489_v32 = vpop.f32.mrf.mxu0  ;;  %v1608_v33 = vpop.f32.mrf.mxu1 }
 0x14c   :  { %v1757_v34 = vcombine.low %v1487_v30, %v1489_v32  ;;  %v1758_v35 = vcombine.high %v1487_v30, %v1489_v32  ;;  %v1759_v36 = vcombine.low %v1606_v31, %v1608_v33  ;;  %v1760_v37 = vcombine.high %v1606_v31, %v1608_v33 }
 0x14e   :  { %v1767_v38 = vrot.slane %v1757_v34, %v16549_v10  ;;  %v1774_v39 = vrot.slane %v1758_v35, %v16549_v10  ;;  %v1781_v40 = vrot.slane %v1759_v36, %v16549_v10  ;;  %v1788_v41 = vrot.slane %v1760_v37, %v16549_v10 }
 0x14f   :  { %v1493_v42 = vpop.f32.mrf.mxu0  ;;  %v1612_v43 = vpop.f32.mrf.mxu1 }
 0x150   :  { %v1789_v44 = vcombine.low %v1767_v38, %v1781_v40  ;;  %v1790_v45 = vcombine.high %v1767_v38, %v1781_v40  ;;  %v1791_v46 = vcombine.low %v1774_v39, %v1788_v41  ;;  %v1792_v47 = vcombine.high %v1774_v39, %v1788_v41 }
 0x151   :  { %v1495_v48 = vpop.f32.mrf.mxu0  ;;  %v1614_v49 = vpop.f32.mrf.mxu1 }
 0x152   :  { %v1825_v50 = vcombine.low %v1493_v42, %v1495_v48  ;;  %v1826_v51 = vcombine.high %v1493_v42, %v1495_v48  ;;  %v1827_v52 = vcombine.low %v1612_v43, %v1614_v49  ;;  %v1828_v53 = vcombine.high %v1612_v43, %v1614_v49 }
 0x153   :  { %v17020_v23 = vrot.slane %v1789_v44, %v16549_v10  ;;  %v17023_v24 = vrot.slane %v1791_v46, %v16549_v10  ;;  %v17026_v25 = vrot.slane %v1790_v45, %v16549_v10  ;;  %v17029_v28 = vrot.slane %v1792_v47, %v16549_v10 }
 0x154   :  { %v1835_v56 = vrot.slane %v1825_v50, %v16549_v10  ;;  %v1842_v57 = vrot.slane %v1826_v51, %v16549_v10  ;;  %v1849_v58 = vrot.slane %v1827_v52, %v16549_v10  ;;  %v1856_v59 = vrot.slane %v1828_v53, %v16549_v10 }
 0x155   :  { %v1499_v54 = vpop.f32.mrf.mxu0  ;;  %v1618_v55 = vpop.f32.mrf.mxu1  ;;  %v17040_v36 = vcombine.high %v17020_v23, %v17020_v23  ;;  %v17044_v37 = vcombine.high %v17023_v24, %v17023_v24  ;;  %v17048_v38 = vcombine.high %v17026_v25, %v17026_v25  ;;  %v17052_v41 = vcombine.high %v17029_v28, %v17029_v28 }
 0x156   :  { %v1857_v2 = vcombine.low %v1835_v56, %v1849_v58  ;;  %v1858_v3 = vcombine.high %v1835_v56, %v1849_v58  ;;  %v1859_v4 = vcombine.low %v1842_v57, %v1856_v59  ;;  %v1860_v5 = vcombine.high %v1842_v57, %v1856_v59 }
 0x157   :  { %v1501_v60 = vpop.f32.mrf.mxu0  ;;  %v1620_v61 = vpop.f32.mrf.mxu1 }
 0x158   :  { %v1893_v62 = vcombine.low %v1499_v54, %v1501_v60  ;;  %v1894_v63 = vcombine.high %v1499_v54, %v1501_v60  ;;  %v1895_v0 = vcombine.low %v1618_v55, %v1620_v61  ;;  %v1896_v1 = vcombine.high %v1618_v55, %v1620_v61 }
 0x159   :  { %v17055_v42 = vrot.slane %v1857_v2, %v16549_v10  ;;  %v17058_v43 = vrot.slane %v1859_v4, %v16549_v10  ;;  %v17061_v44 = vrot.slane %v1858_v3, %v16549_v10  ;;  %v17067_v48 = vrot.slane %v1860_v5, %v16549_v10 }
 0x15a   :  { %v16972_v6 = vrot.slane %v1893_v62, %v16549_v10  ;;  %v16975_v7 = vrot.slane %v1894_v63, %v16549_v10  ;;  %v16978_v8 = vrot.slane %v1895_v0, %v16549_v10  ;;  %v16981_v9 = vrot.slane %v1896_v1, %v16549_v10 }
 0x15b   :  { %v17076_v58 = vcombine.high %v17055_v42, %v17055_v42  ;;  %v17080_v59 = vcombine.high %v17058_v43, %v17058_v43  ;;  %v17084_v60 = vcombine.high %v17061_v44, %v17061_v44  ;;  %v17088_v63 = vcombine.high %v17067_v48, %v17067_v48 }
 0x15c   :  { %v1925_v15 = vcombine.low %v16972_v6, %v16978_v8  ;;  %v1926_v16 = vcombine.high %v16972_v6, %v16978_v8  ;;  %v1927_v17 = vcombine.low %v16975_v7, %v16981_v9  ;;  %v1928_v18 = vcombine.high %v16975_v7, %v16981_v9 }
 0x15e   :  { %v17102_v2 = vrot.slane %v1925_v15, %v16549_v10  ;;  %v17120_v15 = vrot.slane %v1928_v18, %v16549_v10 }
 0x15f   :  { %v1505_v26 = vpop.f32.mrf.mxu0  ;;  %v1624_v27 = vpop.f32.mrf.mxu1 }
 0x160   :  { %v17129_v0 = vcombine.high %v17102_v2, %v17102_v2  ;;  %v17141_v18 = vcombine.high %v17120_v15, %v17120_v15 }
 0x161   :  { %v1507_v39 = vpop.f32.mrf.mxu0  ;;  %v1626_v40 = vpop.f32.mrf.mxu1 }
 0x162   :  { %v1961_v49 = vcombine.low %v1505_v26, %v1507_v39  ;;  %v1962_v50 = vcombine.high %v1505_v26, %v1507_v39  ;;  %v1963_v51 = vcombine.low %v1624_v27, %v1626_v40  ;;  %v1964_v52 = vcombine.high %v1624_v27, %v1626_v40  ;;  %23060 = vst [vmem:[#allocation14_spill] sm:$0xff] %v17141_v18 }
 0x164   :  { %v1971_v3 = vrot.slane %v1961_v49, %v16549_v10  ;;  %v1978_v4 = vrot.slane %v1962_v50, %v16549_v10  ;;  %v1985_v5 = vrot.slane %v1963_v51, %v16549_v10  ;;  %v1992_v26 = vrot.slane %v1964_v52, %v16549_v10 }
 0x165   :  { %v17105_v49 = vrot.slane %v1927_v17, %v16549_v10  ;;  %v17111_v50 = vrot.slane %v1926_v16, %v16549_v10 }
 0x166   :  { %v1993_v17 = vcombine.low %v1971_v3, %v1985_v5 }
 0x167   :  { %v17133_v7 = vcombine.high %v17105_v49, %v17105_v49  ;;  %v17137_v9 = vcombine.high %v17111_v50, %v17111_v50 }
 0x168   :  { %v1511_v61 = vpop.f32.mrf.mxu0  ;;  %v1630_v62 = vpop.f32.mrf.mxu1 }
 0x169   :  { %23059 = vst [vmem:[#allocation13_spill] sm:$0xff] %v17133_v7  ;;  %v23104_v7 = vrot.slane %v16987_v12, 2 }
 0x16a   :  { %v1513_v27 = vpop.f32.mrf.mxu0  ;;  %v1632_v39 = vpop.f32.mrf.mxu1 }
 0x16b   :  { %v2029_v40 = vcombine.low %v1511_v61, %v1513_v27  ;;  %v2030_v47 = vcombine.high %v1511_v61, %v1513_v27  ;;  %v2031_v57 = vcombine.low %v1630_v62, %v1632_v39  ;;  %v2032_v56 = vcombine.high %v1630_v62, %v1632_v39 }
 0x16c   :  { %v1994_v62 = vcombine.high %v1971_v3, %v1985_v5  ;;  %v1995_v27 = vcombine.low %v1978_v4, %v1992_v26  ;;  %v1996_v39 = vcombine.high %v1978_v4, %v1992_v26  ;;  %v17147_v5 = vrot.slane %v1993_v17, %v16549_v10 }
 0x16d   :  { %v2039_v6 = vrot.slane %v2029_v40, %v16549_v10  ;;  %v2046_v8 = vrot.slane %v2030_v47, %v16549_v10  ;;  %v2053_v16 = vrot.slane %v2031_v57, %v16549_v10  ;;  %v2060_v52 = vrot.slane %v2032_v56, %v16549_v10 }
 0x16e   :  { %v1517_v3 = vpop.f32.mrf.mxu0  ;;  %23061 = vst [vmem:[#allocation15_spill] sm:$0xff] %v17147_v5  ;;  %v17150_v26 = vrot.slane %v1995_v27, %v16549_v10  ;;  %v17153_v40 = vrot.slane %v1994_v62, %v16549_v10  ;;  %v17156_v61 = vrot.slane %v1996_v39, %v16549_v10  ;;  %v17164_v39 = vcombine.high %v17147_v5, %v17147_v5 }
 0x16f   :  { %v1636_v4 = vpop.f32.mrf.mxu1  ;;  %v2061_v51 = vcombine.low %v2039_v6, %v2053_v16  ;;  %v2062_v47 = vcombine.high %v2039_v6, %v2053_v16  ;;  %v2063_v1 = vcombine.low %v2046_v8, %v2060_v52  ;;  %v2064_v56 = vcombine.high %v2046_v8, %v2060_v52 }
 0x170   :  { %23062 = vst [vmem:[#allocation16_spill] sm:$0xff] %v17150_v26  ;;  %23063 = vst [vmem:[#allocation17_spill] sm:$0xff] %v17153_v40  ;;  %v1519_v54 = vpop.f32.mrf.mxu0  ;;  %v17168_v52 = vcombine.high %v17150_v26, %v17150_v26  ;;  %v17176_v6 = vcombine.high %v17156_v61, %v17156_v61  ;;  %v23102_v5 = vrot.slane %v17013_v21, 2 }
 0x171   :  { %23064 = vst [vmem:[#allocation18_spill] sm:$0xff] %v17156_v61  ;;  %v1638_v57 = vpop.f32.mrf.mxu1  ;;  %v2097_v53 = vcombine.low %v1517_v3, %v1519_v54  ;;  %v2098_v55 = vcombine.high %v1517_v3, %v1519_v54  ;;  %23065 = vst [vmem:[#allocation19_spill] sm:$0xff] %v17164_v39  ;;  %v17172_v54 = vcombine.high %v17153_v40, %v17153_v40 }
 0x172   :  { %v2099_v46 = vcombine.low %v1636_v4, %v1638_v57  ;;  %v2100_v17 = vcombine.high %v1636_v4, %v1638_v57  ;;  %23066 = vst [vmem:[#allocation20_spill] sm:$0xff] %v17168_v52  ;;  %23068 = vst [vmem:[#allocation22_spill] sm:$0xff] %v17176_v6  ;;  %v17179_v8 = vrot.slane %v2061_v51, %v16549_v10 }
 0x173   :  { %23067 = vst [vmem:[#allocation21_spill] sm:$0xff] %v17172_v54  ;;  %v17182_v16 = vrot.slane %v2063_v1, %v16549_v10  ;;  %v17185_v57 = vrot.slane %v2062_v47, %v16549_v10  ;;  %v17188_v3 = vrot.slane %v2064_v56, %v16549_v10  ;;  %v2107_v4 = vrot.slane %v2097_v53, %v16549_v10 }
 0x174   :  { %23069 = vst [vmem:[#allocation23_spill] sm:$0xff] %v17179_v8  ;;  %v2114_v35 = vrot.slane %v2098_v55, %v16549_v10  ;;  %v2121_v62 = vrot.slane %v2099_v46, %v16549_v10  ;;  %v2128_v27 = vrot.slane %v2100_v17, %v16549_v10  ;;  %v17204_v51 = vcombine.high %v17179_v8, %v17179_v8 }
 0x175   :  { %23070 = vst [vmem:[#allocation24_spill] sm:$0xff] %v17182_v16  ;;  %23071 = vst [vmem:[#allocation25_spill] sm:$0xff] %v17185_v57  ;;  %v17208_v1 = vcombine.high %v17185_v57, %v17185_v57  ;;  %v17212_v47 = vcombine.high %v17182_v16, %v17182_v16 }
 0x176   :  { %23072 = vst [vmem:[#allocation26_spill] sm:$0xff] %v17188_v3  ;;  %v2129_v32 = vcombine.low %v2107_v4, %v2121_v62  ;;  %v2130_v53 = vcombine.high %v2107_v4, %v2121_v62  ;;  %v1523_v34 = vpop.f32.mrf.mxu0  ;;  %23073 = vst [vmem:[#allocation27_spill] sm:$0xff] %v17204_v51  ;;  %v17216_v62 = vcombine.high %v17188_v3, %v17188_v3 }
 0x177   :  { %v1642_v55 = vpop.f32.mrf.mxu1  ;;  %23074 = vst [vmem:[#allocation28_spill] sm:$0xff] %v17208_v1  ;;  %23075 = vst [vmem:[#allocation29_spill] sm:$0xff] %v17212_v47  ;;  %v2131_v4 = vcombine.low %v2114_v35, %v2128_v27  ;;  %v2132_v46 = vcombine.high %v2114_v35, %v2128_v27 }
 0x178   :  { %23076 = vst [vmem:[#allocation30_spill] sm:$0xff] %v17216_v62  ;;  %v1525_v56 = vpop.f32.mrf.mxu0  ;;  %v17221_v52 = vrot.slane %v2129_v32, %v16549_v10  ;;  %v17224_v54 = vrot.slane %v2130_v53, %v16549_v10 }
 0x179   :  { %v1644_v17 = vpop.f32.mrf.mxu1  ;;  %v2165_v30 = vcombine.low %v1523_v34, %v1525_v56  ;;  %v2166_v45 = vcombine.high %v1523_v34, %v1525_v56  ;;  %v17233_v32 = vrot.slane %v2131_v4, %v16549_v10  ;;  %v17236_v53 = vrot.slane %v2132_v46, %v16549_v10 }
 0x17a   :  { %v2167_v33 = vcombine.low %v1642_v55, %v1644_v17  ;;  %v2168_v31 = vcombine.high %v1642_v55, %v1644_v17  ;;  %23077 = vst [vmem:[#allocation31_spill] sm:$0xff] %v17221_v52  ;;  %23078 = vst [vmem:[#allocation32_spill] sm:$0xff] %v17224_v54  ;;  %v1529_v39 = vpop.f32.mrf.mxu0  ;;  %v17244_v55 = vcombine.high %v17221_v52, %v17221_v52 }
 0x17b   :  { %v1648_v61 = vpop.f32.mrf.mxu1  ;;  %23079 = vst [vmem:[#allocation33_spill] sm:$0xff] %v17233_v32  ;;  %23080 = vst [vmem:[#allocation34_spill] sm:$0xff] %v17236_v53  ;;  %v2175_v35 = vrot.slane %v2165_v30, %v16549_v10  ;;  %v2182_v27 = vrot.slane %v2166_v45, %v16549_v10  ;;  %v17248_v4 = vcombine.high %v17224_v54, %v17224_v54 }
 0x17c   :  { %v1531_v29 = vpop.f32.mrf.mxu0  ;;  %v2189_v34 = vrot.slane %v2167_v33, %v16549_v10  ;;  %v2196_v56 = vrot.slane %v2168_v31, %v16549_v10  ;;  %23081 = vst [vmem:[#allocation35_spill] sm:$0xff] %v17244_v55  ;;  %v17252_v45 = vcombine.high %v17233_v32, %v17233_v32  ;;  %v17256_v31 = vcombine.high %v17236_v53, %v17236_v53 }
 0x17d   :  { %v1650_v6 = vpop.f32.mrf.mxu1  ;;  %23082 = vst [vmem:[#allocation36_spill] sm:$0xff] %v17248_v4  ;;  %v2233_v46 = vcombine.low %v1529_v39, %v1531_v29 }
 0x17e   :  { %v2234_v17 = vcombine.low %v1648_v61, %v1650_v6  ;;  %v2197_v62 = vcombine.low %v2175_v35, %v2189_v34  ;;  %v2198_v47 = vcombine.high %v2175_v35, %v2189_v34  ;;  %v2199_v3 = vcombine.low %v2182_v27, %v2196_v56  ;;  %23083 = vst [vmem:[#allocation37_spill] sm:$0xff] %v17252_v45 }
 0x17f   :  { %v2200_v30 = vcombine.high %v2182_v27, %v2196_v56  ;;  %23084 = vst [vmem:[#allocation38_spill] sm:$0xff] %v17256_v31  ;;  %v2241_v33 = vrot.slane %v2233_v46, %v16549_v10 }
 0x180   :  { %v2248_v16 = vrot.slane %v2234_v17, %v16549_v10  ;;  %v3435_v1 = vpop.f32.mrf.mxu0  ;;  %v3554_v51 = vpop.f32.mrf.mxu1  ;;  %v17261_v29 = vrot.slane %v2197_v62, %v16549_v10  ;;  %v17264_v61 = vrot.slane %v2199_v3, %v16549_v10  ;;  %v17267_v39 = vrot.slane %v2198_v47, %v16549_v10 }
 0x181   :  { %v17270_v6 = vrot.slane %v2200_v30, %v16549_v10 }
 0x182   :  { %23085 = vst [vmem:[#allocation39_spill] sm:$0xff] %v17261_v29  ;;  %23086 = vst [vmem:[#allocation40_spill] sm:$0xff] %v17264_v61  ;;  %v17280_v3 = vcombine.high %v17261_v29, %v17261_v29  ;;  %v17284_v47 = vcombine.high %v17267_v39, %v17267_v39  ;;  %v3437_v46 = vpop.f32.mrf.mxu0  ;;  %v3556_v30 = vpop.f32.mrf.mxu1  ;;  %v17290_v56 = vcombine.high %v17264_v61, %v17264_v61  ;;  %v23100_v29 = vrot.slane %v17009_v20, 2 }
 0x183   :  { %23087 = vst [vmem:[#allocation41_spill] sm:$0xff] %v17267_v39  ;;  %23088 = vst [vmem:[#allocation42_spill] sm:$0xff] %v17270_v6  ;;  %v17294_v17 = vcombine.high %v17270_v6, %v17270_v6  ;;  %v2249_v4 = vcombine.low %v2241_v33, %v2248_v16  ;;  %v2250_v55 = vcombine.high %v2241_v33, %v2248_v16  ;;  %v23099_v39 = vrot.slane %v16993_v14, 2 }
 0x184   :  { %23089 = vst [vmem:[#allocation43_spill] sm:$0xff] %v17280_v3  ;;  %23090 = vst [vmem:[#allocation44_spill] sm:$0xff] %v17284_v47  ;;  %v3643_v45 = vcombine.low %v3435_v1, %v3437_v46  ;;  %v3644_v34 = vcombine.high %v3435_v1, %v3437_v46  ;;  %v3645_v54 = vcombine.low %v3554_v51, %v3556_v30 }
 0x185   :  { %23091 = vst [vmem:[#allocation45_spill] sm:$0xff] %v17290_v56  ;;  %23092 = vst [vmem:[#allocation46_spill] sm:$0xff] %v17294_v17  ;;  %v3646_v52 = vcombine.high %v3554_v51, %v3556_v30  ;;  %v17307_v53 = vrot.slane %v2249_v4, %v16549_v10  ;;  %v17310_v1 = vrot.slane %v2250_v55, %v16549_v10 }
 0x186   :  { %v3653_v16 = vrot.slane %v3643_v45, %v16549_v10  ;;  %v3660_v33 = vrot.slane %v3644_v34, %v16549_v10  ;;  %v3667_v46 = vrot.slane %v3645_v54, %v16549_v10 }
 0x187   :  { %v3441_v57 = vpop.f32.mrf.mxu0  ;;  %v3560_v8 = vpop.f32.mrf.mxu1  ;;  %23093 = vst [vmem:[#allocation47_spill] sm:$0xff] %v17310_v1  ;;  %v3674_v51 = vrot.slane %v3646_v52, %v16549_v10 }
 0x188   :  { %v3675_v17 = vcombine.low %v3653_v16, %v3667_v46  ;;  %v3676_v45 = vcombine.high %v3653_v16, %v3667_v46 }
 0x189   :  { %v3443_v30 = vpop.f32.mrf.mxu0  ;;  %v3562_v32 = vpop.f32.mrf.mxu1  ;;  %v3677_v47 = vcombine.low %v3660_v33, %v3674_v51  ;;  %v3678_v34 = vcombine.high %v3660_v33, %v3674_v51 }
 0x18a   :  { %v3711_v27 = vcombine.low %v3441_v57, %v3443_v30  ;;  %v3712_v62 = vcombine.high %v3441_v57, %v3443_v30  ;;  %v3713_v31 = vcombine.low %v3560_v8, %v3562_v32  ;;  %v3714_v35 = vcombine.high %v3560_v8, %v3562_v32 }
 0x18b   :  { %v3685_v52 = vrot.slane %v3675_v17, %v16549_v10  ;;  %v3692_v3 = vrot.slane %v3677_v47, %v16549_v10  ;;  %v3699_v57 = vrot.slane %v3676_v45, %v16549_v10  ;;  %v3706_v8 = vrot.slane %v3678_v34, %v16549_v10 }
 0x18c   :  { %v3721_v4 = vrot.slane %v3711_v27, %v16549_v10  ;;  %v3728_v56 = vrot.slane %v3712_v62, %v16549_v10  ;;  %v3735_v55 = vrot.slane %v3713_v31, %v16549_v10  ;;  %v3742_v54 = vrot.slane %v3714_v35, %v16549_v10 }
 0x18d   :  { %v3707_v51 = vcombine.high %v3685_v52, %v3685_v52  ;;  %v17322_v27 = vcombine.high %v3692_v3, %v3692_v3  ;;  %v17324_v62 = vcombine.high %v3699_v57, %v3699_v57  ;;  %v17326_v31 = vcombine.high %v3706_v8, %v3706_v8 }
 0x18e   :  { %v3743_v32 = vcombine.low %v3721_v4, %v3735_v55  ;;  %v3744_v16 = vcombine.high %v3721_v4, %v3735_v55  ;;  %v3745_v46 = vcombine.low %v3728_v56, %v3742_v54  ;;  %v3746_v33 = vcombine.high %v3728_v56, %v3742_v54  ;;  %v17328_v35 = vpop.f32.mrf.mxu0  ;;  %v17351_v40 = vpop.f32.mrf.mxu1 }
 0x18f   :  { %23094 = vst [vmem:[#allocation48_spill] sm:$0xff] %v17322_v27  ;;  %23095 = vst [vmem:[#allocation49_spill] sm:$0xff] %v17324_v62  ;;  %v4283_v17 = vadd.f32 %v3685_v52, %v16984_v11  ;;  %v4284_v47 = vadd.f32 %v3699_v57, %v16990_v13  ;;  %v4287_v30 = vadd.f32 %v3692_v3, %v16987_v12  ;;  %v23097_v54 = vrot.slane %v16990_v13, 2 }
 0x190   :  { %23096 = vst [vmem:[#allocation50_spill] sm:$0xff] %v17326_v31  ;;  %v4288_v45 = vadd.f32 %v3706_v8, %v16993_v14  ;;  %v4285_v34 = vadd.f32 %v3707_v51, %v17005_v19  ;;  %v4286_v56 = vadd.f32 %v17324_v62, %v17013_v21  ;;  %v4289_v4 = vadd.f32 %v17322_v27, %v17009_v20  ;;  %v3449_v14 = vpop.f32.mrf.mxu0 }
 0x191   :  { %v4290_v55 = vadd.f32 %v17326_v31, %v17017_v22  ;;  %v4475_v11 = vadd.f32 %v23097_v54, %v4283_v17  ;;  %v23098_v52 = vrot.slane %v17005_v19, 2  ;;  %v4479_v61 = vadd.f32 %v23099_v39, %v4287_v30 }
 0x192   :  { %v17349_v26 = vadd.f32 %v23100_v29, %v4288_v45  ;;  %v17355_v18 = vadd.f32 %v23102_v5, %v4285_v34  ;;  %v4478_v13 = vadd.f32 %v23104_v7, %v4286_v56  ;;  %v23105_v17 = vrot.slane %v17017_v22, 2  ;;  %v3568_v56 = vpop.f32.mrf.mxu1 }
 0x193   :  { %v4476_v6 = vadd.f32 %v23098_v52, %v4284_v47  ;;  %v4539_v47 = vrot.slane %v3699_v57, 2  ;;  %v4540_v20 = vrot.slane %v3707_v51, 2  ;;  %v4542_v29 = vrot.slane %v3692_v3, 2 }
 0x194   :  { %23101 = vst [vmem:[#allocation51_spill] sm:$0xff] %v17349_v26  ;;  %23103 = vst [vmem:[#allocation52_spill] sm:$0xff] %v17355_v18  ;;  %v17361_v19 = vadd.f32 %v23105_v17, %v4289_v4  ;;  %v4543_v30 = vrot.slane %v3706_v8, 2  ;;  %v3753_v12 = vrot.slane %v3743_v32, %v16549_v10  ;;  %v3760_v57 = vrot.slane %v3745_v46, %v16549_v10 }
 0x195   :  { %v17366_v5 = vadd.f32 %v4539_v47, %v4475_v11  ;;  %v17369_v7 = vadd.f32 %v4540_v20, %v4476_v6  ;;  %v17371_v22 = vadd.f32 %v4542_v29, %v4478_v13  ;;  %v3767_v3 = vrot.slane %v3744_v16, %v16549_v10  ;;  %v3453_v54 = vpop.f32.mrf.mxu0 }
 0x196   :  { %23106 = vst [vmem:[#allocation53_spill] sm:$0xff] %v17361_v19  ;;  %v17373_v34 = vadd.f32 %v4543_v30, %v4479_v61  ;;  %v3774_v8 = vrot.slane %v3746_v33, %v16549_v10  ;;  %v17378_v51 = vcombine.high %v3753_v12, %v3753_v12  ;;  %v4291_v4 = vadd.f32 %v3753_v12, %v17020_v23  ;;  %v3572_v30 = vpop.f32.mrf.mxu1 }
 0x197   :  { %23107 = vst [vmem:[#allocation54_spill] sm:$0xff] %v17366_v5  ;;  %23108 = vst [vmem:[#allocation55_spill] sm:$0xff] %v17369_v7  ;;  %v17381_v11 = vcombine.high %v3760_v57, %v3760_v57  ;;  %v4295_v6 = vadd.f32 %v3760_v57, %v17023_v24  ;;  %v23113_v32 = vrot.slane %v17020_v23, 2  ;;  %v4546_v52 = vrot.slane %v3753_v12, 2 }
 0x198   :  { %23109 = vst [vmem:[#allocation56_spill] sm:$0xff] %v17371_v22  ;;  %23110 = vst [vmem:[#allocation57_spill] sm:$0xff] %v17373_v34  ;;  %v17386_v13 = vcombine.high %v3767_v3, %v3767_v3  ;;  %v17388_v46 = vcombine.high %v3774_v8, %v3774_v8  ;;  %v4292_v16 = vadd.f32 %v3767_v3, %v17026_v25  ;;  %v23116_v20 = vrot.slane %v17026_v25, 2  ;;  %v3455_v25 = vpop.f32.mrf.mxu0 }
 0x199   :  { %23111 = vst [vmem:[#allocation58_spill] sm:$0xff] %v17378_v51  ;;  %23112 = vst [vmem:[#allocation59_spill] sm:$0xff] %v17381_v11  ;;  %v4482_v61 = vadd.f32 %v23113_v32, %v4290_v55  ;;  %v4293_v33 = vadd.f32 %v17378_v51, %v17040_v36  ;;  %v4296_v17 = vadd.f32 %v3774_v8, %v17029_v28  ;;  %v23117_v23 = vrot.slane %v17029_v28, 2 }
 0x19a   :  { %23114 = vst [vmem:[#allocation60_spill] sm:$0xff] %v17386_v13  ;;  %23115 = vst [vmem:[#allocation61_spill] sm:$0xff] %v17388_v46  ;;  %v4297_v47 = vadd.f32 %v17381_v11, %v17044_v37  ;;  %v4483_v29 = vadd.f32 %v23116_v20, %v4291_v4  ;;  %v4294_v12 = vadd.f32 %v17386_v13, %v17048_v38  ;;  %v23118_v21 = vrot.slane %v17040_v36, 2 }
 0x19b   :  { %v4487_v55 = vadd.f32 %v23117_v23, %v4295_v6  ;;  %v4298_v32 = vadd.f32 %v17388_v46, %v17052_v41  ;;  %v23120_v39 = vrot.slane %v17048_v38, 2  ;;  %v23122_v28 = vrot.slane %v17044_v37, 2 }
 0x19c   :  { %v17406_v45 = vadd.f32 %v23118_v21, %v4292_v16  ;;  %v23124_v20 = vrot.slane %v17052_v41, 2  ;;  %v4547_v22 = vrot.slane %v3767_v3, 2  ;;  %v23126_v21 = vrot.slane %v17023_v24, 2 }
 0x19d   :  { %v17410_v34 = vadd.f32 %v23120_v39, %v4293_v33  ;;  %v17415_v6 = vadd.f32 %v23122_v28, %v4296_v17  ;;  %v4550_v38 = vrot.slane %v3760_v57, 2  ;;  %v4551_v39 = vrot.slane %v3774_v8, 2  ;;  %v3574_v17 = vpop.f32.mrf.mxu1 }
 0x19e   :  { %23119 = vst [vmem:[#allocation62_spill] sm:$0xff] %v17406_v45  ;;  %v17419_v23 = vadd.f32 %v23124_v20, %v4297_v47  ;;  %v4486_v16 = vadd.f32 %v23126_v21, %v4294_v12  ;;  %v17426_v7 = vadd.f32 %v4546_v52, %v4482_v61  ;;  %v17428_v37 = vadd.f32 %v4547_v22, %v4483_v29  ;;  %v17436_v12 = vpop.f32.mrf.mxu0 }
 0x19f   :  { %23121 = vst [vmem:[#allocation63_spill] sm:$0xff] %v17410_v34  ;;  %23123 = vst [vmem:[#allocation64_spill] sm:$0xff] %v17415_v6  ;;  %v17432_v47 = vadd.f32 %v4551_v39, %v4487_v55  ;;  %v3779_v3 = vcombine.low %v17328_v35, %v3449_v14  ;;  %v3780_v24 = vcombine.high %v17328_v35, %v3449_v14  ;;  %v23131_v61 = vrot.slane %v17055_v42, 2 }
 0x1a0   :  { %23125 = vst [vmem:[#allocation65_spill] sm:$0xff] %v17419_v23  ;;  %23127 = vst [vmem:[#allocation66_spill] sm:$0xff] %v17426_v7  ;;  %v17430_v41 = vadd.f32 %v4550_v38, %v4486_v16  ;;  %v3781_v57 = vcombine.low %v17351_v40, %v3568_v56  ;;  %v3782_v8 = vcombine.high %v17351_v40, %v3568_v56  ;;  %v17447_v38 = vpop.f32.mrf.mxu0  ;;  %v23137_v4 = vrot.slane %v17076_v58, 2  ;;  %v23182_v23 = vld [vmem:[#allocation22_spill] sm:$0xff] }
 0x1a1   :  { %23128 = vst [vmem:[#allocation67_spill] sm:$0xff] %v17428_v37  ;;  %23130 = vst [vmem:[#allocation69_spill] sm:$0xff] %v17432_v47  ;;  %v4490_v52 = vadd.f32 %v23131_v61, %v4298_v32  ;;  %v3847_v22 = vcombine.low %v3453_v54, %v3455_v25  ;;  %v3789_v29 = vrot.slane %v3779_v3, %v16549_v10  ;;  %v23139_v7 = vrot.slane %v17067_v48, 2 }
 0x1a2   :  { %23129 = vst [vmem:[#allocation68_spill] sm:$0xff] %v17430_v41  ;;  %v3796_v28 = vrot.slane %v3780_v24, %v16549_v10  ;;  %v3848_v55 = vcombine.high %v3453_v54, %v3455_v25  ;;  %v3849_v20 = vcombine.low %v3572_v30, %v3574_v17  ;;  %v3803_v21 = vrot.slane %v3781_v57, %v16549_v10 }
 0x1a3   :  { %v3810_v35 = vrot.slane %v3782_v8, %v16549_v10  ;;  %v3857_v14 = vrot.slane %v3847_v22, %v16549_v10  ;;  %v3850_v16 = vcombine.high %v3572_v30, %v3574_v17  ;;  %v3915_v30 = vcombine.low %v17436_v12, %v17447_v38 }
 0x1a4   :  { %v3864_v32 = vrot.slane %v3848_v55, %v16549_v10  ;;  %v3871_v39 = vrot.slane %v3849_v20, %v16549_v10  ;;  %v3811_v3 = vcombine.low %v3789_v29, %v3803_v21  ;;  %v3812_v54 = vcombine.high %v3789_v29, %v3803_v21 }
 0x1a5   :  { %v3813_v25 = vcombine.low %v3796_v28, %v3810_v35  ;;  %v3814_v24 = vcombine.high %v3796_v28, %v3810_v35  ;;  %v3878_v57 = vrot.slane %v3850_v16, %v16549_v10  ;;  %v23140_v31 = vrot.slane %v17080_v59, 2 }
 0x1a6   :  { %v3879_v8 = vcombine.low %v3857_v14, %v3871_v39  ;;  %v3880_v61 = vcombine.high %v3857_v14, %v3871_v39  ;;  %v3821_v17 = vrot.slane %v3811_v3, %v16549_v10  ;;  %v3835_v36 = vrot.slane %v3812_v54, %v16549_v10 }
 0x1a7   :  { %v3828_v22 = vrot.slane %v3813_v25, %v16549_v10  ;;  %v3842_v55 = vrot.slane %v3814_v24, %v16549_v10  ;;  %v3881_v20 = vcombine.low %v3864_v32, %v3878_v57  ;;  %v3882_v56 = vcombine.high %v3864_v32, %v3878_v57 }
 0x1a8   :  { %v17461_v29 = vrot.slane %v3879_v8, %v16549_v10  ;;  %v17464_v28 = vrot.slane %v3880_v61, %v16549_v10  ;;  %v17466_v21 = vcombine.high %v3821_v17, %v3821_v17  ;;  %v17470_v14 = vcombine.high %v3835_v36, %v3835_v36  ;;  %v17486_v61 = vpop.f32.mrf.mxu1 }
 0x1a9   :  { %v17468_v35 = vcombine.high %v3828_v22, %v3828_v22  ;;  %v17472_v16 = vcombine.high %v3842_v55, %v3842_v55  ;;  %v4299_v39 = vadd.f32 %v3821_v17, %v17055_v42  ;;  %v4300_v3 = vadd.f32 %v3835_v36, %v17061_v44 }
 0x1aa   :  { %23132 = vst [vmem:[#allocation70_spill] sm:$0xff] %v17466_v21  ;;  %23134 = vst [vmem:[#allocation72_spill] sm:$0xff] %v17470_v14  ;;  %v4303_v32 = vadd.f32 %v3828_v22, %v17058_v43  ;;  %v4304_v54 = vadd.f32 %v3842_v55, %v17067_v48  ;;  %v4301_v25 = vadd.f32 %v17466_v21, %v17076_v58  ;;  %v23136_v42 = vrot.slane %v17061_v44, 2 }
 0x1ab   :  { %23133 = vst [vmem:[#allocation71_spill] sm:$0xff] %v17468_v35  ;;  %23135 = vst [vmem:[#allocation73_spill] sm:$0xff] %v17472_v16  ;;  %v4302_v24 = vadd.f32 %v17470_v14, %v17084_v60  ;;  %v4305_v57 = vadd.f32 %v17468_v35, %v17080_v59  ;;  %v4306_v8 = vadd.f32 %v17472_v16, %v17088_v63  ;;  %v23142_v27 = vrot.slane %v17084_v60, 2  ;;  %v23199_v14 = vld [vmem:[#allocation29_spill] sm:$0xff] }
 0x1ac   :  { %v4491_v40 = vadd.f32 %v23136_v42, %v4299_v39  ;;  %v17492_v33 = vadd.f32 %v23137_v4, %v4300_v3  ;;  %v4495_v5 = vadd.f32 %v23139_v7, %v4303_v32  ;;  %v17498_v19 = vadd.f32 %v23140_v31, %v4304_v54  ;;  %v17510_v4 = vpop.f32.mrf.mxu0 }
 0x1ad   :  { %v17502_v26 = vadd.f32 %v23142_v27, %v4301_v25  ;;  %v23144_v62 = vrot.slane %v17058_v43, 2  ;;  %v23145_v44 = vrot.slane %v17088_v63, 2  ;;  %v4554_v58 = vrot.slane %v3821_v17, 2  ;;  %v3580_v63 = vpop.f32.mrf.mxu1 }
 0x1ae   :  { %23138 = vst [vmem:[#allocation74_spill] sm:$0xff] %v17492_v33  ;;  %23141 = vst [vmem:[#allocation75_spill] sm:$0xff] %v17498_v19  ;;  %v4555_v48 = vrot.slane %v3835_v36, 2  ;;  %v4558_v7 = vrot.slane %v3828_v22, 2  ;;  %v3916_v59 = vcombine.high %v17436_v12, %v17447_v38  ;;  %v17515_v31 = vrot.slane %v3915_v30, %v16549_v10 }
 0x1af   :  { %23143 = vst [vmem:[#allocation76_spill] sm:$0xff] %v17502_v26  ;;  %v4494_v18 = vadd.f32 %v23144_v62, %v4302_v24  ;;  %v17508_v39 = vadd.f32 %v23145_v44, %v4305_v57  ;;  %v4559_v27 = vrot.slane %v3842_v55, 2  ;;  %v17519_v62 = vadd.f32 %v4554_v58, %v4490_v52  ;;  %v3584_v57 = vpop.f32.mrf.mxu1  ;;  %v23156_v44 = vld [vmem:[#allocation13_spill] sm:$0xff] }
 0x1b0   :  { %v17521_v3 = vadd.f32 %v4555_v48, %v4491_v40  ;;  %v3896_v36 = vrot.slane %v3881_v20, %v16549_v10  ;;  %v3910_v22 = vrot.slane %v3882_v56, %v16549_v10  ;;  %v17531_v38 = vcombine.high %v17461_v29, %v17461_v29  ;;  %v3467_v40 = vpop.f32.mrf.mxu0 }
 0x1b1   :  { %23146 = vst [vmem:[#allocation77_spill] sm:$0xff] %v17508_v39  ;;  %23147 = vst [vmem:[#allocation78_spill] sm:$0xff] %v17519_v62  ;;  %v17523_v17 = vadd.f32 %v4558_v7, %v4494_v18  ;;  %v17527_v12 = vadd.f32 %v4559_v27, %v4495_v5  ;;  %v17535_v30 = vcombine.high %v17464_v28, %v17464_v28  ;;  %v23155_v25 = vrot.slane %v17102_v2, 2 }
 0x1b2   :  { %23148 = vst [vmem:[#allocation79_spill] sm:$0xff] %v17521_v3  ;;  %23151 = vst [vmem:[#allocation82_spill] sm:$0xff] %v17531_v38  ;;  %v4307_v52 = vadd.f32 %v17461_v29, %v17102_v2  ;;  %v17539_v18 = vcombine.high %v3896_v36, %v3896_v36  ;;  %v17541_v55 = vcombine.high %v3910_v22, %v3910_v22  ;;  %v23157_v48 = vrot.slane %v17111_v50, 2  ;;  %v23197_v3 = vld [vmem:[#allocation24_spill] sm:$0xff] }
 0x1b3   :  { %23149 = vst [vmem:[#allocation80_spill] sm:$0xff] %v17523_v17  ;;  %23150 = vst [vmem:[#allocation81_spill] sm:$0xff] %v17527_v12  ;;  %v4308_v5 = vadd.f32 %v17464_v28, %v17111_v50  ;;  %v4311_v56 = vadd.f32 %v3896_v36, %v17105_v49  ;;  %v4309_v20 = vadd.f32 %v17531_v38, %v17129_v0  ;;  %v23158_v27 = vrot.slane %v17129_v0, 2  ;;  %v17574_v50 = vpop.f32.mrf.mxu0  ;;  %v23225_v38 = vld [vmem:[#allocation38_spill] sm:$0xff] }
 0x1b4   :  { %23152 = vst [vmem:[#allocation83_spill] sm:$0xff] %v17535_v30  ;;  %23153 = vst [vmem:[#allocation84_spill] sm:$0xff] %v17539_v18  ;;  %v4310_v32 = vadd.f32 %v17535_v30, %v17137_v9  ;;  %v4312_v54 = vadd.f32 %v3910_v22, %v17120_v15  ;;  %v4498_v24 = vadd.f32 %v23155_v25, %v4306_v8  ;;  %v23160_v60 = vrot.slane %v17137_v9, 2 }
 0x1b5   :  { %23154 = vst [vmem:[#allocation85_spill] sm:$0xff] %v17541_v55  ;;  %v4313_v58 = vadd.f32 %v17539_v18, %v23156_v44  ;;  %v4499_v7 = vadd.f32 %v23157_v48, %v4307_v52  ;;  %v17560_v43 = vadd.f32 %v23158_v27, %v4308_v5  ;;  %v23162_v2 = vrot.slane %v17105_v49, 2  ;;  %v23166_v52 = vld [vmem:[#allocation14_spill] sm:$0xff] }
 0x1b6   :  { %v17564_v62 = vadd.f32 %v23160_v60, %v4309_v20  ;;  %v23163_v25 = vrot.slane %v17120_v15, 2  ;;  %v23164_v47 = vrot.slane %v23156_v44, 2  ;;  %v4314_v5 = vadd.f32 %v17541_v55, %v23166_v52  ;;  %v23204_v55 = vld [vmem:[#allocation30_spill] sm:$0xff] }
 0x1b7   :  { %23159 = vst [vmem:[#allocation13_spill] sm:$0xff] %v17560_v43  ;;  %v4502_v8 = vadd.f32 %v23162_v2, %v4310_v32  ;;  %v23167_v9 = vrot.slane %v23166_v52, 2  ;;  %v4562_v49 = vrot.slane %v17461_v29, 2  ;;  %v4563_v15 = vrot.slane %v17464_v28, 2  ;;  %v3586_v32 = vpop.f32.mrf.mxu1 }
 0x1b8   :  { %23161 = vst [vmem:[#allocation86_spill] sm:$0xff] %v17564_v62  ;;  %v4503_v42 = vadd.f32 %v23163_v25, %v4311_v56  ;;  %v17572_v41 = vadd.f32 %v23164_v47, %v4312_v54  ;;  %v4566_v20 = vrot.slane %v3896_v36, 2  ;;  %v4567_v54 = vrot.slane %v3910_v22, 2  ;;  %v17596_v25 = vpop.f32.mrf.mxu0  ;;  %v23179_v47 = vld [vmem:[#allocation21_spill] sm:$0xff] }
 0x1b9   :  { %v17581_v60 = vadd.f32 %v23167_v9, %v4313_v58  ;;  %v17589_v27 = vadd.f32 %v4562_v49, %v4498_v24  ;;  %v17591_v2 = vadd.f32 %v4563_v15, %v4499_v7  ;;  %v3932_v58 = vrot.slane %v3916_v59, %v16549_v10 }
 0x1ba   :  { %23165 = vst [vmem:[#allocation87_spill] sm:$0xff] %v17572_v41  ;;  %v3917_v29 = vcombine.low %v17486_v61, %v3580_v63  ;;  %v3918_v28 = vcombine.high %v17486_v61, %v3580_v63  ;;  %v17598_v52 = vadd.f32 %v4566_v20, %v4502_v8  ;;  %v3983_v36 = vcombine.low %v17510_v4, %v3467_v40  ;;  %v23173_v20 = vld [vmem:[#allocation15_spill] sm:$0xff] }
 0x1bb   :  { %23168 = vst [vmem:[#allocation14_spill] sm:$0xff] %v17581_v60  ;;  %23169 = vst [vmem:[#allocation88_spill] sm:$0xff] %v17589_v27  ;;  %v3984_v22 = vcombine.high %v17510_v4, %v3467_v40  ;;  %v3985_v9 = vcombine.low %v3584_v57, %v3586_v32  ;;  %v17602_v0 = vadd.f32 %v4567_v54, %v4503_v42  ;;  %v23174_v54 = vrot.slane %v23173_v20, 2 }
 0x1bc   :  { %23170 = vst [vmem:[#allocation89_spill] sm:$0xff] %v17591_v2  ;;  %23171 = vst [vmem:[#allocation90_spill] sm:$0xff] %v17598_v52  ;;  %v3939_v24 = vrot.slane %v3917_v29, %v16549_v10  ;;  %v3946_v7 = vrot.slane %v3918_v28, %v16549_v10  ;;  %v3986_v59 = vcombine.high %v3584_v57, %v3586_v32  ;;  %v23203_v52 = vrot.slane %v23197_v3, 2 }
 0x1bd   :  { %23172 = vst [vmem:[#allocation91_spill] sm:$0xff] %v17602_v0  ;;  %v3993_v49 = vrot.slane %v3983_v36, %v16549_v10  ;;  %v4000_v61 = vrot.slane %v3984_v22, %v16549_v10  ;;  %v4007_v63 = vrot.slane %v3985_v9, %v16549_v10  ;;  %v4051_v8 = vcombine.low %v17574_v50, %v17596_v25  ;;  %v17616_v36 = vpop.f32.mrf.mxu1 }
 0x1be   :  { %v3947_v15 = vcombine.low %v17515_v31, %v3939_v24  ;;  %v3948_v4 = vcombine.high %v17515_v31, %v3939_v24  ;;  %v3949_v40 = vcombine.low %v3932_v58, %v3946_v7  ;;  %v3950_v42 = vcombine.high %v3932_v58, %v3946_v7 }
 0x1bf   :  { %v4506_v29 = vadd.f32 %v23174_v54, %v4314_v5  ;;  %v4014_v57 = vrot.slane %v3986_v59, %v16549_v10  ;;  %v4015_v32 = vcombine.low %v3993_v49, %v4007_v63  ;;  %v4016_v28 = vcombine.high %v3993_v49, %v4007_v63  ;;  %v3592_v20 = vpop.f32.mrf.mxu1  ;;  %v17651_v54 = vpop.f32.mrf.mxu0 }
 0x1c0   :  { %v3957_v22 = vrot.slane %v3947_v15, %v16549_v10  ;;  %v17620_v9 = vrot.slane %v3949_v40, %v16549_v10  ;;  %v3971_v48 = vrot.slane %v3948_v4, %v16549_v10  ;;  %v17624_v31 = vrot.slane %v3950_v42, %v16549_v10  ;;  %v23175_v4 = vld [vmem:[#allocation17_spill] sm:$0xff]  ;;  %v23176_v40 = vld [vmem:[#allocation16_spill] sm:$0xff] }
 0x1c1   :  { %v4017_v58 = vcombine.low %v4000_v61, %v4014_v57  ;;  %v4018_v24 = vcombine.high %v4000_v61, %v4014_v57  ;;  %v4052_v5 = vcombine.high %v17574_v50, %v17596_v25  ;;  %v17629_v7 = vrot.slane %v4051_v8, %v16549_v10  ;;  %v23177_v25 = vld [vmem:[#allocation18_spill] sm:$0xff]  ;;  %v23178_v57 = vld [vmem:[#allocation19_spill] sm:$0xff] }
 0x1c2   :  { %v17631_v59 = vcombine.high %v3957_v22, %v3957_v22  ;;  %v17635_v49 = vcombine.high %v17620_v9, %v17620_v9  ;;  %v17637_v63 = vcombine.high %v3971_v48, %v3971_v48  ;;  %v17641_v15 = vcombine.high %v17624_v31, %v17624_v31 }
 0x1c3   :  { %v4315_v61 = vadd.f32 %v3971_v48, %v23175_v4  ;;  %v4318_v50 = vadd.f32 %v17620_v9, %v23176_v40  ;;  %v4319_v8 = vadd.f32 %v17624_v31, %v23177_v25  ;;  %v17649_v42 = vrot.slane %v4015_v32, %v16549_v10  ;;  %v23181_v4 = vld [vmem:[#allocation20_spill] sm:$0xff] }
 0x1c4   :  { %v4316_v44 = vadd.f32 %v17631_v59, %v23178_v57  ;;  %v4317_v56 = vadd.f32 %v17637_v63, %v23179_v47  ;;  %v4570_v37 = vrot.slane %v3957_v22, 2  ;;  %v17658_v48 = vrot.slane %v4016_v28, %v16549_v10 }
 0x1c5   :  { %v17662_v46 = vadd.f32 %v17635_v49, %v23181_v4  ;;  %v17666_v32 = vadd.f32 %v17641_v15, %v23182_v23  ;;  %v23183_v11 = vrot.slane %v23178_v57, 2  ;;  %v23184_v13 = vrot.slane %v23177_v25, 2  ;;  %v23196_v57 = vld [vmem:[#allocation28_spill] sm:$0xff] }
 0x1c6   :  { %23180 = vst [vmem:[#allocation15_spill] sm:$0xff] %v17658_v48  ;;  %v23185_v22 = vrot.slane %v23179_v47, 2  ;;  %v23186_v51 = vrot.slane %v23176_v40, 2  ;;  %v23187_v27 = vrot.slane %v23181_v4, 2  ;;  %v4032_v40 = vrot.slane %v4017_v58, %v16549_v10  ;;  %v23191_v4 = vld [vmem:[#allocation23_spill] sm:$0xff]  ;;  %v23192_v47 = vld [vmem:[#allocation25_spill] sm:$0xff] }
 0x1c7   :  { %v17670_v6 = vadd.f32 %v23183_v11, %v4315_v61  ;;  %v17674_v34 = vadd.f32 %v23184_v13, %v4318_v50  ;;  %v3479_v50 = vpop.f32.mrf.mxu0  ;;  %v4323_v58 = vadd.f32 %v17658_v48, %v23192_v47  ;;  %v23195_v61 = vld [vmem:[#allocation27_spill] sm:$0xff]  ;;  %v23200_v21 = vrot.slane %v23192_v47, 2 }
 0x1c8   :  { %v17678_v28 = vadd.f32 %v23185_v22, %v4316_v44  ;;  %v17682_v45 = vadd.f32 %v23186_v51, %v4317_v56  ;;  %v17686_v12 = vadd.f32 %v23187_v27, %v4319_v8  ;;  %v3596_v44 = vpop.f32.mrf.mxu1  ;;  %v4046_v51 = vrot.slane %v4018_v24, %v16549_v10 }
 0x1c9   :  { %v17697_v56 = vcombine.high %v17649_v42, %v17649_v42  ;;  %v17701_v27 = vcombine.high %v17658_v48, %v17658_v48  ;;  %v17704_v8 = vadd.f32 %v4570_v37, %v4506_v29  ;;  %v4322_v22 = vadd.f32 %v17649_v42, %v23191_v4  ;;  %v23198_v37 = vld [vmem:[#allocation26_spill] sm:$0xff]  ;;  %v3483_v19 = vpop.f32.mrf.mxu0 }
 0x1ca   :  { %v17710_v13 = vcombine.high %v4032_v40, %v4032_v40  ;;  %v17712_v24 = vcombine.high %v4046_v51, %v4046_v51  ;;  %v4326_v25 = vadd.f32 %v4032_v40, %v23197_v3  ;;  %v4327_v29 = vadd.f32 %v4046_v51, %v23198_v37  ;;  %v3598_v35 = vpop.f32.mrf.mxu1 }
 0x1cb   :  { %23188 = vst [vmem:[#allocation17_spill] sm:$0xff] %v17697_v56  ;;  %23189 = vst [vmem:[#allocation16_spill] sm:$0xff] %v17701_v27  ;;  %v4324_v11 = vadd.f32 %v17697_v56, %v23195_v61  ;;  %v4325_v17 = vadd.f32 %v17701_v27, %v23196_v57  ;;  %v17726_v33 = vadd.f32 %v23200_v21, %v4322_v22  ;;  %v23205_v39 = vrot.slane %v23196_v57, 2 }
 0x1cc   :  { %23190 = vst [vmem:[#allocation18_spill] sm:$0xff] %v17704_v8  ;;  %23193 = vst [vmem:[#allocation19_spill] sm:$0xff] %v17710_v13  ;;  %v4328_v26 = vadd.f32 %v17710_v13, %v23199_v14  ;;  %v23201_v8 = vrot.slane %v23195_v61, 2  ;;  %v4329_v16 = vadd.f32 %v17712_v24, %v23204_v55  ;;  %v23207_v18 = vrot.slane %v23198_v37, 2 }
 0x1cd   :  { %23194 = vst [vmem:[#allocation21_spill] sm:$0xff] %v17712_v24  ;;  %v4517_v2 = vadd.f32 %v23203_v52, %v4325_v17  ;;  %v17738_v60 = vadd.f32 %v23205_v39, %v4324_v11  ;;  %v23208_v21 = vrot.slane %v23199_v14, 2  ;;  %v23210_v61 = vrot.slane %v23204_v55, 2  ;;  %v17755_v11 = vpop.f32.mrf.mxu1  ;;  %v3485_v14 = vpop.f32.mrf.mxu0 }
 0x1ce   :  { %v17730_v0 = vadd.f32 %v23201_v8, %v4323_v58  ;;  %v4518_v41 = vadd.f32 %v23207_v18, %v4326_v25  ;;  %v4581_v52 = vrot.slane %v4032_v40, 2  ;;  %v4582_v22 = vrot.slane %v4046_v51, 2 }
 0x1cf   :  { %23206 = vst [vmem:[#allocation22_spill] sm:$0xff] %v17738_v60  ;;  %v17744_v47 = vadd.f32 %v23208_v21, %v4327_v29  ;;  %v17748_v8 = vadd.f32 %v23210_v61, %v4328_v26  ;;  %v4068_v39 = vrot.slane %v4052_v5, %v16549_v10  ;;  %v4053_v57 = vcombine.low %v17616_v36, %v3592_v20  ;;  %v17770_v25 = vpop.f32.mrf.mxu1 }
 0x1d0   :  { %23202 = vst [vmem:[#allocation20_spill] sm:$0xff] %v17730_v0  ;;  %v4054_v18 = vcombine.high %v17616_v36, %v3592_v20  ;;  %v17759_v55 = vadd.f32 %v4581_v52, %v4517_v2  ;;  %v4119_v58 = vcombine.low %v17651_v54, %v3479_v50  ;;  %v4120_v5 = vcombine.high %v17651_v54, %v3479_v50 }
 0x1d1   :  { %23209 = vst [vmem:[#allocation23_spill] sm:$0xff] %v17744_v47  ;;  %23211 = vst [vmem:[#allocation25_spill] sm:$0xff] %v17748_v8  ;;  %v4075_v40 = vrot.slane %v4053_v57, %v16549_v10  ;;  %v4121_v37 = vcombine.low %v3596_v44, %v3598_v35  ;;  %v17765_v29 = vadd.f32 %v4582_v22, %v4518_v41  ;;  %v23214_v57 = vld [vmem:[#allocation31_spill] sm:$0xff] }
 0x1d2   :  { %23212 = vst [vmem:[#allocation27_spill] sm:$0xff] %v17759_v55  ;;  %v4082_v51 = vrot.slane %v4054_v18, %v16549_v10  ;;  %v4129_v36 = vrot.slane %v4119_v58, %v16549_v10  ;;  %v4122_v20 = vcombine.high %v3596_v44, %v3598_v35  ;;  %v4187_v21 = vcombine.low %v3483_v19, %v3485_v14 }
 0x1d3   :  { %23213 = vst [vmem:[#allocation28_spill] sm:$0xff] %v17765_v29  ;;  %v4083_v61 = vcombine.low %v17629_v7, %v4075_v40  ;;  %v4084_v2 = vcombine.high %v17629_v7, %v4075_v40  ;;  %v23215_v17 = vrot.slane %v23214_v57, 2  ;;  %v4136_v54 = vrot.slane %v4120_v5, %v16549_v10 }
 0x1d4   :  { %v4085_v52 = vcombine.low %v4068_v39, %v4082_v51  ;;  %v4086_v26 = vcombine.high %v4068_v39, %v4082_v51  ;;  %v4143_v41 = vrot.slane %v4121_v37, %v16549_v10  ;;  %v4150_v50 = vrot.slane %v4122_v20, %v16549_v10  ;;  %v23219_v37 = vld [vmem:[#allocation32_spill] sm:$0xff]  ;;  %v23220_v20 = vld [vmem:[#allocation33_spill] sm:$0xff] }
 0x1d5   :  { %v4521_v18 = vadd.f32 %v23215_v17, %v4329_v16  ;;  %v4093_v35 = vrot.slane %v4083_v61, %v16549_v10  ;;  %v4107_v44 = vrot.slane %v4084_v2, %v16549_v10  ;;  %v17782_v14 = vrot.slane %v4187_v21, %v16549_v10  ;;  %v23221_v61 = vld [vmem:[#allocation34_spill] sm:$0xff]  ;;  %v23222_v2 = vld [vmem:[#allocation35_spill] sm:$0xff]  ;;  %v23224_v16 = vld [vmem:[#allocation37_spill] sm:$0xff] }
 0x1d6   :  { %v4100_v19 = vrot.slane %v4085_v52, %v16549_v10  ;;  %v4114_v7 = vrot.slane %v4086_v26, %v16549_v10  ;;  %v4151_v22 = vcombine.low %v4129_v36, %v4143_v41  ;;  %v4152_v39 = vcombine.high %v4129_v36, %v4143_v41  ;;  %v23223_v41 = vld [vmem:[#allocation36_spill] sm:$0xff] }
 0x1d7   :  { %v17786_v17 = vcombine.high %v4093_v35, %v4093_v35  ;;  %v17790_v40 = vcombine.high %v4107_v44, %v4107_v44  ;;  %v4330_v5 = vadd.f32 %v4093_v35, %v23214_v57  ;;  %v4331_v26 = vadd.f32 %v4107_v44, %v23219_v37 }
 0x1d8   :  { %v17788_v58 = vcombine.high %v4100_v19, %v4100_v19  ;;  %v17792_v51 = vcombine.high %v4114_v7, %v4114_v7  ;;  %v4334_v36 = vadd.f32 %v4100_v19, %v23220_v20  ;;  %v4335_v21 = vadd.f32 %v4114_v7, %v23221_v61 }
 0x1d9   :  { %23217 = vst [vmem:[#allocation26_spill] sm:$0xff] %v17790_v40  ;;  %v4332_v52 = vadd.f32 %v17786_v17, %v23222_v2  ;;  %v4333_v3 = vadd.f32 %v17790_v40, %v23223_v41  ;;  %v4153_v62 = vcombine.low %v4136_v54, %v4150_v50  ;;  %v23226_v57 = vrot.slane %v23219_v37, 2 }
 0x1da   :  { %23216 = vst [vmem:[#allocation24_spill] sm:$0xff] %v17788_v58  ;;  %23218 = vst [vmem:[#allocation29_spill] sm:$0xff] %v17792_v51  ;;  %v4336_v30 = vadd.f32 %v17788_v58, %v23224_v16  ;;  %v4337_v43 = vadd.f32 %v17792_v51, %v23225_v38  ;;  %v23227_v55 = vrot.slane %v23222_v2, 2  ;;  %v4154_v8 = vcombine.high %v4136_v54, %v4150_v50 }
 0x1db   :  { %v4522_v29 = vadd.f32 %v23226_v57, %v4330_v5  ;;  %v23228_v13 = vrot.slane %v23220_v20, 2  ;;  %v23229_v27 = vrot.slane %v23221_v61, 2  ;;  %v23230_v56 = vrot.slane %v23224_v16, 2 }
 0x1dc   :  { %v17810_v24 = vadd.f32 %v23227_v55, %v4331_v26  ;;  %v4585_v1 = vrot.slane %v4093_v35, 2  ;;  %v23232_v48 = vrot.slane %v23223_v41, 2  ;;  %v23234_v5 = vrot.slane %v23225_v38, 2 }
 0x1dd   :  { %v4525_v47 = vadd.f32 %v23228_v13, %v4333_v3  ;;  %v4526_v60 = vadd.f32 %v23229_v27, %v4334_v36  ;;  %v17818_v0 = vadd.f32 %v23230_v56, %v4335_v21  ;;  %v4586_v54 = vrot.slane %v4107_v44, 2  ;;  %v23236_v36 = vld [vmem:[#allocation39_spill] sm:$0xff]  ;;  %v23237_v21 = vld [vmem:[#allocation40_spill] sm:$0xff] }
 0x1de   :  { %v17822_v37 = vadd.f32 %v23232_v48, %v4332_v52  ;;  %v17826_v55 = vadd.f32 %v23234_v5, %v4336_v30  ;;  %v4589_v3 = vrot.slane %v4100_v19, 2  ;;  %v4590_v27 = vrot.slane %v4114_v7, 2 }
 0x1df   :  { %23231 = vst [vmem:[#allocation30_spill] sm:$0xff] %v17818_v0  ;;  %v17832_v35 = vadd.f32 %v4585_v1, %v4521_v18  ;;  %v4161_v48 = vrot.slane %v4151_v22, %v16549_v10  ;;  %v4168_v26 = vrot.slane %v4153_v62, %v16549_v10  ;;  %v17836_v38 = vadd.f32 %v4586_v54, %v4522_v29  ;;  %v23238_v22 = vld [vmem:[#allocation41_spill] sm:$0xff]  ;;  %v23239_v62 = vld [vmem:[#allocation42_spill] sm:$0xff] }
 0x1e0   :  { %23233 = vst [vmem:[#allocation31_spill] sm:$0xff] %v17822_v37  ;;  %23235 = vst [vmem:[#allocation32_spill] sm:$0xff] %v17826_v55  ;;  %v17838_v30 = vadd.f32 %v4589_v3, %v4525_v47  ;;  %v4175_v44 = vrot.slane %v4152_v39, %v16549_v10  ;;  %v4182_v20 = vrot.slane %v4154_v8, %v16549_v10  ;;  %v23241_v47 = vld [vmem:[#allocation43_spill] sm:$0xff]  ;;  %v23242_v39 = vld [vmem:[#allocation45_spill] sm:$0xff]  ;;  %v23243_v8 = vrot.slane %v23236_v36, 2 }
 0x1e1   :  { %v4183_v19 = vcombine.high %v4161_v48, %v4161_v48  ;;  %v4184_v7 = vcombine.high %v4168_v26, %v4168_v26  ;;  %v4338_v61 = vadd.f32 %v4161_v48, %v23236_v36  ;;  %v4342_v2 = vadd.f32 %v4168_v26, %v23237_v21  ;;  %v23244_v3 = vld [vmem:[#allocation44_spill] sm:$0xff] }
 0x1e2   :  { %v4185_v1 = vcombine.high %v4175_v44, %v4175_v44  ;;  %v17844_v18 = vcombine.high %v4182_v20, %v4182_v20  ;;  %v4339_v52 = vadd.f32 %v4175_v44, %v23238_v22  ;;  %v4343_v29 = vadd.f32 %v4182_v20, %v23239_v62 }
 0x1e3   :  { %v17848_v41 = vadd.f32 %v4590_v27, %v4526_v60  ;;  %v4340_v57 = vadd.f32 %v4183_v19, %v23241_v47  ;;  %v4344_v5 = vadd.f32 %v4184_v7, %v23242_v39  ;;  %v4529_v54 = vadd.f32 %v23243_v8, %v4337_v43  ;;  %v23248_v60 = vld [vmem:[#allocation46_spill] sm:$0xff] }
 0x1e4   :  { %v4341_v56 = vadd.f32 %v4185_v1, %v23244_v3  ;;  %v23245_v16 = vrot.slane %v23238_v22, 2  ;;  %v23246_v50 = vrot.slane %v23241_v47, 2  ;;  %v23247_v55 = vrot.slane %v23239_v62, 2 }
 0x1e5   :  { %23240 = vst [vmem:[#allocation33_spill] sm:$0xff] %v17848_v41  ;;  %v4345_v27 = vadd.f32 %v17844_v18, %v23248_v60  ;;  %v23249_v41 = vrot.slane %v23244_v3, 2  ;;  %v23250_v36 = vrot.slane %v23242_v39, 2  ;;  %v4593_v8 = vrot.slane %v4161_v48, 2 }
 0x1e6   :  { %v4530_v13 = vadd.f32 %v23245_v16, %v4338_v61  ;;  %v4531_v51 = vadd.f32 %v23246_v50, %v4339_v52  ;;  %v4534_v58 = vadd.f32 %v23247_v55, %v4342_v2  ;;  %v23251_v40 = vrot.slane %v23237_v21, 2 }
 0x1e7   :  { %v4532_v0 = vadd.f32 %v23249_v41, %v4340_v57  ;;  %v4535_v43 = vadd.f32 %v23250_v36, %v4343_v29  ;;  %v23252_v16 = vrot.slane %v23248_v60, 2  ;;  %v4594_v50 = vrot.slane %v4175_v44, 2  ;;  %v23266_v60 = vld [vmem:[#allocation47_spill] sm:$0xff] }
 0x1e8   :  { %v4533_v22 = vadd.f32 %v23251_v40, %v4341_v56  ;;  %v4595_v52 = vrot.slane %v4183_v19, 2  ;;  %v4596_v62 = vrot.slane %v4185_v1, 2  ;;  %v4597_v55 = vrot.slane %v4168_v26, 2 }
 0x1e9   :  { %v4536_v61 = vadd.f32 %v23252_v16, %v4344_v5  ;;  %v4598_v2 = vrot.slane %v4182_v20, 2  ;;  %v4599_v47 = vrot.slane %v4184_v7, 2  ;;  %v4600_v37 = vrot.slane %v17844_v18, 2 }
 0x1ea   :  { %v17872_v3 = vadd.f32 %v4593_v8, %v4529_v54  ;;  %v17874_v41 = vadd.f32 %v4594_v50, %v4530_v13  ;;  %v17876_v29 = vadd.f32 %v4595_v52, %v4531_v51  ;;  %v17878_v48 = vadd.f32 %v4596_v62, %v4532_v0 }
 0x1eb   :  { %v17880_v40 = vadd.f32 %v4597_v55, %v4533_v22  ;;  %v17882_v56 = vadd.f32 %v4598_v2, %v4534_v58  ;;  %v23253_v26 = vcombine.low %v17755_v11, %v17770_v25  ;;  %v17888_v20 = vadd.f32 %v4599_v47, %v4535_v43 }
 0x1ec   :  { %v23254_v19 = vrot.slane %v23182_v23, 2  ;;  %v23255_v51 = vrot.slane %v23191_v4, 2  ;;  %v23256_v7 = vrot.slane %v17631_v59, 2  ;;  %v23257_v11 = vrot.slane %v17637_v63, 2 }
 0x1ed   :  { %v4202_v44 = vrot.slane %v23253_v26, %v16549_v10  ;;  %v23258_v23 = vrot.slane %v17620_v9, 2  ;;  %v23259_v4 = vrot.slane %v17624_v31, 2  ;;  %v23260_v59 = vrot.slane %v17635_v49, 2  ;;  %v23264_v31 = vld [vmem:[#allocation15_spill] sm:$0xff] }
 0x1ee   :  { %v4512_v13 = vadd.f32 %v23254_v19, %v17662_v46  ;;  %v4513_v0 = vadd.f32 %v23255_v51, %v17666_v32  ;;  %v4699_v58 = vadd.f32 %v23256_v7, %v17670_v6  ;;  %v4700_v25 = vadd.f32 %v23257_v11, %v17678_v28  ;;  %v23269_v11 = vld [vmem:[#allocation17_spill] sm:$0xff] }
 0x1ef   :  { %v4203_v21 = vcombine.low %v17782_v14, %v4202_v44  ;;  %v4204_v1 = vcombine.high %v17782_v14, %v4202_v44  ;;  %v4701_v46 = vadd.f32 %v23258_v23, %v17682_v45  ;;  %v4702_v32 = vadd.f32 %v23259_v4, %v17674_v34  ;;  %v23272_v4 = vld [vmem:[#allocation16_spill] sm:$0xff] }
 0x1f0   :  { %v4703_v6 = vadd.f32 %v23260_v59, %v17686_v12  ;;  %v23261_v18 = vrot.slane %v17641_v15, 2  ;;  %v23262_v14 = vrot.slane %v17649_v42, 2  ;;  %v23263_v45 = vrot.slane %v17307_v53, 2 }
 0x1f1   :  { %v4211_v63 = vrot.slane %v4203_v21, %v16549_v10  ;;  %v4218_v28 = vrot.slane %v4204_v1, %v16549_v10  ;;  %v23265_v34 = vrot.slane %v23264_v31, 2  ;;  %vm4763_vm2 = vcmp.gt.f32.partialorder %v4699_v58, 0.0  ;;  %v23268_v1 = vld [vmem:[#allocation20_spill] sm:$0xff] }
 0x1f2   :  { %v4704_v57 = vadd.f32 %v23261_v18, %v4512_v13  ;;  %v4705_v39 = vadd.f32 %v23262_v14, %v4513_v0  ;;  %v4537_v9 = vadd.f32 %v23263_v45, %v4345_v27  ;;  %vm4764_vm3 = vcmp.gt.f32.partialorder %v4700_v25, 0.0  ;;  %v23274_v18 = vld [vmem:[#allocation23_spill] sm:$0xff]  ;;  %v23277_v45 = vld [vmem:[#allocation25_spill] sm:$0xff] }
 0x1f3   :  { %v4706_v5 = vadd.f32 %v23265_v34, %v17726_v33  ;;  %vm4765_vm4 = vcmp.gt.f32.partialorder %v4701_v46, 0.0  ;;  %vm4766_vm5 = vcmp.gt.f32.partialorder %v4702_v32, 0.0  ;;  %v4346_v12 = vadd.f32 %v4211_v63, %v17307_v53  ;;  %v23275_v14 = vld [vmem:[#allocation19_spill] sm:$0xff] }
 0x1f4   :  { %v4601_v49 = vrot.slane %v4211_v63, 2  ;;  %v4602_v15 = vrot.slane %v4218_v28, 2  ;;  %vm4767_vm6 = vcmp.gt.f32.partialorder %v4703_v6, 0.0  ;;  %vm4768_vm7 = vcmp.gt.f32.partialorder %v4704_v57, 0.0 }
 0x1f5   :  { %vm4769_vm8 = vcmp.gt.f32.partialorder %v4705_v39, 0.0  ;;  %v4827_v42 = vmul.f32 0.2, %v4699_v58  ;;  %v4828_v54 = vmul.f32 0.2, %v4700_v25  ;;  %v23267_v36 = vrot.slane %v23266_v60, 2 }
 0x1f6   :  { %v17927_v43 = vadd.f32 %v4601_v49, %v4537_v9  ;;  %v4829_v8 = vmul.f32 0.2, %v4701_v46  ;;  %v4830_v33 = vmul.f32 0.2, %v4702_v32  ;;  %v17929_v22 = vadd.f32 %v4600_v37, %v4536_v61  ;;  %v23278_v9 = vld [vmem:[#allocation21_spill] sm:$0xff] }
 0x1f7   :  { %v4538_v27 = vadd.f32 %v23267_v36, %v4346_v12  ;;  %v4831_v16 = vmul.f32 0.2, %v4703_v6  ;;  %v4832_v50 = vmul.f32 0.2, %v4704_v57  ;;  %v4833_v52 = vmul.f32 0.2, %v4705_v39 }
 0x1f8   :  { %vm4770_vm9 = vcmp.gt.f32.partialorder %v4706_v5, 0.0  ;;  %v4834_v62 = vmul.f32 0.2, %v4706_v5  ;;  %v4891_v55 = vsel %vm4763_vm2, %v4699_v58, %v4827_v42  ;;  %v17935_v2 = vmul.f32 0.2, %v17927_v43  ;;  %v23280_v12 = vld [vmem:[#allocation27_spill] sm:$0xff] }
 0x1f9   :  { %v17931_v53 = vadd.f32 %v4602_v15, %v4538_v27  ;;  %v4892_v47 = vsel %vm4764_vm3, %v4700_v25, %v4828_v54  ;;  %v4893_v26 = vsel %vm4765_vm4, %v4701_v46, %v4829_v8  ;;  %v4894_v44 = vsel %vm4766_vm5, %v4702_v32, %v4830_v33  ;;  %v23271_v46 = vld [vmem:[#allocation22_spill] sm:$0xff]  ;;  %v23281_v42 = vld [vmem:[#allocation28_spill] sm:$0xff] }
 0x1fa   :  { %v4895_v61 = vsel %vm4767_vm6, %v4703_v6, %v4831_v16  ;;  %v4896_v19 = vsel %vm4768_vm7, %v4704_v57, %v4832_v50  ;;  %v4897_v13 = vsel %vm4769_vm8, %v4705_v39, %v4833_v52  ;;  %v4898_v51 = vsel %vm4770_vm9, %v4706_v5, %v4834_v62 }
 0x1fb   :  { %v17941_v37 = vmul.f32 0.2, %v17931_v53  ;;  %v5260_v0 = vcombine.low %v4891_v55, %v4892_v47  ;;  %v5261_v7 = vcombine.low %v4893_v26, %v4894_v44  ;;  %v5262_v58 = vcombine.low %v4895_v61, %v4896_v19 }
 0x1fc   :  { %v5263_v21 = vcombine.low %v4897_v13, %v4898_v51  ;;  %v23270_v25 = vrot.slane %v23269_v11, 2  ;;  %v23273_v32 = vrot.slane %v23272_v4, 2  ;;  %v23276_v6 = vrot.slane %v23275_v14, 2  ;;  %v23284_v14 = vld [vmem:[#allocation26_spill] sm:$0xff] }
 0x1fd   :  { %v5270_v57 = vrot.slane %v5260_v0, %v16549_v10  ;;  %v5277_v39 = vrot.slane %v5261_v7, %v16549_v10  ;;  %v5284_v28 = vrot.slane %v5262_v58, %v16549_v10  ;;  %v23279_v31 = vrot.slane %v23278_v9, 2 }
 0x1fe   :  { %v4707_v23 = vadd.f32 %v23270_v25, %v23268_v1  ;;  %v4708_v59 = vadd.f32 %v23273_v32, %v23271_v46  ;;  %v4711_v63 = vadd.f32 %v23276_v6, %v23274_v18  ;;  %v5291_v5 = vrot.slane %v5263_v21, %v16549_v10  ;;  %v23283_v18 = vld [vmem:[#allocation31_spill] sm:$0xff] }
 0x1ff   :  { %v4712_v34 = vadd.f32 %v23279_v31, %v23277_v45  ;;  %vm4773_vm12 = vcmp.gt.f32.partialorder %v23280_v12, 0.0  ;;  %v5293_v49 = vcombine.high %v5270_v57, %v5277_v39  ;;  %v5292_v15 = vcombine.low %v5270_v57, %v5277_v39  ;;  %v23286_v57 = vld [vmem:[#allocation30_spill] sm:$0xff]  ;;  %v23289_v45 = vld [vmem:[#allocation32_spill] sm:$0xff] }
 0x200   :  { %vm4771_vm10 = vcmp.gt.f32.partialorder %v4707_v23, 0.0  ;;  %vm4772_vm11 = vcmp.gt.f32.partialorder %v4708_v59, 0.0  ;;  %vm4774_vm13 = vcmp.gt.f32.partialorder %v23281_v42, 0.0  ;;  %vm4775_vm14 = vcmp.gt.f32.partialorder %v4711_v63, 0.0 }
 0x201   :  { %v5295_v54 = vcombine.high %v5284_v28, %v5291_v5  ;;  %v5294_v60 = vcombine.low %v5284_v28, %v5291_v5  ;;  %vm4776_vm15 = vcmp.gt.f32.partialorder %v4712_v34, 0.0  ;;  %vm4777_vm0 = vcmp.gt.f32.partialorder %v17832_v35, 0.0 }
 0x202   :  { %v5309_v36 = vrot.slane %v5293_v49, %v16549_v10  ;;  %v5302_v27 = vrot.slane %v5292_v15, %v16549_v10  ;;  %vm4778_vm1 = vcmp.gt.f32.partialorder %v17836_v38, 0.0  ;;  %v4835_v8 = vmul.f32 0.2, %v4707_v23 }
 0x203   :  { %v5323_v33 = vrot.slane %v5295_v54, %v16549_v10  ;;  %v5316_v16 = vrot.slane %v5294_v60, %v16549_v10  ;;  %v4836_v50 = vmul.f32 0.2, %v4708_v59  ;;  %v4837_v52 = vmul.f32 0.2, %v23280_v12 }
 0x204   :  { %v4838_v62 = vmul.f32 0.2, %v23281_v42  ;;  %v4839_v55 = vmul.f32 0.2, %v4711_v63  ;;  %v4840_v47 = vmul.f32 0.2, %v4712_v34  ;;  %v4899_v26 = vsel %vm4771_vm10, %v4707_v23, %v4835_v8 }
 0x205   :  { %v5325_v44 = vcombine.low %v5309_v36, %v5323_v33  ;;  %v5324_v61 = vcombine.low %v5302_v27, %v5316_v16  ;;  %v4841_v19 = vmul.f32 0.2, %v17832_v35  ;;  %v4842_v13 = vmul.f32 0.2, %v17836_v38 }
 0x206   :  { %v4900_v51 = vsel %vm4772_vm11, %v4708_v59, %v4836_v50  ;;  %v4901_v0 = vsel %vm4773_vm12, %v23280_v12, %v4837_v52  ;;  %v4902_v7 = vsel %vm4774_vm13, %v23281_v42, %v4838_v62  ;;  %v4903_v58 = vsel %vm4775_vm14, %v4711_v63, %v4839_v55 }
 0x207   :  { %5542 = vrot.lane.b32.xlu1 %v5325_v44, %s16410_s26  ;;  %5540 = vrot.lane.b32.xlu0 %v5324_v61, %s16410_s26  ;;  %v4904_v21 = vsel %vm4776_vm15, %v4712_v34, %v4840_v47  ;;  %v4905_v1 = vsel %vm4777_vm0, %v17832_v35, %v4841_v19  ;;  %v4906_v11 = vsel %vm4778_vm1, %v17836_v38, %v4842_v13  ;;  %vm4781_vm2 = vcmp.gt.f32.partialorder %v17838_v30, 0.0  ;;  %v23287_v35 = vld [vmem:[#allocation24_spill] sm:$0xff]  ;;  %v23290_v38 = vld [vmem:[#allocation29_spill] sm:$0xff] }
 0x208   :  { %v5326_v25 = vcombine.low %v4899_v26, %v4900_v51  ;;  %v5327_v23 = vcombine.low %v4901_v0, %v4902_v7  ;;  %v5328_v46 = vcombine.low %v4903_v58, %v4904_v21  ;;  %v5329_v4 = vcombine.low %v4905_v1, %v4906_v11 }
 0x209   :  { %v23282_v32 = vrot.slane %v17786_v17, 2  ;;  %v23285_v6 = vrot.slane %v23284_v14, 2  ;;  %v23288_v39 = vrot.slane %v23287_v35, 2  ;;  %v23291_v9 = vrot.slane %v23290_v38, 2  ;;  %v23292_v17 = vld [vmem:[#allocation33_spill] sm:$0xff] }
 0x20a   :  { %v5336_v34 = vrot.slane %v5326_v25, %v16549_v10  ;;  %v5343_v5 = vrot.slane %v5327_v23, %v16549_v10  ;;  %v5350_v12 = vrot.slane %v5328_v46, %v16549_v10  ;;  %vm4782_vm5 = vcmp.gt.f32.partialorder %v23292_v17, 0.0 }
 0x20b   :  { %v4715_v59 = vadd.f32 %v23282_v32, %v17810_v24  ;;  %v4716_v63 = vadd.f32 %v23285_v6, %v23283_v18  ;;  %v4719_v28 = vadd.f32 %v23288_v39, %v23286_v57  ;;  %v4720_v31 = vadd.f32 %v23291_v9, %v23289_v45 }
 0x20c   :  { %v5357_v24 = vrot.slane %v5329_v4, %v16549_v10  ;;  %v5359_v49 = vcombine.high %v5336_v34, %v5343_v5  ;;  %v5358_v42 = vcombine.low %v5336_v34, %v5343_v5  ;;  %vm4785_vm8 = vcmp.gt.f32.partialorder %v17872_v3, 0.0 }
 0x20d   :  { %vm4779_vm3 = vcmp.gt.f32.partialorder %v4715_v59, 0.0  ;;  %vm4780_vm4 = vcmp.gt.f32.partialorder %v4716_v63, 0.0  ;;  %vm4783_vm6 = vcmp.gt.f32.partialorder %v4719_v28, 0.0  ;;  %vm4784_vm7 = vcmp.gt.f32.partialorder %v4720_v31, 0.0 }
 0x20e   :  { %v5361_v15 = vcombine.high %v5350_v12, %v5357_v24  ;;  %v5360_v54 = vcombine.low %v5350_v12, %v5357_v24  ;;  %vm4786_vm9 = vcmp.gt.f32.partialorder %v17874_v41, 0.0  ;;  %v4843_v60 = vmul.f32 0.2, %v4715_v59 }
 0x20f   :  { %v5375_v36 = vrot.slane %v5359_v49, %v16549_v10  ;;  %v5368_v8 = vrot.slane %v5358_v42, %v16549_v10  ;;  %v4844_v16 = vmul.f32 0.2, %v4716_v63  ;;  %v4845_v50 = vmul.f32 0.2, %v17838_v30 }
 0x210   :  { %v5389_v27 = vrot.slane %v5361_v15, %v16549_v10  ;;  %v5382_v33 = vrot.slane %v5360_v54, %v16549_v10  ;;  %v4846_v52 = vmul.f32 0.2, %v23292_v17  ;;  %v4907_v62 = vsel %vm4779_vm3, %v4715_v59, %v4843_v60  ;;  %v23293_v60 = vld [vmem:[#allocation13_spill] sm:$0xff] }
 0x211   :  { %vm4793_vm10 = vcmp.gt.f32.partialorder %v17927_v43, 0.0  ;;  %v4847_v26 = vmul.f32 0.2, %v4719_v28  ;;  %v4848_v44 = vmul.f32 0.2, %v4720_v31  ;;  %vm4794_vm11 = vcmp.gt.f32.partialorder %v17931_v53, 0.0 }
 0x212   :  { %v5391_v55 = vcombine.low %v5375_v36, %v5389_v27  ;;  %v5390_v47 = vcombine.low %v5368_v8, %v5382_v33  ;;  %v4849_v61 = vmul.f32 0.2, %v17872_v3  ;;  %v4850_v19 = vmul.f32 0.2, %v17874_v41  ;;  %v23294_v36 = vld [vmem:[#allocation82_spill] sm:$0xff] }
 0x213   :  { %v4908_v13 = vsel %vm4780_vm4, %v4716_v63, %v4844_v16  ;;  %v4909_v51 = vsel %vm4781_vm2, %v17838_v30, %v4845_v50  ;;  %v4910_v0 = vsel %vm4782_vm5, %v23292_v17, %v4846_v52  ;;  %v4911_v7 = vsel %vm4783_vm6, %v4719_v28, %v4847_v26  ;;  %v23299_v50 = vld [vmem:[#allocation87_spill] sm:$0xff]  ;;  %v23300_v52 = vld [vmem:[#allocation84_spill] sm:$0xff] }
 0x214   :  { %5546 = vrot.lane.b32.xlu1 %v5391_v55, %s16410_s26  ;;  %5544 = vrot.lane.b32.xlu0 %v5390_v47, %s16410_s26  ;;  %v4912_v58 = vsel %vm4784_vm7, %v4720_v31, %v4848_v44  ;;  %vm4787_vm12 = vcmp.gt.f32.partialorder %v17876_v29, 0.0  ;;  %v4913_v21 = vsel %vm4785_vm8, %v17872_v3, %v4849_v61  ;;  %v4914_v30 = vsel %vm4786_vm9, %v17874_v41, %v4850_v19  ;;  %v23303_v55 = vld [vmem:[#allocation85_spill] sm:$0xff] }
 0x215   :  { %v5392_v1 = vcombine.low %v4907_v62, %v4908_v13  ;;  %v5393_v11 = vcombine.low %v4909_v51, %v4910_v0  ;;  %v5394_v25 = vcombine.low %v4911_v7, %v4912_v58  ;;  %v5395_v23 = vcombine.low %v4913_v21, %v4914_v30  ;;  %v23305_v13 = vld [vmem:[#allocation89_spill] sm:$0xff]  ;;  %v23306_v51 = vld [vmem:[#allocation90_spill] sm:$0xff]  ;;  %v23307_v0 = vld [vmem:[#allocation91_spill] sm:$0xff] }
 0x216   :  { %vm4788_vm13 = vcmp.gt.f32.partialorder %v17878_v48, 0.0  ;;  %vm4789_vm14 = vcmp.gt.f32.partialorder %v17880_v40, 0.0  ;;  %vm4790_vm15 = vcmp.gt.f32.partialorder %v17882_v56, 0.0  ;;  %vm4791_vm0 = vcmp.gt.f32.partialorder %v17888_v20, 0.0  ;;  %v23308_v21 = vld [vmem:[#allocation18_spill] sm:$0xff] }
 0x217   :  { %v5402_v46 = vrot.slane %v5392_v1, %v16549_v10  ;;  %v5409_v4 = vrot.slane %v5393_v11, %v16549_v10  ;;  %v5416_v3 = vrot.slane %v5394_v25, %v16549_v10  ;;  %v5423_v41 = vrot.slane %v5395_v23, %v16549_v10 }
 0x218   :  { %vm4792_vm1 = vcmp.gt.f32.partialorder %v17929_v22, 0.0  ;;  %v4851_v32 = vmul.f32 0.2, %v17876_v29  ;;  %v4852_v14 = vmul.f32 0.2, %v17878_v48  ;;  %v23295_v27 = vrot.slane %v23294_v36, 2 }
 0x219   :  { %v5424_v59 = vcombine.low %v5402_v46, %v5409_v4  ;;  %v5425_v18 = vcombine.high %v5402_v46, %v5409_v4  ;;  %v4853_v6 = vmul.f32 0.2, %v17880_v40  ;;  %v5426_v63 = vcombine.low %v5416_v3, %v5423_v41 }
 0x21a   :  { %v5427_v57 = vcombine.high %v5416_v3, %v5423_v41  ;;  %v4854_v35 = vmul.f32 0.2, %v17882_v56  ;;  %v4855_v39 = vmul.f32 0.2, %v17888_v20  ;;  %v4856_v38 = vmul.f32 0.2, %v17929_v22 }
 0x21b   :  { %v5434_v28 = vrot.slane %v5424_v59, %v16549_v10  ;;  %v5441_v45 = vrot.slane %v5425_v18, %v16549_v10  ;;  %v4915_v9 = vsel %vm4787_vm12, %v17876_v29, %v4851_v32  ;;  %v5448_v31 = vrot.slane %v5426_v63, %v16549_v10 }
 0x21c   :  { %v5455_v34 = vrot.slane %v5427_v57, %v16549_v10  ;;  %v4916_v5 = vsel %vm4788_vm13, %v17878_v48, %v4852_v14  ;;  %v4917_v12 = vsel %vm4789_vm14, %v17880_v40, %v4853_v6  ;;  %v4918_v24 = vsel %vm4790_vm15, %v17882_v56, %v4854_v35 }
 0x21d   :  { %v4919_v29 = vsel %vm4791_vm0, %v17888_v20, %v4855_v39  ;;  %v4920_v17 = vsel %vm4792_vm1, %v17929_v22, %v4856_v38  ;;  %v4921_v48 = vsel %vm4793_vm10, %v17927_v43, %v17935_v2  ;;  %v5456_v49 = vcombine.low %v5434_v28, %v5448_v31  ;;  %v23296_v43 = vld [vmem:[#allocation86_spill] sm:$0xff]  ;;  %v23297_v2 = vld [vmem:[#allocation83_spill] sm:$0xff] }
 0x21e   :  { %v5457_v15 = vcombine.low %v5441_v45, %v5455_v34  ;;  %v4922_v40 = vsel %vm4794_vm11, %v17931_v53, %v17941_v37  ;;  %v5458_v56 = vcombine.low %v4915_v9, %v4916_v5  ;;  %v5459_v42 = vcombine.low %v4917_v12, %v4918_v24  ;;  %v23302_v37 = vld [vmem:[#allocation14_spill] sm:$0xff] }
 0x21f   :  { %v5460_v54 = vcombine.low %v4919_v29, %v4920_v17  ;;  %v5461_v20 = vcombine.low %v4921_v48, %v4922_v40  ;;  %v4692_v22 = vadd.f32 %v23295_v27, %v23293_v60  ;;  %5548 = vrot.lane.b32.xlu1 %v5456_v49, %s16410_s26  ;;  %v23298_v33 = vrot.slane %v23297_v2, 2  ;;  %v23309_v24 = vld [vmem:[#allocation74_spill] sm:$0xff]  ;;  %v23315_v27 = vld [vmem:[#allocation75_spill] sm:$0xff]  ;;  %v23318_v2 = vld [vmem:[#allocation77_spill] sm:$0xff] }
 0x220   :  { %v5468_v8 = vrot.slane %v5458_v56, %v16549_v10  ;;  %v23301_v62 = vrot.slane %v23300_v52, 2  ;;  %v23304_v47 = vrot.slane %v23303_v55, 2  ;;  %v5475_v44 = vrot.slane %v5459_v42, %v16549_v10  ;;  %v23310_v29 = vld [vmem:[#allocation70_spill] sm:$0xff]  ;;  %v23312_v56 = vld [vmem:[#allocation76_spill] sm:$0xff] }
 0x221   :  { %v4693_v16 = vadd.f32 %v23298_v33, %v23296_v43  ;;  %v5482_v61 = vrot.slane %v5460_v54, %v16549_v10  ;;  %v5489_v19 = vrot.slane %v5461_v20, %v16549_v10  ;;  %vm4755_vm2 = vcmp.gt.f32.partialorder %v23305_v13, 0.0  ;;  %v23313_v42 = vld [vmem:[#allocation72_spill] sm:$0xff]  ;;  %v23319_v33 = vld [vmem:[#allocation73_spill] sm:$0xff] }
 0x222   :  { %v4696_v53 = vadd.f32 %v23301_v62, %v23299_v50  ;;  %v4697_v26 = vadd.f32 %v23304_v47, %v23302_v37  ;;  %vm4756_vm3 = vcmp.gt.f32.partialorder %v4692_v22, 0.0  ;;  %vm4758_vm5 = vcmp.gt.f32.partialorder %v23306_v51, 0.0  ;;  %v23321_v62 = vld [vmem:[#allocation79_spill] sm:$0xff]  ;;  %v23322_v55 = vld [vmem:[#allocation80_spill] sm:$0xff]  ;;  %v23323_v47 = vld [vmem:[#allocation81_spill] sm:$0xff] }
 0x223   :  { %vm4757_vm4 = vcmp.gt.f32.partialorder %v4693_v16, 0.0  ;;  %vm4759_vm6 = vcmp.gt.f32.partialorder %v23307_v0, 0.0  ;;  %v5490_v7 = vcombine.low %v5468_v8, %v5475_v44  ;;  %v5492_v58 = vcombine.low %v5482_v61, %v5489_v19  ;;  %5550 = vrot.lane.b32.xlu1 %v5457_v15, %s16410_s26 }
 0x224   :  { %vm4760_vm7 = vcmp.gt.f32.partialorder %v4696_v53, 0.0  ;;  %vm4761_vm8 = vcmp.gt.f32.partialorder %v4697_v26, 0.0  ;;  %vm4762_vm9 = vcmp.gt.f32.partialorder %v23308_v21, 0.0  ;;  %v4819_v30 = vmul.f32 0.2, %v23305_v13 }
 0x225   :  { %v4820_v1 = vmul.f32 0.2, %v4692_v22  ;;  %v5491_v11 = vcombine.high %v5468_v8, %v5475_v44  ;;  %v5500_v25 = vrot.slane %v5490_v7, %v16549_v10  ;;  %v5514_v23 = vrot.slane %v5492_v58, %v16549_v10  ;;  %v23324_v44 = vld [vmem:[#allocation88_spill] sm:$0xff] }
 0x226   :  { %v4821_v46 = vmul.f32 0.2, %v4693_v16  ;;  %v4822_v4 = vmul.f32 0.2, %v23306_v51  ;;  %v4823_v3 = vmul.f32 0.2, %v23307_v0  ;;  %v4883_v59 = vsel %vm4755_vm2, %v23305_v13, %v4819_v30 }
 0x227   :  { %v4824_v41 = vmul.f32 0.2, %v4696_v53  ;;  %v4825_v32 = vmul.f32 0.2, %v4697_v26  ;;  %v5522_v18 = vcombine.low %v5500_v25, %v5514_v23  ;;  %v4826_v14 = vmul.f32 0.2, %v23308_v21 }
 0x228   :  { %v4884_v6 = vsel %vm4756_vm3, %v4692_v22, %v4820_v1  ;;  %v4885_v63 = vsel %vm4757_vm4, %v4693_v16, %v4821_v46  ;;  %v4886_v57 = vsel %vm4758_vm5, %v23306_v51, %v4822_v4  ;;  %v4887_v35 = vsel %vm4759_vm6, %v23307_v0, %v4823_v3  ;;  %v23316_v22 = vld [vmem:[#allocation71_spill] sm:$0xff] }
 0x229   :  { %v4888_v39 = vsel %vm4760_vm7, %v4696_v53, %v4824_v41  ;;  %v4889_v28 = vsel %vm4761_vm8, %v4697_v26, %v4825_v32  ;;  %5552 = vrot.lane.b32.xlu0 %v5522_v18, %s16410_s26  ;;  %v4890_v45 = vsel %vm4762_vm9, %v23308_v21, %v4826_v14  ;;  %v5194_v38 = vcombine.low %v4883_v59, %v4884_v6 }
 0x22a   :  { %v5195_v9 = vcombine.low %v4885_v63, %v4886_v57  ;;  %v5196_v31 = vcombine.low %v4887_v35, %v4888_v39  ;;  %v5197_v34 = vcombine.low %v4889_v28, %v4890_v45  ;;  %v5493_v5 = vcombine.high %v5482_v61, %v5489_v19  ;;  %v23325_v28 = vld [vmem:[#allocation62_spill] sm:$0xff] }
 0x22b   :  { %v5507_v12 = vrot.slane %v5491_v11, %v16549_v10  ;;  %v23311_v17 = vrot.slane %v23310_v29, 2  ;;  %v5204_v49 = vrot.slane %v5194_v38, %v16549_v10  ;;  %v23314_v54 = vrot.slane %v23313_v42, 2  ;;  %v23326_v45 = vld [vmem:[#allocation58_spill] sm:$0xff]  ;;  %v23334_v42 = vld [vmem:[#allocation65_spill] sm:$0xff] }
 0x22c   :  { %v5211_v15 = vrot.slane %v5195_v9, %v16549_v10  ;;  %v5218_v40 = vrot.slane %v5196_v31, %v16549_v10  ;;  %v5225_v60 = vrot.slane %v5197_v34, %v16549_v10  ;;  %v5521_v36 = vrot.slane %v5493_v5, %v16549_v10  ;;  %v23328_v31 = vld [vmem:[#allocation63_spill] sm:$0xff]  ;;  %v23329_v34 = vld [vmem:[#allocation60_spill] sm:$0xff] }
 0x22d   :  { %v4684_v48 = vadd.f32 %v23311_v17, %v23309_v24  ;;  %v4685_v20 = vadd.f32 %v23314_v54, %v23312_v56  ;;  %v23317_v8 = vrot.slane %v23316_v22, 2  ;;  %v23320_v16 = vrot.slane %v23319_v33, 2  ;;  %v23335_v54 = vld [vmem:[#allocation61_spill] sm:$0xff] }
 0x22e   :  { %v5227_v52 = vcombine.high %v5204_v49, %v5211_v15  ;;  %vm4747_vm10 = vcmp.gt.f32.partialorder %v23321_v62, 0.0  ;;  %v5229_v53 = vcombine.high %v5218_v40, %v5225_v60  ;;  %v5523_v37 = vcombine.low %v5507_v12, %v5521_v36  ;;  %v23337_v36 = vld [vmem:[#allocation67_spill] sm:$0xff] }
 0x22f   :  { %v4688_v43 = vadd.f32 %v23317_v8, %v23315_v27  ;;  %v4689_v50 = vadd.f32 %v23320_v16, %v23318_v2  ;;  %vm4748_vm11 = vcmp.gt.f32.partialorder %v4684_v48, 0.0  ;;  %vm4749_vm12 = vcmp.gt.f32.partialorder %v4685_v20, 0.0  ;;  %v23339_v2 = vld [vmem:[#allocation69_spill] sm:$0xff] }
 0x230   :  { %vm4750_vm13 = vcmp.gt.f32.partialorder %v23322_v55, 0.0  ;;  %vm4751_vm14 = vcmp.gt.f32.partialorder %v23323_v47, 0.0  ;;  %v5243_v26 = vrot.slane %v5227_v52, %v16549_v10  ;;  %vm4754_vm1 = vcmp.gt.f32.partialorder %v23324_v44, 0.0  ;;  %5554 = vrot.lane.b32.xlu0 %v5523_v37, %s16410_s26 }
 0x231   :  { %vm4752_vm15 = vcmp.gt.f32.partialorder %v4688_v43, 0.0  ;;  %vm4753_vm0 = vcmp.gt.f32.partialorder %v4689_v50, 0.0  ;;  %v5257_v61 = vrot.slane %v5229_v53, %v16549_v10  ;;  %v4811_v19 = vmul.f32 0.2, %v23321_v62 }
 0x232   :  { %v4812_v13 = vmul.f32 0.2, %v4684_v48  ;;  %v4813_v51 = vmul.f32 0.2, %v4685_v20  ;;  %v4814_v0 = vmul.f32 0.2, %v23322_v55  ;;  %v5226_v21 = vcombine.low %v5204_v49, %v5211_v15 }
 0x233   :  { %v4815_v7 = vmul.f32 0.2, %v23323_v47  ;;  %v4816_v58 = vmul.f32 0.2, %v4688_v43  ;;  %v5259_v30 = vcombine.low %v5243_v26, %v5257_v61  ;;  %v4817_v1 = vmul.f32 0.2, %v4689_v50 }
 0x234   :  { %v4818_v11 = vmul.f32 0.2, %v23324_v44  ;;  %v4875_v25 = vsel %vm4747_vm10, %v23321_v62, %v4811_v19  ;;  %v4876_v23 = vsel %vm4748_vm11, %v4684_v48, %v4812_v13  ;;  %v4877_v46 = vsel %vm4749_vm12, %v4685_v20, %v4813_v51  ;;  %v23331_v49 = vld [vmem:[#allocation64_spill] sm:$0xff]  ;;  %v23332_v15 = vld [vmem:[#allocation59_spill] sm:$0xff] }
 0x235   :  { %v4878_v4 = vsel %vm4750_vm13, %v23322_v55, %v4814_v0  ;;  %v4879_v3 = vsel %vm4751_vm14, %v23323_v47, %v4815_v7  ;;  %5538 = vrot.lane.b32.xlu1 %v5259_v30, %s16410_s26  ;;  %v4880_v41 = vsel %vm4752_vm15, %v4688_v43, %v4816_v58  ;;  %v4881_v32 = vsel %vm4753_vm0, %v4689_v50, %v4817_v1  ;;  %v23338_v43 = vld [vmem:[#allocation68_spill] sm:$0xff]  ;;  %v23340_v50 = vld [vmem:[#allocation78_spill] sm:$0xff] }
 0x236   :  { %v4882_v59 = vsel %vm4754_vm1, %v23324_v44, %v4818_v11  ;;  %v5128_v18 = vcombine.low %v4875_v25, %v4876_v23  ;;  %v5129_v14 = vcombine.low %v4877_v46, %v4878_v4  ;;  %v5130_v6 = vcombine.low %v4879_v3, %v4880_v41  ;;  %v23341_v41 = vld [vmem:[#allocation52_spill] sm:$0xff] }
 0x237   :  { %v5131_v63 = vcombine.low %v4881_v32, %v4882_v59  ;;  %v5228_v57 = vcombine.low %v5218_v40, %v5225_v60  ;;  %v5236_v39 = vrot.slane %v5226_v21, %v16549_v10  ;;  %v23327_v38 = vrot.slane %v23326_v45, 2  ;;  %v23342_v32 = vld [vmem:[#allocation49_spill] sm:$0xff] }
 0x238   :  { %v5138_v35 = vrot.slane %v5128_v18, %v16549_v10  ;;  %v23330_v5 = vrot.slane %v23329_v34, 2  ;;  %v5145_v24 = vrot.slane %v5129_v14, %v16549_v10  ;;  %v5152_v29 = vrot.slane %v5130_v6, %v16549_v10 }
 0x239   :  { %v4676_v9 = vadd.f32 %v23327_v38, %v23325_v28  ;;  %v5159_v17 = vrot.slane %v5131_v63, %v16549_v10  ;;  %v5250_v48 = vrot.slane %v5228_v57, %v16549_v10  ;;  %v23333_v40 = vrot.slane %v23332_v15, 2  ;;  %v23344_v57 = vld [vmem:[#allocation51_spill] sm:$0xff]  ;;  %v23353_v15 = vld [vmem:[#allocation57_spill] sm:$0xff] }
 0x23a   :  { %v4677_v12 = vadd.f32 %v23330_v5, %v23328_v31  ;;  %v23336_v20 = vrot.slane %v23335_v54, 2  ;;  %vm4739_vm2 = vcmp.gt.f32.partialorder %v23337_v36, 0.0  ;;  %v5161_v27 = vcombine.high %v5138_v35, %v5145_v24  ;;  %v23348_v31 = vld [vmem:[#allocation50_spill] sm:$0xff] }
 0x23b   :  { %v4680_v56 = vadd.f32 %v23333_v40, %v23331_v49  ;;  %vm4740_vm3 = vcmp.gt.f32.partialorder %v4676_v9, 0.0  ;;  %v5163_v22 = vcombine.high %v5152_v29, %v5159_v17  ;;  %v5258_v8 = vcombine.low %v5236_v39, %v5250_v48 }
 0x23c   :  { %v4681_v60 = vadd.f32 %v23336_v20, %v23334_v42  ;;  %vm4741_vm4 = vcmp.gt.f32.partialorder %v4677_v12, 0.0  ;;  %vm4742_vm5 = vcmp.gt.f32.partialorder %v23338_v43, 0.0  ;;  %vm4743_vm6 = vcmp.gt.f32.partialorder %v23339_v2, 0.0 }
 0x23d   :  { %vm4744_vm7 = vcmp.gt.f32.partialorder %v4680_v56, 0.0  ;;  %v5177_v33 = vrot.slane %v5161_v27, %v16549_v10  ;;  %v5191_v16 = vrot.slane %v5163_v22, %v16549_v10  ;;  %5536 = vrot.lane.b32.xlu0 %v5258_v8, %s16410_s26  ;;  %vm4746_vm9 = vcmp.gt.f32.partialorder %v23340_v50, 0.0 }
 0x23e   :  { %vm4745_vm8 = vcmp.gt.f32.partialorder %v4681_v60, 0.0  ;;  %v4803_v52 = vmul.f32 0.2, %v23337_v36  ;;  %v4804_v62 = vmul.f32 0.2, %v4676_v9  ;;  %v5160_v55 = vcombine.low %v5138_v35, %v5145_v24  ;;  %v23345_v35 = vld [vmem:[#allocation48_spill] sm:$0xff] }
 0x23f   :  { %v4805_v53 = vmul.f32 0.2, %v4677_v12  ;;  %v4806_v37 = vmul.f32 0.2, %v23338_v43  ;;  %v5193_v47 = vcombine.low %v5177_v33, %v5191_v16  ;;  %v4807_v26 = vmul.f32 0.2, %v23339_v2 }
 0x240   :  { %v4808_v44 = vmul.f32 0.2, %v4680_v56  ;;  %v4809_v61 = vmul.f32 0.2, %v4681_v60  ;;  %v4810_v19 = vmul.f32 0.2, %v23340_v50  ;;  %v4867_v13 = vsel %vm4739_vm2, %v23337_v36, %v4803_v52 }
 0x241   :  { %v4868_v51 = vsel %vm4740_vm3, %v4676_v9, %v4804_v62  ;;  %v4869_v0 = vsel %vm4741_vm4, %v4677_v12, %v4805_v53  ;;  %5534 = vrot.lane.b32.xlu1 %v5193_v47, %s16410_s26  ;;  %v4870_v7 = vsel %vm4742_vm5, %v23338_v43, %v4806_v37  ;;  %v4871_v58 = vsel %vm4743_vm6, %v23339_v2, %v4807_v26  ;;  %v23347_v9 = vld [vmem:[#allocation53_spill] sm:$0xff]  ;;  %v23350_v12 = vld [vmem:[#allocation54_spill] sm:$0xff] }
 0x242   :  { %v4872_v21 = vsel %vm4744_vm7, %v4680_v56, %v4808_v44  ;;  %v4873_v30 = vsel %vm4745_vm8, %v4681_v60, %v4809_v61  ;;  %v4874_v1 = vsel %vm4746_vm9, %v23340_v50, %v4810_v19  ;;  %v5062_v11 = vcombine.low %v4867_v13, %v4868_v51  ;;  %v23354_v56 = vld [vmem:[#allocation66_spill] sm:$0xff] }
 0x243   :  { %v5063_v25 = vcombine.low %v4869_v0, %v4870_v7  ;;  %v5064_v23 = vcombine.low %v4871_v58, %v4872_v21  ;;  %v5065_v46 = vcombine.low %v4873_v30, %v4874_v1  ;;  %v5162_v4 = vcombine.low %v5152_v29, %v5159_v17  ;;  %v23351_v29 = vld [vmem:[#allocation55_spill] sm:$0xff]  ;;  %v23352_v17 = vld [vmem:[#allocation56_spill] sm:$0xff] }
 0x244   :  { %v5170_v3 = vrot.slane %v5160_v55, %v16549_v10  ;;  %v23343_v59 = vrot.slane %v23342_v32, 2  ;;  %v5072_v14 = vrot.slane %v5062_v11, %v16549_v10  ;;  %v23346_v39 = vrot.slane %v23345_v35, 2 }
 0x245   :  { %v5079_v6 = vrot.slane %v5063_v25, %v16549_v10  ;;  %v5086_v63 = vrot.slane %v5064_v23, %v16549_v10  ;;  %v5093_v45 = vrot.slane %v5065_v46, %v16549_v10  ;;  %v5184_v38 = vrot.slane %v5162_v4, %v16549_v10 }
 0x246   :  { %v4669_v18 = vadd.f32 %v23343_v59, %v23341_v41  ;;  %v4672_v28 = vadd.f32 %v23346_v39, %v23344_v57  ;;  %v23349_v34 = vrot.slane %v23348_v31, 2  ;;  %vm4731_vm10 = vcmp.gt.f32.partialorder %v23350_v12, 0.0 }
 0x247   :  { %v5095_v24 = vcombine.high %v5072_v14, %v5079_v6  ;;  %vm4732_vm11 = vcmp.gt.f32.partialorder %v23351_v29, 0.0  ;;  %vm4734_vm13 = vcmp.gt.f32.partialorder %v23352_v17, 0.0  ;;  %v5097_v48 = vcombine.high %v5086_v63, %v5093_v45 }
 0x248   :  { %v4673_v5 = vadd.f32 %v23349_v34, %v23347_v9  ;;  %vm4733_vm12 = vcmp.gt.f32.partialorder %v4669_v18, 0.0  ;;  %v5192_v49 = vcombine.low %v5170_v3, %v5184_v38  ;;  %vm4735_vm14 = vcmp.gt.f32.partialorder %v23353_v15, 0.0  ;;  %v6575_v9 = vld [vmem:[#allocation6 + $0x3a8] sm:$0xff] }
 0x249   :  { %vm4736_vm15 = vcmp.gt.f32.partialorder %v4672_v28, 0.0  ;;  %v5111_v40 = vrot.slane %v5095_v24, %v16549_v10  ;;  %vm4738_vm1 = vcmp.gt.f32.partialorder %v23354_v56, 0.0  ;;  %v4795_v42 = vmul.f32 0.2, %v23350_v12 }
 0x24a   :  { %vm4737_vm0 = vcmp.gt.f32.partialorder %v4673_v5, 0.0  ;;  %v5125_v54 = vrot.slane %v5097_v48, %v16549_v10  ;;  %5532 = vrot.lane.b32.xlu0 %v5192_v49, %s16410_s26  ;;  %v4796_v20 = vmul.f32 0.2, %v23351_v29  ;;  %v4797_v60 = vmul.f32 0.2, %v4669_v18 }
 0x24b   :  { %v4798_v36 = vmul.f32 0.2, %v23352_v17  ;;  %v4799_v27 = vmul.f32 0.2, %v23353_v15  ;;  %v4800_v22 = vmul.f32 0.2, %v4672_v28  ;;  %v4859_v43 = vsel %vm4731_vm10, %v23350_v12, %v4795_v42 }
 0x24c   :  { %v4801_v8 = vmul.f32 0.2, %v4673_v5  ;;  %v5127_v2 = vcombine.low %v5111_v40, %v5125_v54  ;;  %v4802_v33 = vmul.f32 0.2, %v23354_v56  ;;  %v4860_v16 = vsel %vm4732_vm11, %v23351_v29, %v4796_v20  ;;  %v4923_v54 = vld [vmem:[%s23357_s28] sm:$0xff] }
 0x24d   :  { %v4861_v50 = vsel %vm4733_vm12, %v4669_v18, %v4797_v60  ;;  %v4862_v52 = vsel %vm4734_vm13, %v23352_v17, %v4798_v36  ;;  %v4863_v62 = vsel %vm4735_vm14, %v23353_v15, %v4799_v27  ;;  %v4864_v53 = vsel %vm4736_vm15, %v4672_v28, %v4800_v22  ;;  %v6519_v27 = vld [vmem:[#allocation6 + $0x1e8] sm:$0xff]  ;;  %v6518_v22 = vld [vmem:[#allocation6 + $0x1e0] sm:$0xff] }
 0x24e   :  { %v4865_v37 = vsel %vm4737_vm0, %v4673_v5, %v4801_v8  ;;  %5530 = vrot.lane.b32.xlu1 %v5127_v2, %s16410_s26  ;;  %v4866_v55 = vsel %vm4738_vm1, %v23354_v56, %v4802_v33  ;;  %v4996_v47 = vcombine.low %v4859_v43, %v4860_v16  ;;  %v4997_v26 = vcombine.low %v4861_v50, %v4862_v52  ;;  %v6515_v8 = vld [vmem:[#allocation6 + $0x1c8] sm:$0xff]  ;;  %v6514_v43 = vld [vmem:[#allocation6 + $0x1c0] sm:$0xff] }
 0x24f   :  { %v4998_v44 = vcombine.low %v4863_v62, %v4864_v53  ;;  %v4999_v61 = vcombine.low %v4865_v37, %v4866_v55  ;;  %v5094_v19 = vcombine.low %v5072_v14, %v5079_v6  ;;  %v5096_v13 = vcombine.low %v5086_v63, %v5093_v45  ;;  %v4924_v2 = vld [vmem:[%s23357_s28 + $0x8] sm:$0xff]  ;;  %v6510_v16 = vld [vmem:[#allocation6 + $0x1a0] sm:$0xff]  ;;  %v4925_v62 = vld [vmem:[%s23357_s28 + $0x10] sm:$0xff] }
 0x250   :  { %v5006_v51 = vrot.slane %v4996_v47, %v16549_v10  ;;  %v5013_v0 = vrot.slane %v4997_v26, %v16549_v10  ;;  %v22996_v7 = vmov 0.0   ;;  %vm16412_vm2 = vmmov 0   ;;  %v6511_v33 = vld [vmem:[#allocation6 + $0x1a8] sm:$0xff]  ;;  %v6506_v52 = vld [vmem:[#allocation6 + $0x180] sm:$0xff]  ;;  %v4926_v26 = vld [vmem:[%s23357_s28 + $0x18] sm:$0xff] }
 0x251   :  { %16123 = vmatprep.subr.mxu1 %v22996_v7  ;;  %5697 = vmatprep.mubr.f32.mxu0 %v22996_v7  ;;  %v5020_v58 = vrot.slane %v4998_v44, %v16549_v10  ;;  %v5027_v21 = vrot.slane %v4999_v61, %v16549_v10  ;;  %v5104_v30 = vrot.slane %v5094_v19, %v16549_v10  ;;  %vm5556_vm3 = vcmask 64512   ;;  %v6507_v50 = vld [vmem:[#allocation6 + $0x188] sm:$0xff]  ;;  %v6502_v37 = vld [vmem:[#allocation6 + $0x160] sm:$0xff] }
 0x252   :  { %v5118_v1 = vrot.slane %v5096_v13, %v16549_v10  ;;  %v5029_v11 = vcombine.high %v5006_v51, %v5013_v0  ;;  %v5028_v25 = vcombine.low %v5006_v51, %v5013_v0  ;;  %16139 = vmatprep.mubr.msk.f32.mxu1 %vm16412_vm2, %v22996_v7  ;;  %vm18288_vm4 = vmneg %vm5556_vm3  ;;  %vm5605_vm5 = vcmask 523264   ;;  %v6503_v53 = vld [vmem:[#allocation6 + $0x168] sm:$0xff]  ;;  %v6498_v47 = vld [vmem:[#allocation6 + $0x140] sm:$0xff] }
 0x253   :  { %v5031_v23 = vcombine.high %v5020_v58, %v5027_v21  ;;  %v5030_v4 = vcombine.low %v5020_v58, %v5027_v21  ;;  %v6499_v55 = vld [vmem:[#allocation6 + $0x148] sm:$0xff]  ;;  %v6494_v61 = vld [vmem:[#allocation6 + $0x120] sm:$0xff]  ;;  %vm7032_vm6 = vcmask 130048  }
 0x254   :  { %v5126_v46 = vcombine.low %v5104_v30, %v5118_v1  ;;  %v5045_v3 = vrot.slane %v5029_v11, %v16549_v10  ;;  %v5038_v41 = vrot.slane %v5028_v25, %v16549_v10  ;;  %v6495_v44 = vld [vmem:[#allocation6 + $0x128] sm:$0xff]  ;;  %v6490_v13 = vld [vmem:[#allocation6 + $0x100] sm:$0xff] }
 0x255   :  { %v5059_v32 = vrot.slane %v5031_v23, %v16549_v10  ;;  %v5052_v59 = vrot.slane %v5030_v4, %v16549_v10  ;;  %v6491_v19 = vld [vmem:[#allocation6 + $0x108] sm:$0xff]  ;;  %v4927_v51 = vld [vmem:[%s23357_s28 + $0x20] sm:$0xff]  ;;  %v4929_v4 = vld [vmem:[%s23357_s28 + $0x30] sm:$0xff] }
 0x256   :  { %5528 = vrot.lane.b32.xlu0 %v5126_v46, %s16410_s26  ;;  %v6487_v0 = vld [vmem:[#allocation6 + $0xe8] sm:$0xff]  ;;  %v6486_v58 = vld [vmem:[#allocation6 + $0xe0] sm:$0xff] }
 0x257   :  { %v5061_v18 = vcombine.low %v5045_v3, %v5059_v32  ;;  %v5060_v14 = vcombine.low %v5038_v41, %v5052_v59  ;;  %v6483_v21 = vld [vmem:[#allocation6 + $0xc8] sm:$0xff]  ;;  %v6482_v30 = vld [vmem:[#allocation6 + $0xc0] sm:$0xff] }
 0x258   :  { %v4928_v1 = vld [vmem:[%s23357_s28 + $0x28] sm:$0xff]  ;;  %v6478_v25 = vld [vmem:[#allocation6 + $0xa0] sm:$0xff] }
 0x259   :  { %5526 = vrot.lane.b32.xlu1 %v5061_v18, %s16410_s26  ;;  %v6479_v11 = vld [vmem:[#allocation6 + $0xa8] sm:$0xff]  ;;  %v6474_v46 = vld [vmem:[#allocation6 + $0x80] sm:$0xff]  ;;  %v4930_v18 = vld [vmem:[%s23357_s28 + $0x38] sm:$0xff] }
 0x25a   :  { %5524 = vrot.lane.b32.xlu0 %v5060_v14, %s16410_s26  ;;  %v6475_v23 = vld [vmem:[#allocation6 + $0x88] sm:$0xff]  ;;  %v6470_v41 = vld [vmem:[#allocation6 + $0x60] sm:$0xff] }
 0x25b   :  { %v6471_v3 = vld [vmem:[#allocation6 + $0x68] sm:$0xff]  ;;  %v6466_v59 = vld [vmem:[#allocation6 + $0x40] sm:$0xff] }
 0x25c   :  { %v6467_v32 = vld [vmem:[#allocation6 + $0x48] sm:$0xff] }
 0x25d   :  { %v6463_v14 = vld [vmem:[#allocation6 + $0x28] sm:$0xff] }
 0x279   :  { %v5543_v6 = vpop.permute.xlu1 %5542  ;;  %v5541_v63 = vpop.permute.xlu0 %5540 }
 0x27a   :  { %v5561_v12 = vsel %vm5556_vm3, %v5541_v63, %v5543_v6 }
 0x286   :  { %v5547_v57 = vpop.permute.xlu1 %5546  ;;  %v5545_v35 = vpop.permute.xlu0 %5544 }
 0x287   :  { %v5562_v5 = vsel %vm5556_vm3, %v5545_v35, %v5547_v57 }
 0x291   :  { %v5549_v39 = vpop.permute.xlu1 %5548 }
 0x295   :  { %v5551_v45 = vpop.permute.xlu1 %5550 }
 0x296   :  { %v5563_v34 = vsel %vm5556_vm3, %v5549_v39, %v5551_v45 }
 0x29b   :  { %v5553_v28 = vpop.permute.xlu0 %5552 }
 0x2a2   :  { %v5555_v38 = vpop.permute.xlu0 %5554 }
 0x2a3   :  { %16124 = vmatpush3.msk.msra.mxu1 %vm5556_vm3, %v5555_v38  ;;  %v5564_v31 = vsel %vm5556_vm3, %v5553_v28, %v5555_v38  ;;  %v6578_v38 = vld [vmem:[#allocation6 + $0x3c0] sm:$0xff] }
 0x2a4   :  { %5649 = vmatprep.subr.mxu0 %v5564_v31  ;;  %16125 = vmatprep.subr.mxu1 %v22996_v7  ;;  %v6574_v31 = vld [vmem:[#allocation6 + $0x3a0] sm:$0xff] }
 0x2a5   :  { %15960 = vmatpush1.msk.msra.mxu0 %vm18288_vm4, %v5553_v28  ;;  %16126 = vmatpush3.msk.msra.mxu1 %vm5556_vm3, %v5551_v45  ;;  %v6582_v28 = vld [vmem:[#allocation6 + $0x3e0] sm:$0xff]  ;;  %v6579_v45 = vld [vmem:[#allocation6 + $0x3c8] sm:$0xff] }
 0x2a6   :  { %5651 = vmatprep.subr.mxu0 %v5563_v34  ;;  %16127 = vmatprep.subr.mxu1 %v22996_v7  ;;  %v6571_v34 = vld [vmem:[#allocation6 + $0x388] sm:$0xff] }
 0x2a7   :  { %15962 = vmatpush1.msk.msra.mxu0 %vm18288_vm4, %v5549_v39  ;;  %16128 = vmatpush3.msk.msra.mxu1 %vm5556_vm3, %v5547_v57  ;;  %v5539_v24 = vpop.permute.xlu1 %5538  ;;  %v6458_v57 = vld [vmem:[#allocation6] sm:$0xff]  ;;  %v6583_v39 = vld [vmem:[#allocation6 + $0x3e8] sm:$0xff] }
 0x2a8   :  { %5653 = vmatprep.subr.mxu0 %v5562_v5  ;;  %16129 = vmatprep.subr.mxu1 %v22996_v7  ;;  %v6570_v5 = vld [vmem:[#allocation6 + $0x380] sm:$0xff] }
 0x2a9   :  { %15964 = vmatpush1.msk.msra.mxu0 %vm18288_vm4, %v5545_v35  ;;  %16130 = vmatpush3.msk.msra.mxu1 %vm5556_vm3, %v5543_v6  ;;  %v6462_v6 = vld [vmem:[#allocation6 + $0x20] sm:$0xff] }
 0x2aa   :  { %5655 = vmatprep.subr.mxu0 %v5561_v12  ;;  %16131 = vmatprep.subr.mxu1 %v22996_v7  ;;  %v4931_v35 = vld [vmem:[%s23357_s28 + $0x40] sm:$0xf]  ;;  %v6567_v12 = vld [vmem:[#allocation6 + $0x368] sm:$0xff] }
 0x2ab   :  { %15966 = vmatpush1.msk.msra.mxu0 %vm18288_vm4, %v5541_v63  ;;  %16132 = vmatpush3.msk.msra.mxu1 %vm5556_vm3, %v5539_v24  ;;  %v6459_v63 = vld [vmem:[#allocation6 + $0x8] sm:$0xff] }
 0x2ac   :  { %16133 = vmatprep.subr.mxu1 %v22996_v7 }
 0x2af   :  { %v5537_v29 = vpop.permute.xlu0 %5536 }
 0x2b0   :  { %v5560_v17 = vsel %vm5556_vm3, %v5537_v29, %v5539_v24  ;;  %v6566_v24 = vld [vmem:[#allocation6 + $0x360] sm:$0xff] }
 0x2b1   :  { %5657 = vmatprep.subr.mxu0 %v5560_v17  ;;  %v6563_v17 = vld [vmem:[#allocation6 + $0x348] sm:$0xff] }
 0x2b2   :  { %15968 = vmatpush1.msk.msra.mxu0 %vm18288_vm4, %v5537_v29  ;;  %v6591_v29 = vld [vmem:[#allocation6 + $0x428] sm:$0xff] }
 0x2b3   :  { %v5535_v48 = vpop.permute.xlu1 %5534 }
 0x2b4   :  { %16134 = vmatpush3.msk.msra.mxu1 %vm5556_vm3, %v5535_v48 }
 0x2b5   :  { %16135 = vmatprep.subr.mxu1 %v22996_v7 }
 0x2bc   :  { %v5533_v49 = vpop.permute.xlu0 %5532 }
 0x2bd   :  { %v5559_v15 = vsel %vm5556_vm3, %v5533_v49, %v5535_v48  ;;  %v6590_v48 = vld [vmem:[#allocation6 + $0x420] sm:$0xff] }
 0x2be   :  { %5659 = vmatprep.subr.mxu0 %v5559_v15  ;;  %v6559_v15 = vld [vmem:[#allocation6 + $0x328] sm:$0xff] }
 0x2bf   :  { %15970 = vmatpush1.msk.msra.mxu0 %vm18288_vm4, %v5533_v49  ;;  %v6562_v49 = vld [vmem:[#allocation6 + $0x340] sm:$0xff] }
 0x2c0   :  { %v5531_v40 = vpop.permute.xlu1 %5530 }
 0x2c1   :  { %16136 = vmatpush3.msk.msra.mxu1 %vm5556_vm3, %v5531_v40 }
 0x2c2   :  { %16137 = vmatprep.subr.mxu1 %v22996_v7 }
 0x2c8   :  { %v5529_v56 = vpop.permute.xlu0 %5528 }
 0x2c9   :  { %v5558_v42 = vsel %vm5556_vm3, %v5529_v56, %v5531_v40  ;;  %v6558_v40 = vld [vmem:[#allocation6 + $0x320] sm:$0xff] }
 0x2ca   :  { %5661 = vmatprep.subr.mxu0 %v5558_v42  ;;  %v6554_v42 = vld [vmem:[#allocation6 + $0x300] sm:$0xff] }
 0x2cb   :  { %15972 = vmatpush1.msk.msra.mxu0 %vm18288_vm4, %v5529_v56  ;;  %v5527_v20 = vpop.permute.xlu1 %5526  ;;  %v6555_v56 = vld [vmem:[#allocation6 + $0x308] sm:$0xff] }
 0x2cc   :  { %v5525_v60 = vpop.permute.xlu0 %5524  ;;  %16138 = vmatpush3.msk.msra.mxu1 %vm5556_vm3, %v5527_v20 }
 0x2cd   :  { %v5557_v36 = vsel %vm5556_vm3, %v5525_v60, %v5527_v20  ;;  %16140 = vmatmul.mubr.msk.f32.vlgmr.msra.gmra.mxu1 %vm5605_vm5, %v4923_v54  ;;  %7166 = vmatprep.subr.mxu1 %v6591_v29  ;;  %v6550_v20 = vld [vmem:[#allocation6 + $0x2e0] sm:$0xff] }
 0x2ce   :  { %5663 = vmatprep.subr.mxu0 %v5557_v36  ;;  %16142 = vmatprep.mubr.msk.f32.mxu1 %vm16412_vm2, %v22996_v7  ;;  %v6546_v36 = vld [vmem:[#allocation6 + $0x2c0] sm:$0xff] }
 0x2cf   :  { %15974 = vmatpush1.msk.msra.mxu0 %vm18288_vm4, %v5525_v60  ;;  %7167 = vmatpush1.msra.mxu1 %v6590_v48  ;;  %v6547_v60 = vld [vmem:[#allocation6 + $0x2c8] sm:$0xff] }
 0x2d0   :  { %15975 = vmatmul.mubr.msk.f32.vlgmr.msra.gmra.mxu0 %vm5605_vm5, %v4923_v54  ;;  %7043 = vmatprep.subr.mxu0 %v6519_v27  ;;  %v6551_v54 = vld [vmem:[#allocation6 + $0x2e8] sm:$0xff] }
 0x2d1   :  { %5703 = vmatprep.mubr.f32.mxu0 %v22996_v7  ;;  %7044 = vmatpush1.msra.mxu0 %v6518_v22  ;;  %v6543_v27 = vld [vmem:[#allocation6 + $0x2a8] sm:$0xff]  ;;  %v6542_v22 = vld [vmem:[#allocation6 + $0x2a0] sm:$0xff] }
 0x2d2   :  { %16143 = vmatmul.mubr.msk.f32.gmra.mxu1 %vm5605_vm5, %v4924_v2  ;;  %7045 = vmatprep.subr.mxu0 %v6515_v8  ;;  %v6539_v8 = vld [vmem:[#allocation6 + $0x288] sm:$0xff] }
 0x2d3   :  { %16145 = vmatprep.mubr.msk.f32.mxu1 %vm16412_vm2, %v22996_v7  ;;  %7046 = vmatpush1.msra.mxu0 %v6514_v43  ;;  %v6538_v43 = vld [vmem:[#allocation6 + $0x280] sm:$0xff] }
 0x2d4   :  { %15976 = vmatmul.mubr.msk.f32.gmra.mxu0 %vm5605_vm5, %v4924_v2  ;;  %7047 = vmatprep.subr.mxu0 %v6511_v33  ;;  %v6535_v2 = vld [vmem:[#allocation6 + $0x268] sm:$0xff] }
 0x2d5   :  { %5709 = vmatprep.mubr.f32.mxu0 %v22996_v7  ;;  %7048 = vmatpush1.msra.mxu0 %v6510_v16  ;;  %v6587_v33 = vld [vmem:[#allocation6 + $0x408] sm:$0xff]  ;;  %v6586_v16 = vld [vmem:[#allocation6 + $0x400] sm:$0xff] }
 0x2d6   :  { %16146 = vmatmul.mubr.msk.f32.gmra.mxu1 %vm5605_vm5, %v4925_v62  ;;  %7049 = vmatprep.subr.mxu0 %v6507_v50  ;;  %v6534_v50 = vld [vmem:[#allocation6 + $0x260] sm:$0xff] }
 0x2d7   :  { %16148 = vmatprep.mubr.msk.f32.mxu1 %vm16412_vm2, %v22996_v7  ;;  %7050 = vmatpush1.msra.mxu0 %v6506_v52  ;;  %v6531_v52 = vld [vmem:[#allocation6 + $0x248] sm:$0xff] }
 0x2d8   :  { %15977 = vmatmul.mubr.msk.f32.gmra.mxu0 %vm5605_vm5, %v4925_v62  ;;  %7051 = vmatprep.subr.mxu0 %v6503_v53  ;;  %v6521_v62 = vld [vmem:[#allocation6 + $0x1f8] sm:$0xff]  ;;  %v6530_v53 = vld [vmem:[#allocation6 + $0x240] sm:$0xff] }
 0x2d9   :  { %5715 = vmatprep.mubr.f32.mxu0 %v22996_v7  ;;  %7052 = vmatpush1.msra.mxu0 %v6502_v37  ;;  %v6527_v37 = vld [vmem:[#allocation6 + $0x228] sm:$0xff] }
 0x2da   :  { %16149 = vmatmul.mubr.msk.f32.gmra.mxu1 %vm5605_vm5, %v4926_v26  ;;  %7053 = vmatprep.subr.mxu0 %v6499_v55  ;;  %v6526_v55 = vld [vmem:[#allocation6 + $0x220] sm:$0xff] }
 0x2db   :  { %16151 = vmatprep.mubr.msk.f32.mxu1 %vm16412_vm2, %v22996_v7  ;;  %7054 = vmatpush1.msra.mxu0 %v6498_v47  ;;  %v6523_v47 = vld [vmem:[#allocation6 + $0x208] sm:$0xff] }
 0x2dc   :  { %15978 = vmatmul.mubr.msk.f32.gmra.mxu0 %vm5605_vm5, %v4926_v26  ;;  %7055 = vmatprep.subr.mxu0 %v6495_v44  ;;  %v6522_v26 = vld [vmem:[#allocation6 + $0x200] sm:$0xff]  ;;  %v6593_v44 = vld [vmem:[#allocation6 + $0x438] sm:$0xff] }
 0x2dd   :  { %5721 = vmatprep.mubr.f32.mxu0 %v22996_v7  ;;  %7056 = vmatpush1.msra.mxu0 %v6494_v61 }
 0x2de   :  { %16152 = vmatmul.mubr.msk.f32.gmra.mxu1 %vm5605_vm5, %v4927_v51  ;;  %7057 = vmatprep.subr.mxu0 %v6491_v19 }
 0x2df   :  { %16154 = vmatprep.mubr.msk.f32.mxu1 %vm16412_vm2, %v22996_v7  ;;  %7058 = vmatpush1.msra.mxu0 %v6490_v13 }
 0x2e0   :  { %15979 = vmatmul.mubr.msk.f32.gmra.mxu0 %vm5605_vm5, %v4927_v51  ;;  %7059 = vmatprep.subr.mxu0 %v6487_v0 }
 0x2e1   :  { %5727 = vmatprep.mubr.f32.mxu0 %v22996_v7  ;;  %7060 = vmatpush1.msra.mxu0 %v6486_v58 }
 0x2e2   :  { %16155 = vmatmul.mubr.msk.f32.gmra.mxu1 %vm5605_vm5, %v4928_v1  ;;  %7061 = vmatprep.subr.mxu0 %v6483_v21 }
 0x2e3   :  { %16157 = vmatprep.mubr.msk.f32.mxu1 %vm16412_vm2, %v22996_v7  ;;  %7062 = vmatpush1.msra.mxu0 %v6482_v30 }
 0x2e4   :  { %15980 = vmatmul.mubr.msk.f32.gmra.mxu0 %vm5605_vm5, %v4928_v1  ;;  %7063 = vmatprep.subr.mxu0 %v6479_v11 }
 0x2e5   :  { %5733 = vmatprep.mubr.f32.mxu0 %v22996_v7  ;;  %7064 = vmatpush1.msra.mxu0 %v6478_v25 }
 0x2e6   :  { %16158 = vmatmul.mubr.msk.f32.gmra.mxu1 %vm5605_vm5, %v4929_v4  ;;  %7065 = vmatprep.subr.mxu0 %v6475_v23 }
 0x2e7   :  { %16160 = vmatprep.mubr.msk.f32.mxu1 %vm16412_vm2, %v22996_v7  ;;  %7066 = vmatpush1.msra.mxu0 %v6474_v46 }
 0x2e8   :  { %15981 = vmatmul.mubr.msk.f32.gmra.mxu0 %vm5605_vm5, %v4929_v4  ;;  %7067 = vmatprep.subr.mxu0 %v6471_v3 }
 0x2e9   :  { %5739 = vmatprep.mubr.f32.mxu0 %v22996_v7  ;;  %7068 = vmatpush1.msra.mxu0 %v6470_v41 }
 0x2ea   :  { %16161 = vmatmul.mubr.msk.f32.gmra.mxu1 %vm5605_vm5, %v4930_v18  ;;  %7069 = vmatprep.subr.mxu0 %v6467_v32 }
 0x2eb   :  { %16163 = vmatprep.mubr.msk.f32.mxu1 %vm16412_vm2, %v22996_v7  ;;  %7070 = vmatpush1.msra.mxu0 %v6466_v59 }
 0x2ec   :  { %15982 = vmatmul.mubr.msk.f32.gmra.mxu0 %vm5605_vm5, %v4930_v18  ;;  %7071 = vmatprep.subr.mxu0 %v6463_v14 }
 0x2ed   :  { %5745 = vmatprep.mubr.f32.mxu0 %v22996_v7  ;;  %7072 = vmatpush1.msra.mxu0 %v6462_v6 }
 0x2ee   :  { %16164 = vmatmul.mubr.msk.f32.gmra.mxu1 %vm5605_vm5, %v4931_v35  ;;  %7073 = vmatprep.subr.mxu0 %v6459_v63 }
 0x2ef   :  { %7074 = vmatpush1.msra.mxu0 %v6458_v57  ;;  %7202 = vmatprep.mubr.f32.mxu1 %v22996_v7 }
 0x2f0   :  { %15983 = vmatmul.mubr.msk.f32.gmra.mxu0 %vm5605_vm5, %v4931_v35  ;;  %7075 = vmatprep.subr.mxu0 %v6583_v39 }
 0x2f1   :  { %7076 = vmatpush2.msra.mxu0 %v6582_v28  ;;  %7168 = vmatprep.subr.mxu1 %v6587_v33 }
 0x2f2   :  { %7077 = vmatprep.subr.mxu0 %v6579_v45  ;;  %7169 = vmatpush1.msra.mxu1 %v6586_v16 }
 0x2f3   :  { %7078 = vmatpush2.msra.mxu0 %v6578_v38  ;;  %7233 = vmatprep.subr.mxu1 %v6521_v62 }
 0x2f4   :  { %7079 = vmatprep.subr.mxu0 %v6575_v9 }
 0x2f5   :  { %7080 = vmatpush2.msra.mxu0 %v6574_v31 }
 0x2f6   :  { %7081 = vmatprep.subr.mxu0 %v6571_v34 }
 0x2f7   :  { %7082 = vmatpush2.msra.mxu0 %v6570_v5 }
 0x2f8   :  { %7083 = vmatprep.subr.mxu0 %v6567_v12 }
 0x2f9   :  { %7084 = vmatpush2.msra.mxu0 %v6566_v24 }
 0x2fa   :  { %7085 = vmatprep.subr.mxu0 %v6563_v17 }
 0x2fb   :  { %7086 = vmatpush2.msra.mxu0 %v6562_v49 }
 0x2fc   :  { %7087 = vmatprep.subr.mxu0 %v6559_v15 }
 0x2fd   :  { %7088 = vmatpush2.msra.mxu0 %v6558_v40 }
 0x2fe   :  { %7089 = vmatprep.subr.mxu0 %v6555_v56 }
 0x2ff   :  { %7090 = vmatpush2.msra.mxu0 %v6554_v42 }
 0x300   :  { %7091 = vmatprep.subr.mxu0 %v6551_v54 }
 0x301   :  { %7092 = vmatpush2.msra.mxu0 %v6550_v20 }
 0x302   :  { %7093 = vmatprep.subr.mxu0 %v6547_v60 }
 0x303   :  { %7094 = vmatpush2.msra.mxu0 %v6546_v36 }
 0x304   :  { %7095 = vmatprep.subr.mxu0 %v6543_v27 }
 0x305   :  { %7096 = vmatpush2.msra.mxu0 %v6542_v22 }
 0x306   :  { %7097 = vmatprep.subr.mxu0 %v6539_v8 }
 0x307   :  { %7098 = vmatpush2.msra.mxu0 %v6538_v43 }
 0x308   :  { %7099 = vmatprep.subr.mxu0 %v6535_v2 }
 0x309   :  { %7100 = vmatpush2.msra.mxu0 %v6534_v50 }
 0x30a   :  { %7101 = vmatprep.subr.mxu0 %v6531_v52 }
 0x30b   :  { %7102 = vmatpush2.msra.mxu0 %v6530_v53 }
 0x30c   :  { %7103 = vmatprep.subr.mxu0 %v6527_v37 }
 0x30d   :  { %7104 = vmatpush2.msra.mxu0 %v6526_v55 }
 0x30e   :  { %7105 = vmatprep.subr.mxu0 %v6523_v47 }
 0x30f   :  { %7106 = vmatpush2.msra.mxu0 %v6522_v26 }
 0x310   :  { %7356 = vmatprep.subr.mxu0 %v6593_v44 }
 0x38d   :  { %v5818_v61 = vpop.f32.mrf.mxu1 }
 0x38e   :  { %v5891_v19 = vcombine.high %v5818_v61, %v5818_v61  ;;  %v5912_v3 = vrot.slane %v5818_v61, %v16549_v10 }
 0x38f   :  { %v16141_v51 = vpop.f32.mrf.mxu1 }
 0x390   :  { %v5699_v13 = vpop.f32.mrf.mxu0  ;;  %v5919_v1 = vrot.slane %v5891_v19, %v16549_v10 }
 0x392   :  { %v5701_v0 = vpop.f32.mrf.mxu0  ;;  %v5823_v58 = vpop.f32.mrf.mxu1 }
 0x393   :  { %v5889_v21 = vcombine.low %v5699_v13, %v5701_v0  ;;  %v5890_v30 = vcombine.high %v5699_v13, %v5701_v0  ;;  %v5958_v25 = vcombine.high %v5823_v58, %v5823_v58  ;;  %v5979_v32 = vrot.slane %v5823_v58, %v16549_v10 }
 0x394   :  { %v5705_v11 = vpop.f32.mrf.mxu0  ;;  %v16144_v23 = vpop.f32.mrf.mxu1 }
 0x395   :  { %v5898_v46 = vrot.slane %v5889_v21, %v16549_v10  ;;  %v5905_v4 = vrot.slane %v5890_v30, %v16549_v10  ;;  %v5986_v28 = vrot.slane %v5958_v25, %v16549_v10 }
 0x396   :  { %v5707_v41 = vpop.f32.mrf.mxu0  ;;  %v5828_v59 = vpop.f32.mrf.mxu1 }
 0x397   :  { %v5920_v18 = vcombine.low %v5898_v46, %v5912_v3  ;;  %v5921_v14 = vcombine.high %v5898_v46, %v5912_v3  ;;  %v5922_v6 = vcombine.low %v5905_v4, %v5919_v1  ;;  %v5923_v63 = vcombine.high %v5905_v4, %v5919_v1 }
 0x398   :  { %v5956_v57 = vcombine.low %v5705_v11, %v5707_v41  ;;  %v5957_v35 = vcombine.high %v5705_v11, %v5707_v41  ;;  %v5711_v39 = vpop.f32.mrf.mxu0  ;;  %v6025_v45 = vcombine.high %v5828_v59, %v5828_v59  ;;  %v16147_v38 = vpop.f32.mrf.mxu1  ;;  %v6046_v17 = vrot.slane %v5828_v59, %v16549_v10 }
 0x399   :  { %v5930_v9 = vrot.slane %v5920_v18, %v16549_v10  ;;  %v5937_v31 = vrot.slane %v5922_v6, %v16549_v10  ;;  %v5944_v34 = vrot.slane %v5921_v14, %v16549_v10  ;;  %v5951_v5 = vrot.slane %v5923_v63, %v16549_v10  ;;  %v6520_v14 = vld [vmem:[#allocation6 + $0x1f0] sm:$0xff] }
 0x39a   :  { %v5965_v12 = vrot.slane %v5956_v57, %v16549_v10  ;;  %v5972_v24 = vrot.slane %v5957_v35, %v16549_v10  ;;  %v5713_v29 = vpop.f32.mrf.mxu0  ;;  %v6053_v48 = vrot.slane %v6025_v45, %v16549_v10  ;;  %v5833_v49 = vpop.f32.mrf.mxu1 }
 0x39b   :  { %v6730_v15 = vcombine.low %v5930_v9, %v5944_v34  ;;  %v16001_v40 = vcombine.high %v5930_v9, %v5944_v34  ;;  %v6732_v56 = vcombine.low %v5937_v31, %v5951_v5  ;;  %v16002_v42 = vcombine.high %v5937_v31, %v5951_v5  ;;  %v6516_v34 = vld [vmem:[#allocation6 + $0x1d0] sm:$0xff] }
 0x39c   :  { %v5987_v54 = vcombine.low %v5965_v12, %v5979_v32  ;;  %v5988_v20 = vcombine.high %v5965_v12, %v5979_v32  ;;  %v5989_v60 = vcombine.low %v5972_v24, %v5986_v28  ;;  %v5990_v36 = vcombine.high %v5972_v24, %v5986_v28  ;;  %v5717_v27 = vpop.f32.mrf.mxu0  ;;  %v16150_v22 = vpop.f32.mrf.mxu1 }
 0x39d   :  { %v18416_v8 = vrot.slane %v6730_v15, %v16549_v10  ;;  %v18419_v43 = vrot.slane %v16001_v40, %v16549_v10  ;;  %v18422_v2 = vrot.slane %v6732_v56, %v16549_v10  ;;  %v18425_v33 = vrot.slane %v16002_v42, %v16549_v10  ;;  %v6509_v22 = vld [vmem:[#allocation6 + $0x198] sm:$0xff] }
 0x39e   :  { %v18428_v16 = vrot.slane %v5987_v54, %v16549_v10  ;;  %v18431_v50 = vrot.slane %v5989_v60, %v16549_v10  ;;  %v18434_v52 = vrot.slane %v5988_v20, %v16549_v10  ;;  %v18437_v62 = vrot.slane %v5990_v36, %v16549_v10  ;;  %v5719_v53 = vpop.f32.mrf.mxu0  ;;  %v18439_v37 = vpop.f32.mrf.mxu1  ;;  %v6512_v54 = vld [vmem:[#allocation6 + $0x1b0] sm:$0xff] }
 0x39f   :  { %v6762_v55 = vcombine.low %v18416_v8, %v18419_v43  ;;  %v6764_v47 = vcombine.low %v18422_v2, %v18425_v33  ;;  %v6023_v26 = vcombine.low %v5711_v39, %v5713_v29  ;;  %v6024_v44 = vcombine.high %v5711_v39, %v5713_v29  ;;  %v6517_v39 = vld [vmem:[#allocation6 + $0x1d8] sm:$0xff] }
 0x3a0   :  { %v6797_v61 = vcombine.low %v18428_v16, %v18434_v52  ;;  %v16003_v19 = vcombine.high %v18428_v16, %v18434_v52  ;;  %v6799_v13 = vcombine.low %v18431_v50, %v18437_v62  ;;  %v18451_v51 = vpop.f32.mrf.mxu0  ;;  %v16153_v0 = vpop.f32.mrf.mxu1  ;;  %v16004_v11 = vcombine.high %v18431_v50, %v18437_v62  ;;  %v6472_v50 = vld [vmem:[#allocation6 + $0x70] sm:$0xff] }
 0x3a1   :  { %v18454_v58 = vrot.slane %v6762_v55, %v16549_v10  ;;  %v18457_v21 = vrot.slane %v6764_v47, %v16549_v10  ;;  %v6032_v30 = vrot.slane %v6023_v26, %v16549_v10  ;;  %v6039_v1 = vrot.slane %v6024_v44, %v16549_v10  ;;  %v6508_v26 = vld [vmem:[#allocation6 + $0x190] sm:$0xff] }
 0x3a2   :  { %v18464_v25 = vrot.slane %v6797_v61, %v16549_v10  ;;  %v6090_v23 = vcombine.low %v5717_v27, %v5719_v53  ;;  %v6091_v46 = vcombine.high %v5717_v27, %v5719_v53  ;;  %v18466_v4 = vpop.f32.mrf.mxu0  ;;  %v18468_v3 = vpop.f32.mrf.mxu1  ;;  %v6092_v35 = vcombine.high %v5833_v49, %v5833_v49 }
 0x3a3   :  { %v18472_v41 = vcombine.high %v18454_v58, %v18457_v21  ;;  %v6054_v32 = vcombine.low %v6032_v30, %v6046_v17  ;;  %v6055_v59 = vcombine.high %v6032_v30, %v6046_v17  ;;  %v6056_v18 = vcombine.low %v6039_v1, %v6053_v48 }
 0x3a4   :  { %v6057_v6 = vcombine.high %v6039_v1, %v6053_v48  ;;  %v6099_v63 = vrot.slane %v6090_v23, %v16549_v10  ;;  %v6106_v57 = vrot.slane %v6091_v46, %v16549_v10  ;;  %v16156_v28 = vpop.f32.mrf.mxu1  ;;  %v6113_v31 = vrot.slane %v5833_v49, %v16549_v10  ;;  %v18490_v17 = vpop.f32.mrf.mxu0  ;;  %v6513_v48 = vld [vmem:[#allocation6 + $0x1b8] sm:$0xff] }
 0x3a5   :  { %v18477_v45 = vrot.slane %v6054_v32, %v16549_v10  ;;  %v6071_v38 = vrot.slane %v6056_v18, %v16549_v10  ;;  %v6078_v9 = vrot.slane %v6055_v59, %v16549_v10  ;;  %16005 = vmatmul.mubr.msk.f32.vlgmr.msra.gmra.mxu1 %vm7032_vm6, %v18472_v41  ;;  %v6120_v12 = vrot.slane %v6092_v35, %v16549_v10  ;;  %v6505_v1 = vld [vmem:[#allocation6 + $0x178] sm:$0xff]  ;;  %v6504_v59 = vld [vmem:[#allocation6 + $0x170] sm:$0xff] }
 0x3a6   :  { %v6085_v5 = vrot.slane %v6057_v6, %v16549_v10  ;;  %v6157_v24 = vcombine.low %v18451_v51, %v18466_v4  ;;  %v6158_v29 = vcombine.high %v18451_v51, %v18466_v4  ;;  %7234 = vmatpush1.msra.mxu1 %v6520_v14  ;;  %v18492_v15 = vpop.f32.mrf.mxu1  ;;  %v6121_v42 = vcombine.low %v6099_v63, %v6113_v31  ;;  %v5731_v30 = vpop.f32.mrf.mxu0 }
 0x3a7   :  { %v6086_v49 = vcombine.high %v18477_v45, %v18477_v45  ;;  %v6087_v40 = vcombine.high %v6071_v38, %v6071_v38  ;;  %v6088_v56 = vcombine.high %v6078_v9, %v6078_v9  ;;  %7235 = vmatprep.subr.mxu1 %v6517_v39  ;;  %v6122_v60 = vcombine.high %v6099_v63, %v6113_v31  ;;  %v6500_v31 = vld [vmem:[#allocation6 + $0x150] sm:$0xff] }
 0x3a8   :  { %v6089_v20 = vcombine.high %v6085_v5, %v6085_v5  ;;  %v6123_v36 = vcombine.low %v6106_v57, %v6120_v12  ;;  %v6124_v27 = vcombine.high %v6106_v57, %v6120_v12  ;;  %7236 = vmatpush1.msra.mxu1 %v6516_v34  ;;  %v16159_v16 = vpop.f32.mrf.mxu1  ;;  %v18497_v52 = vrot.slane %v16003_v19, %v16549_v10  ;;  %v6501_v57 = vld [vmem:[#allocation6 + $0x158] sm:$0xff] }
 0x3a9   :  { %v7779_v53 = vcombine.low %v6078_v9, %v6086_v49  ;;  %v18499_v55 = vcombine.low %v6088_v56, %v6071_v38  ;;  %v6131_v47 = vrot.slane %v6121_v42, %v16549_v10  ;;  %7237 = vmatprep.subr.mxu1 %v6513_v48  ;;  %v18502_v44 = vcombine.low %v6085_v5, %v6087_v40  ;;  %v6496_v42 = vld [vmem:[#allocation6 + $0x130] sm:$0xff] }
 0x3aa   :  { %v6138_v61 = vrot.slane %v6123_v36, %v16549_v10  ;;  %v6145_v51 = vrot.slane %v6122_v60, %v16549_v10  ;;  %v6152_v0 = vrot.slane %v6124_v27, %v16549_v10  ;;  %7238 = vmatpush1.msra.mxu1 %v6512_v54  ;;  %v18507_v19 = vpop.f32.mrf.mxu1  ;;  %v6166_v32 = vrot.slane %v6157_v24, %v16549_v10  ;;  %v18533_v36 = vpop.f32.mrf.mxu0  ;;  %v6493_v27 = vld [vmem:[#allocation6 + $0x118] sm:$0xff] }
 0x3ab   :  { %v18510_v23 = vrot.slane %v7779_v53, %v16549_v10  ;;  %v6153_v46 = vcombine.high %v6131_v47, %v6131_v47  ;;  %v7782_v4 = vcombine.low %v6089_v20, %v6131_v47  ;;  %7239 = vmatprep.subr.mxu1 %v6509_v22  ;;  %v6173_v6 = vrot.slane %v6158_v29, %v16549_v10  ;;  %v6497_v29 = vld [vmem:[#allocation6 + $0x138] sm:$0xff] }
 0x3ac   :  { %v6154_v18 = vcombine.high %v6138_v61, %v6138_v61  ;;  %v6155_v14 = vcombine.high %v6145_v51, %v6145_v51  ;;  %v6159_v63 = vcombine.high %v18439_v37, %v18439_v37  ;;  %7240 = vmatpush1.msra.mxu1 %v6508_v26  ;;  %v16162_v35 = vpop.f32.mrf.mxu1  ;;  %v6156_v28 = vcombine.high %v6152_v0, %v6152_v0 }
 0x3ad   :  { %v7846_v39 = vcombine.low %v6145_v51, %v6153_v46  ;;  %v6180_v38 = vrot.slane %v18439_v37, %v16549_v10  ;;  %v6224_v9 = vcombine.low %v18490_v17, %v5731_v30  ;;  %7241 = vmatprep.subr.mxu1 %v6505_v1  ;;  %v6225_v24 = vcombine.high %v18490_v17, %v5731_v30  ;;  %v6488_v35 = vld [vmem:[#allocation6 + $0xf0] sm:$0xff] }
 0x3ae   :  { %v7847_v34 = vcombine.low %v6155_v14, %v6138_v61  ;;  %v7848_v5 = vcombine.low %v6152_v0, %v6154_v18  ;;  %v6187_v12 = vrot.slane %v6159_v63, %v16549_v10  ;;  %7242 = vmatpush1.msra.mxu1 %v6504_v59  ;;  %v18521_v48 = vpop.f32.mrf.mxu1  ;;  %v18524_v49 = vrot.slane %v7782_v4, %v16549_v10  ;;  %v6492_v61 = vld [vmem:[#allocation6 + $0x110] sm:$0xff]  ;;  %v6489_v18 = vld [vmem:[#allocation6 + $0xf8] sm:$0xff] }
 0x3af   :  { %v18527_v40 = vrot.slane %v7846_v39, %v16549_v10  ;;  %v6188_v37 = vcombine.low %v6166_v32, %v6180_v38  ;;  %v6189_v56 = vcombine.high %v6166_v32, %v6180_v38  ;;  %7243 = vmatprep.subr.mxu1 %v6501_v57  ;;  %v6233_v17 = vrot.slane %v6224_v9, %v16549_v10 }
 0x3b0   :  { %v18530_v54 = vrot.slane %v7847_v34, %v16549_v10  ;;  %v6190_v20 = vcombine.low %v6173_v6, %v6187_v12  ;;  %v6191_v60 = vcombine.high %v6173_v6, %v6187_v12  ;;  %7244 = vmatpush1.msra.mxu1 %v6500_v31  ;;  %v16165_v22 = vpop.f32.mrf.mxu1  ;;  %v6240_v47 = vrot.slane %v6225_v24, %v16549_v10  ;;  %v6484_v12 = vld [vmem:[#allocation6 + $0xd0] sm:$0xff] }
 0x3b1   :  { %v6198_v16 = vrot.slane %v6188_v37, %v16549_v10  ;;  %v18537_v53 = vrot.slane %v6189_v56, %v16549_v10  ;;  %v6226_v26 = vcombine.high %v18468_v3, %v18468_v3  ;;  %7245 = vmatprep.subr.mxu1 %v6497_v29  ;;  %v6247_v30 = vrot.slane %v18468_v3, %v16549_v10  ;;  %v5737_v3 = vpop.f32.mrf.mxu0  ;;  %v6481_v56 = vld [vmem:[#allocation6 + $0xb8] sm:$0xff] }
 0x3b2   :  { %v6205_v51 = vrot.slane %v6190_v20, %v16549_v10  ;;  %v6219_v0 = vrot.slane %v6191_v60, %v16549_v10  ;;  %v6763_v1 = vcombine.high %v18416_v8, %v18419_v43  ;;  %7246 = vmatpush1.msra.mxu1 %v6496_v42  ;;  %v18552_v14 = vrot.slane %v7848_v5, %v16549_v10 }
 0x3b3   :  { %v6220_v46 = vcombine.high %v6198_v16, %v6198_v16  ;;  %v6222_v4 = vcombine.high %v18537_v53, %v18537_v53  ;;  %v7849_v32 = vcombine.low %v6156_v28, %v6198_v16  ;;  %v6254_v59 = vrot.slane %v6226_v26, %v16549_v10  ;;  %7247 = vmatprep.subr.mxu1 %v6493_v27  ;;  %v6485_v28 = vld [vmem:[#allocation6 + $0xd8] sm:$0xff]  ;;  %v6480_v27 = vld [vmem:[#allocation6 + $0xb0] sm:$0xff] }
 0x3b4   :  { %v6223_v6 = vcombine.high %v6219_v0, %v6219_v0  ;;  %v6255_v63 = vcombine.low %v6233_v17, %v6247_v30  ;;  %v6256_v57 = vcombine.high %v6233_v17, %v6247_v30  ;;  %7248 = vmatpush1.msra.mxu1 %v6492_v61  ;;  %v6221_v8 = vcombine.high %v6205_v51, %v6205_v51 }
 0x3b5   :  { %v6864_v43 = vcombine.low %v18477_v45, %v6220_v46  ;;  %v6865_v39 = vcombine.low %v6222_v4, %v6205_v51  ;;  %v6257_v38 = vcombine.low %v6240_v47, %v6254_v59  ;;  %7208 = vmatprep.mubr.f32.mxu1 %v22996_v7  ;;  %v18557_v9 = vrot.slane %v7849_v32, %v16549_v10 }
 0x3b6   :  { %v6258_v31 = vcombine.high %v6240_v47, %v6254_v59  ;;  %v6265_v34 = vrot.slane %v6255_v63, %v16549_v10  ;;  %v6279_v5 = vrot.slane %v6256_v57, %v16549_v10  ;;  %7249 = vmatprep.subr.mxu1 %v6489_v18  ;;  %v6765_v45 = vcombine.high %v18422_v2, %v18425_v33  ;;  %v6477_v33 = vld [vmem:[#allocation6 + $0x98] sm:$0xff]  ;;  %v6476_v59 = vld [vmem:[#allocation6 + $0x90] sm:$0xff] }
 0x3b7   :  { %v6272_v24 = vrot.slane %v6257_v38, %v16549_v10  ;;  %v6779_v29 = vrot.slane %v6763_v1, %v16549_v10  ;;  %v6291_v37 = vcombine.low %v18533_v36, %v5737_v3  ;;  %7250 = vmatpush1.msra.mxu1 %v6488_v35  ;;  %v6866_v22 = vcombine.low %v6219_v0, %v6221_v8  ;;  %v6473_v57 = vld [vmem:[#allocation6 + $0x78] sm:$0xff] }
 0x3b8   :  { %v18567_v42 = vrot.slane %v6258_v31, %v16549_v10  ;;  %v6287_v20 = vcombine.high %v6265_v34, %v6265_v34  ;;  %v6289_v60 = vcombine.high %v6279_v5, %v6279_v5  ;;  %v6867_v17 = vcombine.low %v6223_v6, %v6265_v34  ;;  %7251 = vmatprep.subr.mxu1 %v6485_v28 }
 0x3b9   :  { %v6288_v16 = vcombine.high %v6272_v24, %v6272_v24  ;;  %v6793_v47 = vrot.slane %v6765_v45, %v16549_v10  ;;  %v6292_v2 = vcombine.high %v18533_v36, %v5737_v3  ;;  %7252 = vmatpush1.msra.mxu1 %v6484_v12  ;;  %v6300_v51 = vrot.slane %v6291_v37, %v16549_v10  ;;  %v18623_v37 = vpop.f32.mrf.mxu0 }
 0x3ba   :  { %v18572_v26 = vrot.slane %v6867_v17, %v16549_v10  ;;  %v6931_v61 = vcombine.low %v6279_v5, %v6287_v20  ;;  %v18577_v30 = vcombine.low %v18454_v58, %v18457_v21  ;;  %7253 = vmatprep.subr.mxu1 %v6481_v56  ;;  %v18579_v1 = vcombine.low %v6289_v60, %v6272_v24  ;;  %v6468_v5 = vld [vmem:[#allocation6 + $0x50] sm:$0xff] }
 0x3bb   :  { %v18582_v0 = vcombine.low %v18567_v42, %v6288_v16  ;;  %v18584_v46 = vcombine.low %v6779_v29, %v6793_v47  ;;  %v6307_v36 = vrot.slane %v6292_v2, %v16549_v10  ;;  %7254 = vmatpush1.msra.mxu1 %v6480_v27  ;;  %v6290_v4 = vcombine.high %v18567_v42, %v18567_v42  ;;  %v6465_v29 = vld [vmem:[#allocation6 + $0x38] sm:$0xff] }
 0x3bc   :  { %v6293_v32 = vcombine.high %v18492_v15, %v18492_v15  ;;  %v6314_v58 = vrot.slane %v18492_v15, %v16549_v10  ;;  %v6821_v21 = vrot.slane %v6799_v13, %v16549_v10  ;;  %7255 = vmatprep.subr.mxu1 %v6477_v33  ;;  %v6828_v18 = vrot.slane %v16004_v11, %v16549_v10 }
 0x3bd   :  { %7107 = vmatprep.mubr.f32.mxu0 %v18584_v46  ;;  %v6830_v6 = vcombine.high %v18464_v25, %v18497_v52  ;;  %v6829_v15 = vcombine.low %v18464_v25, %v18497_v52  ;;  %v18607_v63 = vrot.slane %v6864_v43, %v16549_v10  ;;  %v18612_v8 = vrot.slane %v6865_v39, %v16549_v10  ;;  %v6469_v52 = vld [vmem:[#allocation6 + $0x58] sm:$0xff] }
 0x3be   :  { %7108 = vmatmul.mubr.f32.vlgmr.msra.gmra.mxu0 %v18577_v30  ;;  %v6321_v13 = vrot.slane %v6293_v32, %v16549_v10  ;;  %v6322_v3 = vcombine.low %v6300_v51, %v6314_v58  ;;  %v6323_v35 = vcombine.high %v6300_v51, %v6314_v58  ;;  %v6832_v62 = vcombine.high %v6821_v21, %v6828_v18 }
 0x3bf   :  { %v6846_v11 = vrot.slane %v6830_v6, %v16549_v10  ;;  %v6831_v38 = vcombine.low %v6821_v21, %v6828_v18  ;;  %v6839_v25 = vrot.slane %v6829_v15, %v16549_v10  ;;  %7256 = vmatpush1.msra.mxu1 %v6476_v59  ;;  %v6888_v24 = vrot.slane %v6866_v22, %v16549_v10  ;;  %v6592_v21 = vld [vmem:[#allocation6 + $0x430] sm:$0xff]  ;;  %v5743_v59 = vpop.f32.mrf.mxu0 }
 0x3c0   :  { %v6324_v43 = vcombine.low %v6307_v36, %v6321_v13  ;;  %v6325_v28 = vcombine.high %v6307_v36, %v6321_v13  ;;  %v6332_v31 = vrot.slane %v6322_v3, %v16549_v10  ;;  %v6346_v34 = vrot.slane %v6323_v35, %v16549_v10  ;;  %7257 = vmatprep.subr.mxu1 %v6473_v57  ;;  %v6464_v36 = vld [vmem:[#allocation6 + $0x30] sm:$0xff] }
 0x3c1   :  { %v6860_v39 = vrot.slane %v6832_v62, %v16549_v10  ;;  %v6853_v12 = vrot.slane %v6831_v38, %v16549_v10  ;;  %v6897_v45 = vcombine.high %v18607_v63, %v18612_v8  ;;  %7258 = vmatpush1.msra.mxu1 %v6472_v50  ;;  %v6899_v32 = vcombine.high %v6888_v24, %v18572_v26  ;;  %v6589_v50 = vld [vmem:[#allocation6 + $0x418] sm:$0xff] }
 0x3c2   :  { %v18626_v56 = vrot.slane %v6324_v43, %v16549_v10  ;;  %v18629_v42 = vrot.slane %v6325_v28, %v16549_v10  ;;  %v6354_v20 = vcombine.high %v6332_v31, %v6332_v31  ;;  %v6356_v60 = vcombine.high %v6346_v34, %v6346_v34  ;;  %7259 = vmatprep.subr.mxu1 %v6469_v52  ;;  %v18671_v52 = vpop.f32.mrf.mxu0 }
 0x3c3   :  { %v6934_v17 = vcombine.low %v6290_v4, %v6332_v31  ;;  %v18631_v27 = vcombine.low %v6846_v11, %v6860_v39  ;;  %v18633_v22 = vcombine.high %v6839_v25, %v6853_v12  ;;  %v18635_v16 = vcombine.low %v6839_v25, %v6853_v12  ;;  %7260 = vmatpush1.msra.mxu1 %v6468_v5 }
 0x3c4   :  { %v6998_v47 = vcombine.low %v6346_v34, %v6354_v20  ;;  %v7913_v2 = vcombine.low %v18537_v53, %v6356_v60  ;;  %v7914_v33 = vcombine.low %v18626_v56, %v18629_v42  ;;  %v16015_v51 = vcombine.high %v18626_v56, %v18629_v42  ;;  %7261 = vmatprep.subr.mxu1 %v6465_v29  ;;  %v6461_v53 = vld [vmem:[#allocation6 + $0x18] sm:$0xff]  ;;  %v6650_v42 = vld [vmem:[#allocation7 + $0x1c0] sm:$0xff] }
 0x3c5   :  { %v6941_v4 = vrot.slane %v6931_v61, %v16549_v10  ;;  %7113 = vmatprep.mubr.f32.mxu0 %v18631_v27  ;;  %16006 = vmatmul.mubr.msk.f32.gmra.mxu1 %vm7032_vm6, %v18633_v22  ;;  %v6913_v58 = vrot.slane %v6897_v45, %v16549_v10  ;;  %v6962_v18 = vrot.slane %v6934_v17, %v16549_v10  ;;  %v6460_v61 = vld [vmem:[#allocation6 + $0x10] sm:$0xff] }
 0x3c6   :  { %v18650_v6 = vrot.slane %v7913_v2, %v16549_v10  ;;  %v18653_v15 = vrot.slane %v7914_v33, %v16549_v10  ;;  %7114 = vmatmul.mubr.f32.gmra.mxu0 %v18635_v16  ;;  %7214 = vmatprep.mubr.f32.mxu1 %v22996_v7  ;;  %v6927_v57 = vrot.slane %v6899_v32, %v16549_v10  ;;  %v6584_v17 = vld [vmem:[#allocation6 + $0x3f0] sm:$0xff]  ;;  %v6581_v33 = vld [vmem:[#allocation6 + $0x3d8] sm:$0xff]  ;;  %v5749_v32 = vpop.f32.mrf.mxu0 }
 0x3c7   :  { %v6896_v13 = vcombine.low %v18607_v63, %v18612_v8  ;;  %v6898_v3 = vcombine.low %v6888_v24, %v18572_v26  ;;  %v6948_v35 = vrot.slane %v18579_v1, %v16549_v10  ;;  %7262 = vmatpush1.msra.mxu1 %v6464_v36  ;;  %v6955_v62 = vrot.slane %v18582_v0, %v16549_v10  ;;  %v6585_v1 = vld [vmem:[#allocation6 + $0x3f8] sm:$0xff]  ;;  %v6588_v24 = vld [vmem:[#allocation6 + $0x410] sm:$0xff] }
 0x3c8   :  { %v7005_v11 = vrot.slane %v6998_v47, %v16549_v10  ;;  %7263 = vmatprep.subr.mxu1 %v6461_v53  ;;  %7357 = vmatpush1.msra.mxu0 %v6592_v21  ;;  %v6358_v38 = vcombine.low %v18623_v37, %v5743_v59  ;;  %v18667_v25 = vcombine.low %v6913_v58, %v6927_v57  ;;  %v6655_v47 = vld [vmem:[#allocation7 + $0x1e8] sm:$0xff] }
 0x3c9   :  { %v6906_v63 = vrot.slane %v6896_v13, %v16549_v10  ;;  %v6920_v26 = vrot.slane %v6898_v3, %v16549_v10  ;;  %v6964_v8 = vcombine.high %v6941_v4, %v6948_v35  ;;  %7264 = vmatpush1.msra.mxu1 %v6460_v61  ;;  %v6966_v43 = vcombine.high %v6955_v62, %v6962_v18 }
 0x3ca   :  { %v6963_v28 = vcombine.low %v6941_v4, %v6948_v35  ;;  %v6965_v0 = vcombine.low %v6955_v62, %v6962_v18  ;;  %v7006_v31 = vcombine.high %v7005_v11, %v7005_v11  ;;  %7358 = vmatprep.subr.mxu0 %v6589_v50  ;;  %7119 = vmatprep.mubr.f32.mxu0 %v18667_v25  ;;  %v6577_v35 = vld [vmem:[#allocation6 + $0x3b8] sm:$0xff] }
 0x3cb   :  { %v18674_v34 = vcombine.high %v6906_v63, %v6920_v26  ;;  %v18676_v5 = vcombine.low %v6906_v63, %v6920_v26  ;;  %v6980_v39 = vrot.slane %v6964_v8, %v16549_v10  ;;  %v18680_v12 = vrot.slane %v7005_v11, %v16549_v10  ;;  %7265 = vmatprep.subr.mxu1 %v6585_v1  ;;  %v6576_v1 = vld [vmem:[#allocation6 + $0x3b0] sm:$0xff] }
 0x3cc   :  { %v6994_v45 = vrot.slane %v6966_v43, %v16549_v10  ;;  %v6973_v29 = vrot.slane %v6963_v28, %v16549_v10  ;;  %v6987_v20 = vrot.slane %v6965_v0, %v16549_v10  ;;  %v18686_v60 = vrot.slane %v7006_v31, %v16549_v10  ;;  %7359 = vmatpush1.msra.mxu0 %v6588_v24  ;;  %v6573_v24 = vld [vmem:[#allocation6 + $0x398] sm:$0xff] }
 0x3cd   :  { %16007 = vmatmul.mubr.msk.f32.gmra.mxu1 %vm7032_vm6, %v18674_v34  ;;  %7120 = vmatmul.mubr.f32.gmra.mxu0 %v18676_v5  ;;  %v18693_v2 = vcombine.high %v18680_v12, %v18680_v12  ;;  %v6359_v36 = vcombine.high %v18623_v37, %v5743_v59  ;;  %v6367_v4 = vrot.slane %v6358_v38, %v16549_v10  ;;  %v6580_v59 = vld [vmem:[#allocation6 + $0x3d0] sm:$0xff] }
 0x3ce   :  { %7220 = vmatprep.mubr.f32.mxu1 %v22996_v7  ;;  %v18698_v58 = vcombine.low %v6980_v39, %v6994_v45  ;;  %v18700_v53 = vcombine.high %v6973_v29, %v6987_v20  ;;  %v18702_v21 = vcombine.low %v6973_v29, %v6987_v20  ;;  %7266 = vmatpush2.msra.mxu1 %v6584_v17  ;;  %v6572_v45 = vld [vmem:[#allocation6 + $0x390] sm:$0xff] }
 0x3cf   :  { %8091 = vmatprep.subr.mxu0 %v6655_v47  ;;  %v6374_v18 = vrot.slane %v6359_v36, %v16549_v10  ;;  %v6360_v61 = vcombine.high %v18507_v19, %v18507_v19  ;;  %v6381_v37 = vrot.slane %v18507_v19, %v16549_v10  ;;  %7267 = vmatprep.subr.mxu1 %v6581_v33  ;;  %v6654_v47 = vld [vmem:[#allocation7 + $0x1e0] sm:$0xff] }
 0x3d0   :  { %7125 = vmatprep.mubr.f32.mxu0 %v18698_v58  ;;  %v7796_v57 = vrot.slane %v18499_v55, %v16549_v10  ;;  %v7803_v13 = vrot.slane %v18502_v44, %v16549_v10  ;;  %v6425_v3 = vcombine.low %v18671_v52, %v5749_v32  ;;  %7268 = vmatpush2.msra.mxu1 %v6580_v59 }
 0x3d1   :  { %16008 = vmatmul.mubr.msk.f32.gmra.mxu1 %vm7032_vm6, %v18700_v53  ;;  %7126 = vmatmul.mubr.f32.gmra.mxu0 %v18702_v21  ;;  %v6388_v19 = vrot.slane %v6360_v61, %v16549_v10  ;;  %v6389_v50 = vcombine.low %v6367_v4, %v6381_v37  ;;  %v6390_v62 = vcombine.high %v6367_v4, %v6381_v37  ;;  %v6651_v4 = vld [vmem:[#allocation7 + $0x1c8] sm:$0xff] }
 0x3d2   :  { %7226 = vmatprep.mubr.f32.mxu1 %v22996_v7  ;;  %7131 = vmatprep.mubr.f32.mxu0 %v18686_v60  ;;  %v7811_v55 = vcombine.low %v18510_v23, %v7796_v57  ;;  %v7812_v44 = vcombine.high %v18510_v23, %v7796_v57  ;;  %v7813_v11 = vcombine.low %v7803_v13, %v18524_v49  ;;  %v6568_v57 = vld [vmem:[#allocation6 + $0x370] sm:$0xff] }
 0x3d3   :  { %v6391_v38 = vcombine.low %v6374_v18, %v6388_v19  ;;  %v6392_v63 = vcombine.high %v6374_v18, %v6388_v19  ;;  %v6399_v26 = vrot.slane %v6389_v50, %v16549_v10  ;;  %v6413_v8 = vrot.slane %v6390_v62, %v16549_v10  ;;  %7269 = vmatprep.subr.mxu1 %v6577_v35  ;;  %v6569_v18 = vld [vmem:[#allocation6 + $0x378] sm:$0xff]  ;;  %v6646_v19 = vld [vmem:[#allocation7 + $0x1a0] sm:$0xff] }
 0x3d4   :  { %v7814_v52 = vcombine.high %v7803_v13, %v18524_v49  ;;  %v18728_v43 = vrot.slane %v7811_v55, %v16549_v10  ;;  %v7828_v28 = vrot.slane %v7812_v44, %v16549_v10  ;;  %v18732_v23 = vrot.slane %v7813_v11, %v16549_v10  ;;  %7270 = vmatpush2.msra.mxu1 %v6576_v1  ;;  %v6643_v44 = vld [vmem:[#allocation7 + $0x188] sm:$0xff]  ;;  %v6565_v11 = vld [vmem:[#allocation6 + $0x358] sm:$0xff] }
 0x3d5   :  { %16009 = vmatmul.mubr.msk.f32.gmra.mxu1 %vm7032_vm6, %v18693_v2  ;;  %7132 = vmatmul.mubr.f32.gmra.mxu0 %v18680_v12  ;;  %v6406_v0 = vrot.slane %v6391_v38, %v16549_v10  ;;  %v6420_v31 = vrot.slane %v6392_v63, %v16549_v10  ;;  %v7916_v39 = vcombine.low %v6399_v26, %v6413_v8 }
 0x3d6   :  { %7297 = vmatprep.mubr.f32.mxu1 %v18584_v46  ;;  %7392 = vmatprep.mubr.f32.mxu0 %v22996_v7  ;;  %v16016_v49 = vcombine.high %v6399_v26, %v6413_v8  ;;  %v7842_v29 = vrot.slane %v7814_v52, %v16549_v10  ;;  %v18744_v20 = vcombine.high %v18728_v43, %v18732_v23  ;;  %v6642_v26 = vld [vmem:[#allocation7 + $0x180] sm:$0xff]  ;;  %v6564_v8 = vld [vmem:[#allocation6 + $0x350] sm:$0xff] }
 0x3d7   :  { %v18750_v17 = vrot.slane %v16015_v51, %v16549_v10  ;;  %v18753_v33 = vrot.slane %v7916_v39, %v16549_v10  ;;  %v7981_v46 = vcombine.low %v6406_v0, %v6420_v31  ;;  %v6432_v36 = vrot.slane %v6425_v3, %v16549_v10  ;;  %7271 = vmatprep.subr.mxu1 %v6573_v24  ;;  %v6638_v24 = vld [vmem:[#allocation7 + $0x160] sm:$0xff] }
 0x3d8   :  { %v16017_v32 = vcombine.high %v6406_v0, %v6420_v31  ;;  %v18756_v61 = vcombine.low %v7828_v28, %v7842_v29  ;;  %v6439_v37 = vrot.slane %v18521_v48, %v16549_v10  ;;  %v7878_v56 = vcombine.low %v18527_v40, %v18530_v54  ;;  %7272 = vmatpush2.msra.mxu1 %v6572_v45  ;;  %v6647_v48 = vld [vmem:[#allocation7 + $0x1a8] sm:$0xff] }
 0x3d9   :  { %16010 = vmatmul.mubr.msk.f32.vlgmr.msra.gmra.mxu0 %vm7032_vm6, %v18472_v41  ;;  %v18765_v51 = vrot.slane %v16016_v49, %v16549_v10  ;;  %v18768_v59 = vrot.slane %v7981_v46, %v16549_v10  ;;  %v7880_v13 = vcombine.low %v18552_v14, %v18557_v9  ;;  %7273 = vmatprep.subr.mxu1 %v6569_v18  ;;  %v6639_v31 = vld [vmem:[#allocation7 + $0x168] sm:$0xff]  ;;  %v6561_v49 = vld [vmem:[#allocation6 + $0x338] sm:$0xff]  ;;  %v6634_v18 = vld [vmem:[#allocation7 + $0x140] sm:$0xff] }
 0x3da   :  { %8092 = vmatpush1.msra.mxu0 %v6654_v47  ;;  %7398 = vmatprep.mubr.f32.mxu0 %v22996_v7  ;;  %v6440_v3 = vcombine.low %v6432_v36, %v6439_v37  ;;  %v6441_v35 = vcombine.high %v6432_v36, %v6439_v37  ;;  %v7888_v41 = vrot.slane %v7878_v56, %v16549_v10  ;;  %v6635_v46 = vld [vmem:[#allocation7 + $0x148] sm:$0xff]  ;;  %v6560_v36 = vld [vmem:[#allocation6 + $0x330] sm:$0xff]  ;;  %v6557_v37 = vld [vmem:[#allocation6 + $0x318] sm:$0xff] }
 0x3db   :  { %8093 = vmatprep.subr.mxu0 %v6651_v4  ;;  %v7902_v50 = vrot.slane %v7880_v13, %v16549_v10  ;;  %v7945_v62 = vcombine.low %v18650_v6, %v18653_v15  ;;  %v7947_v55 = vcombine.low %v18750_v17, %v18753_v33  ;;  %7274 = vmatpush2.msra.mxu1 %v6568_v57 }
 0x3dc   :  { %8094 = vmatpush1.msra.mxu0 %v6650_v42  ;;  %v18780_v38 = vrot.slane %v6440_v3, %v16549_v10  ;;  %v18783_v63 = vrot.slane %v6441_v35, %v16549_v10  ;;  %v18792_v0 = vrot.slane %v16017_v32, %v16549_v10  ;;  %7275 = vmatprep.subr.mxu1 %v6565_v11  ;;  %v6627_v35 = vld [vmem:[#allocation7 + $0x108] sm:$0xff]  ;;  %v6549_v11 = vld [vmem:[#allocation6 + $0x2d8] sm:$0xff] }
 0x3dd   :  { %8095 = vmatprep.subr.mxu0 %v6647_v48  ;;  %16011 = vmatmul.mubr.msk.f32.gmra.mxu0 %vm7032_vm6, %v18633_v22  ;;  %v18787_v1 = vcombine.high %v7888_v41, %v7902_v50  ;;  %v7955_v52 = vrot.slane %v7945_v62, %v16549_v10  ;;  %v7969_v28 = vrot.slane %v7947_v55, %v16549_v10 }
 0x3de   :  { %8096 = vmatpush1.msra.mxu0 %v6646_v19  ;;  %7404 = vmatprep.mubr.f32.mxu0 %v22996_v7  ;;  %v7983_v39 = vcombine.low %v18780_v38, %v18783_v63  ;;  %v8012_v22 = vcombine.low %v18765_v51, %v18768_v59  ;;  %v18803_v29 = vcombine.low %v18728_v43, %v18732_v23 }
 0x3df   :  { %8097 = vmatprep.subr.mxu0 %v6643_v44  ;;  %v18799_v45 = vcombine.high %v7955_v52, %v7969_v28  ;;  %v7879_v47 = vcombine.high %v18527_v40, %v18530_v54  ;;  %7276 = vmatpush2.msra.mxu1 %v6564_v8  ;;  %v7881_v32 = vcombine.high %v18552_v14, %v18557_v9  ;;  %v6631_v54 = vld [vmem:[#allocation7 + $0x128] sm:$0xff] }
 0x3e0   :  { %8098 = vmatpush1.msra.mxu0 %v6642_v26  ;;  %v8011_v4 = vrot.slane %v7983_v39, %v16549_v10  ;;  %v18813_v23 = vcombine.low %v7888_v41, %v7902_v50  ;;  %v7946_v40 = vcombine.high %v18650_v6, %v18653_v15  ;;  %7277 = vmatprep.subr.mxu1 %v6561_v49  ;;  %v6630_v6 = vld [vmem:[#allocation7 + $0x120] sm:$0xff]  ;;  %v6553_v15 = vld [vmem:[#allocation6 + $0x2f8] sm:$0xff]  ;;  %v6552_v41 = vld [vmem:[#allocation6 + $0x2f0] sm:$0xff] }
 0x3e1   :  { %8099 = vmatprep.subr.mxu0 %v6639_v31  ;;  %16012 = vmatmul.mubr.msk.f32.gmra.mxu0 %vm7032_vm6, %v18674_v34  ;;  %v7895_v43 = vrot.slane %v7879_v47, %v16549_v10  ;;  %v8022_v14 = vrot.slane %v8012_v22, %v16549_v10  ;;  %v7909_v9 = vrot.slane %v7881_v32, %v16549_v10  ;;  %v6556_v34 = vld [vmem:[#allocation6 + $0x310] sm:$0xff]  ;;  %v6626_v50 = vld [vmem:[#allocation7 + $0x100] sm:$0xff]  ;;  %v6623_v44 = vld [vmem:[#allocation7 + $0xe8] sm:$0xff] }
 0x3e2   :  { %8100 = vmatpush1.msra.mxu0 %v6638_v24  ;;  %v8014_v56 = vcombine.low %v18792_v0, %v8011_v4  ;;  %7278 = vmatpush2.msra.mxu1 %v6560_v36  ;;  %v7948_v42 = vcombine.high %v18750_v17, %v18753_v33  ;;  %v7962_v57 = vrot.slane %v7946_v40, %v16549_v10  ;;  %v6618_v31 = vld [vmem:[#allocation7 + $0xc0] sm:$0xff]  ;;  %v6544_v39 = vld [vmem:[#allocation6 + $0x2b0] sm:$0xff]  ;;  %v6615_v22 = vld [vmem:[#allocation7 + $0xa8] sm:$0xff] }
 0x3e3   :  { %8101 = vmatprep.subr.mxu0 %v6635_v46  ;;  %v18823_v13 = vcombine.low %v7955_v52, %v7969_v28  ;;  %7410 = vmatprep.mubr.f32.mxu0 %v22996_v7  ;;  %v18827_v3 = vcombine.low %v7895_v43, %v7909_v9  ;;  %v8013_v17 = vcombine.high %v18765_v51, %v18768_v59  ;;  %v6548_v59 = vld [vmem:[#allocation6 + $0x2d0] sm:$0xff]  ;;  %v6619_v28 = vld [vmem:[#allocation7 + $0xc8] sm:$0xff]  ;;  %v6541_v24 = vld [vmem:[#allocation6 + $0x298] sm:$0xff] }
 0x3e4   :  { %8102 = vmatpush1.msra.mxu0 %v6634_v18  ;;  %v8036_v48 = vrot.slane %v8014_v56, %v16549_v10  ;;  %7279 = vmatprep.subr.mxu1 %v6557_v37  ;;  %v7976_v19 = vrot.slane %v7948_v42, %v16549_v10  ;;  %v8015_v33 = vcombine.high %v18792_v0, %v8011_v4  ;;  %v6545_v0 = vld [vmem:[#allocation6 + $0x2b8] sm:$0xff]  ;;  %v6614_v49 = vld [vmem:[#allocation7 + $0xa0] sm:$0xff]  ;;  %v6540_v47 = vld [vmem:[#allocation6 + $0x290] sm:$0xff] }
 0x3e5   :  { %8103 = vmatprep.subr.mxu0 %v6631_v54  ;;  %16013 = vmatmul.mubr.msk.f32.gmra.mxu0 %vm7032_vm6, %v18700_v53  ;;  %v8029_v8 = vrot.slane %v8013_v17, %v16549_v10  ;;  %v6622_v53 = vld [vmem:[#allocation7 + $0xe0] sm:$0xff]  ;;  %v6611_v46 = vld [vmem:[#allocation7 + $0x88] sm:$0xff]  ;;  %v6537_v36 = vld [vmem:[#allocation6 + $0x278] sm:$0xff] }
 0x3e6   :  { %7280 = vmatpush2.msra.mxu1 %v6556_v34  ;;  %v18835_v62 = vcombine.high %v8022_v14, %v8036_v48  ;;  %v18837_v55 = vcombine.low %v8022_v14, %v8036_v48  ;;  %8104 = vmatpush1.msra.mxu0 %v6630_v6  ;;  %v18839_v26 = vcombine.low %v7962_v57, %v7976_v19  ;;  %v6610_v4 = vld [vmem:[#allocation7 + $0x80] sm:$0xff]  ;;  %v6607_v32 = vld [vmem:[#allocation7 + $0x68] sm:$0xff]  ;;  %v6533_v18 = vld [vmem:[#allocation6 + $0x258] sm:$0xff] }
 0x3e7   :  { %7281 = vmatprep.subr.mxu1 %v6553_v15  ;;  %v8043_v51 = vrot.slane %v8015_v33, %v16549_v10  ;;  %8105 = vmatprep.subr.mxu0 %v6627_v35  ;;  %v6606_v43 = vld [vmem:[#allocation7 + $0x60] sm:$0xff]  ;;  %v6532_v40 = vld [vmem:[#allocation6 + $0x250] sm:$0xff]  ;;  %v6603_v54 = vld [vmem:[#allocation7 + $0x48] sm:$0xff] }
 0x3e8   :  { %7282 = vmatpush2.msra.mxu1 %v6552_v41  ;;  %8106 = vmatpush1.msra.mxu0 %v6626_v50  ;;  %v6529_v37 = vld [vmem:[#allocation6 + $0x238] sm:$0xff]  ;;  %v6602_v56 = vld [vmem:[#allocation7 + $0x40] sm:$0xff]  ;;  %v6528_v14 = vld [vmem:[#allocation6 + $0x230] sm:$0xff] }
 0x3e9   :  { %7416 = vmatprep.mubr.f32.mxu0 %v22996_v7  ;;  %v18844_v52 = vcombine.low %v8029_v8, %v8043_v51  ;;  %8107 = vmatprep.subr.mxu0 %v6623_v44  ;;  %v6599_v9 = vld [vmem:[#allocation7 + $0x28] sm:$0xff]  ;;  %v6525_v34 = vld [vmem:[#allocation6 + $0x218] sm:$0xff]  ;;  %v6598_v42 = vld [vmem:[#allocation7 + $0x20] sm:$0xff] }
 0x3ea   :  { %7283 = vmatprep.subr.mxu1 %v6549_v11  ;;  %16014 = vmatmul.mubr.msk.f32.gmra.mxu0 %vm7032_vm6, %v18693_v2  ;;  %v6536_v2 = vld [vmem:[#allocation6 + $0x270] sm:$0xff]  ;;  %v6595_v6 = vld [vmem:[#allocation7 + $0x8] sm:$0xff]  ;;  %v6594_v15 = vld [vmem:[#allocation7] sm:$0xff] }
 0x3eb   :  { %7284 = vmatpush2.msra.mxu1 %v6548_v59  ;;  %8108 = vmatpush1.msra.mxu0 %v6622_v53  ;;  %v6524_v57 = vld [vmem:[#allocation6 + $0x210] sm:$0xff]  ;;  %v6719_v48 = vld [vmem:[#allocation7 + $0x3e8] sm:$0xff]  ;;  %v6718_v41 = vld [vmem:[#allocation7 + $0x3e0] sm:$0xff] }
 0x3ec   :  { %8155 = vmatprep.mubr.f32.mxu0 %v18756_v61  ;;  %8109 = vmatprep.subr.mxu0 %v6619_v28  ;;  %v6727_v35 = vld [vmem:[#allocation7 + $0x428] sm:$0xff]  ;;  %v6726_v19 = vld [vmem:[#allocation7 + $0x420] sm:$0xff]  ;;  %v6657_v59 = vld [vmem:[#allocation7 + $0x1f8] sm:$0xff] }
 0x3ed   :  { %7285 = vmatprep.subr.mxu1 %v6545_v0  ;;  %8110 = vmatpush1.msra.mxu0 %v6618_v31  ;;  %v6715_v17 = vld [vmem:[#allocation7 + $0x3c8] sm:$0xff]  ;;  %v6714_v33 = vld [vmem:[#allocation7 + $0x3c0] sm:$0xff] }
 0x3ee   :  { %7286 = vmatpush2.msra.mxu1 %v6544_v39  ;;  %8111 = vmatprep.subr.mxu0 %v6615_v22  ;;  %v6711_v50 = vld [vmem:[#allocation7 + $0x3a8] sm:$0xff]  ;;  %v6710_v11 = vld [vmem:[#allocation7 + $0x3a0] sm:$0xff] }
 0x3ef   :  { %7287 = vmatprep.subr.mxu1 %v6541_v24  ;;  %8112 = vmatpush1.msra.mxu0 %v6614_v49  ;;  %v6723_v44 = vld [vmem:[#allocation7 + $0x408] sm:$0xff]  ;;  %v6722_v8 = vld [vmem:[#allocation7 + $0x400] sm:$0xff] }
 0x3f0   :  { %7288 = vmatpush2.msra.mxu1 %v6540_v47  ;;  %8113 = vmatprep.subr.mxu0 %v6611_v46  ;;  %v6706_v51 = vld [vmem:[#allocation7 + $0x380] sm:$0xff]  ;;  %v6691_v31 = vld [vmem:[#allocation7 + $0x308] sm:$0xff]  ;;  %v6653_v47 = vld [vmem:[#allocation7 + $0x1d8] sm:$0xff] }
 0x3f1   :  { %7289 = vmatprep.subr.mxu1 %v6537_v36  ;;  %8114 = vmatpush1.msra.mxu0 %v6610_v4  ;;  %v6702_v53 = vld [vmem:[#allocation7 + $0x360] sm:$0xff]  ;;  %v6687_v39 = vld [vmem:[#allocation7 + $0x2e8] sm:$0xff]  ;;  %v6652_v46 = vld [vmem:[#allocation7 + $0x1d0] sm:$0xff] }
 0x3f2   :  { %7290 = vmatpush2.msra.mxu1 %v6536_v2  ;;  %8115 = vmatprep.subr.mxu0 %v6607_v32  ;;  %v6698_v28 = vld [vmem:[#allocation7 + $0x340] sm:$0xff]  ;;  %v6683_v22 = vld [vmem:[#allocation7 + $0x2c8] sm:$0xff]  ;;  %v6649_v36 = vld [vmem:[#allocation7 + $0x1b8] sm:$0xff]  ;;  %v16018_v32 = vcombine.high %v18780_v38, %v18783_v63 }
 0x3f3   :  { %7291 = vmatprep.subr.mxu1 %v6533_v18  ;;  %8116 = vmatpush1.msra.mxu0 %v6606_v43  ;;  %v6694_v0 = vld [vmem:[#allocation7 + $0x320] sm:$0xff]  ;;  %v6679_v49 = vld [vmem:[#allocation7 + $0x2a8] sm:$0xff]  ;;  %v6648_v18 = vld [vmem:[#allocation7 + $0x1b0] sm:$0xff] }
 0x3f4   :  { %7292 = vmatpush2.msra.mxu1 %v6532_v40  ;;  %8117 = vmatprep.subr.mxu0 %v6603_v54  ;;  %v6682_v24 = vld [vmem:[#allocation7 + $0x2c0] sm:$0xff]  ;;  %v6671_v2 = vld [vmem:[#allocation7 + $0x268] sm:$0xff]  ;;  %v6645_v40 = vld [vmem:[#allocation7 + $0x198] sm:$0xff]  ;;  %v18867_v38 = vrot.slane %v16018_v32, %v16549_v10 }
 0x3f5   :  { %7293 = vmatprep.subr.mxu1 %v6529_v37  ;;  %8118 = vmatpush1.msra.mxu0 %v6602_v56  ;;  %v6674_v4 = vld [vmem:[#allocation7 + $0x280] sm:$0xff]  ;;  %v6667_v54 = vld [vmem:[#allocation7 + $0x248] sm:$0xff]  ;;  %v6644_v37 = vld [vmem:[#allocation7 + $0x190] sm:$0xff] }
 0x3f6   :  { %7294 = vmatpush2.msra.mxu1 %v6528_v14  ;;  %8119 = vmatprep.subr.mxu0 %v6599_v9  ;;  %v6670_v43 = vld [vmem:[#allocation7 + $0x260] sm:$0xff]  ;;  %v6641_v56 = vld [vmem:[#allocation7 + $0x178] sm:$0xff]  ;;  %v6663_v63 = vld [vmem:[#allocation7 + $0x228] sm:$0xff] }
 0x3f7   :  { %7295 = vmatprep.subr.mxu1 %v6525_v34  ;;  %8120 = vmatpush1.msra.mxu0 %v6598_v42  ;;  %v6666_v14 = vld [vmem:[#allocation7 + $0x240] sm:$0xff]  ;;  %v6640_v9 = vld [vmem:[#allocation7 + $0x170] sm:$0xff]  ;;  %v6637_v42 = vld [vmem:[#allocation7 + $0x158] sm:$0xff] }
 0x3f8   :  { %7296 = vmatpush2.msra.mxu1 %v6524_v57  ;;  %8121 = vmatprep.subr.mxu0 %v6595_v6  ;;  %v6662_v34 = vld [vmem:[#allocation7 + $0x220] sm:$0xff]  ;;  %v6659_v57 = vld [vmem:[#allocation7 + $0x208] sm:$0xff]  ;;  %v6636_v6 = vld [vmem:[#allocation7 + $0x150] sm:$0xff] }
 0x3f9   :  { %7298 = vmatmul.mubr.f32.vlgmr.msra.gmra.mxu1 %v18577_v30  ;;  %8122 = vmatpush1.msra.mxu0 %v6594_v15  ;;  %v6707_v30 = vld [vmem:[#allocation7 + $0x388] sm:$0xff]  ;;  %v18874_v15 = vrot.slane %v18867_v38, %v16549_v10  ;;  %v6708_v32 = vld [vmem:[#allocation7 + $0x390] sm:$0xff] }
 0x3fa   :  { %7303 = vmatprep.mubr.f32.mxu1 %v18631_v27  ;;  %8123 = vmatprep.subr.mxu0 %v6719_v48  ;;  %v6703_v27 = vld [vmem:[#allocation7 + $0x368] sm:$0xff]  ;;  %v6633_v48 = vld [vmem:[#allocation7 + $0x138] sm:$0xff] }
 0x3fb   :  { %8214 = vmatprep.subr.mxu1 %v6727_v35  ;;  %8124 = vmatpush2.msra.mxu0 %v6718_v41  ;;  %v6658_v35 = vld [vmem:[#allocation7 + $0x200] sm:$0xff]  ;;  %v6632_v41 = vld [vmem:[#allocation7 + $0x130] sm:$0xff] }
 0x3fc   :  { %8215 = vmatpush1.msra.mxu1 %v6726_v19  ;;  %8125 = vmatprep.subr.mxu0 %v6715_v17  ;;  %v6629_v19 = vld [vmem:[#allocation7 + $0x118] sm:$0xff]  ;;  %v6628_v17 = vld [vmem:[#allocation7 + $0x110] sm:$0xff] }
 0x3fd   :  { %7304 = vmatmul.mubr.f32.gmra.mxu1 %v18635_v16  ;;  %8126 = vmatpush2.msra.mxu0 %v6714_v33  ;;  %v6699_v16 = vld [vmem:[#allocation7 + $0x348] sm:$0xff]  ;;  %v18882_v33 = vcombine.high %v18874_v15, %v18874_v15 }
 0x3fe   :  { %7309 = vmatprep.mubr.f32.mxu1 %v18667_v25  ;;  %8127 = vmatprep.subr.mxu0 %v6711_v50  ;;  %v6695_v25 = vld [vmem:[#allocation7 + $0x328] sm:$0xff]  ;;  %v6729_v50 = vld [vmem:[#allocation7 + $0x438] sm:$0xff] }
 0x3ff   :  { %8216 = vmatprep.subr.mxu1 %v6723_v44  ;;  %8128 = vmatpush2.msra.mxu0 %v6710_v11  ;;  %v6625_v44 = vld [vmem:[#allocation7 + $0xf8] sm:$0xff]  ;;  %v6624_v11 = vld [vmem:[#allocation7 + $0xf0] sm:$0xff] }
 0x400   :  { %8217 = vmatpush1.msra.mxu1 %v6722_v8  ;;  %8129 = vmatprep.subr.mxu0 %v6707_v30  ;;  %v6621_v8 = vld [vmem:[#allocation7 + $0xd8] sm:$0xff]  ;;  %v6620_v30 = vld [vmem:[#allocation7 + $0xd0] sm:$0xff] }
 0x401   :  { %7310 = vmatmul.mubr.f32.gmra.mxu1 %v18676_v5  ;;  %8130 = vmatpush2.msra.mxu0 %v6706_v51  ;;  %v6690_v5 = vld [vmem:[#allocation7 + $0x300] sm:$0xff]  ;;  %v6617_v51 = vld [vmem:[#allocation7 + $0xb8] sm:$0xff] }
 0x402   :  { %7315 = vmatprep.mubr.f32.mxu1 %v18698_v58  ;;  %8131 = vmatprep.subr.mxu0 %v6703_v27  ;;  %v6686_v58 = vld [vmem:[#allocation7 + $0x2e0] sm:$0xff]  ;;  %v6728_v27 = vld [vmem:[#allocation7 + $0x430] sm:$0xff] }
 0x403   :  { %8281 = vmatprep.subr.mxu1 %v6657_v59  ;;  %8132 = vmatpush2.msra.mxu0 %v6702_v53  ;;  %v6616_v59 = vld [vmem:[#allocation7 + $0xb0] sm:$0xff]  ;;  %v8055_v53 = vcombine.high %v18867_v38, %v18867_v38 }
 0x404   :  { %8133 = vmatprep.subr.mxu0 %v6699_v16  ;;  %v6613_v16 = vld [vmem:[#allocation7 + $0x98] sm:$0xff]  ;;  %v6688_v38 = vld [vmem:[#allocation7 + $0x2f0] sm:$0xff] }
 0x405   :  { %7316 = vmatmul.mubr.f32.gmra.mxu1 %v18702_v21  ;;  %8134 = vmatpush2.msra.mxu0 %v6698_v28  ;;  %v6656_v21 = vld [vmem:[#allocation7 + $0x1f0] sm:$0xff] }
 0x406   :  { %7321 = vmatprep.mubr.f32.mxu1 %v18686_v60  ;;  %8135 = vmatprep.subr.mxu0 %v6695_v25  ;;  %v6678_v60 = vld [vmem:[#allocation7 + $0x2a0] sm:$0xff]  ;;  %v6612_v28 = vld [vmem:[#allocation7 + $0x90] sm:$0xff]  ;;  %v6725_v25 = vld [vmem:[#allocation7 + $0x418] sm:$0xff] }
 0x407   :  { %8136 = vmatpush2.msra.mxu0 %v6694_v0  ;;  %v6609_v0 = vld [vmem:[#allocation7 + $0x78] sm:$0xff] }
 0x408   :  { %8137 = vmatprep.subr.mxu0 %v6691_v31  ;;  %v6724_v31 = vld [vmem:[#allocation7 + $0x410] sm:$0xff] }
 0x409   :  { %7322 = vmatmul.mubr.f32.gmra.mxu1 %v18680_v12  ;;  %8138 = vmatpush2.msra.mxu0 %v6690_v5  ;;  %v6675_v12 = vld [vmem:[#allocation7 + $0x288] sm:$0xff]  ;;  %v18896_v5 = vrot.slane %v8055_v53, %v16549_v10 }
 0x40a   :  { %8250 = vmatprep.mubr.f32.mxu1 %v22996_v7  ;;  %8139 = vmatprep.subr.mxu0 %v6687_v39  ;;  %v6605_v39 = vld [vmem:[#allocation7 + $0x58] sm:$0xff] }
 0x40b   :  { %8140 = vmatpush2.msra.mxu0 %v6686_v58  ;;  %v6604_v58 = vld [vmem:[#allocation7 + $0x50] sm:$0xff] }
 0x40c   :  { %8141 = vmatprep.subr.mxu0 %v6683_v22  ;;  %v6601_v22 = vld [vmem:[#allocation7 + $0x38] sm:$0xff] }
 0x40d   :  { %16019 = vmatmul.mubr.msk.f32.vlgmr.msra.gmra.mxu1 %vm7032_vm6, %v18744_v20  ;;  %8142 = vmatpush2.msra.mxu0 %v6682_v24  ;;  %v6600_v24 = vld [vmem:[#allocation7 + $0x30] sm:$0xff] }
 0x40e   :  { %8282 = vmatpush1.msra.mxu1 %v6656_v21  ;;  %8143 = vmatprep.subr.mxu0 %v6679_v49  ;;  %v6597_v21 = vld [vmem:[#allocation7 + $0x18] sm:$0xff]  ;;  %v6596_v49 = vld [vmem:[#allocation7 + $0x10] sm:$0xff] }
 0x40f   :  { %8283 = vmatprep.subr.mxu1 %v6653_v47  ;;  %8144 = vmatpush2.msra.mxu0 %v6678_v60  ;;  %v6721_v47 = vld [vmem:[#allocation7 + $0x3f8] sm:$0xff]  ;;  %v6720_v60 = vld [vmem:[#allocation7 + $0x3f0] sm:$0xff] }
 0x410   :  { %8284 = vmatpush1.msra.mxu1 %v6652_v46  ;;  %8145 = vmatprep.subr.mxu0 %v6675_v12  ;;  %v6717_v46 = vld [vmem:[#allocation7 + $0x3d8] sm:$0xff]  ;;  %v6716_v12 = vld [vmem:[#allocation7 + $0x3d0] sm:$0xff] }
 0x411   :  { %8256 = vmatprep.mubr.f32.mxu1 %v22996_v7  ;;  %8285 = vmatprep.subr.mxu1 %v6649_v36  ;;  %v6713_v36 = vld [vmem:[#allocation7 + $0x3b8] sm:$0xff] }
 0x412   :  { %8146 = vmatpush2.msra.mxu0 %v6674_v4  ;;  %16020 = vmatmul.mubr.msk.f32.gmra.mxu1 %vm7032_vm6, %v18787_v1  ;;  %v6712_v4 = vld [vmem:[#allocation7 + $0x3b0] sm:$0xff] }
 0x413   :  { %8147 = vmatprep.subr.mxu0 %v6671_v2  ;;  %8286 = vmatpush1.msra.mxu1 %v6648_v18  ;;  %v6709_v2 = vld [vmem:[#allocation7 + $0x398] sm:$0xff] }
 0x414   :  { %8148 = vmatpush2.msra.mxu0 %v6670_v43  ;;  %8287 = vmatprep.subr.mxu1 %v6645_v40  ;;  %v6705_v18 = vld [vmem:[#allocation7 + $0x378] sm:$0xff]  ;;  %v6704_v43 = vld [vmem:[#allocation7 + $0x370] sm:$0xff] }
 0x415   :  { %8149 = vmatprep.subr.mxu0 %v6667_v54  ;;  %8288 = vmatpush1.msra.mxu1 %v6644_v37  ;;  %v6700_v40 = vld [vmem:[#allocation7 + $0x350] sm:$0xff]  ;;  %v6697_v54 = vld [vmem:[#allocation7 + $0x338] sm:$0xff] }
 0x416   :  { %8262 = vmatprep.mubr.f32.mxu1 %v22996_v7  ;;  %8289 = vmatprep.subr.mxu1 %v6641_v56  ;;  %v6696_v37 = vld [vmem:[#allocation7 + $0x330] sm:$0xff] }
 0x417   :  { %8150 = vmatpush2.msra.mxu0 %v6666_v14  ;;  %16021 = vmatmul.mubr.msk.f32.gmra.mxu1 %vm7032_vm6, %v18799_v45  ;;  %v6692_v56 = vld [vmem:[#allocation7 + $0x310] sm:$0xff]  ;;  %v6689_v14 = vld [vmem:[#allocation7 + $0x2f8] sm:$0xff] }
 0x418   :  { %8151 = vmatprep.subr.mxu0 %v6663_v63  ;;  %8290 = vmatpush1.msra.mxu1 %v6640_v9  ;;  %v6684_v63 = vld [vmem:[#allocation7 + $0x2d0] sm:$0xff]  ;;  %v6681_v9 = vld [vmem:[#allocation7 + $0x2b8] sm:$0xff] }
 0x419   :  { %8152 = vmatpush2.msra.mxu0 %v6662_v34  ;;  %8291 = vmatprep.subr.mxu1 %v6637_v42  ;;  %v6680_v34 = vld [vmem:[#allocation7 + $0x2b0] sm:$0xff]  ;;  %v6677_v42 = vld [vmem:[#allocation7 + $0x298] sm:$0xff] }
 0x41a   :  { %8153 = vmatprep.subr.mxu0 %v6659_v57  ;;  %8292 = vmatpush1.msra.mxu1 %v6636_v6  ;;  %v6673_v57 = vld [vmem:[#allocation7 + $0x278] sm:$0xff]  ;;  %v6672_v6 = vld [vmem:[#allocation7 + $0x270] sm:$0xff] }
 0x41b   :  { %8268 = vmatprep.mubr.f32.mxu1 %v22996_v7  ;;  %8293 = vmatprep.subr.mxu1 %v6633_v48  ;;  %v6669_v48 = vld [vmem:[#allocation7 + $0x258] sm:$0xff] }
 0x41c   :  { %8154 = vmatpush2.msra.mxu0 %v6658_v35  ;;  %16022 = vmatmul.mubr.msk.f32.gmra.mxu1 %vm7032_vm6, %v18835_v62  ;;  %v6668_v35 = vld [vmem:[#allocation7 + $0x250] sm:$0xff] }
 0x41d   :  { %8156 = vmatmul.mubr.f32.vlgmr.msra.gmra.mxu0 %v18803_v29  ;;  %8294 = vmatpush1.msra.mxu1 %v6632_v41  ;;  %v6665_v41 = vld [vmem:[#allocation7 + $0x238] sm:$0xff] }
 0x41e   :  { %8161 = vmatprep.mubr.f32.mxu0 %v18827_v3  ;;  %8295 = vmatprep.subr.mxu1 %v6629_v19  ;;  %v6664_v19 = vld [vmem:[#allocation7 + $0x230] sm:$0xff] }
 0x41f   :  { %8274 = vmatprep.mubr.f32.mxu1 %v22996_v7  ;;  %8296 = vmatpush1.msra.mxu1 %v6628_v17  ;;  %v6661_v17 = vld [vmem:[#allocation7 + $0x218] sm:$0xff] }
 0x420   :  { %8404 = vmatprep.subr.mxu0 %v6729_v50  ;;  %8297 = vmatprep.subr.mxu1 %v6625_v44 }
 0x421   :  { %16023 = vmatmul.mubr.msk.f32.gmra.mxu1 %vm7032_vm6, %v18882_v33  ;;  %8162 = vmatmul.mubr.f32.gmra.mxu0 %v18813_v23 }
 0x422   :  { %8298 = vmatpush1.msra.mxu1 %v6624_v11  ;;  %8345 = vmatprep.mubr.f32.mxu1 %v18756_v61  ;;  %v6608_v61 = vld [vmem:[#allocation7 + $0x70] sm:$0xff] }
 0x423   :  { %8299 = vmatprep.subr.mxu1 %v6621_v8  ;;  %8167 = vmatprep.mubr.f32.mxu0 %v18839_v26 }
 0x424   :  { %8300 = vmatpush1.msra.mxu1 %v6620_v30  ;;  %8405 = vmatpush1.msra.mxu0 %v6728_v27 }
 0x425   :  { %8301 = vmatprep.subr.mxu1 %v6617_v51  ;;  %8168 = vmatmul.mubr.f32.gmra.mxu0 %v18823_v13 }
 0x426   :  { %8302 = vmatpush1.msra.mxu1 %v6616_v59  ;;  %8173 = vmatprep.mubr.f32.mxu0 %v18844_v52 }
 0x427   :  { %8303 = vmatprep.subr.mxu1 %v6613_v16  ;;  %8406 = vmatprep.subr.mxu0 %v6725_v25 }
 0x428   :  { %8304 = vmatpush1.msra.mxu1 %v6612_v28  ;;  %8407 = vmatpush1.msra.mxu0 %v6724_v31 }
 0x429   :  { %8305 = vmatprep.subr.mxu1 %v6609_v0  ;;  %8174 = vmatmul.mubr.f32.gmra.mxu0 %v18837_v55 }
 0x42a   :  { %8306 = vmatpush1.msra.mxu1 %v6608_v61  ;;  %8179 = vmatprep.mubr.f32.mxu0 %v18896_v5 }
 0x42b   :  { %8307 = vmatprep.subr.mxu1 %v6605_v39 }
 0x42c   :  { %8308 = vmatpush1.msra.mxu1 %v6604_v58 }
 0x42d   :  { %8309 = vmatprep.subr.mxu1 %v6601_v22  ;;  %8180 = vmatmul.mubr.f32.gmra.mxu0 %v18874_v15 }
 0x42e   :  { %8310 = vmatpush1.msra.mxu1 %v6600_v24  ;;  %8440 = vmatprep.mubr.f32.mxu0 %v22996_v7 }
 0x42f   :  { %8311 = vmatprep.subr.mxu1 %v6597_v21 }
 0x430   :  { %8312 = vmatpush1.msra.mxu1 %v6596_v49 }
 0x431   :  { %8313 = vmatprep.subr.mxu1 %v6721_v47  ;;  %16024 = vmatmul.mubr.msk.f32.vlgmr.msra.gmra.mxu0 %vm7032_vm6, %v18744_v20  ;;  %v6701_v20 = vld [vmem:[#allocation7 + $0x358] sm:$0xff] }
 0x432   :  { %8314 = vmatpush2.msra.mxu1 %v6720_v60  ;;  %8446 = vmatprep.mubr.f32.mxu0 %v22996_v7 }
 0x433   :  { %8315 = vmatprep.subr.mxu1 %v6717_v46 }
 0x434   :  { %8316 = vmatpush2.msra.mxu1 %v6716_v12 }
 0x435   :  { %8317 = vmatprep.subr.mxu1 %v6713_v36  ;;  %16025 = vmatmul.mubr.msk.f32.gmra.mxu0 %vm7032_vm6, %v18787_v1  ;;  %v6693_v1 = vld [vmem:[#allocation7 + $0x318] sm:$0xff] }
 0x436   :  { %8318 = vmatpush2.msra.mxu1 %v6712_v4  ;;  %8452 = vmatprep.mubr.f32.mxu0 %v22996_v7 }
 0x437   :  { %8319 = vmatprep.subr.mxu1 %v6709_v2 }
 0x438   :  { %8320 = vmatpush2.msra.mxu1 %v6708_v32 }
 0x439   :  { %8321 = vmatprep.subr.mxu1 %v6705_v18  ;;  %16026 = vmatmul.mubr.msk.f32.gmra.mxu0 %vm7032_vm6, %v18799_v45  ;;  %v6685_v45 = vld [vmem:[#allocation7 + $0x2d8] sm:$0xff] }
 0x43a   :  { %8322 = vmatpush2.msra.mxu1 %v6704_v43  ;;  %8458 = vmatprep.mubr.f32.mxu0 %v22996_v7 }
 0x43b   :  { %8323 = vmatprep.subr.mxu1 %v6701_v20 }
 0x43c   :  { %8324 = vmatpush2.msra.mxu1 %v6700_v40 }
 0x43d   :  { %8325 = vmatprep.subr.mxu1 %v6697_v54  ;;  %16027 = vmatmul.mubr.msk.f32.gmra.mxu0 %vm7032_vm6, %v18835_v62  ;;  %v6676_v62 = vld [vmem:[#allocation7 + $0x290] sm:$0xff] }
 0x43e   :  { %8326 = vmatpush2.msra.mxu1 %v6696_v37  ;;  %8464 = vmatprep.mubr.f32.mxu0 %v22996_v7 }
 0x43f   :  { %8327 = vmatprep.subr.mxu1 %v6693_v1 }
 0x440   :  { %8328 = vmatpush2.msra.mxu1 %v6692_v56 }
 0x441   :  { %8329 = vmatprep.subr.mxu1 %v6689_v14  ;;  %16028 = vmatmul.mubr.msk.f32.gmra.mxu0 %vm7032_vm6, %v18882_v33  ;;  %v6660_v33 = vld [vmem:[#allocation7 + $0x210] sm:$0xff] }
 0x442   :  { %8330 = vmatpush2.msra.mxu1 %v6688_v38  ;;  %10644 = vmatprep.mubr.f32.mxu0 %v22996_v7 }
 0x443   :  { %8331 = vmatprep.subr.mxu1 %v6685_v45 }
 0x444   :  { %8332 = vmatpush2.msra.mxu1 %v6684_v63 }
 0x445   :  { %8333 = vmatprep.subr.mxu1 %v6681_v9 }
 0x446   :  { %8334 = vmatpush2.msra.mxu1 %v6680_v34 }
 0x447   :  { %8335 = vmatprep.subr.mxu1 %v6677_v42 }
 0x448   :  { %8336 = vmatpush2.msra.mxu1 %v6676_v62 }
 0x449   :  { %8337 = vmatprep.subr.mxu1 %v6673_v57 }
 0x44a   :  { %8338 = vmatpush2.msra.mxu1 %v6672_v6 }
 0x44b   :  { %8339 = vmatprep.subr.mxu1 %v6669_v48 }
 0x44c   :  { %8340 = vmatpush2.msra.mxu1 %v6668_v35 }
 0x44d   :  { %8341 = vmatprep.subr.mxu1 %v6665_v41 }
 0x44e   :  { %8342 = vmatpush2.msra.mxu1 %v6664_v19 }
 0x44f   :  { %8343 = vmatprep.subr.mxu1 %v6661_v17 }
 0x450   :  { %8344 = vmatpush2.msra.mxu1 %v6660_v33 }
 0x451   :  { %8346 = vmatmul.mubr.f32.vlgmr.msra.gmra.mxu1 %v18803_v29  ;;  %16166 = vmatprep.subr.mxu1 %v22996_v7 }
 0x452   :  { %8351 = vmatprep.mubr.f32.mxu1 %v18827_v3 }
 0x455   :  { %8352 = vmatmul.mubr.f32.gmra.mxu1 %v18813_v23 }
 0x456   :  { %8357 = vmatprep.mubr.f32.mxu1 %v18839_v26 }
 0x459   :  { %8358 = vmatmul.mubr.f32.gmra.mxu1 %v18823_v13 }
 0x45a   :  { %8363 = vmatprep.mubr.f32.mxu1 %v18844_v52 }
 0x45d   :  { %8364 = vmatmul.mubr.f32.gmra.mxu1 %v18837_v55 }
 0x45e   :  { %8369 = vmatprep.mubr.f32.mxu1 %v18896_v5 }
 0x461   :  { %8370 = vmatmul.mubr.f32.gmra.mxu1 %v18874_v15 }
 0x462   :  { %16174 = vmatprep.mubr.msk.f32.mxu1 %vm16412_vm2, %v22996_v7 }
 0x465   :  { %v7204_v29 = vpop.f32.mrf.mxu1 }
 0x467   :  { %v7206_v3 = vpop.f32.mrf.mxu1 }
 0x47e   :  { %v7109_v50 = vpop.f32.mrf.mxu0 }
 0x47f   :  { %v18929_v44 = vadd.f32 %v7204_v29, %v7109_v50 }
 0x480   :  { %v7111_v23 = vpop.f32.mrf.mxu0 }
 0x481   :  { %v18931_v26 = vadd.f32 %v7206_v3, %v7111_v23 }
 0x483   :  { %v7443_v13 = vcombine.low %v18929_v44, %v18931_v26  ;;  %v7444_v55 = vcombine.high %v18929_v44, %v18931_v26 }
 0x485   :  { %v7210_v52 = vpop.f32.mrf.mxu1  ;;  %v7453_v26 = vrot.slane %v7443_v13, %v16549_v10 }
 0x486   :  { %v7115_v11 = vpop.f32.mrf.mxu0 }
 0x487   :  { %v18937_v15 = vadd.f32 %v7210_v52, %v7115_v11  ;;  %v7212_v8 = vpop.f32.mrf.mxu1  ;;  %v7460_v52 = vrot.slane %v7444_v55, %v16549_v10 }
 0x488   :  { %v7117_v30 = vpop.f32.mrf.mxu0 }
 0x489   :  { %v18939_v51 = vadd.f32 %v7212_v8, %v7117_v30 }
 0x48b   :  { %v7511_v27 = vcombine.low %v18937_v15, %v18939_v51  ;;  %v7512_v59 = vcombine.high %v18937_v15, %v18939_v51 }
 0x48d   :  { %v7121_v53 = vpop.f32.mrf.mxu0  ;;  %v7216_v16 = vpop.f32.mrf.mxu1 }
 0x48e   :  { %v18945_v28 = vadd.f32 %v7216_v16, %v7121_v53 }
 0x48f   :  { %v7123_v25 = vpop.f32.mrf.mxu0  ;;  %v7218_v0 = vpop.f32.mrf.mxu1 }
 0x490   :  { %v7219_v11 = vadd.f32 %v7218_v0, %v7123_v25 }
 0x491   :  { %v7127_v31 = vpop.f32.mrf.mxu0  ;;  %v7222_v61 = vpop.f32.mrf.mxu1 }
 0x492   :  { %v7223_v8 = vadd.f32 %v7222_v61, %v7127_v31  ;;  %v7580_v13 = vcombine.high %v18945_v28, %v7219_v11  ;;  %v7521_v31 = vrot.slane %v7511_v27, %v16549_v10  ;;  %v7528_v27 = vrot.slane %v7512_v59, %v16549_v10 }
 0x493   :  { %v7129_v5 = vpop.f32.mrf.mxu0  ;;  %v7224_v39 = vpop.f32.mrf.mxu1 }
 0x494   :  { %v7225_v30 = vadd.f32 %v7224_v39, %v7129_v5 }
 0x495   :  { %v7133_v58 = vpop.f32.mrf.mxu0  ;;  %v7228_v22 = vpop.f32.mrf.mxu1 }
 0x496   :  { %v18947_v24 = vadd.f32 %v7228_v22, %v7133_v58  ;;  %v7647_v55 = vcombine.low %v7223_v8, %v7225_v30  ;;  %v7648_v61 = vcombine.high %v7223_v8, %v7225_v30 }
 0x497   :  { %v7135_v21 = vpop.f32.mrf.mxu0  ;;  %v7230_v49 = vpop.f32.mrf.mxu1 }
 0x498   :  { %v18949_v47 = vadd.f32 %v7230_v49, %v7135_v21 }
 0x499   :  { %v7394_v46 = vpop.f32.mrf.mxu0 }
 0x49a   :  { %v7715_v60 = vcombine.low %v18947_v24, %v18949_v47 }
 0x49b   :  { %v7396_v12 = vpop.f32.mrf.mxu0 }
 0x49c   :  { %v19022_v15 = vrot.slane %v7715_v60, %v16549_v10 }
 0x49d   :  { %v7400_v36 = vpop.f32.mrf.mxu0 }
 0x49f   :  { %v7402_v2 = vpop.f32.mrf.mxu0 }
 0x4a1   :  { %v7406_v18 = vpop.f32.mrf.mxu0 }
 0x4a3   :  { %v7408_v20 = vpop.f32.mrf.mxu0 }
 0x4a5   :  { %v7412_v54 = vpop.f32.mrf.mxu0 }
 0x4a7   :  { %v7414_v1 = vpop.f32.mrf.mxu0 }
 0x4aa   :  { %v18953_v14 = vpop.f32.mrf.mxu0 }
 0x4ac   :  { %v18955_v45 = vpop.f32.mrf.mxu0 }
 0x4b9   :  { %v7299_v4 = vpop.f32.mrf.mxu1 }
 0x4ba   :  { %v7395_v48 = vadd.f32 %v7394_v46, %v7299_v4 }
 0x4bb   :  { %v7301_v32 = vpop.f32.mrf.mxu1 }
 0x4bc   :  { %v7397_v62 = vadd.f32 %v7396_v12, %v7301_v32 }
 0x4bd   :  { %v7305_v43 = vpop.f32.mrf.mxu1 }
 0x4be   :  { %v7445_v35 = vcombine.low %v7395_v48, %v7397_v62  ;;  %v7446_v19 = vcombine.high %v7395_v48, %v7397_v62  ;;  %v7401_v44 = vadd.f32 %v7400_v36, %v7305_v43  ;;  %v7579_v36 = vcombine.low %v18945_v28, %v7219_v11 }
 0x4bf   :  { %v7307_v40 = vpop.f32.mrf.mxu1  ;;  %v7657_v62 = vrot.slane %v7647_v55, %v16549_v10 }
 0x4c0   :  { %v7403_v33 = vadd.f32 %v7402_v2, %v7307_v40  ;;  %v7467_v29 = vrot.slane %v7445_v35, %v16549_v10  ;;  %v7474_v3 = vrot.slane %v7446_v19, %v16549_v10  ;;  %v19016_v19 = vrot.slane %v7648_v61, %v16549_v10 }
 0x4c1   :  { %v7311_v37 = vpop.f32.mrf.mxu1 }
 0x4c2   :  { %v7513_v53 = vcombine.low %v7401_v44, %v7403_v33  ;;  %v7475_v58 = vcombine.low %v7453_v26, %v7467_v29  ;;  %v7476_v21 = vcombine.high %v7453_v26, %v7467_v29  ;;  %v7477_v49 = vcombine.low %v7460_v52, %v7474_v3 }
 0x4c3   :  { %v7313_v56 = vpop.f32.mrf.mxu1  ;;  %v7514_v46 = vcombine.high %v7401_v44, %v7403_v33  ;;  %v7407_v12 = vadd.f32 %v7406_v18, %v7311_v37  ;;  %v7478_v2 = vcombine.high %v7460_v52, %v7474_v3  ;;  %v7589_v37 = vrot.slane %v7579_v36, %v16549_v10 }
 0x4c4   :  { %v7409_v16 = vadd.f32 %v7408_v20, %v7313_v56  ;;  %v7535_v25 = vrot.slane %v7513_v53, %v16549_v10  ;;  %v18991_v5 = vrot.slane %v7475_v58, %v16549_v10  ;;  %v18996_v18 = vrot.slane %v7477_v49, %v16549_v10 }
 0x4c5   :  { %v7317_v38 = vpop.f32.mrf.mxu1  ;;  %v18999_v28 = vrot.slane %v7476_v21, %v16549_v10  ;;  %v7542_v43 = vrot.slane %v7514_v46, %v16549_v10 }
 0x4c6   :  { %v7581_v0 = vcombine.low %v7407_v12, %v7409_v16  ;;  %v7582_v20 = vcombine.high %v7407_v12, %v7409_v16  ;;  %v7413_v56 = vadd.f32 %v7412_v54, %v7317_v38  ;;  %v7543_v48 = vcombine.low %v7521_v31, %v7535_v25 }
 0x4c7   :  { %v7319_v9 = vpop.f32.mrf.mxu1  ;;  %v19026_v51 = vcombine.high %v18991_v5, %v18991_v5  ;;  %v19032_v38 = vcombine.high %v18996_v18, %v18996_v18  ;;  %v19036_v33 = vcombine.high %v18999_v28, %v18999_v28  ;;  %v7545_v29 = vcombine.low %v7528_v27, %v7542_v43 }
 0x4c8   :  { %v7415_v39 = vadd.f32 %v7414_v1, %v7319_v9  ;;  %v19010_v1 = vrot.slane %v7478_v2, %v16549_v10  ;;  %v7596_v9 = vrot.slane %v7580_v13, %v16549_v10  ;;  %v7603_v35 = vrot.slane %v7581_v0, %v16549_v10 }
 0x4c9   :  { %v18961_v42 = vpop.f32.mrf.mxu1  ;;  %v7610_v24 = vrot.slane %v7582_v20, %v16549_v10  ;;  %v7544_v3 = vcombine.high %v7521_v31, %v7535_v25  ;;  %v7546_v44 = vcombine.high %v7528_v27, %v7542_v43  ;;  %v19048_v8 = vrot.slane %v7543_v48, %v16549_v10 }
 0x4ca   :  { %v7649_v59 = vcombine.low %v7413_v56, %v7415_v39  ;;  %v19043_v60 = vcombine.high %v19010_v1, %v19010_v1  ;;  %v7650_v26 = vcombine.high %v7413_v56, %v7415_v39  ;;  %v7611_v30 = vcombine.low %v7589_v37, %v7603_v35 }
 0x4cb   :  { %v18965_v6 = vpop.f32.mrf.mxu1  ;;  %v7612_v16 = vcombine.high %v7589_v37, %v7603_v35  ;;  %v19058_v12 = vrot.slane %v7545_v29, %v16549_v10  ;;  %v7613_v36 = vcombine.low %v7596_v9, %v7610_v24  ;;  %v7614_v2 = vcombine.high %v7596_v9, %v7610_v24 }
 0x4cc   :  { %23358 = vst [vmem:[#allocation34_spill] sm:$0xff] %v19043_v60  ;;  %v7671_v58 = vrot.slane %v7649_v59, %v16549_v10  ;;  %v7421_v21 = vadd.f32 %v18955_v45, %v18965_v6  ;;  %v19063_v55 = vrot.slane %v7544_v3, %v16549_v10  ;;  %v19066_v25 = vrot.slane %v7546_v44, %v16549_v10 }
 0x4cd   :  { %v18969_v17 = vpop.f32.mrf.mxu1  ;;  %23359 = vst [vmem:[#allocation35_spill] sm:$0xff] %v19058_v12  ;;  %v7678_v0 = vrot.slane %v7650_v26, %v16549_v10  ;;  %v7419_v45 = vadd.f32 %v18953_v14, %v18961_v42  ;;  %v19075_v61 = vcombine.high %v19048_v8, %v19048_v8  ;;  %v19078_v39 = vrot.slane %v7611_v30, %v16549_v10 }
 0x4ce   :  { %v19081_v20 = vrot.slane %v7612_v16, %v16549_v10  ;;  %v7679_v27 = vcombine.low %v7657_v62, %v7671_v58  ;;  %v7680_v37 = vcombine.high %v7657_v62, %v7671_v58  ;;  %v19088_v48 = vrot.slane %v7613_v36, %v16549_v10 }
 0x4cf   :  { %v18975_v23 = vpop.f32.mrf.mxu1  ;;  %v7716_v56 = vcombine.low %v7419_v45, %v7421_v21  ;;  %v19091_v35 = vrot.slane %v7614_v2, %v16549_v10  ;;  %v19095_v59 = vcombine.high %v19058_v12, %v19058_v12  ;;  %v19099_v62 = vcombine.high %v19063_v55, %v19063_v55 }
 0x4d0   :  { %v19103_v29 = vcombine.high %v19066_v25, %v19066_v25  ;;  %v7681_v24 = vcombine.low %v19016_v19, %v7678_v0  ;;  %v19110_v26 = vcombine.high %v19078_v39, %v19078_v39  ;;  %v7682_v30 = vcombine.high %v19016_v19, %v7678_v0 }
 0x4d1   :  { %23360 = vst [vmem:[#allocation36_spill] sm:$0xff] %v19099_v62  ;;  %v19115_v58 = vcombine.high %v19081_v20, %v19081_v20  ;;  %v19118_v21 = vrot.slane %v7679_v27, %v16549_v10  ;;  %v19121_v36 = vrot.slane %v7680_v37, %v16549_v10  ;;  %v7730_v2 = vrot.slane %v7716_v56, %v16549_v10 }
 0x4d2   :  { %v18981_v4 = vpop.f32.mrf.mxu1  ;;  %23361 = vst [vmem:[#allocation37_spill] sm:$0xff] %v19103_v29  ;;  %v19128_v19 = vcombine.high %v19088_v48, %v19088_v48  ;;  %v19132_v0 = vcombine.high %v19091_v35, %v19091_v35  ;;  %v19138_v56 = vrot.slane %v7681_v24, %v16549_v10  ;;  %v19144_v44 = vrot.slane %v7682_v30, %v16549_v10 }
 0x4d3   :  { %23362 = vst [vmem:[#allocation38_spill] sm:$0xff] %v19118_v21  ;;  %v19149_v27 = vcombine.high %v19118_v21, %v19118_v21  ;;  %v19153_v24 = vcombine.high %v19121_v36, %v19121_v36  ;;  %v7731_v14 = vcombine.low %v19022_v15, %v7730_v2  ;;  %v7732_v53 = vcombine.high %v19022_v15, %v7730_v2 }
 0x4d4   :  { %v19002_v40 = vpop.f32.mrf.mxu1  ;;  %23363 = vst [vmem:[#allocation39_spill] sm:$0xff] %v19138_v56  ;;  %v19162_v6 = vcombine.high %v19138_v56, %v19138_v56  ;;  %v19170_v11 = vcombine.high %v19144_v44, %v19144_v44 }
 0x4d5   :  { %23364 = vst [vmem:[#allocation40_spill] sm:$0xff] %v19149_v27  ;;  %23365 = vst [vmem:[#allocation41_spill] sm:$0xff] %v19153_v24  ;;  %v19179_v15 = vrot.slane %v7731_v14, %v16549_v10  ;;  %v19191_v14 = vrot.slane %v7732_v53, %v16549_v10  ;;  %v23374_v27 = vrot.slane %v19010_v1, 2 }
 0x4d6   :  { %23366 = vst [vmem:[#allocation42_spill] sm:$0xff] %v19162_v6  ;;  %23367 = vst [vmem:[#allocation43_spill] sm:$0xff] %v19170_v11 }
 0x4d7   :  { %v19039_v47 = vpop.f32.mrf.mxu1  ;;  %23368 = vst [vmem:[#allocation45_spill] sm:$0xff] %v19191_v14  ;;  %v23375_v14 = vrot.slane %v19032_v38, 2 }
 0x4d9   :  { %v19060_v13 = vpop.f32.mrf.mxu1 }
 0x4dc   :  { %v8270_v43 = vpop.f32.mrf.mxu1 }
 0x4dd   :  { %v18957_v63 = vpop.f32.mrf.mxu0 }
 0x4de   :  { %v8272_v16 = vpop.f32.mrf.mxu1 }
 0x4df   :  { %v18959_v34 = vpop.f32.mrf.mxu0 }
 0x4e0   :  { %v8255_v46 = vadd.f32 %v18975_v23, %v18959_v34  ;;  %v8253_v34 = vadd.f32 %v18969_v17, %v18957_v63 }
 0x4e1   :  { %v18963_v57 = vpop.f32.mrf.mxu0  ;;  %v8276_v3 = vpop.f32.mrf.mxu1 }
 0x4e2   :  { %v8259_v2 = vadd.f32 %v18981_v4, %v18963_v57  ;;  %v8491_v21 = vcombine.low %v8253_v34, %v8255_v46  ;;  %v8492_v24 = vcombine.high %v8253_v34, %v8255_v46 }
 0x4e3   :  { %v18967_v41 = vpop.f32.mrf.mxu0  ;;  %v8278_v52 = vpop.f32.mrf.mxu1 }
 0x4e4   :  { %v8261_v37 = vadd.f32 %v19002_v40, %v18967_v41 }
 0x4e5   :  { %v18972_v50 = vpop.f32.mrf.mxu0 }
 0x4e6   :  { %v8559_v63 = vcombine.low %v8259_v2, %v8261_v37  ;;  %v8265_v17 = vadd.f32 %v19039_v47, %v18972_v50  ;;  %v8501_v50 = vrot.slane %v8491_v21, %v16549_v10 }
 0x4e7   :  { %v18979_v22 = vpop.f32.mrf.mxu0 }
 0x4e8   :  { %v8267_v42 = vadd.f32 %v19060_v13, %v18979_v22 }
 0x4e9   :  { %v18993_v32 = vpop.f32.mrf.mxu0 }
 0x4ea   :  { %v8271_v41 = vadd.f32 %v8270_v43, %v18993_v32  ;;  %v8627_v31 = vcombine.low %v8265_v17, %v8267_v42  ;;  %v8628_v6 = vcombine.high %v8265_v17, %v8267_v42 }
 0x4eb   :  { %v19028_v54 = vpop.f32.mrf.mxu0 }
 0x4ec   :  { %v8273_v40 = vadd.f32 %v8272_v16, %v19028_v54  ;;  %v8560_v54 = vcombine.high %v8259_v2, %v8261_v37  ;;  %v19211_v21 = vrot.slane %v8627_v31, %v16549_v10 }
 0x4ed   :  { %v19054_v49 = vpop.f32.mrf.mxu0 }
 0x4ee   :  { %v8277_v57 = vadd.f32 %v8276_v3, %v19054_v49  ;;  %v8695_v46 = vcombine.low %v8271_v41, %v8273_v40  ;;  %v8696_v3 = vcombine.high %v8271_v41, %v8273_v40  ;;  %v19206_v37 = vrot.slane %v8560_v54, %v16549_v10 }
 0x4ef   :  { %v19083_v9 = vpop.f32.mrf.mxu0 }
 0x4f0   :  { %v8279_v22 = vadd.f32 %v8278_v52, %v19083_v9  ;;  %v8508_v52 = vrot.slane %v8492_v24, %v16549_v10  ;;  %v19203_v9 = vrot.slane %v8559_v63, %v16549_v10  ;;  %v19214_v24 = vrot.slane %v8628_v6, %v16549_v10 }
 0x4f1   :  { %v8442_v45 = vpop.f32.mrf.mxu0  ;;  %v19217_v63 = vrot.slane %v8695_v46, %v16549_v10 }
 0x4f3   :  { %v8444_v7 = vpop.f32.mrf.mxu0 }
 0x4f5   :  { %v8448_v23 = vpop.f32.mrf.mxu0 }
 0x4f7   :  { %v8450_v13 = vpop.f32.mrf.mxu0 }
 0x4f9   :  { %v8454_v42 = vpop.f32.mrf.mxu0 }
 0x4fb   :  { %v8456_v6 = vpop.f32.mrf.mxu0 }
 0x511   :  { %v8347_v30 = vpop.f32.mrf.mxu1 }
 0x512   :  { %v8443_v43 = vadd.f32 %v8442_v45, %v8347_v30  ;;  %v8763_v45 = vcombine.low %v8277_v57, %v8279_v22 }
 0x513   :  { %v8349_v4 = vpop.f32.mrf.mxu1 }
 0x514   :  { %v8445_v16 = vadd.f32 %v8444_v7, %v8349_v4 }
 0x515   :  { %v8353_v34 = vpop.f32.mrf.mxu1 }
 0x516   :  { %v8493_v47 = vcombine.low %v8443_v43, %v8445_v16  ;;  %v8494_v49 = vcombine.high %v8443_v43, %v8445_v16  ;;  %v8449_v41 = vadd.f32 %v8448_v23, %v8353_v34  ;;  %v19220_v43 = vrot.slane %v8696_v3, %v16549_v10 }
 0x517   :  { %v8355_v7 = vpop.f32.mrf.mxu1 }
 0x518   :  { %v8515_v30 = vrot.slane %v8493_v47, %v16549_v10  ;;  %v8522_v2 = vrot.slane %v8494_v49, %v16549_v10  ;;  %v8451_v17 = vadd.f32 %v8450_v13, %v8355_v7  ;;  %v19223_v13 = vrot.slane %v8763_v45, %v16549_v10 }
 0x519   :  { %v8359_v40 = vpop.f32.mrf.mxu1 }
 0x51a   :  { %v8523_v57 = vcombine.low %v8501_v50, %v8515_v30  ;;  %v8524_v22 = vcombine.high %v8501_v50, %v8515_v30  ;;  %v8525_v4 = vcombine.low %v8508_v52, %v8522_v2  ;;  %v8526_v54 = vcombine.high %v8508_v52, %v8522_v2  ;;  %23369 = vst [vmem:[#allocation44_spill] sm:$0xff] %v19223_v13 }
 0x51b   :  { %v8561_v31 = vcombine.low %v8449_v41, %v8451_v17  ;;  %v8562_v16 = vcombine.high %v8449_v41, %v8451_v17  ;;  %v8361_v47 = vpop.f32.mrf.mxu1  ;;  %v8455_v3 = vadd.f32 %v8454_v42, %v8359_v40 }
 0x51c   :  { %v8533_v49 = vrot.slane %v8523_v57, %v16549_v10  ;;  %v19227_v46 = vrot.slane %v8525_v4, %v16549_v10  ;;  %v19230_v23 = vrot.slane %v8524_v22, %v16549_v10  ;;  %v19233_v34 = vrot.slane %v8526_v54, %v16549_v10  ;;  %v8460_v4 = vpop.f32.mrf.mxu0 }
 0x51d   :  { %v8583_v50 = vrot.slane %v8561_v31, %v16549_v10  ;;  %v8590_v52 = vrot.slane %v8562_v16, %v16549_v10  ;;  %v8457_v45 = vadd.f32 %v8456_v6, %v8361_v47  ;;  %v8365_v41 = vpop.f32.mrf.mxu1  ;;  %v23372_v47 = vrot.slane %v18999_v28, 2 }
 0x51e   :  { %v19237_v7 = vcombine.high %v8533_v49, %v8533_v49  ;;  %v19241_v30 = vcombine.high %v19227_v46, %v19227_v46  ;;  %v19245_v2 = vcombine.high %v19230_v23, %v19230_v23  ;;  %v19249_v17 = vcombine.high %v19233_v34, %v19233_v34 }
 0x51f   :  { %v8827_v57 = vadd.f32 %v8533_v49, %v18991_v5  ;;  %v8828_v42 = vadd.f32 %v19230_v23, %v18999_v28  ;;  %v8831_v40 = vadd.f32 %v19227_v46, %v18996_v18  ;;  %v8832_v22 = vadd.f32 %v19233_v34, %v19010_v1 }
 0x520   :  { %23370 = vst [vmem:[#allocation46_spill] sm:$0xff] %v19249_v17  ;;  %v8829_v54 = vadd.f32 %v19237_v7, %v19026_v51  ;;  %v19262_v31 = vadd.f32 %v19245_v2, %v19036_v33  ;;  %v19266_v5 = vadd.f32 %v19241_v30, %v19032_v38  ;;  %v19270_v16 = vadd.f32 %v19249_v17, %v19043_v60 }
 0x521   :  { %v19274_v6 = vadd.f32 %v23372_v47, %v8827_v57  ;;  %v23373_v49 = vrot.slane %v19026_v51, 2  ;;  %v19282_v53 = vadd.f32 %v23374_v27, %v8831_v40  ;;  %v19286_v13 = vadd.f32 %v23375_v14, %v8832_v22  ;;  %v8462_v14 = vpop.f32.mrf.mxu0 }
 0x522   :  { %23371 = vst [vmem:[#allocation15_spill] sm:$0xff] %v19266_v5  ;;  %v23376_v5 = vrot.slane %v19036_v33, 2  ;;  %v8591_v33 = vcombine.low %v19203_v9, %v8583_v50  ;;  %v8592_v40 = vcombine.high %v19203_v9, %v8583_v50  ;;  %v8593_v22 = vcombine.low %v19206_v37, %v8590_v52 }
 0x523   :  { %v19278_v32 = vadd.f32 %v23373_v49, %v8828_v42  ;;  %v8367_v42 = vpop.f32.mrf.mxu1  ;;  %v8630_v49 = vcombine.high %v8455_v3, %v8457_v45  ;;  %v8461_v51 = vadd.f32 %v8460_v4, %v8365_v41  ;;  %v23389_v28 = vrot.slane %v19075_v61, 2 }
 0x524   :  { %v19290_v60 = vadd.f32 %v23376_v5, %v8829_v54  ;;  %v8594_v54 = vcombine.high %v19206_v37, %v8590_v52  ;;  %v8629_v5 = vcombine.low %v8455_v3, %v8457_v45  ;;  %v8463_v57 = vadd.f32 %v8462_v14, %v8367_v42 }
 0x525   :  { %v19304_v47 = vrot.slane %v8591_v33, %v16549_v10  ;;  %v19307_v27 = vrot.slane %v8593_v22, %v16549_v10  ;;  %v19310_v38 = vrot.slane %v8592_v40, %v16549_v10  ;;  %v8658_v37 = vrot.slane %v8630_v49, %v16549_v10 }
 0x526   :  { %v19313_v1 = vrot.slane %v8594_v54, %v16549_v10  ;;  %v8651_v9 = vrot.slane %v8629_v5, %v16549_v10  ;;  %v8697_v50 = vcombine.low %v8461_v51, %v8463_v57  ;;  %v8698_v52 = vcombine.high %v8461_v51, %v8463_v57 }
 0x527   :  { %23377 = vst [vmem:[#allocation47_spill] sm:$0xff] %v19307_v27  ;;  %23378 = vst [vmem:[#allocation20_spill] sm:$0xff] %v19310_v38  ;;  %v19319_v3 = vcombine.high %v19304_v47, %v19304_v47  ;;  %v19323_v45 = vcombine.high %v19307_v27, %v19307_v27  ;;  %v19327_v41 = vcombine.high %v19310_v38, %v19310_v38  ;;  %v23387_v5 = vrot.slane %v19063_v55, 2 }
 0x528   :  { %23379 = vst [vmem:[#allocation17_spill] sm:$0xff] %v19313_v1  ;;  %v19331_v4 = vcombine.high %v19313_v1, %v19313_v1  ;;  %v8835_v42 = vadd.f32 %v19304_v47, %v19048_v8  ;;  %v8836_v57 = vadd.f32 %v19310_v38, %v19063_v55  ;;  %v8839_v51 = vadd.f32 %v19307_v27, %v19058_v12 }
 0x529   :  { %23380 = vst [vmem:[#allocation22_spill] sm:$0xff] %v19319_v3  ;;  %23381 = vst [vmem:[#allocation16_spill] sm:$0xff] %v19323_v45  ;;  %v8840_v14 = vadd.f32 %v19313_v1, %v19066_v25  ;;  %v19343_v33 = vadd.f32 %v19319_v3, %v19075_v61  ;;  %v19347_v40 = vadd.f32 %v19327_v41, %v19099_v62 }
 0x52a   :  { %23382 = vst [vmem:[#allocation23_spill] sm:$0xff] %v19327_v41  ;;  %23383 = vst [vmem:[#allocation19_spill] sm:$0xff] %v19331_v4  ;;  %v19351_v22 = vadd.f32 %v19323_v45, %v19095_v59  ;;  %v8842_v54 = vadd.f32 %v19331_v4, %v19103_v29  ;;  %v19357_v49 = vadd.f32 %v23387_v5, %v8835_v42  ;;  %v8371_v5 = vpop.f32.mrf.mxu1  ;;  %v23395_v42 = vrot.slane %v19078_v39, 2 }
 0x52b   :  { %23384 = vst [vmem:[#allocation25_spill] sm:$0xff] %v19343_v33  ;;  %23385 = vst [vmem:[#allocation21_spill] sm:$0xff] %v19347_v40  ;;  %v19361_v12 = vadd.f32 %v23389_v28, %v8836_v57  ;;  %v23391_v33 = vrot.slane %v19066_v25, 2  ;;  %v23393_v40 = vrot.slane %v19095_v59, 2  ;;  %v8466_v59 = vpop.f32.mrf.mxu0  ;;  %v8719_v61 = vrot.slane %v8697_v50, %v16549_v10 }
 0x52c   :  { %23386 = vst [vmem:[#allocation27_spill] sm:$0xff] %v19351_v22  ;;  %23388 = vst [vmem:[#allocation28_spill] sm:$0xff] %v19357_v49  ;;  %v8938_v55 = vadd.f32 %v23395_v42, %v8842_v54  ;;  %v8726_v28 = vrot.slane %v8698_v52, %v16549_v10  ;;  %v19387_v29 = vadd.f32 %v8466_v59, %v8371_v5  ;;  %v23398_v4 = vrot.slane %v19128_v19, 2 }
 0x52d   :  { %23390 = vst [vmem:[#allocation31_spill] sm:$0xff] %v19361_v12  ;;  %v19365_v17 = vadd.f32 %v23391_v33, %v8839_v51  ;;  %v19369_v62 = vadd.f32 %v23393_v40, %v8840_v14  ;;  %v8659_v51 = vcombine.low %v19211_v21, %v8651_v9  ;;  %v8660_v14 = vcombine.high %v19211_v21, %v8651_v9  ;;  %v8373_v12 = vpop.f32.mrf.mxu1 }
 0x52e   :  { %v8661_v33 = vcombine.low %v19214_v24, %v8658_v37  ;;  %v8662_v40 = vcombine.high %v19214_v24, %v8658_v37  ;;  %v8727_v24 = vcombine.low %v19217_v63, %v8719_v61  ;;  %v8728_v39 = vcombine.high %v19217_v63, %v8719_v61 }
 0x52f   :  { %23392 = vst [vmem:[#allocation26_spill] sm:$0xff] %v19365_v17  ;;  %23394 = vst [vmem:[#allocation30_spill] sm:$0xff] %v19369_v62  ;;  %v8669_v57 = vrot.slane %v8659_v51, %v16549_v10  ;;  %v8683_v21 = vrot.slane %v8660_v14, %v16549_v10  ;;  %v8729_v37 = vcombine.low %v19220_v43, %v8726_v28  ;;  %v23400_v17 = vrot.slane %v19088_v48, 2 }
 0x530   :  { %v19391_v25 = vrot.slane %v8661_v33, %v16549_v10  ;;  %v19395_v9 = vrot.slane %v8662_v40, %v16549_v10  ;;  %v8730_v50 = vcombine.high %v19220_v43, %v8726_v28  ;;  %v23396_v40 = vrot.slane %v19110_v26, 2 }
 0x531   :  { %v8691_v52 = vcombine.high %v8669_v57, %v8669_v57  ;;  %v8693_v42 = vcombine.high %v8683_v21, %v8683_v21  ;;  %v8843_v59 = vadd.f32 %v8683_v21, %v19081_v20  ;;  %v8970_v61 = vrot.slane %v8669_v57, 2 }
 0x532   :  { %v19403_v54 = vcombine.high %v19391_v25, %v19391_v25  ;;  %v8694_v5 = vcombine.high %v19395_v9, %v19395_v9  ;;  %v8846_v51 = vadd.f32 %v19391_v25, %v19088_v48  ;;  %v8847_v63 = vadd.f32 %v19395_v9, %v19091_v35 }
 0x533   :  { %v8844_v43 = vadd.f32 %v8691_v52, %v19110_v26  ;;  %v8845_v28 = vadd.f32 %v8693_v42, %v19115_v58  ;;  %v8939_v22 = vadd.f32 %v23396_v40, %v8843_v59  ;;  %v23397_v20 = vrot.slane %v19091_v35, 2 }
 0x534   :  { %v8848_v14 = vadd.f32 %v19403_v54, %v19128_v19  ;;  %v8849_v33 = vadd.f32 %v8694_v5, %v19132_v0  ;;  %v8943_v45 = vadd.f32 %v23398_v4, %v8847_v63  ;;  %v8971_v62 = vrot.slane %v8691_v52, 2  ;;  %v8468_v19 = vpop.f32.mrf.mxu0 }
 0x535   :  { %v8942_v21 = vadd.f32 %v23397_v20, %v8846_v51  ;;  %v23399_v57 = vrot.slane %v19115_v58, 2  ;;  %v8941_v27 = vadd.f32 %v23400_v17, %v8845_v28  ;;  %v8972_v41 = vrot.slane %v8693_v42, 2  ;;  %v23403_v42 = vld [vmem:[#allocation38_spill] sm:$0xff] }
 0x536   :  { %v8973_v3 = vrot.slane %v19391_v25, 2  ;;  %v8974_v26 = vrot.slane %v19395_v9, 2  ;;  %v8975_v59 = vrot.slane %v19403_v54, 2  ;;  %v8976_v35 = vrot.slane %v8694_v5, 2 }
 0x537   :  { %v8940_v1 = vadd.f32 %v23399_v57, %v8844_v43  ;;  %v19430_v51 = vadd.f32 %v8970_v61, %v8938_v55  ;;  %v8737_v4 = vrot.slane %v8727_v24, %v16549_v10  ;;  %v19434_v58 = vrot.slane %v8729_v37, %v16549_v10  ;;  %v23406_v43 = vld [vmem:[#allocation41_spill] sm:$0xff] }
 0x538   :  { %v8751_v48 = vrot.slane %v8728_v39, %v16549_v10  ;;  %v19438_v17 = vrot.slane %v8730_v50, %v16549_v10  ;;  %v8469_v25 = vadd.f32 %v8468_v19, %v8373_v12  ;;  %v23402_v52 = vrot.slane %v19132_v0, 2  ;;  %v23405_v50 = vld [vmem:[#allocation40_spill] sm:$0xff] }
 0x539   :  { %23401 = vst [vmem:[#allocation24_spill] sm:$0xff] %v19430_v51  ;;  %v23404_v54 = vrot.slane %v23403_v42, 2  ;;  %v19444_v55 = vadd.f32 %v8971_v62, %v8939_v22  ;;  %v19446_v63 = vcombine.high %v8737_v4, %v8737_v4  ;;  %v19450_v24 = vcombine.high %v19434_v58, %v19434_v58 }
 0x53a   :  { %v8944_v9 = vadd.f32 %v23402_v52, %v8848_v14  ;;  %v19452_v37 = vcombine.high %v8751_v48, %v8751_v48  ;;  %v19456_v39 = vcombine.high %v19438_v17, %v19438_v17  ;;  %v8850_v12 = vadd.f32 %v8737_v4, %v23403_v42  ;;  %v23407_v14 = vld [vmem:[#allocation42_spill] sm:$0xff] }
 0x53b   :  { %v8945_v5 = vadd.f32 %v23404_v54, %v8849_v33  ;;  %v8851_v0 = vadd.f32 %v8751_v48, %v19121_v36  ;;  %v8854_v62 = vadd.f32 %v19434_v58, %v19138_v56  ;;  %v8855_v22 = vadd.f32 %v19438_v17, %v19144_v44 }
 0x53c   :  { %v19466_v61 = vadd.f32 %v19446_v63, %v23405_v50  ;;  %v19470_v28 = vadd.f32 %v19452_v37, %v23406_v43  ;;  %v19474_v33 = vadd.f32 %v19450_v24, %v23407_v14  ;;  %v8857_v40 = vadd.f32 %v19456_v39, %v19170_v11 }
 0x53d   :  { %v23409_v20 = vrot.slane %v19121_v36, 2  ;;  %v23410_v19 = vrot.slane %v23405_v50, 2  ;;  %v23411_v42 = vrot.slane %v19144_v44, 2  ;;  %v23412_v51 = vrot.slane %v23407_v14, 2 }
 0x53e   :  { %23408 = vst [vmem:[#allocation32_spill] sm:$0xff] %v19474_v33  ;;  %v8977_v49 = vrot.slane %v8737_v4, 2  ;;  %v8978_v33 = vrot.slane %v8751_v48, 2  ;;  %v8979_v56 = vrot.slane %v19446_v63, 2  ;;  %v8980_v11 = vrot.slane %v19452_v37, 2 }
 0x53f   :  { %v8946_v57 = vadd.f32 %v23409_v20, %v8850_v12  ;;  %v19482_v52 = vadd.f32 %v23410_v19, %v8851_v0  ;;  %v19486_v54 = vadd.f32 %v23411_v42, %v8854_v62  ;;  %v19490_v38 = vadd.f32 %v23412_v51, %v8855_v22 }
 0x540   :  { %v8981_v36 = vrot.slane %v19434_v58, 2  ;;  %v8982_v12 = vrot.slane %v19438_v17, 2  ;;  %v8983_v0 = vrot.slane %v19450_v24, 2  ;;  %v8764_v62 = vcombine.low %v19387_v29, %v8469_v25  ;;  %v23419_v25 = vld [vmem:[#allocation44_spill] sm:$0xff] }
 0x541   :  { %v23413_v50 = vrot.slane %v19179_v15, 2  ;;  %v19501_v22 = vadd.f32 %v8972_v41, %v8940_v1  ;;  %v19503_v4 = vadd.f32 %v8973_v3, %v8941_v27  ;;  %v19505_v48 = vadd.f32 %v8974_v26, %v8942_v21  ;;  %v23415_v41 = vld [vmem:[#allocation15_spill] sm:$0xff] }
 0x542   :  { %v19507_v14 = vadd.f32 %v8975_v59, %v8943_v45  ;;  %v19509_v20 = vadd.f32 %v8976_v35, %v8944_v9  ;;  %v19511_v19 = vadd.f32 %v8977_v49, %v8945_v5  ;;  %v8778_v42 = vrot.slane %v8764_v62, %v16549_v10  ;;  %v23416_v49 = vld [vmem:[#allocation34_spill] sm:$0xff] }
 0x543   :  { %v8953_v51 = vadd.f32 %v23413_v50, %v8857_v40  ;;  %v19514_v44 = vadd.f32 %v8978_v33, %v8946_v57  ;;  %v9223_v29 = vcombine.low %v19444_v55, %v19501_v22  ;;  %v23414_v1 = vrot.slane %v18996_v18, 2 }
 0x544   :  { %v9224_v3 = vcombine.low %v19503_v4, %v19505_v48  ;;  %v9225_v45 = vcombine.low %v19507_v14, %v19509_v20  ;;  %v23417_v21 = vrot.slane %v23416_v49, 2  ;;  %v23418_v59 = vrot.slane %v19048_v8, 2 }
 0x545   :  { %v8926_v27 = vadd.f32 %v23414_v1, %v19262_v31  ;;  %v8779_v9 = vcombine.low %v23419_v25, %v8778_v42  ;;  %v8780_v5 = vcombine.high %v23419_v25, %v8778_v42  ;;  %v9226_v18 = vcombine.low %v19511_v19, %v19514_v44 }
 0x546   :  { %v8929_v26 = vadd.f32 %v23417_v21, %v23415_v41  ;;  %v8930_v35 = vadd.f32 %v23418_v59, %v19270_v16  ;;  %v9233_v31 = vrot.slane %v9223_v29, %v16549_v10  ;;  %v9240_v33 = vrot.slane %v9224_v3, %v16549_v10 }
 0x547   :  { %v9247_v40 = vrot.slane %v9225_v45, %v16549_v10  ;;  %v23420_v57 = vrot.slane %v19230_v23, 2  ;;  %v23421_v8 = vrot.slane %v19237_v7, 2  ;;  %v8787_v50 = vrot.slane %v8779_v9, %v16549_v10 }
 0x548   :  { %v8794_v42 = vrot.slane %v8780_v5, %v16549_v10  ;;  %v9254_v29 = vrot.slane %v9226_v18, %v16549_v10  ;;  %v23422_v1 = vrot.slane %v19245_v2, 2  ;;  %v9255_v45 = vcombine.low %v9233_v31, %v9240_v33  ;;  %v23426_v5 = vld [vmem:[#allocation45_spill] sm:$0xff] }
 0x549   :  { %v19541_v62 = vadd.f32 %v23420_v57, %v19274_v6  ;;  %v19546_v16 = vadd.f32 %v23421_v8, %v19278_v32  ;;  %v9256_v23 = vcombine.high %v9233_v31, %v9240_v33  ;;  %v23423_v6 = vrot.slane %v19227_v46, 2  ;;  %v23428_v31 = vld [vmem:[#allocation46_spill] sm:$0xff] }
 0x54a   :  { %v19554_v3 = vadd.f32 %v23422_v1, %v19290_v60  ;;  %v23424_v32 = vrot.slane %v19233_v34, 2  ;;  %v8858_v49 = vadd.f32 %v8787_v50, %v19179_v15  ;;  %v8985_v21 = vrot.slane %v8787_v50, 2 }
 0x54b   :  { %v19558_v41 = vadd.f32 %v23423_v6, %v8926_v27  ;;  %v8986_v59 = vrot.slane %v8794_v42, 2  ;;  %v9257_v25 = vcombine.low %v9247_v40, %v9254_v29  ;;  %v9258_v9 = vcombine.high %v9247_v40, %v9254_v29 }
 0x54c   :  { %v19563_v7 = vadd.f32 %v23424_v32, %v19282_v53  ;;  %v9265_v60 = vrot.slane %v9255_v45, %v16549_v10  ;;  %v9272_v2 = vrot.slane %v9256_v23, %v16549_v10  ;;  %v23425_v46 = vrot.slane %v19241_v30, 2  ;;  %v23432_v32 = vld [vmem:[#allocation39_spill] sm:$0xff] }
 0x54d   :  { %v23427_v18 = vrot.slane %v23426_v5, 2  ;;  %v19575_v53 = vadd.f32 %v8985_v21, %v8953_v51  ;;  %v9279_v15 = vrot.slane %v9257_v25, %v16549_v10  ;;  %v23429_v33 = vrot.slane %v23428_v31, 2  ;;  %v23435_v25 = vld [vmem:[#allocation43_spill] sm:$0xff] }
 0x54e   :  { %v19571_v27 = vadd.f32 %v23425_v46, %v19286_v13  ;;  %v9286_v40 = vrot.slane %v9258_v9, %v16549_v10  ;;  %v23430_v8 = vrot.slane %v19304_v47, 2  ;;  %v9091_v13 = vcombine.low %v19541_v62, %v19546_v16 }
 0x54f   :  { %v8954_v34 = vadd.f32 %v23427_v18, %v8858_v49  ;;  %v19580_v57 = vadd.f32 %v23429_v33, %v8929_v26  ;;  %v9092_v30 = vcombine.low %v19554_v3, %v19558_v41  ;;  %v9287_v42 = vcombine.low %v9265_v60, %v9279_v15  ;;  %v23439_v15 = vld [vmem:[#allocation36_spill] sm:$0xff] }
 0x550   :  { %v19585_v50 = vadd.f32 %v23430_v8, %v8930_v35  ;;  %v9093_v29 = vcombine.low %v19563_v7, %v19571_v27  ;;  %v23431_v26 = vrot.slane %v23406_v43, 2  ;;  %v9288_v45 = vcombine.low %v9272_v2, %v9286_v40  ;;  %v23442_v40 = vld [vmem:[#allocation35_spill] sm:$0xff] }
 0x551   :  { %v19591_v51 = vadd.f32 %v8986_v59, %v8954_v34  ;;  %v9101_v35 = vrot.slane %v9091_v13, %v16549_v10  ;;  %v9108_v23 = vrot.slane %v9092_v30, %v16549_v10  ;;  %v23433_v49 = vrot.slane %v23432_v32, 2  ;;  %v23434_v59 = vld [vmem:[#allocation32_spill] sm:$0xff] }
 0x552   :  { %v8948_v1 = vadd.f32 %v23431_v26, %v19466_v61  ;;  %v9094_v47 = vcombine.low %v19580_v57, %v19585_v50  ;;  %v9115_v6 = vrot.slane %v9093_v29, %v16549_v10  ;;  %v23436_v9 = vrot.slane %v23435_v25, 2  ;;  %v23447_v32 = vld [vmem:[#allocation28_spill] sm:$0xff] }
 0x553   :  { %v8949_v21 = vadd.f32 %v23433_v49, %v19470_v28  ;;  %v19612_v61 = vadd.f32 %v8979_v56, %v19482_v52  ;;  %v9369_v43 = vadd.f32 %v9288_v45, %v9287_v42  ;;  %v9123_v46 = vcombine.low %v9101_v35, %v9108_v23  ;;  %v23448_v49 = vld [vmem:[#allocation20_spill] sm:$0xff] }
 0x554   :  { %v8952_v60 = vadd.f32 %v23436_v9, %v23434_v59  ;;  %v9122_v2 = vrot.slane %v9094_v47, %v16549_v10  ;;  %v9124_v5 = vcombine.high %v9101_v35, %v9108_v23  ;;  %v19617_v18 = vadd.f32 %v8980_v11, %v8948_v1  ;;  %v23444_v47 = vld [vmem:[#allocation27_spill] sm:$0xff]  ;;  %v23445_v35 = vld [vmem:[#allocation37_spill] sm:$0xff] }
 0x555   :  { %v19621_v28 = vadd.f32 %v8981_v36, %v8949_v21  ;;  %v19626_v34 = vadd.f32 %v8982_v12, %v19486_v54  ;;  %v19631_v56 = vadd.f32 %v8983_v0, %v19490_v38  ;;  %9370 = vadd.xlane.f32.xlu0 %v9369_v43  ;;  %v9133_v11 = vrot.slane %v9123_v46, %v16549_v10  ;;  %v23438_v0 = vld [vmem:[#allocation25_spill] sm:$0xff]  ;;  %v23450_v43 = vld [vmem:[#allocation31_spill] sm:$0xff] }
 0x556   :  { %v9125_v63 = vcombine.low %v9115_v6, %v9122_v2  ;;  %v9126_v52 = vcombine.high %v9115_v6, %v9122_v2  ;;  %v9140_v37 = vrot.slane %v9124_v5, %v16549_v10  ;;  %v23437_v58 = vrot.slane %v19456_v39, 2  ;;  %v23441_v39 = vld [vmem:[#allocation21_spill] sm:$0xff]  ;;  %v23451_v2 = vld [vmem:[#allocation22_spill] sm:$0xff] }
 0x557   :  { %v9289_v17 = vcombine.low %v19612_v61, %v19617_v18  ;;  %v9290_v54 = vcombine.low %v19621_v28, %v19626_v34  ;;  %v9292_v38 = vcombine.low %v19575_v53, %v19591_v51  ;;  %v23440_v31 = vrot.slane %v23439_v15, 2 }
 0x558   :  { %v19637_v36 = vadd.f32 %v23437_v58, %v8952_v60  ;;  %v9147_v24 = vrot.slane %v9125_v63, %v16549_v10  ;;  %v9154_v12 = vrot.slane %v9126_v52, %v16549_v10  ;;  %v23443_v8 = vrot.slane %v23442_v40, 2  ;;  %v23453_v52 = vld [vmem:[#allocation23_spill] sm:$0xff]  ;;  %v23461_v40 = vld [vmem:[#allocation16_spill] sm:$0xff] }
 0x559   :  { %v8933_v33 = vadd.f32 %v23440_v31, %v23438_v0  ;;  %v9299_v42 = vrot.slane %v9289_v17, %v16549_v10  ;;  %v9306_v29 = vrot.slane %v9290_v54, %v16549_v10  ;;  %v9320_v26 = vrot.slane %v9292_v38, %v16549_v10  ;;  %v23455_v58 = vld [vmem:[#allocation47_spill] sm:$0xff]  ;;  %v23457_v38 = vld [vmem:[#allocation26_spill] sm:$0xff] }
 0x55a   :  { %v8934_v13 = vadd.f32 %v23443_v8, %v23441_v39  ;;  %v9291_v30 = vcombine.low %v19631_v56, %v19637_v36  ;;  %v9155_v1 = vcombine.low %v9133_v11, %v9147_v24  ;;  %v9156_v45 = vcombine.low %v9140_v37, %v9154_v12  ;;  %v23458_v24 = vld [vmem:[#allocation17_spill] sm:$0xff]  ;;  %v23460_v39 = vld [vmem:[#allocation30_spill] sm:$0xff] }
 0x55b   :  { %v23446_v23 = vrot.slane %v23445_v35, 2  ;;  %v23449_v21 = vrot.slane %v23448_v49, 2  ;;  %v9321_v9 = vcombine.low %v9299_v42, %v9306_v29  ;;  %v9322_v60 = vcombine.high %v9299_v42, %v9306_v29  ;;  %v23463_v42 = vld [vmem:[#allocation19_spill] sm:$0xff] }
 0x55c   :  { %v9313_v25 = vrot.slane %v9291_v30, %v16549_v10  ;;  %v23452_v46 = vrot.slane %v23451_v2, 2  ;;  %v9363_v63 = vadd.f32 %v9156_v45, %v9155_v1  ;;  %v23454_v11 = vrot.slane %v23453_v52, 2 }
 0x55d   :  { %v8937_v6 = vadd.f32 %v23446_v23, %v23444_v47  ;;  %v19664_v59 = vadd.f32 %v23449_v21, %v23447_v32  ;;  %v23456_v17 = vrot.slane %v23455_v58, 2  ;;  %v23459_v12 = vrot.slane %v23458_v24, 2  ;;  %v23465_v32 = vld [vmem:[#allocation24_spill] sm:$0xff] }
 0x55e   :  { %v19670_v5 = vadd.f32 %v23452_v46, %v23450_v43  ;;  %v19674_v37 = vadd.f32 %v23454_v11, %v8933_v33  ;;  %v9323_v15 = vcombine.low %v9313_v25, %v9320_v26  ;;  %v9324_v31 = vcombine.high %v9313_v25, %v9320_v26  ;;  %9364 = vadd.xlane.f32.xlu0 %v9363_v63 }
 0x55f   :  { %v19678_v54 = vadd.f32 %v23456_v17, %v8934_v13  ;;  %v19683_v0 = vadd.f32 %v23459_v12, %v23457_v38  ;;  %v23462_v8 = vrot.slane %v23461_v40, 2  ;;  %v23464_v33 = vrot.slane %v23463_v42, 2 }
 0x560   :  { %v9157_v13 = vcombine.low %v19664_v59, %v19670_v5  ;;  %v9331_v45 = vrot.slane %v9321_v9, %v16549_v10  ;;  %v9338_v26 = vrot.slane %v9322_v60, %v16549_v10  ;;  %v9345_v47 = vrot.slane %v9323_v15, %v16549_v10 }
 0x561   :  { %v19688_v30 = vadd.f32 %v23462_v8, %v23460_v39  ;;  %v19692_v29 = vadd.f32 %v23464_v33, %v8937_v6  ;;  %v9158_v1 = vcombine.low %v19674_v37, %v19678_v54  ;;  %v9352_v35 = vrot.slane %v9324_v31, %v16549_v10 }
 0x562   :  { %v9167_v49 = vrot.slane %v9157_v13, %v16549_v10  ;;  %v9353_v25 = vcombine.low %v9331_v45, %v9345_v47 }
 0x563   :  { %v9159_v23 = vcombine.low %v19683_v0, %v19688_v30  ;;  %v9160_v6 = vcombine.low %v19692_v29, %v23465_v32  ;;  %v9174_v21 = vrot.slane %v9158_v1, %v16549_v10  ;;  %v9354_v43 = vcombine.low %v9338_v26, %v9352_v35 }
 0x565   :  { %v9181_v9 = vrot.slane %v9159_v23, %v16549_v10  ;;  %v9188_v60 = vrot.slane %v9160_v6, %v16549_v10  ;;  %v9189_v2 = vcombine.low %v9167_v49, %v9174_v21  ;;  %v9190_v46 = vcombine.high %v9167_v49, %v9174_v21 }
 0x566   :  { %v9372_v63 = vadd.f32 %v9354_v43, %v9353_v25 }
 0x567   :  { %v9191_v52 = vcombine.low %v9181_v9, %v9188_v60  ;;  %v9192_v11 = vcombine.high %v9181_v9, %v9188_v60  ;;  %v9199_v58 = vrot.slane %v9189_v2, %v16549_v10  ;;  %v9206_v17 = vrot.slane %v9190_v46, %v16549_v10 }
 0x568   :  { %9373 = vadd.xlane.f32.xlu1 %v9372_v63 }
 0x569   :  { %v9213_v38 = vrot.slane %v9191_v52, %v16549_v10  ;;  %v9220_v24 = vrot.slane %v9192_v11, %v16549_v10 }
 0x56b   :  { %v9221_v12 = vcombine.low %v9199_v58, %v9213_v38  ;;  %v9222_v15 = vcombine.low %v9206_v17, %v9220_v24 }
 0x56d   :  { %v9366_v31 = vadd.f32 %v9222_v15, %v9221_v12 }
 0x56f   :  { %9367 = vadd.xlane.f32.xlu0 %v9366_v31 }
 0x5de   :  { %v9371_v39 = vpop.xlane.xlu0 %9370 }
 0x5e7   :  { %v9365_v8 = vpop.xlane.xlu0 %9364 }
 0x5f1   :  { %v9374_v40 = vpop.xlane.xlu1 %9373 }
 0x5f2   :  { %v9382_v42 = vadd.f32 %v9374_v40, %v9371_v39 }
 0x5f4   :  { %v9383_v33 = vrot.slane %v9382_v42, 4 }
 0x5f6   :  { %v9384_v13 = vadd.f32 %v9383_v33, %v9382_v42 }
 0x5f8   :  { %v9385_v1 = vrot.slane %v9384_v13, 2  ;;  %v9368_v45 = vpop.xlane.xlu0 %9367 }
 0x5f9   :  { %v9375_v26 = vadd.f32 %v9368_v45, %v9365_v8 }
 0x5fa   :  { %v9386_v47 = vadd.f32 %v9385_v1, %v9384_v13 }
 0x5fb   :  { %v9376_v35 = vrot.slane %v9375_v26, 4 }
 0x5fc   :  { %v9387_v23 = vrot.slane %v9386_v47, 1 }
 0x5fd   :  { %v9377_v6 = vadd.f32 %v9376_v35, %v9375_v26 }
 0x5fe   :  { %v9388_v49 = vadd.f32 %v9387_v23, %v9386_v47 }
 0x5ff   :  { %v9378_v21 = vrot.slane %v9377_v6, 2 }
 0x600   :  { %v9390_v25 = vmul.f32 0.00024414063, %v9388_v49 }
 0x601   :  { %v9379_v43 = vadd.f32 %v9378_v21, %v9377_v6 }
 0x602   :  { %v19715_v9 = vsub.f32 %v19612_v61, %v9390_v25  ;;  %v19718_v60 = vsub.f32 %v19617_v18, %v9390_v25  ;;  %v19721_v2 = vsub.f32 %v19621_v28, %v9390_v25  ;;  %v19724_v46 = vsub.f32 %v19626_v34, %v9390_v25 }
 0x603   :  { %v9380_v63 = vrot.slane %v9379_v43, 1  ;;  %v19727_v52 = vsub.f32 %v19631_v56, %v9390_v25  ;;  %v19730_v11 = vsub.f32 %v19637_v36, %v9390_v25  ;;  %v19733_v58 = vsub.f32 %v19575_v53, %v9390_v25 }
 0x604   :  { %v19736_v61 = vsub.f32 %v19591_v51, %v9390_v25  ;;  %v9447_v18 = vmul.f32 %v19715_v9, %v19715_v9  ;;  %v9448_v28 = vmul.f32 %v19718_v60, %v19718_v60  ;;  %v9449_v34 = vmul.f32 %v19721_v2, %v19721_v2 }
 0x605   :  { %v9381_v56 = vadd.f32 %v9380_v63, %v9379_v43  ;;  %v9450_v36 = vmul.f32 %v19724_v46, %v19724_v46  ;;  %v9451_v53 = vmul.f32 %v19727_v52, %v19727_v52  ;;  %v9452_v51 = vmul.f32 %v19730_v11, %v19730_v11 }
 0x606   :  { %v9453_v17 = vmul.f32 %v19733_v58, %v19733_v58  ;;  %v9454_v38 = vmul.f32 %v19736_v61, %v19736_v61  ;;  %v9685_v24 = vcombine.low %v9447_v18, %v9448_v28  ;;  %v19755_v12 = vsub.f32 %v19444_v55, %v9390_v25 }
 0x607   :  { %v19757_v15 = vmul.f32 0.00024414063, %v9381_v56  ;;  %v9686_v31 = vcombine.low %v9449_v34, %v9450_v36  ;;  %v9687_v39 = vcombine.low %v9451_v53, %v9452_v51  ;;  %v19760_v40 = vsub.f32 %v19501_v22, %v9390_v25 }
 0x608   :  { %v9688_v8 = vcombine.low %v9453_v17, %v9454_v38  ;;  %v9695_v42 = vrot.slane %v9685_v24, %v16549_v10  ;;  %v19764_v33 = vsub.f32 %v19503_v4, %v9390_v25  ;;  %v19767_v13 = vsub.f32 %v19505_v48, %v9390_v25 }
 0x609   :  { %v9702_v1 = vrot.slane %v9686_v31, %v16549_v10  ;;  %v9709_v55 = vrot.slane %v9687_v39, %v16549_v10  ;;  %v19772_v45 = vsub.f32 %v19507_v14, %v9390_v25  ;;  %v19775_v26 = vsub.f32 %v19509_v20, %v9390_v25 }
 0x60a   :  { %v9716_v22 = vrot.slane %v9688_v8, %v16549_v10  ;;  %v19779_v47 = vsub.f32 %v19511_v19, %v9390_v25  ;;  %v19782_v4 = vsub.f32 %v19514_v44, %v9390_v25  ;;  %v9439_v48 = vmul.f32 %v19755_v12, %v19755_v12 }
 0x60b   :  { %v9717_v35 = vcombine.low %v9695_v42, %v9702_v1  ;;  %v9718_v23 = vcombine.high %v9695_v42, %v9702_v1  ;;  %v9440_v14 = vmul.f32 %v19760_v40, %v19760_v40  ;;  %v9441_v20 = vmul.f32 %v19764_v33, %v19764_v33 }
 0x60c   :  { %v9719_v6 = vcombine.low %v9709_v55, %v9716_v22  ;;  %v9720_v49 = vcombine.high %v9709_v55, %v9716_v22  ;;  %v9442_v19 = vmul.f32 %v19767_v13, %v19767_v13  ;;  %v9443_v44 = vmul.f32 %v19772_v45, %v19772_v45 }
 0x60d   :  { %v9727_v21 = vrot.slane %v9717_v35, %v16549_v10  ;;  %v9734_v25 = vrot.slane %v9718_v23, %v16549_v10  ;;  %v9444_v43 = vmul.f32 %v19775_v26, %v19775_v26  ;;  %v9445_v63 = vmul.f32 %v19779_v47, %v19779_v47 }
 0x60e   :  { %v9741_v18 = vrot.slane %v9719_v6, %v16549_v10  ;;  %v9748_v28 = vrot.slane %v9720_v49, %v16549_v10  ;;  %v9446_v34 = vmul.f32 %v19782_v4, %v19782_v4  ;;  %v9619_v56 = vcombine.low %v9439_v48, %v9440_v14 }
 0x60f   :  { %v9620_v36 = vcombine.low %v9441_v20, %v9442_v19  ;;  %v9621_v53 = vcombine.low %v9443_v44, %v9444_v43  ;;  %v19806_v51 = vsub.f32 %v19664_v59, %v19757_v15  ;;  %v19810_v17 = vsub.f32 %v19670_v5, %v19757_v15 }
 0x610   :  { %v9749_v38 = vcombine.low %v9727_v21, %v9741_v18  ;;  %v9750_v24 = vcombine.low %v9734_v25, %v9748_v28  ;;  %v9622_v31 = vcombine.low %v9445_v63, %v9446_v34  ;;  %v9629_v39 = vrot.slane %v9619_v56, %v16549_v10 }
 0x611   :  { %v9636_v8 = vrot.slane %v9620_v36, %v16549_v10  ;;  %v9643_v42 = vrot.slane %v9621_v53, %v16549_v10  ;;  %v19817_v1 = vsub.f32 %v19674_v37, %v19757_v15  ;;  %v19821_v59 = vsub.f32 %v19678_v54, %v19757_v15 }
 0x612   :  { %v9768_v55 = vadd.f32 %v9750_v24, %v9749_v38  ;;  %v9650_v5 = vrot.slane %v9622_v31, %v16549_v10  ;;  %v19826_v22 = vsub.f32 %v19683_v0, %v19757_v15  ;;  %v19830_v48 = vsub.f32 %v19688_v30, %v19757_v15 }
 0x613   :  { %v9651_v35 = vcombine.low %v9629_v39, %v9636_v8  ;;  %v9652_v23 = vcombine.high %v9629_v39, %v9636_v8  ;;  %v19834_v37 = vsub.f32 %v19692_v29, %v19757_v15  ;;  %v19838_v54 = vsub.f32 %v23465_v32, %v19757_v15 }
 0x614   :  { %9769 = vadd.xlane.f32.xlu0 %v9768_v55  ;;  %v9653_v14 = vcombine.low %v9643_v42, %v9650_v5  ;;  %v9654_v20 = vcombine.high %v9643_v42, %v9650_v5  ;;  %v9431_v0 = vmul.f32 %v19806_v51, %v19806_v51  ;;  %v9432_v30 = vmul.f32 %v19810_v17, %v19810_v17 }
 0x615   :  { %v9661_v6 = vrot.slane %v9651_v35, %v16549_v10  ;;  %v9668_v49 = vrot.slane %v9652_v23, %v16549_v10  ;;  %v9433_v29 = vmul.f32 %v19817_v1, %v19817_v1  ;;  %v9434_v32 = vmul.f32 %v19821_v59, %v19821_v59 }
 0x616   :  { %v9675_v19 = vrot.slane %v9653_v14, %v16549_v10  ;;  %v9682_v44 = vrot.slane %v9654_v20, %v16549_v10  ;;  %v9435_v21 = vmul.f32 %v19826_v22, %v19826_v22  ;;  %v9436_v25 = vmul.f32 %v19830_v48, %v19830_v48 }
 0x617   :  { %v9437_v43 = vmul.f32 %v19834_v37, %v19834_v37  ;;  %v9438_v63 = vmul.f32 %v19838_v54, %v19838_v54  ;;  %v9553_v18 = vcombine.low %v9431_v0, %v9432_v30  ;;  %v9554_v28 = vcombine.low %v9433_v29, %v9434_v32 }
 0x618   :  { %v9683_v34 = vcombine.low %v9661_v6, %v9675_v19  ;;  %v9684_v56 = vcombine.low %v9668_v49, %v9682_v44  ;;  %v9555_v36 = vcombine.low %v9435_v21, %v9436_v25  ;;  %v19862_v53 = vsub.f32 %v19541_v62, %v19757_v15 }
 0x619   :  { %v9556_v38 = vcombine.low %v9437_v43, %v9438_v63  ;;  %v9563_v24 = vrot.slane %v9553_v18, %v16549_v10  ;;  %v9570_v31 = vrot.slane %v9554_v28, %v16549_v10  ;;  %v19868_v39 = vsub.f32 %v19546_v16, %v19757_v15 }
 0x61a   :  { %23466 = vst [vmem:[#allocation29_spill] sm:$0xff] %v19862_v53  ;;  %v9765_v8 = vadd.f32 %v9684_v56, %v9683_v34  ;;  %v9577_v42 = vrot.slane %v9555_v36, %v16549_v10  ;;  %v19873_v55 = vsub.f32 %v19554_v3, %v19757_v15  ;;  %v19877_v62 = vsub.f32 %v19558_v41, %v19757_v15 }
 0x61b   :  { %23467 = vst [vmem:[#allocation33_spill] sm:$0xff] %v19868_v39  ;;  %v9584_v5 = vrot.slane %v9556_v38, %v16549_v10  ;;  %v9585_v35 = vcombine.low %v9563_v24, %v9570_v31  ;;  %v9586_v23 = vcombine.high %v9563_v24, %v9570_v31  ;;  %v19882_v14 = vsub.f32 %v19563_v7, %v19757_v15 }
 0x61c   :  { %23468 = vst [vmem:[#allocation13_spill] sm:$0xff] %v19873_v55  ;;  %23469 = vst [vmem:[#allocation82_spill] sm:$0xff] %v19877_v62  ;;  %9766 = vadd.xlane.f32.xlu1 %v9765_v8  ;;  %v19886_v16 = vsub.f32 %v19571_v27, %v19757_v15  ;;  %v19890_v3 = vsub.f32 %v19580_v57, %v19757_v15  ;;  %v19894_v41 = vsub.f32 %v19585_v50, %v19757_v15 }
 0x61d   :  { %23470 = vst [vmem:[#allocation86_spill] sm:$0xff] %v19882_v14  ;;  %v9423_v20 = vmul.f32 %v19862_v53, %v19862_v53  ;;  %v9587_v0 = vcombine.low %v9577_v42, %v9584_v5  ;;  %v9588_v30 = vcombine.high %v9577_v42, %v9584_v5  ;;  %v9595_v7 = vrot.slane %v9585_v35, %v16549_v10 }
 0x61e   :  { %23471 = vst [vmem:[#allocation83_spill] sm:$0xff] %v19886_v16  ;;  %23472 = vst [vmem:[#allocation87_spill] sm:$0xff] %v19890_v3  ;;  %v9602_v6 = vrot.slane %v9586_v23, %v16549_v10  ;;  %v9424_v27 = vmul.f32 %v19868_v39, %v19868_v39  ;;  %v9425_v57 = vmul.f32 %v19873_v55, %v19873_v55 }
 0x61f   :  { %23473 = vst [vmem:[#allocation84_spill] sm:$0xff] %v19894_v41  ;;  %v9426_v49 = vmul.f32 %v19877_v62, %v19877_v62  ;;  %v9427_v50 = vmul.f32 %v19882_v14, %v19882_v14  ;;  %v9609_v15 = vrot.slane %v9587_v0, %v16549_v10  ;;  %v9616_v29 = vrot.slane %v9588_v30, %v16549_v10 }
 0x620   :  { %v9428_v32 = vmul.f32 %v19886_v16, %v19886_v16  ;;  %v9429_v19 = vmul.f32 %v19890_v3, %v19890_v3  ;;  %v9430_v44 = vmul.f32 %v19894_v41, %v19894_v41  ;;  %v9487_v21 = vcombine.low %v9423_v20, %v9424_v27 }
 0x621   :  { %v9488_v25 = vcombine.low %v9425_v57, %v9426_v49  ;;  %v9617_v43 = vcombine.low %v9595_v7, %v9609_v15  ;;  %v9618_v63 = vcombine.low %v9602_v6, %v9616_v29 }
 0x622   :  { %v9489_v18 = vcombine.low %v9427_v50, %v9428_v32  ;;  %v9490_v28 = vcombine.low %v9429_v19, %v9430_v44  ;;  %v9497_v34 = vrot.slane %v9487_v21, %v16549_v10  ;;  %v16266_v21 = vld [vmem:[%s22869_s7 + $0x10] ss:$8 sps:$4 sm:$0xff]  }
 0x623   :  { %v9504_v56 = vrot.slane %v9488_v25, %v16549_v10  ;;  %v9762_v36 = vadd.f32 %v9618_v63, %v9617_v43  ;;  %v16268_v25 = vld [vmem:[%s22869_s7 + $0x14] ss:$8 sps:$4 sm:$0xff]   ;;  %v16269_v43 = vld [vmem:[%s22870_s8 + $0x10] ss:$8 sps:$4 sm:$0xff]  }
 0x624   :  { %v9511_v38 = vrot.slane %v9489_v18, %v16549_v10  ;;  %v9518_v24 = vrot.slane %v9490_v28, %v16549_v10  ;;  %v16271_v63 = vld [vmem:[%s22870_s8 + $0x14] ss:$8 sps:$4 sm:$0xff]   ;;  %v16272_v28 = vld [vmem:[%s22869_s7] ss:$8 sps:$4 sm:$0xff]  }
 0x625   :  { %v9519_v31 = vcombine.low %v9497_v34, %v9504_v56  ;;  %v9520_v8 = vcombine.high %v9497_v34, %v9504_v56  ;;  %9763 = vadd.xlane.f32.xlu0 %v9762_v36  ;;  %v16274_v34 = vld [vmem:[%s22869_s7 + $0x4] ss:$8 sps:$4 sm:$0xff]   ;;  %v16275_v36 = vld [vmem:[%s22870_s8] ss:$8 sps:$4 sm:$0xff]   ;;  %s16413_s7 = smov 16  }
 0x626   :  { %v9521_v42 = vcombine.low %v9511_v38, %v9518_v24  ;;  %v9522_v5 = vcombine.high %v9511_v38, %v9518_v24  ;;  %v16277_v38 = vld [vmem:[%s22870_s8 + $0x4] ss:$8 sps:$4 sm:$0xff]  }
 0x627   :  { %v9529_v35 = vrot.slane %v9519_v31, %v16549_v10  ;;  %v9536_v23 = vrot.slane %v9520_v8, %v16549_v10  ;;  %v9885_v31 = vrot.slane %v16266_v21, %v16549_v10  ;;  %v9892_v8 = vrot.slane %v16268_v25, %v16549_v10 }
 0x628   :  { %v9543_v20 = vrot.slane %v9521_v42, %v16549_v10  ;;  %v9550_v0 = vrot.slane %v9522_v5, %v16549_v10  ;;  %v10037_v5 = vrot.slane %v16269_v43, %v16549_v10 }
 0x62a   :  { %v9551_v30 = vcombine.low %v9529_v35, %v9543_v20  ;;  %v9552_v7 = vcombine.low %v9536_v23, %v9550_v0  ;;  %v10044_v35 = vrot.slane %v16271_v63, %v16549_v10  ;;  %v9835_v20 = vrot.slane %v16272_v28, %v16549_v10 }
 0x62b   :  { %v9842_v0 = vrot.slane %v16274_v34, %v16549_v10  ;;  %v19963_v21 = vrot.slane %v10037_v5, %v16549_v10 }
 0x62c   :  { %v9759_v6 = vadd.f32 %v9552_v7, %v9551_v30  ;;  %v9987_v30 = vrot.slane %v16275_v36, %v16549_v10  ;;  %v9994_v7 = vrot.slane %v16277_v38, %v16549_v10  ;;  %v19966_v25 = vrot.slane %v10044_v35, %v16549_v10 }
 0x62e   :  { %9760 = vadd.xlane.f32.xlu1 %v9759_v6  ;;  %v9995_v43 = vcombine.high %v9987_v30, %v9987_v30  ;;  %v9996_v63 = vcombine.high %v9994_v7, %v9994_v7 }
 0x69d   :  { %v9770_v27 = vpop.xlane.xlu0 %9769 }
 0x6a5   :  { %v9767_v57 = vpop.xlane.xlu1 %9766 }
 0x6a6   :  { %v9778_v49 = vadd.f32 %v9770_v27, %v9767_v57  ;;  %v9893_v27 = vcombine.high %v9885_v31, %v9885_v31  ;;  %v9894_v57 = vcombine.high %v9892_v8, %v9892_v8 }
 0x6a8   :  { %v9779_v50 = vrot.slane %v9778_v49, 4  ;;  %v19969_v28 = vrot.slane %v9893_v27, %v16549_v10  ;;  %v19972_v34 = vrot.slane %v9894_v57, %v16549_v10  ;;  %v20007_v27 = vrot.slane %v9995_v43, %v16549_v10 }
 0x6aa   :  { %v9780_v15 = vadd.f32 %v9779_v50, %v9778_v49  ;;  %v19957_v49 = vrot.slane %v9885_v31, %v16549_v10  ;;  %v19960_v50 = vrot.slane %v9892_v8, %v16549_v10  ;;  %v19989_v31 = vrot.slane %v9835_v20, %v16549_v10  ;;  %23478 = vst [vmem:[#allocation91_spill] sm:$0xff] %v20007_v27 }
 0x6ab   :  { %v20014_v57 = vcombine.high %v19969_v28, %v19969_v28 }
 0x6ac   :  { %v9781_v29 = vrot.slane %v9780_v15, 2  ;;  %v19980_v36 = vcombine.high %v19960_v50, %v19960_v50 }
 0x6ae   :  { %v9782_v32 = vadd.f32 %v9781_v29, %v9780_v15  ;;  %v9764_v56 = vpop.xlane.xlu0 %9763  ;;  %v10045_v15 = vcombine.high %v10037_v5, %v10037_v5  ;;  %v10046_v29 = vcombine.high %v10044_v35, %v10044_v35 }
 0x6b0   :  { %v9783_v19 = vrot.slane %v9782_v32, 1  ;;  %v19983_v38 = vrot.slane %v10045_v15, %v16549_v10  ;;  %v20018_v15 = vcombine.high %v19963_v21, %v19963_v21 }
 0x6b2   :  { %v9784_v44 = vadd.f32 %v9783_v19, %v9782_v32  ;;  %v9843_v19 = vcombine.high %v9835_v20, %v9835_v20  ;;  %v20010_v20 = vrot.slane %v9996_v63, %v16549_v10 }
 0x6b4   :  { %v9786_v18 = vmul.f32 0.00024414063, %v9784_v44  ;;  %v9844_v44 = vcombine.high %v9842_v0, %v9842_v0  ;;  %v19995_v5 = vrot.slane %v9843_v19, %v16549_v10  ;;  %23479 = vst [vmem:[#allocation18_spill] sm:$0xff] %v20010_v20  ;;  %v20038_v19 = vcombine.high %v19989_v31, %v19989_v31 }
 0x6b5   :  { %v20068_v16 = vcombine.high %v20010_v20, %v20010_v20 }
 0x6b6   :  { %v9788_v24 = vadd.f32 1e-05, %v9786_v18  ;;  %v19998_v35 = vrot.slane %v9844_v44, %v16549_v10  ;;  %v20046_v63 = vcombine.high %v19995_v5, %v19995_v5 }
 0x6b7   :  { %v9761_v42 = vpop.xlane.xlu1 %9760  ;;  %23486 = vst [vmem:[#allocation77_spill] sm:$0xff] %v20068_v16 }
 0x6b8   :  { %16284 = vrsqrt.f32 %v9788_v24  ;;  %v9771_v23 = vadd.f32 %v9764_v56, %v9761_v42  ;;  %v19976_v56 = vcombine.high %v19957_v49, %v19957_v49  ;;  %v19986_v24 = vrot.slane %v10046_v29, %v16549_v10  ;;  %23475 = vst [vmem:[#allocation85_spill] sm:$0xff] %v19998_v35  ;;  %23481 = vst [vmem:[#allocation70_spill] sm:$0xff] %v20046_v63 }
 0x6b9   :  { %v19992_v42 = vrot.slane %v9842_v0, %v16549_v10  ;;  %v20030_v29 = vcombine.high %v19983_v38, %v19983_v38 }
 0x6ba   :  { %v9772_v6 = vrot.slane %v9771_v23, 4 }
 0x6bb   :  { %23474 = vst [vmem:[#allocation14_spill] sm:$0xff] %v19992_v42  ;;  %v20042_v43 = vcombine.high %v19992_v42, %v19992_v42 }
 0x6bc   :  { %v9773_v32 = vadd.f32 %v9772_v6, %v9771_v23  ;;  %v20001_v23 = vrot.slane %v9987_v30, %v16549_v10  ;;  %v20004_v6 = vrot.slane %v9994_v7, %v16549_v10  ;;  %v20022_v30 = vcombine.high %v19966_v25, %v19966_v25 }
 0x6bd   :  { %v20026_v7 = vcombine.high %v19972_v34, %v19972_v34  ;;  %23480 = vst [vmem:[#allocation74_spill] sm:$0xff] %v20042_v43 }
 0x6be   :  { %v9774_v18 = vrot.slane %v9773_v32, 2  ;;  %23476 = vst [vmem:[#allocation89_spill] sm:$0xff] %v20001_v23  ;;  %23477 = vst [vmem:[#allocation90_spill] sm:$0xff] %v20004_v6  ;;  %v20056_v3 = vcombine.high %v20001_v23, %v20001_v23 }
 0x6c0   :  { %v9775_v8 = vadd.f32 %v9774_v18, %v9773_v32  ;;  %v20034_v32 = vcombine.high %v19986_v24, %v19986_v24  ;;  %v20050_v18 = vcombine.high %v19998_v35, %v19998_v35  ;;  %23483 = vst [vmem:[#allocation72_spill] sm:$0xff] %v20056_v3 }
 0x6c2   :  { %v9776_v0 = vrot.slane %v9775_v8, 1  ;;  %23482 = vst [vmem:[#allocation76_spill] sm:$0xff] %v20050_v18 }
 0x6c4   :  { %v9777_v44 = vadd.f32 %v9776_v0, %v9775_v8  ;;  %v20060_v8 = vcombine.high %v20004_v6, %v20004_v6  ;;  %v20064_v0 = vcombine.high %v20007_v27, %v20007_v27 }
 0x6c5   :  { %v20052_v41 = vpop.eup %16284 }
 0x6c6   :  { %23484 = vst [vmem:[#allocation75_spill] sm:$0xff] %v20060_v8  ;;  %23485 = vst [vmem:[#allocation71_spill] sm:$0xff] %v20064_v0  ;;  %v9785_v14 = vmul.f32 0.00024414063, %v9777_v44  ;;  %v9815_v62 = vmul.f32 %v20052_v41, %v19715_v9  ;;  %v9816_v55 = vmul.f32 %v20052_v41, %v19718_v60  ;;  %v9817_v39 = vmul.f32 %v20052_v41, %v19721_v2 }
 0x6c7   :  { %v9818_v53 = vmul.f32 %v20052_v41, %v19724_v46  ;;  %v9819_v8 = vmul.f32 %v20052_v41, %v19727_v52  ;;  %v9820_v20 = vmul.f32 %v20052_v41, %v19730_v11  ;;  %v9821_v44 = vmul.f32 %v20052_v41, %v19733_v58 }
 0x6c8   :  { %v9787_v16 = vadd.f32 1e-05, %v9785_v14  ;;  %v9822_v9 = vmul.f32 %v20052_v41, %v19736_v61  ;;  %v9967_v60 = vmul.f32 %v19957_v49, %v9815_v62  ;;  %v9968_v2 = vmul.f32 %v19969_v28, %v9816_v55 }
 0x6c9   :  { %v9969_v6 = vmul.f32 %v19976_v56, %v9817_v39  ;;  %v9970_v46 = vmul.f32 %v20014_v57, %v9818_v53  ;;  %v9971_v52 = vmul.f32 %v19960_v50, %v9819_v8  ;;  %v9972_v0 = vmul.f32 %v19972_v34, %v9820_v20 }
 0x6ca   :  { %16286 = vrsqrt.f32 %v9787_v16  ;;  %v9973_v11 = vmul.f32 %v19980_v36, %v9821_v44  ;;  %v9974_v58 = vmul.f32 %v20026_v7, %v9822_v9  ;;  %v10119_v14 = vadd.f32 %v19963_v21, %v9967_v60 }
 0x6cb   :  { %v10120_v61 = vadd.f32 %v19983_v38, %v9968_v2  ;;  %v10121_v62 = vadd.f32 %v20018_v15, %v9969_v6  ;;  %v10122_v55 = vadd.f32 %v20030_v29, %v9970_v46  ;;  %v10123_v39 = vadd.f32 %v19966_v25, %v9971_v52 }
 0x6cc   :  { %v10124_v53 = vadd.f32 %v19986_v24, %v9972_v0  ;;  %v10125_v8 = vadd.f32 %v20022_v30, %v9973_v11  ;;  %v10126_v16 = vadd.f32 %v20034_v32, %v9974_v58  ;;  %vm10151_vm7 = vcmp.gt.f32.partialorder %v10119_v14, 0.0 }
 0x6cd   :  { %vm10152_vm8 = vcmp.gt.f32.partialorder %v10120_v61, 0.0  ;;  %vm10153_vm9 = vcmp.gt.f32.partialorder %v10121_v62, 0.0  ;;  %vm10154_vm10 = vcmp.gt.f32.partialorder %v10122_v55, 0.0  ;;  %vm10155_vm11 = vcmp.gt.f32.partialorder %v10123_v39, 0.0 }
 0x6ce   :  { %vm10156_vm12 = vcmp.gt.f32.partialorder %v10124_v53, 0.0  ;;  %vm10157_vm13 = vcmp.gt.f32.partialorder %v10125_v8, 0.0  ;;  %vm10158_vm14 = vcmp.gt.f32.partialorder %v10126_v16, 0.0  ;;  %v10183_v20 = vmul.f32 0.2, %v10119_v14 }
 0x6cf   :  { %v10184_v6 = vmul.f32 0.2, %v10120_v61  ;;  %v10185_v44 = vmul.f32 0.2, %v10121_v62  ;;  %v10186_v9 = vmul.f32 0.2, %v10122_v55  ;;  %v9807_v60 = vmul.f32 %v20052_v41, %v19755_v12 }
 0x6d0   :  { %v10187_v0 = vmul.f32 0.2, %v10123_v39  ;;  %v10188_v2 = vmul.f32 0.2, %v10124_v53  ;;  %v10189_v46 = vmul.f32 0.2, %v10125_v8  ;;  %v10215_v52 = vsel %vm10151_vm7, %v10119_v14, %v10183_v20 }
 0x6d1   :  { %v10190_v11 = vmul.f32 0.2, %v10126_v16  ;;  %v10216_v58 = vsel %vm10152_vm8, %v10120_v61, %v10184_v6  ;;  %v10217_v3 = vsel %vm10153_vm9, %v10121_v62, %v10185_v44  ;;  %v10218_v27 = vsel %vm10154_vm10, %v10122_v55, %v10186_v9 }
 0x6d2   :  { %v10219_v23 = vsel %vm10155_vm11, %v10123_v39, %v10187_v0  ;;  %v10220_v18 = vsel %vm10156_vm12, %v10124_v53, %v10188_v2  ;;  %v10221_v43 = vsel %vm10157_vm13, %v10125_v8, %v10189_v46  ;;  %v10458_v35 = vcombine.low %v10215_v52, %v10216_v58 }
 0x6d3   :  { %v10222_v12 = vsel %vm10158_vm14, %v10126_v16, %v10190_v11  ;;  %v10459_v42 = vcombine.low %v10217_v3, %v10218_v27  ;;  %v10460_v63 = vcombine.low %v10219_v23, %v10220_v18  ;;  %v9808_v14 = vmul.f32 %v20052_v41, %v19760_v40 }
 0x6d4   :  { %v10461_v20 = vcombine.low %v10221_v43, %v10222_v12  ;;  %v10468_v61 = vrot.slane %v10458_v35, %v16549_v10  ;;  %v9809_v62 = vmul.f32 %v20052_v41, %v19764_v33  ;;  %v9810_v55 = vmul.f32 %v20052_v41, %v19767_v13 }
 0x6d5   :  { %v10475_v39 = vrot.slane %v10459_v42, %v16549_v10  ;;  %v10482_v53 = vrot.slane %v10460_v63, %v16549_v10  ;;  %v9811_v3 = vmul.f32 %v20052_v41, %v19772_v45  ;;  %v20125_v23 = vmul.f32 %v20052_v41, %v19775_v26 }
 0x6d6   :  { %v10489_v40 = vrot.slane %v10461_v20, %v16549_v10  ;;  %v20130_v35 = vmul.f32 %v20052_v41, %v19779_v47  ;;  %v20134_v33 = vmul.f32 %v20052_v41, %v19782_v4  ;;  %v20137_v13 = vmul.f32 %v19989_v31, %v9807_v60 }
 0x6d7   :  { %v20139_v42 = vpop.eup %16286  ;;  %v10491_v45 = vcombine.high %v10468_v61, %v10475_v39  ;;  %v10490_v27 = vcombine.low %v10468_v61, %v10475_v39  ;;  %v20142_v26 = vmul.f32 %v19995_v5, %v9808_v14  ;;  %v20145_v43 = vmul.f32 %v20038_v19, %v9809_v62 }
 0x6d8   :  { %v10493_v63 = vcombine.high %v10482_v53, %v10489_v40  ;;  %v10492_v47 = vcombine.low %v10482_v53, %v10489_v40  ;;  %v9799_v18 = vmul.f32 %v20139_v42, %v19806_v51  ;;  %v9800_v4 = vmul.f32 %v20139_v42, %v19810_v17 }
 0x6d9   :  { %v10507_v41 = vrot.slane %v10491_v45, %v16549_v10  ;;  %v10500_v8 = vrot.slane %v10490_v27, %v16549_v10  ;;  %v9801_v16 = vmul.f32 %v20139_v42, %v19817_v1  ;;  %v9802_v6 = vmul.f32 %v20139_v42, %v19821_v59 }
 0x6da   :  { %v10521_v44 = vrot.slane %v10493_v63, %v16549_v10  ;;  %v10514_v9 = vrot.slane %v10492_v47, %v16549_v10  ;;  %v9803_v51 = vmul.f32 %v20139_v42, %v19826_v22  ;;  %v9804_v17 = vmul.f32 %v20139_v42, %v19830_v48 }
 0x6db   :  { %v9805_v60 = vmul.f32 %v20139_v42, %v19834_v37  ;;  %v9806_v0 = vmul.f32 %v20139_v42, %v19838_v54  ;;  %v9951_v1 = vmul.f32 %v19957_v49, %v9799_v18  ;;  %v9952_v59 = vmul.f32 %v19969_v28, %v9800_v4  ;;  %v23489_v4 = vld [vmem:[#allocation85_spill] sm:$0xff] }
 0x6dc   :  { %v10523_v2 = vcombine.low %v10507_v41, %v10521_v44  ;;  %v10522_v46 = vcombine.low %v10500_v8, %v10514_v9  ;;  %v9953_v52 = vmul.f32 %v19976_v56, %v9801_v16  ;;  %v9954_v11 = vmul.f32 %v20014_v57, %v9802_v6  ;;  %v23490_v16 = vld [vmem:[#allocation74_spill] sm:$0xff]  ;;  %v23491_v44 = vld [vmem:[#allocation76_spill] sm:$0xff] }
 0x6dd   :  { %v9955_v22 = vmul.f32 %v19960_v50, %v9803_v51  ;;  %v9956_v48 = vmul.f32 %v19972_v34, %v9804_v17  ;;  %v9957_v58 = vmul.f32 %v19980_v36, %v9805_v60  ;;  %v9958_v37 = vmul.f32 %v20026_v7, %v9806_v0  ;;  %v23492_v51 = vld [vmem:[#allocation89_spill] sm:$0xff] }
 0x6de   :  { %10538 = vrot.lane.b32.xlu0 %v10523_v2, %s16413_s7  ;;  %10536 = vrot.lane.b32.xlu1 %v10522_v46, %s16413_s7  ;;  %v10103_v54 = vadd.f32 %v19963_v21, %v9951_v1  ;;  %v10104_v49 = vadd.f32 %v19983_v38, %v9952_v59  ;;  %v10105_v28 = vadd.f32 %v20018_v15, %v9953_v52  ;;  %v23487_v15 = vld [vmem:[#allocation70_spill] sm:$0xff]  ;;  %v23493_v59 = vld [vmem:[#allocation91_spill] sm:$0xff]  ;;  %v23494_v2 = vld [vmem:[#allocation72_spill] sm:$0xff] }
 0x6df   :  { %v10106_v56 = vadd.f32 %v20030_v29, %v9954_v11  ;;  %v10107_v50 = vadd.f32 %v19966_v25, %v9955_v22  ;;  %v10108_v34 = vadd.f32 %v19986_v24, %v9956_v48  ;;  %v10109_v36 = vadd.f32 %v20022_v30, %v9957_v58  ;;  %v23488_v24 = vld [vmem:[#allocation14_spill] sm:$0xff]  ;;  %v23495_v52 = vld [vmem:[#allocation71_spill] sm:$0xff] }
 0x6e0   :  { %v10110_v57 = vadd.f32 %v20034_v32, %v9958_v37  ;;  %vm10135_vm15 = vcmp.gt.f32.partialorder %v10103_v54, 0.0  ;;  %vm10136_vm0 = vcmp.gt.f32.partialorder %v10104_v49, 0.0  ;;  %vm10137_vm1 = vcmp.gt.f32.partialorder %v10105_v28, 0.0  ;;  %v23496_v11 = vld [vmem:[#allocation90_spill] sm:$0xff] }
 0x6e1   :  { %vm10138_vm3 = vcmp.gt.f32.partialorder %v10106_v56, 0.0  ;;  %vm10139_vm4 = vcmp.gt.f32.partialorder %v10107_v50, 0.0  ;;  %vm10140_vm7 = vcmp.gt.f32.partialorder %v10108_v34, 0.0  ;;  %vm10141_vm8 = vcmp.gt.f32.partialorder %v10109_v36, 0.0 }
 0x6e2   :  { %vm10142_vm9 = vcmp.gt.f32.partialorder %v10110_v57, 0.0  ;;  %v10167_v21 = vmul.f32 0.2, %v10103_v54  ;;  %v10168_v38 = vmul.f32 0.2, %v10104_v49  ;;  %v9962_v7 = vmul.f32 %v23487_v15, %v9810_v55 }
 0x6e3   :  { %v10169_v29 = vmul.f32 0.2, %v10105_v28  ;;  %v10170_v25 = vmul.f32 0.2, %v10106_v56  ;;  %v10171_v12 = vmul.f32 0.2, %v10107_v50  ;;  %v9963_v14 = vmul.f32 %v23488_v24, %v9811_v3 }
 0x6e4   :  { %v10172_v30 = vmul.f32 0.2, %v10108_v34  ;;  %v10173_v20 = vmul.f32 0.2, %v10109_v36  ;;  %v10174_v32 = vmul.f32 0.2, %v10110_v57  ;;  %v10199_v61 = vsel %vm10135_vm15, %v10103_v54, %v10167_v21 }
 0x6e5   :  { %v10200_v62 = vsel %vm10136_vm0, %v10104_v49, %v10168_v38  ;;  %v10201_v39 = vsel %vm10137_vm1, %v10105_v28, %v10169_v29  ;;  %v10202_v53 = vsel %vm10138_vm3, %v10106_v56, %v10170_v25  ;;  %v10203_v40 = vsel %vm10139_vm4, %v10107_v50, %v10171_v12  ;;  %v23498_v49 = vld [vmem:[#allocation75_spill] sm:$0xff]  ;;  %v23499_v56 = vld [vmem:[#allocation77_spill] sm:$0xff] }
 0x6e6   :  { %v10204_v55 = vsel %vm10140_vm7, %v10108_v34, %v10172_v30  ;;  %v10205_v45 = vsel %vm10141_vm8, %v10109_v36, %v10173_v20  ;;  %v10206_v27 = vsel %vm10142_vm9, %v10110_v57, %v10174_v32  ;;  %v10326_v3 = vcombine.low %v10199_v61, %v10200_v62  ;;  %v23500_v25 = vld [vmem:[#allocation29_spill] sm:$0xff] }
 0x6e7   :  { %v10327_v63 = vcombine.low %v10201_v39, %v10202_v53  ;;  %v10328_v47 = vcombine.low %v10203_v40, %v10204_v55  ;;  %v10329_v18 = vcombine.low %v10205_v45, %v10206_v27  ;;  %v9964_v41 = vmul.f32 %v23489_v4, %v20125_v23  ;;  %v23501_v32 = vld [vmem:[#allocation33_spill] sm:$0xff] }
 0x6e8   :  { %v10336_v8 = vrot.slane %v10326_v3, %v16549_v10  ;;  %v9965_v6 = vmul.f32 %v23490_v16, %v20130_v35  ;;  %v9966_v9 = vmul.f32 %v23491_v44, %v20134_v33  ;;  %v10111_v17 = vadd.f32 %v23492_v51, %v20137_v13  ;;  %v23497_v33 = vld [vmem:[#allocation18_spill] sm:$0xff] }
 0x6e9   :  { %v10343_v60 = vrot.slane %v10327_v63, %v16549_v10  ;;  %v10350_v0 = vrot.slane %v10328_v47, %v16549_v10  ;;  %v10357_v1 = vrot.slane %v10329_v18, %v16549_v10  ;;  %v10112_v23 = vadd.f32 %v23493_v59, %v20142_v26 }
 0x6ea   :  { %v10113_v46 = vadd.f32 %v23494_v2, %v20145_v43  ;;  %v10114_v35 = vadd.f32 %v23495_v52, %v9962_v7  ;;  %v10115_v22 = vadd.f32 %v23496_v11, %v9963_v14  ;;  %v10116_v48 = vadd.f32 %v23497_v33, %v9964_v41 }
 0x6eb   :  { %v10359_v58 = vcombine.high %v10336_v8, %v10343_v60  ;;  %v10361_v13 = vcombine.high %v10350_v0, %v10357_v1  ;;  %v10358_v37 = vcombine.low %v10336_v8, %v10343_v60  ;;  %v10360_v54 = vcombine.low %v10350_v0, %v10357_v1  ;;  %v23503_v60 = vld [vmem:[#allocation82_spill] sm:$0xff] }
 0x6ec   :  { %v10117_v28 = vadd.f32 %v23498_v49, %v9965_v6  ;;  %v10118_v50 = vadd.f32 %v23499_v56, %v9966_v9  ;;  %vm10143_vm10 = vcmp.gt.f32.partialorder %v10111_v17, 0.0  ;;  %vm10144_vm11 = vcmp.gt.f32.partialorder %v10112_v23, 0.0  ;;  %v23502_v9 = vld [vmem:[#allocation13_spill] sm:$0xff] }
 0x6ed   :  { %v10375_v26 = vrot.slane %v10359_v58, %v16549_v10  ;;  %v10389_v43 = vrot.slane %v10361_v13, %v16549_v10  ;;  %v10368_v34 = vrot.slane %v10358_v37, %v16549_v10  ;;  %v10382_v36 = vrot.slane %v10360_v54, %v16549_v10  ;;  %v23506_v37 = vld [vmem:[#allocation87_spill] sm:$0xff] }
 0x6ee   :  { %vm10145_vm12 = vcmp.gt.f32.partialorder %v10113_v46, 0.0  ;;  %vm10146_vm13 = vcmp.gt.f32.partialorder %v10114_v35, 0.0  ;;  %vm10147_vm14 = vcmp.gt.f32.partialorder %v10115_v22, 0.0  ;;  %vm10148_vm15 = vcmp.gt.f32.partialorder %v10116_v48, 0.0 }
 0x6ef   :  { %v10391_v57 = vcombine.low %v10375_v26, %v10389_v43  ;;  %v10390_v21 = vcombine.low %v10368_v34, %v10382_v36  ;;  %vm10149_vm0 = vcmp.gt.f32.partialorder %v10117_v28, 0.0  ;;  %vm10150_vm1 = vcmp.gt.f32.partialorder %v10118_v50, 0.0 }
 0x6f0   :  { %v10175_v38 = vmul.f32 0.2, %v10111_v17  ;;  %v10176_v7 = vmul.f32 0.2, %v10112_v23  ;;  %v10177_v29 = vmul.f32 0.2, %v10113_v46  ;;  %v9791_v12 = vmul.f32 %v20139_v42, %v23500_v25 }
 0x6f1   :  { %10530 = vrot.lane.b32.xlu1 %v10391_v57, %s16413_s7  ;;  %10528 = vrot.lane.b32.xlu0 %v10390_v21, %s16413_s7  ;;  %v10178_v14 = vmul.f32 0.2, %v10114_v35  ;;  %v10179_v30 = vmul.f32 0.2, %v10115_v22  ;;  %v10180_v20 = vmul.f32 0.2, %v10116_v48  ;;  %v9792_v61 = vmul.f32 %v20139_v42, %v23501_v32 }
 0x6f2   :  { %v10181_v62 = vmul.f32 0.2, %v10117_v28  ;;  %v10182_v39 = vmul.f32 0.2, %v10118_v50  ;;  %v10207_v53 = vsel %vm10143_vm10, %v10111_v17, %v10175_v38  ;;  %v10208_v40 = vsel %vm10144_vm11, %v10112_v23, %v10176_v7 }
 0x6f3   :  { %v10209_v55 = vsel %vm10145_vm12, %v10113_v46, %v10177_v29  ;;  %v10210_v45 = vsel %vm10146_vm13, %v10114_v35, %v10178_v14  ;;  %v10211_v27 = vsel %vm10147_vm14, %v10115_v22, %v10179_v30  ;;  %v10212_v3 = vsel %vm10148_vm15, %v10116_v48, %v10180_v20  ;;  %v23504_v46 = vld [vmem:[#allocation86_spill] sm:$0xff]  ;;  %v23505_v22 = vld [vmem:[#allocation83_spill] sm:$0xff]  ;;  %vm20291_vm13 = vmneg %vm7032_vm6 }
 0x6f4   :  { %v10213_v63 = vsel %vm10149_vm0, %v10117_v28, %v10181_v62  ;;  %v10214_v47 = vsel %vm10150_vm1, %v10118_v50, %v10182_v39  ;;  %v10392_v18 = vcombine.low %v10207_v53, %v10208_v40  ;;  %v10393_v41 = vcombine.low %v10209_v55, %v10210_v45  ;;  %v23507_v28 = vld [vmem:[#allocation84_spill] sm:$0xff] }
 0x6f5   :  { %v10394_v8 = vcombine.low %v10211_v27, %v10212_v3  ;;  %v10395_v6 = vcombine.low %v10213_v63, %v10214_v47  ;;  %v9793_v17 = vmul.f32 %v20139_v42, %v23502_v9  ;;  %v9794_v0 = vmul.f32 %v20139_v42, %v23503_v60 }
 0x6f6   :  { %v10402_v1 = vrot.slane %v10392_v18, %v16549_v10  ;;  %v10409_v23 = vrot.slane %v10393_v41, %v16549_v10  ;;  %v9795_v35 = vmul.f32 %v20139_v42, %v23504_v46  ;;  %v9796_v48 = vmul.f32 %v20139_v42, %v23505_v22 }
 0x6f7   :  { %v10416_v58 = vrot.slane %v10394_v8, %v16549_v10  ;;  %v10423_v13 = vrot.slane %v10395_v6, %v16549_v10  ;;  %v9797_v54 = vmul.f32 %v20139_v42, %v23506_v37  ;;  %v9798_v50 = vmul.f32 %v20139_v42, %v23507_v28 }
 0x6f8   :  { %v10424_v26 = vcombine.low %v10402_v1, %v10409_v23  ;;  %v9943_v43 = vmul.f32 %v19989_v31, %v9791_v12  ;;  %v9944_v34 = vmul.f32 %v19995_v5, %v9792_v61  ;;  %v9945_v36 = vmul.f32 %v20038_v19, %v9793_v17 }
 0x6f9   :  { %v10426_v57 = vcombine.low %v10416_v58, %v10423_v13  ;;  %v9946_v21 = vmul.f32 %v23487_v15, %v9794_v0  ;;  %v9947_v38 = vmul.f32 %v23488_v24, %v9795_v35  ;;  %v9948_v7 = vmul.f32 %v23489_v4, %v9796_v48 }
 0x6fa   :  { %v10434_v29 = vrot.slane %v10424_v26, %v16549_v10  ;;  %v9949_v25 = vmul.f32 %v23490_v16, %v9797_v54  ;;  %v9950_v42 = vmul.f32 %v23491_v44, %v9798_v50  ;;  %v10095_v14 = vadd.f32 %v23492_v51, %v9943_v43  ;;  %v11178_v50 = vld [vmem:[%s22872_s10 + $0x308] sm:$0xff] }
 0x6fb   :  { %v10448_v31 = vrot.slane %v10426_v57, %v16549_v10  ;;  %v10096_v5 = vadd.f32 %v23493_v59, %v9944_v34  ;;  %v10097_v19 = vadd.f32 %v23494_v2, %v9945_v36  ;;  %v10098_v15 = vadd.f32 %v23495_v52, %v9946_v21 }
 0x6fc   :  { %v10099_v24 = vadd.f32 %v23496_v11, %v9947_v38  ;;  %v10100_v4 = vadd.f32 %v23497_v33, %v9948_v7  ;;  %v10101_v12 = vadd.f32 %v23498_v49, %v9949_v25  ;;  %v10102_v16 = vadd.f32 %v23499_v56, %v9950_v42 }
 0x6fd   :  { %v10456_v30 = vcombine.low %v10434_v29, %v10448_v31  ;;  %vm10127_vm3 = vcmp.gt.f32.partialorder %v10095_v14, 0.0  ;;  %vm10128_vm4 = vcmp.gt.f32.partialorder %v10096_v5, 0.0  ;;  %vm10129_vm7 = vcmp.gt.f32.partialorder %v10097_v19, 0.0  ;;  %v10223_v29 = vld [vmem:[%s22871_s9] sm:$0xff]  ;;  %v11142_v31 = vld [vmem:[%s22872_s10 + $0x1e8] sm:$0xff] }
 0x6fe   :  { %vm10130_vm8 = vcmp.gt.f32.partialorder %v10098_v15, 0.0  ;;  %vm10131_vm9 = vcmp.gt.f32.partialorder %v10099_v24, 0.0  ;;  %vm10132_vm10 = vcmp.gt.f32.partialorder %v10100_v4, 0.0  ;;  %vm10133_vm11 = vcmp.gt.f32.partialorder %v10101_v12, 0.0 }
 0x6ff   :  { %10532 = vrot.lane.b32.xlu1 %v10456_v30, %s16413_s7  ;;  %vm10134_vm12 = vcmp.gt.f32.partialorder %v10102_v16, 0.0  ;;  %v10159_v44 = vmul.f32 0.2, %v10095_v14  ;;  %v10160_v51 = vmul.f32 0.2, %v10096_v5  ;;  %v10425_v59 = vcombine.high %v10402_v1, %v10409_v23  ;;  %v11129_v30 = vld [vmem:[%s22872_s10 + $0x180] sm:$0xff] }
 0x700   :  { %v10161_v2 = vmul.f32 0.2, %v10097_v19  ;;  %v10162_v52 = vmul.f32 0.2, %v10098_v15  ;;  %v10163_v11 = vmul.f32 0.2, %v10099_v24  ;;  %v10427_v33 = vcombine.high %v10416_v58, %v10423_v13 }
 0x701   :  { %v10164_v49 = vmul.f32 0.2, %v10100_v4  ;;  %v10165_v56 = vmul.f32 0.2, %v10101_v12  ;;  %v10166_v20 = vmul.f32 0.2, %v10102_v16  ;;  %v10191_v32 = vsel %vm10127_vm3, %v10095_v14, %v10159_v44 }
 0x702   :  { %v10192_v61 = vsel %vm10128_vm4, %v10096_v5, %v10160_v51  ;;  %v10193_v62 = vsel %vm10129_vm7, %v10097_v19, %v10161_v2  ;;  %v10194_v39 = vsel %vm10130_vm8, %v10098_v15, %v10162_v52  ;;  %v10195_v53 = vsel %vm10131_vm9, %v10099_v24, %v10163_v11  ;;  %v11141_v5 = vld [vmem:[%s22872_s10 + $0x1e0] sm:$0xff]  ;;  %v11138_v19 = vld [vmem:[%s22872_s10 + $0x1c8] sm:$0xff]  ;;  %v10225_v44 = vld [vmem:[%s22871_s9 + $0x10] sm:$0xff] }
 0x703   :  { %v10196_v40 = vsel %vm10132_vm10, %v10100_v4, %v10164_v49  ;;  %v10197_v55 = vsel %vm10133_vm11, %v10101_v12, %v10165_v56  ;;  %v10198_v45 = vsel %vm10134_vm12, %v10102_v16, %v10166_v20  ;;  %v10260_v27 = vcombine.low %v10191_v32, %v10192_v61  ;;  %v11137_v15 = vld [vmem:[%s22872_s10 + $0x1c0] sm:$0xff]  ;;  %v10224_v24 = vld [vmem:[%s22871_s9 + $0x8] sm:$0xff]  ;;  %v10226_v11 = vld [vmem:[%s22871_s9 + $0x18] sm:$0xff] }
 0x704   :  { %v10261_v3 = vcombine.low %v10193_v62, %v10194_v39  ;;  %v10262_v63 = vcombine.low %v10195_v53, %v10196_v40  ;;  %v10263_v47 = vcombine.low %v10197_v55, %v10198_v45  ;;  %v10441_v18 = vrot.slane %v10425_v59, %v16549_v10  ;;  %v11134_v4 = vld [vmem:[%s22872_s10 + $0x1a8] sm:$0xff]  ;;  %v11133_v12 = vld [vmem:[%s22872_s10 + $0x1a0] sm:$0xff] }
 0x705   :  { %v10270_v41 = vrot.slane %v10260_v27, %v16549_v10  ;;  %v10455_v8 = vrot.slane %v10427_v33, %v16549_v10  ;;  %v23510_v43 = vmov 0.0   ;;  %vm10564_vm14 = vcmask 261120   ;;  %v11130_v16 = vld [vmem:[%s22872_s10 + $0x188] sm:$0xff]  ;;  %v11125_v59 = vld [vmem:[%s22872_s10 + $0x160] sm:$0xff] }
 0x706   :  { %v10277_v6 = vrot.slane %v10261_v3, %v16549_v10  ;;  %v10284_v9 = vrot.slane %v10262_v63, %v16549_v10  ;;  %v10291_v17 = vrot.slane %v10263_v47, %v16549_v10  ;;  %v11126_v51 = vld [vmem:[%s22872_s10 + $0x168] sm:$0xff]  ;;  %v11121_v52 = vld [vmem:[%s22872_s10 + $0x140] sm:$0xff] }
 0x707   :  { %v10457_v60 = vcombine.low %v10441_v18, %v10455_v8  ;;  %v11122_v2 = vld [vmem:[%s22872_s10 + $0x148] sm:$0xff]  ;;  %v11117_v49 = vld [vmem:[%s22872_s10 + $0x120] sm:$0xff] }
 0x708   :  { %v10292_v0 = vcombine.low %v10270_v41, %v10277_v6  ;;  %v10294_v1 = vcombine.low %v10284_v9, %v10291_v17  ;;  %v10293_v23 = vcombine.high %v10270_v41, %v10277_v6  ;;  %v10295_v46 = vcombine.high %v10284_v9, %v10291_v17  ;;  %v11118_v33 = vld [vmem:[%s22872_s10 + $0x128] sm:$0xff]  ;;  %v11113_v20 = vld [vmem:[%s22872_s10 + $0x100] sm:$0xff] }
 0x709   :  { %10534 = vrot.lane.b32.xlu1 %v10457_v60, %s16413_s7  ;;  %v11114_v56 = vld [vmem:[%s22872_s10 + $0x108] sm:$0xff]  ;;  %v10227_v32 = vld [vmem:[%s22871_s9 + $0x20] sm:$0xf] }
 0x70a   :  { %v10302_v35 = vrot.slane %v10292_v0, %v16549_v10  ;;  %v10316_v22 = vrot.slane %v10294_v1, %v16549_v10  ;;  %v10309_v48 = vrot.slane %v10293_v23, %v16549_v10  ;;  %v10323_v58 = vrot.slane %v10295_v46, %v16549_v10  ;;  %v11110_v61 = vld [vmem:[%s22872_s10 + $0xe8] sm:$0xff]  ;;  %v11109_v62 = vld [vmem:[%s22872_s10 + $0xe0] sm:$0xff] }
 0x70b   :  { %v11106_v39 = vld [vmem:[%s22872_s10 + $0xc8] sm:$0xff]  ;;  %v11105_v53 = vld [vmem:[%s22872_s10 + $0xc0] sm:$0xff] }
 0x70c   :  { %v10324_v13 = vcombine.low %v10302_v35, %v10316_v22  ;;  %v10325_v37 = vcombine.low %v10309_v48, %v10323_v58  ;;  %v11102_v40 = vld [vmem:[%s22872_s10 + $0xa8] sm:$0xff]  ;;  %v11101_v55 = vld [vmem:[%s22872_s10 + $0xa0] sm:$0xff] }
 0x70d   :  { %v11098_v45 = vld [vmem:[%s22872_s10 + $0x88] sm:$0xff]  ;;  %v11097_v27 = vld [vmem:[%s22872_s10 + $0x80] sm:$0xff] }
 0x70e   :  { %10524 = vrot.lane.b32.xlu0 %v10324_v13, %s16413_s7  ;;  %10526 = vrot.lane.b32.xlu1 %v10325_v37, %s16413_s7  ;;  %v11094_v3 = vld [vmem:[%s22872_s10 + $0x68] sm:$0xff]  ;;  %v11093_v63 = vld [vmem:[%s22872_s10 + $0x60] sm:$0xff] }
 0x70f   :  { %v11090_v47 = vld [vmem:[%s22872_s10 + $0x48] sm:$0xff]  ;;  %v11089_v18 = vld [vmem:[%s22872_s10 + $0x40] sm:$0xff] }
 0x710   :  { %v11086_v41 = vld [vmem:[%s22872_s10 + $0x28] sm:$0xff]  ;;  %v11085_v8 = vld [vmem:[%s22872_s10 + $0x20] sm:$0xff] }
 0x711   :  { %v11082_v6 = vld [vmem:[%s22872_s10 + $0x8] sm:$0xff]  ;;  %v11081_v9 = vld [vmem:[%s22872_s10] sm:$0xff] }
 0x712   :  { %v11206_v17 = vld [vmem:[%s22872_s10 + $0x3e8] sm:$0xff]  ;;  %v11205_v60 = vld [vmem:[%s22872_s10 + $0x3e0] sm:$0xff] }
 0x713   :  { %v11202_v0 = vld [vmem:[%s22872_s10 + $0x3c8] sm:$0xff]  ;;  %v11201_v1 = vld [vmem:[%s22872_s10 + $0x3c0] sm:$0xff] }
 0x714   :  { %v11198_v23 = vld [vmem:[%s22872_s10 + $0x3a8] sm:$0xff]  ;;  %v11197_v46 = vld [vmem:[%s22872_s10 + $0x3a0] sm:$0xff] }
 0x715   :  { %v11194_v35 = vld [vmem:[%s22872_s10 + $0x388] sm:$0xff]  ;;  %v11193_v22 = vld [vmem:[%s22872_s10 + $0x380] sm:$0xff] }
 0x716   :  { %v11190_v48 = vld [vmem:[%s22872_s10 + $0x368] sm:$0xff]  ;;  %v11189_v58 = vld [vmem:[%s22872_s10 + $0x360] sm:$0xff] }
 0x717   :  { %v11186_v13 = vld [vmem:[%s22872_s10 + $0x348] sm:$0xff]  ;;  %v11185_v37 = vld [vmem:[%s22872_s10 + $0x340] sm:$0xff] }
 0x750   :  { %v10539_v54 = vpop.permute.xlu0 %10538  ;;  %v10537_v28 = vpop.permute.xlu1 %10536 }
 0x751   :  { %16167 = vmatpush3.msk.msra.mxu1 %vm7032_vm6, %v10539_v54  ;;  %v10543_v26 = vsel %vm7032_vm6, %v10537_v28, %v10539_v54  ;;  %v11182_v54 = vld [vmem:[%s22872_s10 + $0x328] sm:$0xff] }
 0x752   :  { %10604 = vmatprep.subr.mxu0 %v10543_v26  ;;  %16168 = vmatprep.subr.mxu1 %v23510_v43  ;;  %v11177_v26 = vld [vmem:[%s22872_s10 + $0x300] sm:$0xff] }
 0x753   :  { %16030 = vmatpush1.msk.msra.mxu0 %vm20291_vm13, %v10537_v28  ;;  %v11181_v28 = vld [vmem:[%s22872_s10 + $0x320] sm:$0xff] }
 0x763   :  { %v10531_v34 = vpop.permute.xlu1 %10530  ;;  %v10529_v57 = vpop.permute.xlu0 %10528 }
 0x764   :  { %v10541_v7 = vsel %vm7032_vm6, %v10529_v57, %v10531_v34 }
 0x771   :  { %v10533_v36 = vpop.permute.xlu1 %10532 }
 0x77b   :  { %v10535_v21 = vpop.permute.xlu1 %10534 }
 0x77c   :  { %16169 = vmatpush3.msk.msra.mxu1 %vm7032_vm6, %v10535_v21  ;;  %v10542_v38 = vsel %vm7032_vm6, %v10533_v36, %v10535_v21  ;;  %v11169_v21 = vld [vmem:[%s22872_s10 + $0x2c0] sm:$0xff] }
 0x77d   :  { %10606 = vmatprep.subr.mxu0 %v10542_v38  ;;  %16170 = vmatprep.subr.mxu1 %v23510_v43  ;;  %v11166_v38 = vld [vmem:[%s22872_s10 + $0x2a8] sm:$0xff] }
 0x77e   :  { %16032 = vmatpush1.msk.msra.mxu0 %vm20291_vm13, %v10533_v36  ;;  %16171 = vmatpush3.msk.msra.mxu1 %vm7032_vm6, %v10531_v34  ;;  %v11174_v34 = vld [vmem:[%s22872_s10 + $0x2e8] sm:$0xff]  ;;  %v11173_v36 = vld [vmem:[%s22872_s10 + $0x2e0] sm:$0xff] }
 0x77f   :  { %10608 = vmatprep.subr.mxu0 %v10541_v7  ;;  %16172 = vmatprep.subr.mxu1 %v23510_v43  ;;  %v11165_v7 = vld [vmem:[%s22872_s10 + $0x2a0] sm:$0xff] }
 0x780   :  { %v10525_v25 = vpop.permute.xlu0 %10524  ;;  %v10527_v42 = vpop.permute.xlu1 %10526  ;;  %16034 = vmatpush1.msk.msra.mxu0 %vm20291_vm13, %v10529_v57  ;;  %v11170_v57 = vld [vmem:[%s22872_s10 + $0x2c8] sm:$0xff] }
 0x781   :  { %16173 = vmatpush3.msk.msra.mxu1 %vm7032_vm6, %v10527_v42  ;;  %v10540_v14 = vsel %vm7032_vm6, %v10525_v25, %v10527_v42  ;;  %v11221_v42 = vld [vmem:[%s22872_s10 + $0x460] sm:$0xff] }
 0x782   :  { %10610 = vmatprep.subr.mxu0 %v10540_v14  ;;  %16175 = vmatmul.mubr.msk.f32.vlgmr.msra.gmra.mxu1 %vm10564_vm14, %v10223_v29  ;;  %v11161_v14 = vld [vmem:[%s22872_s10 + $0x280] sm:$0xff] }
 0x783   :  { %16036 = vmatpush1.msk.msra.mxu0 %vm20291_vm13, %v10525_v25  ;;  %16177 = vmatprep.mubr.msk.f32.mxu1 %vm16412_vm2, %v23510_v43  ;;  %v11162_v25 = vld [vmem:[%s22872_s10 + $0x288] sm:$0xff] }
 0x784   :  { %16037 = vmatmul.mubr.msk.f32.vlgmr.msra.gmra.mxu0 %vm10564_vm14, %v10223_v29  ;;  %11539 = vmatprep.subr.mxu0 %v11142_v31  ;;  %v11222_v29 = vld [vmem:[%s22872_s10 + $0x468] sm:$0xff] }
 0x785   :  { %10650 = vmatprep.mubr.f32.mxu0 %v23510_v43  ;;  %11540 = vmatpush1.msra.mxu0 %v11141_v5  ;;  %v11218_v31 = vld [vmem:[%s22872_s10 + $0x448] sm:$0xff]  ;;  %v11217_v5 = vld [vmem:[%s22872_s10 + $0x440] sm:$0xff] }
 0x786   :  { %16178 = vmatmul.mubr.msk.f32.gmra.mxu1 %vm10564_vm14, %v10224_v24  ;;  %11541 = vmatprep.subr.mxu0 %v11138_v19  ;;  %v11158_v19 = vld [vmem:[%s22872_s10 + $0x268] sm:$0xff] }
 0x787   :  { %16180 = vmatprep.mubr.msk.f32.mxu1 %vm16412_vm2, %v23510_v43  ;;  %11542 = vmatpush1.msra.mxu0 %v11137_v15  ;;  %v11157_v15 = vld [vmem:[%s22872_s10 + $0x260] sm:$0xff] }
 0x788   :  { %16038 = vmatmul.mubr.msk.f32.gmra.mxu0 %vm10564_vm14, %v10224_v24  ;;  %11543 = vmatprep.subr.mxu0 %v11134_v4  ;;  %v11214_v24 = vld [vmem:[%s22872_s10 + $0x428] sm:$0xff] }
 0x789   :  { %10656 = vmatprep.mubr.f32.mxu0 %v23510_v43  ;;  %11544 = vmatpush1.msra.mxu0 %v11133_v12  ;;  %v11154_v4 = vld [vmem:[%s22872_s10 + $0x248] sm:$0xff]  ;;  %v11213_v12 = vld [vmem:[%s22872_s10 + $0x420] sm:$0xff] }
 0x78a   :  { %16181 = vmatmul.mubr.msk.f32.gmra.mxu1 %vm10564_vm14, %v10225_v44  ;;  %11545 = vmatprep.subr.mxu0 %v11130_v16  ;;  %v11153_v16 = vld [vmem:[%s22872_s10 + $0x240] sm:$0xff] }
 0x78b   :  { %16183 = vmatprep.mubr.msk.f32.mxu1 %vm16412_vm2, %v23510_v43  ;;  %11546 = vmatpush1.msra.mxu0 %v11129_v30  ;;  %v11210_v30 = vld [vmem:[%s22872_s10 + $0x408] sm:$0xff] }
 0x78c   :  { %16039 = vmatmul.mubr.msk.f32.gmra.mxu0 %vm10564_vm14, %v10225_v44  ;;  %11547 = vmatprep.subr.mxu0 %v11126_v51  ;;  %v11150_v44 = vld [vmem:[%s22872_s10 + $0x228] sm:$0xff]  ;;  %v11209_v51 = vld [vmem:[%s22872_s10 + $0x400] sm:$0xff] }
 0x78d   :  { %10662 = vmatprep.mubr.f32.mxu0 %v23510_v43  ;;  %11548 = vmatpush1.msra.mxu0 %v11125_v59  ;;  %v11149_v59 = vld [vmem:[%s22872_s10 + $0x220] sm:$0xff] }
 0x78e   :  { %16184 = vmatmul.mubr.msk.f32.gmra.mxu1 %vm10564_vm14, %v10226_v11  ;;  %11549 = vmatprep.subr.mxu0 %v11122_v2  ;;  %v11144_v2 = vld [vmem:[%s22872_s10 + $0x1f8] sm:$0xff] }
 0x78f   :  { %16186 = vmatprep.mubr.msk.f32.mxu1 %vm16412_vm2, %v23510_v43  ;;  %11550 = vmatpush1.msra.mxu0 %v11121_v52  ;;  %v11146_v52 = vld [vmem:[%s22872_s10 + $0x208] sm:$0xff] }
 0x790   :  { %16040 = vmatmul.mubr.msk.f32.gmra.mxu0 %vm10564_vm14, %v10226_v11  ;;  %11551 = vmatprep.subr.mxu0 %v11118_v33  ;;  %v11145_v11 = vld [vmem:[%s22872_s10 + $0x200] sm:$0xff]  ;;  %v11224_v33 = vld [vmem:[%s22872_s10 + $0x478] sm:$0xff] }
 0x791   :  { %10668 = vmatprep.mubr.f32.mxu0 %v23510_v43  ;;  %11552 = vmatpush1.msra.mxu0 %v11117_v49 }
 0x792   :  { %16187 = vmatmul.mubr.msk.f32.gmra.mxu1 %vm10564_vm14, %v10227_v32  ;;  %11553 = vmatprep.subr.mxu0 %v11114_v56 }
 0x793   :  { %11554 = vmatpush1.msra.mxu0 %v11113_v20  ;;  %11686 = vmatprep.mubr.f32.mxu1 %v23510_v43 }
 0x794   :  { %16041 = vmatmul.mubr.msk.f32.gmra.mxu0 %vm10564_vm14, %v10227_v32  ;;  %11555 = vmatprep.subr.mxu0 %v11110_v61 }
 0x795   :  { %11556 = vmatpush1.msra.mxu0 %v11109_v62  ;;  %11646 = vmatprep.subr.mxu1 %v11222_v29 }
 0x796   :  { %11557 = vmatprep.subr.mxu0 %v11106_v39  ;;  %11647 = vmatpush1.msra.mxu1 %v11221_v42 }
 0x797   :  { %11558 = vmatpush1.msra.mxu0 %v11105_v53  ;;  %11648 = vmatprep.subr.mxu1 %v11218_v31 }
 0x798   :  { %11559 = vmatprep.subr.mxu0 %v11102_v40  ;;  %11649 = vmatpush1.msra.mxu1 %v11217_v5 }
 0x799   :  { %11560 = vmatpush1.msra.mxu0 %v11101_v55  ;;  %11650 = vmatprep.subr.mxu1 %v11214_v24 }
 0x79a   :  { %11561 = vmatprep.subr.mxu0 %v11098_v45  ;;  %11651 = vmatpush1.msra.mxu1 %v11213_v12 }
 0x79b   :  { %11562 = vmatpush1.msra.mxu0 %v11097_v27  ;;  %11652 = vmatprep.subr.mxu1 %v11210_v30 }
 0x79c   :  { %11563 = vmatprep.subr.mxu0 %v11094_v3  ;;  %11653 = vmatpush1.msra.mxu1 %v11209_v51 }
 0x79d   :  { %11564 = vmatpush1.msra.mxu0 %v11093_v63  ;;  %11705 = vmatprep.subr.mxu1 %v11144_v2 }
 0x79e   :  { %11565 = vmatprep.subr.mxu0 %v11090_v47 }
 0x79f   :  { %11566 = vmatpush1.msra.mxu0 %v11089_v18 }
 0x7a0   :  { %11567 = vmatprep.subr.mxu0 %v11086_v41 }
 0x7a1   :  { %11568 = vmatpush1.msra.mxu0 %v11085_v8 }
 0x7a2   :  { %11569 = vmatprep.subr.mxu0 %v11082_v6 }
 0x7a3   :  { %11570 = vmatpush1.msra.mxu0 %v11081_v9 }
 0x7a4   :  { %11571 = vmatprep.subr.mxu0 %v11206_v17 }
 0x7a5   :  { %11572 = vmatpush2.msra.mxu0 %v11205_v60 }
 0x7a6   :  { %11573 = vmatprep.subr.mxu0 %v11202_v0 }
 0x7a7   :  { %11574 = vmatpush2.msra.mxu0 %v11201_v1 }
 0x7a8   :  { %11575 = vmatprep.subr.mxu0 %v11198_v23 }
 0x7a9   :  { %11576 = vmatpush2.msra.mxu0 %v11197_v46 }
 0x7aa   :  { %11577 = vmatprep.subr.mxu0 %v11194_v35 }
 0x7ab   :  { %11578 = vmatpush2.msra.mxu0 %v11193_v22 }
 0x7ac   :  { %11579 = vmatprep.subr.mxu0 %v11190_v48 }
 0x7ad   :  { %11580 = vmatpush2.msra.mxu0 %v11189_v58 }
 0x7ae   :  { %11581 = vmatprep.subr.mxu0 %v11186_v13 }
 0x7af   :  { %11582 = vmatpush2.msra.mxu0 %v11185_v37 }
 0x7b0   :  { %11583 = vmatprep.subr.mxu0 %v11182_v54 }
 0x7b1   :  { %11584 = vmatpush2.msra.mxu0 %v11181_v28 }
 0x7b2   :  { %11585 = vmatprep.subr.mxu0 %v11178_v50 }
 0x7b3   :  { %11586 = vmatpush2.msra.mxu0 %v11177_v26 }
 0x7b4   :  { %11587 = vmatprep.subr.mxu0 %v11174_v34 }
 0x7b5   :  { %11588 = vmatpush2.msra.mxu0 %v11173_v36 }
 0x7b6   :  { %11589 = vmatprep.subr.mxu0 %v11170_v57 }
 0x7b7   :  { %11590 = vmatpush2.msra.mxu0 %v11169_v21 }
 0x7b8   :  { %11591 = vmatprep.subr.mxu0 %v11166_v38 }
 0x7b9   :  { %11592 = vmatpush2.msra.mxu0 %v11165_v7 }
 0x7ba   :  { %11593 = vmatprep.subr.mxu0 %v11162_v25 }
 0x7bb   :  { %11594 = vmatpush2.msra.mxu0 %v11161_v14 }
 0x7bc   :  { %11595 = vmatprep.subr.mxu0 %v11158_v19 }
 0x7bd   :  { %11596 = vmatpush2.msra.mxu0 %v11157_v15 }
 0x7be   :  { %11597 = vmatprep.subr.mxu0 %v11154_v4 }
 0x7bf   :  { %11598 = vmatpush2.msra.mxu0 %v11153_v16 }
 0x7c0   :  { %11599 = vmatprep.subr.mxu0 %v11150_v44 }
 0x7c1   :  { %11600 = vmatpush2.msra.mxu0 %v11149_v59 }
 0x7c2   :  { %11601 = vmatprep.subr.mxu0 %v11146_v52 }
 0x7c3   :  { %11602 = vmatpush2.msra.mxu0 %v11145_v11 }
 0x7c4   :  { %11812 = vmatprep.subr.mxu0 %v11224_v33  ;;  %v11143_v33 = vld [vmem:[%s22872_s10 + $0x1f0] sm:$0xff] }
 0x842   :  { %v10741_v49 = vpop.f32.mrf.mxu1 }
 0x843   :  { %v10782_v56 = vcombine.high %v10741_v49, %v10741_v49  ;;  %v10803_v63 = vrot.slane %v10741_v49, %v16549_v10 }
 0x844   :  { %v10646_v20 = vpop.f32.mrf.mxu0  ;;  %v16176_v32 = vpop.f32.mrf.mxu1 }
 0x845   :  { %v10810_v40 = vrot.slane %v10782_v56, %v16549_v10 }
 0x846   :  { %v10648_v61 = vpop.f32.mrf.mxu0  ;;  %v20574_v62 = vpop.f32.mrf.mxu1 }
 0x847   :  { %v10780_v39 = vcombine.low %v10646_v20, %v10648_v61  ;;  %v10781_v53 = vcombine.high %v10646_v20, %v10648_v61  ;;  %v20595_v26 = vrot.slane %v20574_v62, %v16549_v10  ;;  %v11140_v61 = vld [vmem:[%s22872_s10 + $0x1d8] sm:$0xff] }
 0x848   :  { %v20577_v55 = vpop.f32.mrf.mxu0  ;;  %v16179_v45 = vpop.f32.mrf.mxu1 }
 0x849   :  { %v10789_v27 = vrot.slane %v10780_v39, %v16549_v10  ;;  %v10796_v3 = vrot.slane %v10781_v53, %v16549_v10 }
 0x84a   :  { %v20582_v47 = vpop.f32.mrf.mxu0  ;;  %v10751_v18 = vpop.f32.mrf.mxu1 }
 0x84b   :  { %v10811_v41 = vcombine.low %v10789_v27, %v10803_v63  ;;  %v10812_v8 = vcombine.high %v10789_v27, %v10803_v63  ;;  %v10813_v6 = vcombine.low %v10796_v3, %v10810_v40  ;;  %v10814_v9 = vcombine.high %v10796_v3, %v10810_v40  ;;  %v11139_v27 = vld [vmem:[%s22872_s10 + $0x1d0] sm:$0xff] }
 0x84c   :  { %v10847_v17 = vcombine.low %v20577_v55, %v20582_v47  ;;  %v10658_v60 = vpop.f32.mrf.mxu0  ;;  %v16182_v0 = vpop.f32.mrf.mxu1  ;;  %v10916_v48 = vcombine.high %v10751_v18, %v10751_v18  ;;  %v10937_v29 = vrot.slane %v10751_v18, %v16549_v10 }
 0x84d   :  { %v10821_v1 = vrot.slane %v10811_v41, %v16549_v10  ;;  %v10828_v23 = vrot.slane %v10813_v6, %v16549_v10  ;;  %v10835_v46 = vrot.slane %v10812_v8, %v16549_v10  ;;  %v10842_v35 = vrot.slane %v10814_v9, %v16549_v10  ;;  %v11136_v41 = vld [vmem:[%s22872_s10 + $0x1b8] sm:$0xff] }
 0x84e   :  { %v10660_v22 = vpop.f32.mrf.mxu0  ;;  %v10756_v58 = vpop.f32.mrf.mxu1  ;;  %v20591_v50 = vrot.slane %v10847_v17, %v16549_v10  ;;  %v10944_v25 = vrot.slane %v10916_v48, %v16549_v10  ;;  %v11135_v17 = vld [vmem:[%s22872_s10 + $0x1b0] sm:$0xff] }
 0x84f   :  { %v11369_v13 = vcombine.low %v10821_v1, %v10835_v46  ;;  %v16051_v37 = vcombine.high %v10821_v1, %v10835_v46  ;;  %v11371_v54 = vcombine.low %v10828_v23, %v10842_v35  ;;  %v16052_v28 = vcombine.high %v10828_v23, %v10842_v35  ;;  %v11132_v46 = vld [vmem:[%s22872_s10 + $0x198] sm:$0xff] }
 0x850   :  { %v10664_v34 = vpop.f32.mrf.mxu0  ;;  %v16185_v36 = vpop.f32.mrf.mxu1  ;;  %v10914_v5 = vcombine.low %v10658_v60, %v10660_v22  ;;  %v10915_v19 = vcombine.high %v10658_v60, %v10660_v22  ;;  %v10878_v24 = vcombine.low %v20591_v50, %v20595_v26  ;;  %v10983_v45 = vcombine.high %v10756_v58, %v10756_v58 }
 0x851   :  { %v20598_v57 = vrot.slane %v11369_v13, %v16549_v10  ;;  %v20601_v21 = vrot.slane %v16051_v37, %v16549_v10  ;;  %v20604_v38 = vrot.slane %v11371_v54, %v16549_v10  ;;  %v20607_v7 = vrot.slane %v16052_v28, %v16549_v10  ;;  %v11131_v13 = vld [vmem:[%s22872_s10 + $0x190] sm:$0xff]  ;;  %v11128_v36 = vld [vmem:[%s22872_s10 + $0x178] sm:$0xff] }
 0x852   :  { %v20611_v42 = vpop.f32.mrf.mxu1  ;;  %v10666_v15 = vpop.f32.mrf.mxu0  ;;  %v10923_v30 = vrot.slane %v10914_v5, %v16549_v10  ;;  %v10930_v44 = vrot.slane %v10915_v19, %v16549_v10  ;;  %v20629_v49 = vrot.slane %v10878_v24, %v16549_v10  ;;  %v11004_v18 = vrot.slane %v10756_v58, %v16549_v10 }
 0x853   :  { %v11401_v14 = vcombine.low %v20598_v57, %v20601_v21  ;;  %v11403_v31 = vcombine.low %v20604_v38, %v20607_v7  ;;  %v10981_v51 = vcombine.low %v10664_v34, %v10666_v15  ;;  %v10982_v20 = vcombine.high %v10664_v34, %v10666_v15 }
 0x854   :  { %v16188_v4 = vpop.f32.mrf.mxu1  ;;  %v10945_v2 = vcombine.low %v10923_v30, %v10937_v29  ;;  %v10946_v52 = vcombine.high %v10923_v30, %v10937_v29  ;;  %v10947_v11 = vcombine.low %v10930_v44, %v10944_v25  ;;  %v10948_v56 = vcombine.high %v10930_v44, %v10944_v25  ;;  %v11127_v29 = vld [vmem:[%s22872_s10 + $0x170] sm:$0xff] }
 0x855   :  { %v11411_v12 = vrot.slane %v11401_v14, %v16549_v10  ;;  %v11425_v16 = vrot.slane %v11403_v31, %v16549_v10  ;;  %v10990_v32 = vrot.slane %v10981_v51, %v16549_v10  ;;  %v10997_v63 = vrot.slane %v10982_v20, %v16549_v10  ;;  %v11123_v4 = vld [vmem:[%s22872_s10 + $0x150] sm:$0xff] }
 0x856   :  { %v20636_v39 = vrot.slane %v10945_v2, %v16549_v10  ;;  %v10962_v53 = vrot.slane %v10947_v11, %v16549_v10  ;;  %v10969_v40 = vrot.slane %v10946_v52, %v16549_v10  ;;  %v10976_v3 = vrot.slane %v10948_v56, %v16549_v10  ;;  %v11120_v52 = vld [vmem:[%s22872_s10 + $0x138] sm:$0xff] }
 0x857   :  { %v20623_v59 = vcombine.high %v11411_v12, %v11425_v16  ;;  %v11402_v60 = vcombine.high %v20598_v57, %v20601_v21  ;;  %v11011_v0 = vrot.slane %v10983_v45, %v16549_v10  ;;  %v11012_v1 = vcombine.low %v10990_v32, %v11004_v18  ;;  %v11116_v45 = vld [vmem:[%s22872_s10 + $0x118] sm:$0xff] }
 0x858   :  { %v10977_v8 = vcombine.high %v20636_v39, %v20636_v39  ;;  %v10978_v6 = vcombine.high %v10962_v53, %v10962_v53  ;;  %v10979_v9 = vcombine.high %v10969_v40, %v10969_v40  ;;  %v11013_v23 = vcombine.high %v10990_v32, %v11004_v18  ;;  %v11119_v32 = vld [vmem:[%s22872_s10 + $0x130] sm:$0xff] }
 0x859   :  { %16053 = vmatmul.mubr.msk.f32.vlgmr.msra.gmra.mxu1 %vm10564_vm14, %v20623_v59  ;;  %v10980_v58 = vcombine.high %v10976_v3, %v10976_v3  ;;  %v11014_v37 = vcombine.low %v10997_v63, %v11011_v0  ;;  %v11015_v54 = vcombine.high %v10997_v63, %v11011_v0  ;;  %v11022_v28 = vrot.slane %v11012_v1, %v16549_v10  ;;  %v11219_v0 = vld [vmem:[%s22872_s10 + $0x450] sm:$0xff] }
 0x85a   :  { %11706 = vmatpush1.msra.mxu1 %v11143_v33  ;;  %v11436_v35 = vcombine.low %v20629_v49, %v10977_v8  ;;  %v11437_v22 = vcombine.low %v10979_v9, %v10962_v53  ;;  %v11438_v48 = vcombine.low %v10976_v3, %v10978_v6  ;;  %v11036_v34 = vrot.slane %v11013_v23, %v16549_v10  ;;  %v11115_v8 = vld [vmem:[%s22872_s10 + $0x110] sm:$0xff]  ;;  %v11220_v6 = vld [vmem:[%s22872_s10 + $0x458] sm:$0xff] }
 0x85b   :  { %11707 = vmatprep.subr.mxu1 %v11140_v61  ;;  %v11404_v57 = vcombine.high %v20604_v38, %v20607_v7  ;;  %v11418_v21 = vrot.slane %v11402_v60, %v16549_v10  ;;  %v20677_v25 = vcombine.low %v11411_v12, %v11425_v16  ;;  %11692 = vmatprep.mubr.f32.mxu1 %v23510_v43  ;;  %v11124_v38 = vld [vmem:[%s22872_s10 + $0x158] sm:$0xff]  ;;  %v10670_v7 = vpop.f32.mrf.mxu0 }
 0x85c   :  { %11708 = vmatpush1.msra.mxu1 %v11139_v27  ;;  %v20681_v14 = vrot.slane %v11014_v37, %v16549_v10  ;;  %v20684_v31 = vrot.slane %v11015_v54, %v16549_v10  ;;  %v11044_v5 = vcombine.high %v11022_v28, %v11022_v28  ;;  %v11046_v19 = vcombine.high %v11036_v34, %v11036_v34  ;;  %v11223_v27 = vld [vmem:[%s22872_s10 + $0x470] sm:$0xff]  ;;  %v11112_v60 = vld [vmem:[%s22872_s10 + $0xf8] sm:$0xff] }
 0x85d   :  { %11709 = vmatprep.subr.mxu1 %v11136_v41  ;;  %v11439_v15 = vcombine.low %v10980_v58, %v11022_v28  ;;  %v11432_v24 = vrot.slane %v11404_v57, %v16549_v10  ;;  %v11446_v12 = vrot.slane %v11436_v35, %v16549_v10  ;;  %v11453_v16 = vrot.slane %v11437_v22, %v16549_v10  ;;  %v10672_v3 = vpop.f32.mrf.mxu0  ;;  %v11111_v35 = vld [vmem:[%s22872_s10 + $0xf0] sm:$0xff]  ;;  %v11216_v22 = vld [vmem:[%s22872_s10 + $0x438] sm:$0xff] }
 0x85e   :  { %11710 = vmatpush1.msra.mxu1 %v11135_v17  ;;  %v11503_v30 = vcombine.low %v11036_v34, %v11044_v5  ;;  %v12134_v44 = vcombine.low %v10969_v40, %v11046_v19  ;;  %v12135_v51 = vcombine.low %v20681_v14, %v20684_v31  ;;  %v16059_v2 = vcombine.high %v20681_v14, %v20684_v31  ;;  %v11108_v57 = vld [vmem:[%s22872_s10 + $0xd8] sm:$0xff]  ;;  %v11107_v5 = vld [vmem:[%s22872_s10 + $0xd0] sm:$0xff]  ;;  %v11285_v14 = vld [vmem:[#allocation9 + $0x1e0] sm:$0xff] }
 0x85f   :  { %11711 = vmatprep.subr.mxu1 %v11132_v46  ;;  %v11467_v11 = vrot.slane %v11439_v15, %v16549_v10  ;;  %v20703_v33 = vcombine.low %v11418_v21, %v11432_v24  ;;  %v11460_v56 = vrot.slane %v11438_v48, %v16549_v10  ;;  %v11469_v20 = vcombine.high %v11446_v12, %v11453_v16  ;;  %v11212_v19 = vld [vmem:[%s22872_s10 + $0x418] sm:$0xff] }
 0x860   :  { %11712 = vmatpush1.msra.mxu1 %v11131_v13  ;;  %v20710_v61 = vrot.slane %v12134_v44, %v16549_v10  ;;  %v20713_v53 = vrot.slane %v12135_v51, %v16549_v10  ;;  %v11468_v40 = vcombine.low %v11446_v12, %v11453_v16  ;;  %v11510_v1 = vrot.slane %v11503_v30, %v16549_v10  ;;  %v11104_v24 = vld [vmem:[%s22872_s10 + $0xb8] sm:$0xff]  ;;  %v11103_v30 = vld [vmem:[%s22872_s10 + $0xb0] sm:$0xff]  ;;  %v11286_v51 = vld [vmem:[#allocation9 + $0x1e8] sm:$0xff] }
 0x861   :  { %11713 = vmatprep.subr.mxu1 %v11128_v36  ;;  %11603 = vmatprep.mubr.f32.mxu0 %v20703_v33  ;;  %v11471_v63 = vcombine.high %v11460_v56, %v11467_v11  ;;  %v11485_v18 = vrot.slane %v11469_v20, %v16549_v10  ;;  %v11470_v41 = vcombine.low %v11460_v56, %v11467_v11  ;;  %v11099_v56 = vld [vmem:[%s22872_s10 + $0x90] sm:$0xff]  ;;  %v11096_v31 = vld [vmem:[%s22872_s10 + $0x78] sm:$0xff] }
 0x862   :  { %11714 = vmatpush1.msra.mxu1 %v11127_v29  ;;  %v12166_v9 = vcombine.low %v20710_v61, %v20713_v53  ;;  %11604 = vmatmul.mubr.f32.vlgmr.msra.gmra.mxu0 %v20677_v25  ;;  %v11478_v17 = vrot.slane %v11468_v40, %v16549_v10  ;;  %v11048_v48 = vcombine.low %v10670_v7, %v10672_v3  ;;  %v11215_v29 = vld [vmem:[%s22872_s10 + $0x430] sm:$0xff] }
 0x863   :  { %11715 = vmatprep.subr.mxu1 %v11124_v38  ;;  %v11499_v23 = vrot.slane %v11471_v63, %v16549_v10  ;;  %v11492_v46 = vrot.slane %v11470_v41, %v16549_v10  ;;  %11813 = vmatpush1.msra.mxu0 %v11223_v27  ;;  %v11511_v58 = vcombine.high %v11510_v1, %v11510_v1  ;;  %v11095_v40 = vld [vmem:[%s22872_s10 + $0x70] sm:$0xff]  ;;  %v11278_v63 = vld [vmem:[#allocation9 + $0x1a8] sm:$0xff] }
 0x864   :  { %11716 = vmatpush1.msra.mxu1 %v11123_v4  ;;  %11814 = vmatprep.subr.mxu0 %v11220_v6  ;;  %v20749_v13 = vrot.slane %v11510_v1, %v16549_v10  ;;  %v11062_v37 = vrot.slane %v20611_v42, %v16549_v10  ;;  %v11055_v21 = vrot.slane %v11048_v48, %v16549_v10  ;;  %v11211_v4 = vld [vmem:[%s22872_s10 + $0x410] sm:$0xff]  ;;  %v11269_v48 = vld [vmem:[#allocation9 + $0x160] sm:$0xff] }
 0x865   :  { %11717 = vmatprep.subr.mxu1 %v11120_v52  ;;  %v20753_v54 = vcombine.low %v11485_v18, %v11499_v23  ;;  %v20755_v28 = vcombine.high %v11478_v17, %v11492_v46  ;;  %v20757_v34 = vcombine.low %v11478_v17, %v11492_v46  ;;  %11815 = vmatpush1.msra.mxu0 %v11219_v0  ;;  %v11100_v52 = vld [vmem:[%s22872_s10 + $0x98] sm:$0xff]  ;;  %v11087_v17 = vld [vmem:[%s22872_s10 + $0x30] sm:$0xff] }
 0x866   :  { %11718 = vmatpush1.msra.mxu1 %v11119_v32  ;;  %v20760_v36 = vrot.slane %v11511_v58, %v16549_v10  ;;  %11816 = vmatprep.subr.mxu0 %v11216_v22  ;;  %v20771_v42 = vcombine.high %v20749_v13, %v20749_v13  ;;  %v11063_v38 = vcombine.low %v11055_v21, %v11062_v37  ;;  %v11282_v32 = vld [vmem:[#allocation9 + $0x1c8] sm:$0xff]  ;;  %v11084_v0 = vld [vmem:[%s22872_s10 + $0x18] sm:$0xff]  ;;  %v11083_v22 = vld [vmem:[%s22872_s10 + $0x10] sm:$0xff] }
 0x867   :  { %11719 = vmatprep.subr.mxu1 %v11116_v45  ;;  %11609 = vmatprep.mubr.f32.mxu0 %v20753_v54  ;;  %v11064_v7 = vcombine.high %v11055_v21, %v11062_v37  ;;  %v12167_v15 = vcombine.high %v20710_v61, %v20713_v53  ;;  %v12158_v44 = vrot.slane %v16059_v2, %v16549_v10  ;;  %v11091_v61 = vld [vmem:[%s22872_s10 + $0x50] sm:$0xff]  ;;  %v11088_v53 = vld [vmem:[%s22872_s10 + $0x38] sm:$0xff] }
 0x868   :  { %11720 = vmatpush1.msra.mxu1 %v11115_v8  ;;  %11610 = vmatmul.mubr.f32.gmra.mxu0 %v20757_v34  ;;  %v20794_v12 = vrot.slane %v11063_v38, %v16549_v10  ;;  %v10849_v20 = vcombine.high %v20574_v62, %v20574_v62  ;;  %v12176_v45 = vrot.slane %v12166_v9, %v16549_v10  ;;  %v11092_v62 = vld [vmem:[%s22872_s10 + $0x58] sm:$0xff]  ;;  %v11274_v9 = vld [vmem:[#allocation9 + $0x188] sm:$0xff] }
 0x869   :  { %11721 = vmatprep.subr.mxu1 %v11112_v60  ;;  %16054 = vmatmul.mubr.msk.f32.gmra.mxu1 %vm10564_vm14, %v20755_v28  ;;  %v20797_v16 = vrot.slane %v11064_v7, %v16549_v10  ;;  %v12183_v3 = vrot.slane %v12167_v15, %v16549_v10  ;;  %v11273_v60 = vld [vmem:[#allocation9 + $0x180] sm:$0xff]  ;;  %v11208_v58 = vld [vmem:[%s22872_s10 + $0x3f8] sm:$0xff]  ;;  %v10879_v37 = vcombine.high %v20591_v50, %v20595_v26  ;;  %v11262_v7 = vld [vmem:[#allocation9 + $0x128] sm:$0xff] }
 0x86a   :  { %11722 = vmatpush1.msra.mxu1 %v11111_v35  ;;  %11698 = vmatprep.mubr.f32.mxu1 %v23510_v43  ;;  %v10877_v6 = vrot.slane %v10849_v20, %v16549_v10  ;;  %v11270_v35 = vld [vmem:[#allocation9 + $0x168] sm:$0xff]  ;;  %v11204_v38 = vld [vmem:[%s22872_s10 + $0x3d8] sm:$0xff]  ;;  %v11203_v50 = vld [vmem:[%s22872_s10 + $0x3d0] sm:$0xff] }
 0x86b   :  { %11615 = vmatprep.mubr.f32.mxu0 %v20760_v36  ;;  %11723 = vmatprep.subr.mxu1 %v11108_v57  ;;  %v12137_v11 = vcombine.low %v20794_v12, %v20797_v16  ;;  %v11261_v26 = vld [vmem:[#allocation9 + $0x120] sm:$0xff]  ;;  %v11200_v15 = vld [vmem:[%s22872_s10 + $0x3b8] sm:$0xff] }
 0x86c   :  { %11817 = vmatpush1.msra.mxu0 %v11215_v29  ;;  %11724 = vmatpush1.msra.mxu1 %v11107_v5  ;;  %v11266_v29 = vld [vmem:[#allocation9 + $0x148] sm:$0xff]  ;;  %v11207_v5 = vld [vmem:[%s22872_s10 + $0x3f0] sm:$0xff] }
 0x86d   :  { %16055 = vmatmul.mubr.msk.f32.gmra.mxu1 %vm10564_vm14, %v20771_v42  ;;  %11818 = vmatprep.subr.mxu0 %v11212_v19  ;;  %v12165_v2 = vrot.slane %v12137_v11, %v16549_v10  ;;  %v11265_v19 = vld [vmem:[#allocation9 + $0x140] sm:$0xff]  ;;  %v11196_v11 = vld [vmem:[%s22872_s10 + $0x398] sm:$0xff] }
 0x86e   :  { %11616 = vmatmul.mubr.f32.gmra.mxu0 %v20749_v13  ;;  %11769 = vmatprep.mubr.f32.mxu1 %v20703_v33  ;;  %v10848_v33 = vcombine.high %v20577_v55, %v20582_v47  ;;  %v11281_v55 = vld [vmem:[#allocation9 + $0x1c0] sm:$0xff] }
 0x86f   :  { %11725 = vmatprep.subr.mxu1 %v11104_v24  ;;  %11819 = vmatpush1.msra.mxu0 %v11211_v4  ;;  %v12168_v47 = vcombine.low %v12158_v44, %v12165_v2  ;;  %v12169_v27 = vcombine.high %v12158_v44, %v12165_v2  ;;  %v10902_v4 = vrot.slane %v10879_v37, %v16549_v10  ;;  %v11258_v44 = vld [vmem:[#allocation9 + $0x108] sm:$0xff]  ;;  %v11253_v2 = vld [vmem:[#allocation9 + $0xe0] sm:$0xff] }
 0x870   :  { %11726 = vmatpush1.msra.mxu1 %v11103_v30  ;;  %11852 = vmatprep.mubr.f32.mxu0 %v23510_v43  ;;  %v10863_v8 = vrot.slane %v10848_v33, %v16549_v10  ;;  %v11192_v33 = vld [vmem:[%s22872_s10 + $0x378] sm:$0xff] }
 0x871   :  { %12237 = vmatprep.subr.mxu0 %v11286_v51  ;;  %11727 = vmatprep.subr.mxu1 %v11100_v52  ;;  %v12190_v18 = vrot.slane %v12168_v47, %v16549_v10  ;;  %v12197_v41 = vrot.slane %v12169_v27, %v16549_v10  ;;  %v11199_v51 = vld [vmem:[%s22872_s10 + $0x3b0] sm:$0xff]  ;;  %v11257_v52 = vld [vmem:[#allocation9 + $0x100] sm:$0xff]  ;;  %v11246_v47 = vld [vmem:[#allocation9 + $0xa8] sm:$0xff] }
 0x872   :  { %16056 = vmatmul.mubr.msk.f32.vlgmr.msra.gmra.mxu0 %vm10564_vm14, %v20623_v59  ;;  %11728 = vmatpush1.msra.mxu1 %v11099_v56  ;;  %v11277_v59 = vld [vmem:[#allocation9 + $0x1a0] sm:$0xff]  ;;  %v10880_v57 = vcombine.low %v10863_v8, %v10877_v6  ;;  %v10881_v21 = vcombine.high %v10863_v8, %v10877_v6  ;;  %v11254_v56 = vld [vmem:[#allocation9 + $0xe8] sm:$0xff]  ;;  %v11187_v27 = vld [vmem:[%s22872_s10 + $0x350] sm:$0xff] }
 0x873   :  { %12238 = vmatpush1.msra.mxu0 %v11285_v14  ;;  %11729 = vmatprep.subr.mxu1 %v11096_v31  ;;  %v20856_v1 = vcombine.high %v12176_v45, %v12190_v18  ;;  %v20858_v23 = vcombine.low %v12183_v3, %v12197_v41  ;;  %v20860_v46 = vcombine.low %v12176_v45, %v12190_v18  ;;  %v11195_v14 = vld [vmem:[%s22872_s10 + $0x390] sm:$0xff]  ;;  %v11250_v45 = vld [vmem:[#allocation9 + $0xc8] sm:$0xff]  ;;  %v11241_v6 = vld [vmem:[#allocation9 + $0x80] sm:$0xff] }
 0x874   :  { %12239 = vmatprep.subr.mxu0 %v11282_v32  ;;  %11730 = vmatpush1.msra.mxu1 %v11095_v40  ;;  %v10895_v24 = vrot.slane %v10880_v57, %v16549_v10  ;;  %v10909_v30 = vrot.slane %v10881_v21, %v16549_v10  ;;  %v10910_v31 = vcombine.high %v20629_v49, %v20629_v49  ;;  %v11249_v49 = vld [vmem:[#allocation9 + $0xc0] sm:$0xff]  ;;  %v11242_v41 = vld [vmem:[#allocation9 + $0x88] sm:$0xff]  ;;  %v11183_v8 = vld [vmem:[%s22872_s10 + $0x330] sm:$0xff] }
 0x875   :  { %12240 = vmatpush1.msra.mxu0 %v11281_v55  ;;  %11731 = vmatprep.subr.mxu1 %v11092_v62  ;;  %v10912_v32 = vcombine.high %v10902_v4, %v10902_v4  ;;  %v11191_v55 = vld [vmem:[%s22872_s10 + $0x370] sm:$0xff]  ;;  %v11188_v62 = vld [vmem:[%s22872_s10 + $0x358] sm:$0xff]  ;;  %v11233_v21 = vld [vmem:[#allocation9 + $0x40] sm:$0xff] }
 0x876   :  { %12241 = vmatprep.subr.mxu0 %v11278_v63  ;;  %11732 = vmatpush1.msra.mxu1 %v11091_v61  ;;  %v10911_v20 = vcombine.high %v10895_v24, %v10895_v24  ;;  %v10913_v40 = vcombine.high %v10909_v30, %v10909_v30  ;;  %v12067_v3 = vcombine.low %v10902_v4, %v10910_v31  ;;  %v11245_v63 = vld [vmem:[#allocation9 + $0xa0] sm:$0xff]  ;;  %v11184_v61 = vld [vmem:[%s22872_s10 + $0x338] sm:$0xff]  ;;  %v11346_v31 = vld [vmem:[#allocation9 + $0x3c8] sm:$0xff] }
 0x877   :  { %12242 = vmatpush1.msra.mxu0 %v11277_v59  ;;  %11733 = vmatprep.subr.mxu1 %v11088_v53  ;;  %v12068_v59 = vcombine.low %v10912_v32, %v10895_v24  ;;  %v11225_v4 = vld [vmem:[#allocation9] sm:$0xff]  ;;  %v11156_v32 = vld [vmem:[%s22872_s10 + $0x258] sm:$0xff] }
 0x878   :  { %12243 = vmatprep.subr.mxu0 %v11274_v9  ;;  %11734 = vmatpush1.msra.mxu1 %v11087_v17  ;;  %v12069_v53 = vcombine.low %v10909_v30, %v10911_v20  ;;  %v12070_v18 = vcombine.low %v10913_v40, %v20636_v39  ;;  %v11180_v9 = vld [vmem:[%s22872_s10 + $0x318] sm:$0xff]  ;;  %v11238_v17 = vld [vmem:[#allocation9 + $0x68] sm:$0xff]  ;;  %v11179_v39 = vld [vmem:[%s22872_s10 + $0x310] sm:$0xff] }
 0x879   :  { %12244 = vmatpush1.msra.mxu0 %v11273_v60  ;;  %11735 = vmatprep.subr.mxu1 %v11084_v0  ;;  %v20922_v60 = vrot.slane %v12067_v3, %v16549_v10  ;;  %v11237_v0 = vld [vmem:[#allocation9 + $0x60] sm:$0xff]  ;;  %v20934_v37 = vrot.slane %v12068_v59, %v16549_v10  ;;  %v11350_v30 = vld [vmem:[#allocation9 + $0x3e8] sm:$0xff]  ;;  %v11155_v40 = vld [vmem:[%s22872_s10 + $0x250] sm:$0xff] }
 0x87a   :  { %12245 = vmatprep.subr.mxu0 %v11270_v35  ;;  %11736 = vmatpush1.msra.mxu1 %v11083_v22  ;;  %v11176_v35 = vld [vmem:[%s22872_s10 + $0x2f8] sm:$0xff]  ;;  %v20928_v22 = vrot.slane %v12070_v18, %v16549_v10  ;;  %v20937_v57 = vrot.slane %v12069_v53, %v16549_v10  ;;  %v11342_v20 = vld [vmem:[#allocation9 + $0x3a8] sm:$0xff]  ;;  %v11329_v59 = vld [vmem:[#allocation9 + $0x340] sm:$0xff] }
 0x87b   :  { %12246 = vmatpush1.msra.mxu0 %v11269_v48  ;;  %11737 = vmatprep.subr.mxu1 %v11208_v58  ;;  %v11234_v48 = vld [vmem:[#allocation9 + $0x48] sm:$0xff]  ;;  %v11175_v58 = vld [vmem:[%s22872_s10 + $0x2f0] sm:$0xff]  ;;  %v11148_v3 = vld [vmem:[%s22872_s10 + $0x218] sm:$0xff] }
 0x87c   :  { %12247 = vmatprep.subr.mxu0 %v11266_v29  ;;  %11738 = vmatpush2.msra.mxu1 %v11207_v5  ;;  %v11172_v29 = vld [vmem:[%s22872_s10 + $0x2d8] sm:$0xff]  ;;  %v11230_v5 = vld [vmem:[#allocation9 + $0x28] sm:$0xff]  ;;  %v12102_v24 = vcombine.high %v20937_v57, %v20928_v22 }
 0x87d   :  { %12248 = vmatpush1.msra.mxu0 %v11265_v19  ;;  %11739 = vmatprep.subr.mxu1 %v11204_v38  ;;  %v11171_v19 = vld [vmem:[%s22872_s10 + $0x2d0] sm:$0xff]  ;;  %v11229_v38 = vld [vmem:[#allocation9 + $0x20] sm:$0xff]  ;;  %v11326_v53 = vld [vmem:[#allocation9 + $0x328] sm:$0xff] }
 0x87e   :  { %12249 = vmatprep.subr.mxu0 %v11262_v7  ;;  %11740 = vmatpush2.msra.mxu1 %v11203_v50  ;;  %v11168_v7 = vld [vmem:[%s22872_s10 + $0x2b8] sm:$0xff]  ;;  %v11226_v50 = vld [vmem:[#allocation9 + $0x8] sm:$0xff] }
 0x87f   :  { %12250 = vmatpush1.msra.mxu0 %v11261_v26  ;;  %11741 = vmatprep.subr.mxu1 %v11200_v15  ;;  %v11167_v26 = vld [vmem:[%s22872_s10 + $0x2b0] sm:$0xff]  ;;  %v12100_v15 = vcombine.high %v20922_v60, %v20934_v37  ;;  %v11366_v18 = vld [vmem:[#allocation9 + $0x468] sm:$0xff] }
 0x880   :  { %12251 = vmatprep.subr.mxu0 %v11258_v44  ;;  %11742 = vmatpush2.msra.mxu1 %v11199_v51  ;;  %v11164_v44 = vld [vmem:[%s22872_s10 + $0x298] sm:$0xff]  ;;  %v11163_v51 = vld [vmem:[%s22872_s10 + $0x290] sm:$0xff] }
 0x881   :  { %12252 = vmatpush1.msra.mxu0 %v11257_v52  ;;  %11743 = vmatprep.subr.mxu1 %v11196_v11  ;;  %v11349_v52 = vld [vmem:[#allocation9 + $0x3e0] sm:$0xff]  ;;  %v11160_v11 = vld [vmem:[%s22872_s10 + $0x278] sm:$0xff] }
 0x882   :  { %12253 = vmatprep.subr.mxu0 %v11254_v56  ;;  %11744 = vmatpush2.msra.mxu1 %v11195_v14  ;;  %v12116_v56 = vrot.slane %v12100_v15, %v16549_v10  ;;  %v12130_v14 = vrot.slane %v12102_v24, %v16549_v10  ;;  %v11301_v15 = vld [vmem:[#allocation9 + $0x260] sm:$0xff]  ;;  %v11283_v24 = vld [vmem:[#allocation9 + $0x1d0] sm:$0xff] }
 0x883   :  { %12254 = vmatpush1.msra.mxu0 %v11253_v2  ;;  %11745 = vmatprep.subr.mxu1 %v11192_v33  ;;  %v11159_v2 = vld [vmem:[%s22872_s10 + $0x270] sm:$0xff]  ;;  %v11345_v33 = vld [vmem:[#allocation9 + $0x3c0] sm:$0xff] }
 0x884   :  { %12255 = vmatprep.subr.mxu0 %v11250_v45  ;;  %11746 = vmatpush2.msra.mxu1 %v11191_v55  ;;  %v20978_v45 = vcombine.low %v12116_v56, %v12130_v14  ;;  %v11338_v55 = vld [vmem:[#allocation9 + $0x388] sm:$0xff]  ;;  %v11276_v56 = vld [vmem:[#allocation9 + $0x198] sm:$0xff]  ;;  %v11293_v14 = vld [vmem:[#allocation9 + $0x220] sm:$0xff] }
 0x885   :  { %12256 = vmatpush1.msra.mxu0 %v11249_v49  ;;  %11747 = vmatprep.subr.mxu1 %v11188_v62  ;;  %v11152_v49 = vld [vmem:[%s22872_s10 + $0x238] sm:$0xff]  ;;  %v11337_v62 = vld [vmem:[#allocation9 + $0x380] sm:$0xff] }
 0x886   :  { %12257 = vmatprep.subr.mxu0 %v11246_v47  ;;  %11748 = vmatpush2.msra.mxu1 %v11187_v27  ;;  %v11151_v47 = vld [vmem:[%s22872_s10 + $0x230] sm:$0xff]  ;;  %v11334_v27 = vld [vmem:[#allocation9 + $0x368] sm:$0xff] }
 0x887   :  { %12258 = vmatpush1.msra.mxu0 %v11245_v63  ;;  %11749 = vmatprep.subr.mxu1 %v11184_v61  ;;  %v11333_v63 = vld [vmem:[#allocation9 + $0x360] sm:$0xff]  ;;  %v11330_v61 = vld [vmem:[#allocation9 + $0x348] sm:$0xff] }
 0x888   :  { %12259 = vmatprep.subr.mxu0 %v11242_v41  ;;  %11750 = vmatpush2.msra.mxu1 %v11183_v8  ;;  %v11325_v41 = vld [vmem:[#allocation9 + $0x320] sm:$0xff] }
 0x889   :  { %12260 = vmatpush1.msra.mxu0 %v11241_v6  ;;  %11751 = vmatprep.subr.mxu1 %v11180_v9  ;;  %v11365_v8 = vld [vmem:[#allocation9 + $0x460] sm:$0xff]  ;;  %v11322_v6 = vld [vmem:[#allocation9 + $0x308] sm:$0xff] }
 0x88a   :  { %12261 = vmatprep.subr.mxu0 %v11238_v17  ;;  %11752 = vmatpush2.msra.mxu1 %v11179_v39  ;;  %v11321_v9 = vld [vmem:[#allocation9 + $0x300] sm:$0xff]  ;;  %v11318_v17 = vld [vmem:[#allocation9 + $0x2e8] sm:$0xff] }
 0x88b   :  { %12262 = vmatpush1.msra.mxu0 %v11237_v0  ;;  %11753 = vmatprep.subr.mxu1 %v11176_v35  ;;  %v11362_v39 = vld [vmem:[#allocation9 + $0x448] sm:$0xff]  ;;  %v12099_v0 = vcombine.low %v20922_v60, %v20934_v37  ;;  %v12101_v35 = vcombine.low %v20937_v57, %v20928_v22  ;;  %v16060_v22 = vcombine.high %v20794_v12, %v20797_v16 }
 0x88c   :  { %12263 = vmatprep.subr.mxu0 %v11234_v48  ;;  %11754 = vmatpush2.msra.mxu1 %v11175_v58  ;;  %v11361_v48 = vld [vmem:[#allocation9 + $0x440] sm:$0xff]  ;;  %v11358_v58 = vld [vmem:[#allocation9 + $0x428] sm:$0xff] }
 0x88d   :  { %12264 = vmatpush1.msra.mxu0 %v11233_v21  ;;  %11755 = vmatprep.subr.mxu1 %v11172_v29  ;;  %v11313_v21 = vld [vmem:[#allocation9 + $0x2c0] sm:$0xff]  ;;  %v11310_v60 = vld [vmem:[#allocation9 + $0x2a8] sm:$0xff]  ;;  %v12109_v37 = vrot.slane %v12099_v0, %v16549_v10  ;;  %v21010_v12 = vrot.slane %v16060_v22, %v16549_v10  ;;  %v11356_v0 = vld [vmem:[#allocation9 + $0x418] sm:$0xff] }
 0x88e   :  { %12265 = vmatprep.subr.mxu0 %v11230_v5  ;;  %11756 = vmatpush2.msra.mxu1 %v11171_v19  ;;  %v11357_v29 = vld [vmem:[#allocation9 + $0x420] sm:$0xff]  ;;  %v11354_v57 = vld [vmem:[#allocation9 + $0x408] sm:$0xff]  ;;  %v11232_v22 = vld [vmem:[#allocation9 + $0x38] sm:$0xff] }
 0x88f   :  { %12266 = vmatpush1.msra.mxu0 %v11229_v38  ;;  %11757 = vmatprep.subr.mxu1 %v11168_v7  ;;  %v11353_v5 = vld [vmem:[#allocation9 + $0x400] sm:$0xff]  ;;  %v11306_v19 = vld [vmem:[#allocation9 + $0x288] sm:$0xff]  ;;  %v11288_v38 = vld [vmem:[#allocation9 + $0x1f8] sm:$0xff] }
 0x890   :  { %12267 = vmatprep.subr.mxu0 %v11226_v50  ;;  %11758 = vmatpush2.msra.mxu1 %v11167_v26  ;;  %v11305_v7 = vld [vmem:[#allocation9 + $0x280] sm:$0xff]  ;;  %v11287_v50 = vld [vmem:[#allocation9 + $0x1f0] sm:$0xff]  ;;  %v11302_v26 = vld [vmem:[#allocation9 + $0x268] sm:$0xff] }
 0x891   :  { %12268 = vmatpush1.msra.mxu0 %v11225_v4  ;;  %11858 = vmatprep.mubr.f32.mxu0 %v23510_v43  ;;  %v11298_v4 = vld [vmem:[#allocation9 + $0x248] sm:$0xff] }
 0x892   :  { %12269 = vmatprep.subr.mxu0 %v11350_v30  ;;  %11759 = vmatprep.subr.mxu1 %v11164_v44  ;;  %v11280_v30 = vld [vmem:[#allocation9 + $0x1b8] sm:$0xff]  ;;  %v21019_v44 = vrot.slane %v21010_v12, %v16549_v10 }
 0x893   :  { %16057 = vmatmul.mubr.msk.f32.gmra.mxu0 %vm10564_vm14, %v20755_v28  ;;  %11760 = vmatpush2.msra.mxu1 %v11163_v51  ;;  %v11341_v28 = vld [vmem:[#allocation9 + $0x3a0] sm:$0xff] }
 0x894   :  { %12270 = vmatpush2.msra.mxu0 %v11349_v52  ;;  %11761 = vmatprep.subr.mxu1 %v11160_v11  ;;  %v11297_v51 = vld [vmem:[#allocation9 + $0x240] sm:$0xff]  ;;  %v11279_v52 = vld [vmem:[#allocation9 + $0x1b0] sm:$0xff]  ;;  %v11294_v11 = vld [vmem:[#allocation9 + $0x228] sm:$0xff] }
 0x895   :  { %12271 = vmatprep.subr.mxu0 %v11346_v31  ;;  %11762 = vmatpush2.msra.mxu1 %v11159_v2  ;;  %v11275_v31 = vld [vmem:[#allocation9 + $0x190] sm:$0xff]  ;;  %v11290_v2 = vld [vmem:[#allocation9 + $0x208] sm:$0xff] }
 0x896   :  { %12272 = vmatpush2.msra.mxu0 %v11345_v33  ;;  %11864 = vmatprep.mubr.f32.mxu0 %v23510_v43  ;;  %v11272_v33 = vld [vmem:[#allocation9 + $0x178] sm:$0xff] }
 0x897   :  { %12273 = vmatprep.subr.mxu0 %v11342_v20  ;;  %11763 = vmatprep.subr.mxu1 %v11156_v32  ;;  %v21026_v20 = vcombine.high %v21019_v44, %v21019_v44  ;;  %v11289_v32 = vld [vmem:[#allocation9 + $0x200] sm:$0xff] }
 0x898   :  { %16058 = vmatmul.mubr.msk.f32.gmra.mxu0 %vm10564_vm14, %v20771_v42  ;;  %11764 = vmatpush2.msra.mxu1 %v11155_v40  ;;  %v11147_v42 = vld [vmem:[%s22872_s10 + $0x210] sm:$0xff] }
 0x899   :  { %12274 = vmatpush2.msra.mxu0 %v11341_v28  ;;  %12301 = vmatprep.mubr.f32.mxu0 %v20978_v45  ;;  %v11271_v40 = vld [vmem:[#allocation9 + $0x170] sm:$0xff] }
 0x89a   :  { %12275 = vmatprep.subr.mxu0 %v11338_v55  ;;  %11765 = vmatprep.subr.mxu1 %v11152_v49  ;;  %v11268_v55 = vld [vmem:[#allocation9 + $0x158] sm:$0xff]  ;;  %v11267_v49 = vld [vmem:[#allocation9 + $0x150] sm:$0xff] }
 0x89b   :  { %12276 = vmatpush2.msra.mxu0 %v11337_v62  ;;  %11766 = vmatpush2.msra.mxu1 %v11151_v47  ;;  %v12209_v62 = vcombine.high %v21010_v12, %v21010_v12  ;;  %v11264_v47 = vld [vmem:[#allocation9 + $0x138] sm:$0xff] }
 0x89c   :  { %12277 = vmatprep.subr.mxu0 %v11334_v27  ;;  %11767 = vmatprep.subr.mxu1 %v11148_v3  ;;  %v11368_v27 = vld [vmem:[#allocation9 + $0x478] sm:$0xff]  ;;  %v11263_v3 = vld [vmem:[#allocation9 + $0x130] sm:$0xff] }
 0x89d   :  { %12278 = vmatpush2.msra.mxu0 %v11333_v63  ;;  %11768 = vmatpush2.msra.mxu1 %v11147_v42  ;;  %v11260_v63 = vld [vmem:[#allocation9 + $0x118] sm:$0xff]  ;;  %v11367_v42 = vld [vmem:[#allocation9 + $0x470] sm:$0xff] }
 0x89e   :  { %12279 = vmatprep.subr.mxu0 %v11330_v61  ;;  %11770 = vmatmul.mubr.f32.vlgmr.msra.gmra.mxu1 %v20677_v25  ;;  %v11317_v25 = vld [vmem:[#allocation9 + $0x2e0] sm:$0xff]  ;;  %v11259_v61 = vld [vmem:[#allocation9 + $0x110] sm:$0xff]  ;;  %v11340_v12 = vld [vmem:[#allocation9 + $0x398] sm:$0xff] }
 0x89f   :  { %12280 = vmatpush2.msra.mxu0 %v11329_v59  ;;  %11775 = vmatprep.mubr.f32.mxu1 %v20753_v54  ;;  %v11314_v54 = vld [vmem:[#allocation9 + $0x2c8] sm:$0xff]  ;;  %v11364_v59 = vld [vmem:[#allocation9 + $0x458] sm:$0xff] }
 0x8a0   :  { %12281 = vmatprep.subr.mxu0 %v11326_v53  ;;  %12344 = vmatprep.subr.mxu1 %v11366_v18  ;;  %v21039_v53 = vrot.slane %v12209_v62, %v16549_v10  ;;  %v11256_v18 = vld [vmem:[#allocation9 + $0xf8] sm:$0xff] }
 0x8a1   :  { %12282 = vmatpush2.msra.mxu0 %v11325_v41  ;;  %12345 = vmatpush1.msra.mxu1 %v11365_v8  ;;  %v11363_v41 = vld [vmem:[#allocation9 + $0x450] sm:$0xff]  ;;  %v11252_v8 = vld [vmem:[#allocation9 + $0xd8] sm:$0xff] }
 0x8a2   :  { %12283 = vmatprep.subr.mxu0 %v11322_v6  ;;  %11776 = vmatmul.mubr.f32.gmra.mxu1 %v20757_v34  ;;  %v12123_v34 = vrot.slane %v12101_v35, %v16549_v10  ;;  %v11360_v6 = vld [vmem:[#allocation9 + $0x438] sm:$0xff]  ;;  %v11247_v35 = vld [vmem:[#allocation9 + $0xb0] sm:$0xff] }
 0x8a3   :  { %12284 = vmatpush2.msra.mxu0 %v11321_v9  ;;  %11781 = vmatprep.mubr.f32.mxu1 %v20760_v36  ;;  %v11309_v36 = vld [vmem:[#allocation9 + $0x2a0] sm:$0xff]  ;;  %v11251_v9 = vld [vmem:[#allocation9 + $0xd0] sm:$0xff]  ;;  %v11296_v62 = vld [vmem:[#allocation9 + $0x238] sm:$0xff] }
 0x8a4   :  { %12285 = vmatprep.subr.mxu0 %v11318_v17  ;;  %12346 = vmatprep.subr.mxu1 %v11362_v39  ;;  %v21012_v16 = vcombine.high %v12109_v37, %v12123_v34  ;;  %v21028_v28 = vcombine.low %v12109_v37, %v12123_v34  ;;  %v11359_v17 = vld [vmem:[#allocation9 + $0x430] sm:$0xff]  ;;  %v11248_v39 = vld [vmem:[#allocation9 + $0xb8] sm:$0xff] }
 0x8a5   :  { %12286 = vmatpush2.msra.mxu0 %v11317_v25  ;;  %12347 = vmatpush1.msra.mxu1 %v11361_v48  ;;  %v11355_v25 = vld [vmem:[#allocation9 + $0x410] sm:$0xff]  ;;  %v11244_v48 = vld [vmem:[#allocation9 + $0x98] sm:$0xff] }
 0x8a6   :  { %12287 = vmatprep.subr.mxu0 %v11314_v54  ;;  %12348 = vmatprep.subr.mxu1 %v11358_v58  ;;  %v11243_v54 = vld [vmem:[#allocation9 + $0x90] sm:$0xff]  ;;  %v11240_v58 = vld [vmem:[#allocation9 + $0x78] sm:$0xff] }
 0x8a7   :  { %11782 = vmatmul.mubr.f32.gmra.mxu1 %v20749_v13  ;;  %12288 = vmatpush2.msra.mxu0 %v11313_v21  ;;  %v11284_v13 = vld [vmem:[#allocation9 + $0x1d8] sm:$0xff]  ;;  %v11239_v21 = vld [vmem:[#allocation9 + $0x70] sm:$0xff] }
 0x8a8   :  { %12349 = vmatpush1.msra.mxu1 %v11357_v29  ;;  %12289 = vmatprep.subr.mxu0 %v11310_v60  ;;  %v11236_v29 = vld [vmem:[#allocation9 + $0x58] sm:$0xff]  ;;  %v11235_v60 = vld [vmem:[#allocation9 + $0x50] sm:$0xff] }
 0x8a9   :  { %12350 = vmatprep.subr.mxu1 %v11354_v57  ;;  %12290 = vmatpush2.msra.mxu0 %v11309_v36  ;;  %v11231_v37 = vld [vmem:[#allocation9 + $0x30] sm:$0xff]  ;;  %v11228_v34 = vld [vmem:[#allocation9 + $0x18] sm:$0xff] }
 0x8aa   :  { %12351 = vmatpush1.msra.mxu1 %v11353_v5  ;;  %12291 = vmatprep.subr.mxu0 %v11306_v19  ;;  %v11227_v57 = vld [vmem:[#allocation9 + $0x10] sm:$0xff]  ;;  %v11352_v36 = vld [vmem:[#allocation9 + $0x3f8] sm:$0xff] }
 0x8ab   :  { %12384 = vmatprep.mubr.f32.mxu1 %v23510_v43  ;;  %12403 = vmatprep.subr.mxu1 %v11288_v38  ;;  %v11351_v5 = vld [vmem:[#allocation9 + $0x3f0] sm:$0xff]  ;;  %v11348_v19 = vld [vmem:[#allocation9 + $0x3d8] sm:$0xff] }
 0x8ac   :  { %12292 = vmatpush2.msra.mxu0 %v11305_v7  ;;  %16061 = vmatmul.mubr.msk.f32.vlgmr.msra.gmra.mxu1 %vm10564_vm14, %v21012_v16  ;;  %v11344_v38 = vld [vmem:[#allocation9 + $0x3b8] sm:$0xff]  ;;  %v11343_v7 = vld [vmem:[#allocation9 + $0x3b0] sm:$0xff] }
 0x8ad   :  { %12404 = vmatpush1.msra.mxu1 %v11287_v50  ;;  %12293 = vmatprep.subr.mxu0 %v11302_v26  ;;  %v11336_v50 = vld [vmem:[#allocation9 + $0x378] sm:$0xff]  ;;  %v11335_v26 = vld [vmem:[#allocation9 + $0x370] sm:$0xff] }
 0x8ae   :  { %12405 = vmatprep.subr.mxu1 %v11284_v13  ;;  %12294 = vmatpush2.msra.mxu0 %v11301_v15  ;;  %v11332_v13 = vld [vmem:[#allocation9 + $0x358] sm:$0xff]  ;;  %v11331_v15 = vld [vmem:[#allocation9 + $0x350] sm:$0xff] }
 0x8af   :  { %12406 = vmatpush1.msra.mxu1 %v11283_v24  ;;  %12295 = vmatprep.subr.mxu0 %v11298_v4  ;;  %v11328_v24 = vld [vmem:[#allocation9 + $0x338] sm:$0xff]  ;;  %v11327_v4 = vld [vmem:[#allocation9 + $0x330] sm:$0xff] }
 0x8b0   :  { %12390 = vmatprep.mubr.f32.mxu1 %v23510_v43  ;;  %12407 = vmatprep.subr.mxu1 %v11280_v30  ;;  %v11324_v30 = vld [vmem:[#allocation9 + $0x318] sm:$0xff] }
 0x8b1   :  { %12296 = vmatpush2.msra.mxu0 %v11297_v51  ;;  %16062 = vmatmul.mubr.msk.f32.gmra.mxu1 %vm10564_vm14, %v20856_v1  ;;  %v11323_v51 = vld [vmem:[#allocation9 + $0x310] sm:$0xff] }
 0x8b2   :  { %12408 = vmatpush1.msra.mxu1 %v11279_v52  ;;  %12297 = vmatprep.subr.mxu0 %v11294_v11  ;;  %v11320_v52 = vld [vmem:[#allocation9 + $0x2f8] sm:$0xff]  ;;  %v11319_v11 = vld [vmem:[#allocation9 + $0x2f0] sm:$0xff] }
 0x8b3   :  { %12409 = vmatprep.subr.mxu1 %v11276_v56  ;;  %12298 = vmatpush2.msra.mxu0 %v11293_v14  ;;  %v11316_v56 = vld [vmem:[#allocation9 + $0x2d8] sm:$0xff]  ;;  %v11315_v14 = vld [vmem:[#allocation9 + $0x2d0] sm:$0xff] }
 0x8b4   :  { %12410 = vmatpush1.msra.mxu1 %v11275_v31  ;;  %12299 = vmatprep.subr.mxu0 %v11290_v2  ;;  %v11312_v31 = vld [vmem:[#allocation9 + $0x2b8] sm:$0xff]  ;;  %v11311_v2 = vld [vmem:[#allocation9 + $0x2b0] sm:$0xff] }
 0x8b5   :  { %12396 = vmatprep.mubr.f32.mxu1 %v23510_v43  ;;  %12411 = vmatprep.subr.mxu1 %v11272_v33  ;;  %v11308_v33 = vld [vmem:[#allocation9 + $0x298] sm:$0xff] }
 0x8b6   :  { %12300 = vmatpush2.msra.mxu0 %v11289_v32  ;;  %16063 = vmatmul.mubr.msk.f32.gmra.mxu1 %vm10564_vm14, %v21026_v20  ;;  %v11304_v32 = vld [vmem:[#allocation9 + $0x278] sm:$0xff] }
 0x8b7   :  { %12412 = vmatpush1.msra.mxu1 %v11271_v40  ;;  %12302 = vmatmul.mubr.f32.vlgmr.msra.gmra.mxu0 %v21028_v28  ;;  %v11303_v40 = vld [vmem:[#allocation9 + $0x270] sm:$0xff] }
 0x8b8   :  { %12413 = vmatprep.subr.mxu1 %v11268_v55  ;;  %12467 = vmatprep.mubr.f32.mxu1 %v20978_v45  ;;  %v11255_v45 = vld [vmem:[#allocation9 + $0xf0] sm:$0xff]  ;;  %v11300_v55 = vld [vmem:[#allocation9 + $0x258] sm:$0xff] }
 0x8b9   :  { %12307 = vmatprep.mubr.f32.mxu0 %v20858_v23  ;;  %12414 = vmatpush1.msra.mxu1 %v11267_v49  ;;  %v11299_v49 = vld [vmem:[#allocation9 + $0x250] sm:$0xff] }
 0x8ba   :  { %12415 = vmatprep.subr.mxu1 %v11264_v47  ;;  %12510 = vmatprep.subr.mxu0 %v11368_v27  ;;  %v11295_v47 = vld [vmem:[#allocation9 + $0x230] sm:$0xff]  ;;  %v11292_v27 = vld [vmem:[#allocation9 + $0x218] sm:$0xff] }
 0x8bb   :  { %12416 = vmatpush1.msra.mxu1 %v11263_v3  ;;  %12308 = vmatmul.mubr.f32.gmra.mxu0 %v20860_v46  ;;  %v11291_v3 = vld [vmem:[#allocation9 + $0x210] sm:$0xff] }
 0x8bc   :  { %12417 = vmatprep.subr.mxu1 %v11260_v63  ;;  %12511 = vmatpush1.msra.mxu0 %v11367_v42 }
 0x8bd   :  { %12418 = vmatpush1.msra.mxu1 %v11259_v61  ;;  %12512 = vmatprep.subr.mxu0 %v11364_v59 }
 0x8be   :  { %12419 = vmatprep.subr.mxu1 %v11256_v18  ;;  %12313 = vmatprep.mubr.f32.mxu0 %v21039_v53 }
 0x8bf   :  { %12420 = vmatpush1.msra.mxu1 %v11255_v45  ;;  %12513 = vmatpush1.msra.mxu0 %v11363_v41 }
 0x8c0   :  { %12314 = vmatmul.mubr.f32.gmra.mxu0 %v21019_v44  ;;  %12421 = vmatprep.subr.mxu1 %v11252_v8 }
 0x8c1   :  { %12514 = vmatprep.subr.mxu0 %v11360_v6  ;;  %12422 = vmatpush1.msra.mxu1 %v11251_v9 }
 0x8c2   :  { %12515 = vmatpush1.msra.mxu0 %v11359_v17  ;;  %12423 = vmatprep.subr.mxu1 %v11248_v39 }
 0x8c3   :  { %12516 = vmatprep.subr.mxu0 %v11356_v0  ;;  %12424 = vmatpush1.msra.mxu1 %v11247_v35 }
 0x8c4   :  { %12517 = vmatpush1.msra.mxu0 %v11355_v25  ;;  %12550 = vmatprep.mubr.f32.mxu0 %v23510_v43 }
 0x8c5   :  { %12425 = vmatprep.subr.mxu1 %v11244_v48  ;;  %16064 = vmatmul.mubr.msk.f32.vlgmr.msra.gmra.mxu0 %vm10564_vm14, %v21012_v16  ;;  %v11339_v16 = vld [vmem:[#allocation9 + $0x390] sm:$0xff] }
 0x8c6   :  { %12426 = vmatpush1.msra.mxu1 %v11243_v54  ;;  %12556 = vmatprep.mubr.f32.mxu0 %v23510_v43 }
 0x8c7   :  { %12427 = vmatprep.subr.mxu1 %v11240_v58 }
 0x8c8   :  { %12428 = vmatpush1.msra.mxu1 %v11239_v21 }
 0x8c9   :  { %12429 = vmatprep.subr.mxu1 %v11236_v29  ;;  %16065 = vmatmul.mubr.msk.f32.gmra.mxu0 %vm10564_vm14, %v20856_v1  ;;  %v11347_v1 = vld [vmem:[#allocation9 + $0x3d0] sm:$0xff] }
 0x8ca   :  { %12430 = vmatpush1.msra.mxu1 %v11235_v60  ;;  %12562 = vmatprep.mubr.f32.mxu0 %v23510_v43 }
 0x8cb   :  { %12431 = vmatprep.subr.mxu1 %v11232_v22 }
 0x8cc   :  { %12432 = vmatpush1.msra.mxu1 %v11231_v37 }
 0x8cd   :  { %12433 = vmatprep.subr.mxu1 %v11228_v34  ;;  %16066 = vmatmul.mubr.msk.f32.gmra.mxu0 %vm10564_vm14, %v21026_v20  ;;  %v11307_v20 = vld [vmem:[#allocation9 + $0x290] sm:$0xff] }
 0x8ce   :  { %12434 = vmatpush1.msra.mxu1 %v11227_v57  ;;  %13721 = vmatprep.mubr.f32.mxu0 %v23510_v43 }
 0x8cf   :  { %12435 = vmatprep.subr.mxu1 %v11352_v36 }
 0x8d0   :  { %12436 = vmatpush2.msra.mxu1 %v11351_v5 }
 0x8d1   :  { %12437 = vmatprep.subr.mxu1 %v11348_v19 }
 0x8d2   :  { %12438 = vmatpush2.msra.mxu1 %v11347_v1 }
 0x8d3   :  { %12439 = vmatprep.subr.mxu1 %v11344_v38 }
 0x8d4   :  { %12440 = vmatpush2.msra.mxu1 %v11343_v7 }
 0x8d5   :  { %12441 = vmatprep.subr.mxu1 %v11340_v12 }
 0x8d6   :  { %12442 = vmatpush2.msra.mxu1 %v11339_v16 }
 0x8d7   :  { %12443 = vmatprep.subr.mxu1 %v11336_v50 }
 0x8d8   :  { %12444 = vmatpush2.msra.mxu1 %v11335_v26 }
 0x8d9   :  { %12445 = vmatprep.subr.mxu1 %v11332_v13 }
 0x8da   :  { %12446 = vmatpush2.msra.mxu1 %v11331_v15 }
 0x8db   :  { %12447 = vmatprep.subr.mxu1 %v11328_v24 }
 0x8dc   :  { %12448 = vmatpush2.msra.mxu1 %v11327_v4 }
 0x8dd   :  { %12449 = vmatprep.subr.mxu1 %v11324_v30 }
 0x8de   :  { %12450 = vmatpush2.msra.mxu1 %v11323_v51 }
 0x8df   :  { %12451 = vmatprep.subr.mxu1 %v11320_v52 }
 0x8e0   :  { %12452 = vmatpush2.msra.mxu1 %v11319_v11 }
 0x8e1   :  { %12453 = vmatprep.subr.mxu1 %v11316_v56 }
 0x8e2   :  { %12454 = vmatpush2.msra.mxu1 %v11315_v14 }
 0x8e3   :  { %12455 = vmatprep.subr.mxu1 %v11312_v31 }
 0x8e4   :  { %12456 = vmatpush2.msra.mxu1 %v11311_v2 }
 0x8e5   :  { %12457 = vmatprep.subr.mxu1 %v11308_v33 }
 0x8e6   :  { %12458 = vmatpush2.msra.mxu1 %v11307_v20 }
 0x8e7   :  { %12459 = vmatprep.subr.mxu1 %v11304_v32 }
 0x8e8   :  { %12460 = vmatpush2.msra.mxu1 %v11303_v40 }
 0x8e9   :  { %12461 = vmatprep.subr.mxu1 %v11300_v55 }
 0x8ea   :  { %12462 = vmatpush2.msra.mxu1 %v11299_v49 }
 0x8eb   :  { %12463 = vmatprep.subr.mxu1 %v11296_v62 }
 0x8ec   :  { %12464 = vmatpush2.msra.mxu1 %v11295_v47 }
 0x8ed   :  { %12465 = vmatprep.subr.mxu1 %v11292_v27 }
 0x8ee   :  { %12466 = vmatpush2.msra.mxu1 %v11291_v3 }
 0x8ef   :  { %12468 = vmatmul.mubr.f32.vlgmr.msra.gmra.mxu1 %v21028_v28 }
 0x8f0   :  { %12473 = vmatprep.mubr.f32.mxu1 %v20858_v23 }
 0x8f3   :  { %12474 = vmatmul.mubr.f32.gmra.mxu1 %v20860_v46 }
 0x8f4   :  { %12479 = vmatprep.mubr.f32.mxu1 %v21039_v53 }
 0x8f7   :  { %12480 = vmatmul.mubr.f32.gmra.mxu1 %v21019_v44 }
 0x8f8   :  { %14556 = vmatprep.mubr.f32.mxu1 %v23510_v43 }
 0x919   :  { %v11688_v59 = vpop.f32.mrf.mxu1 }
 0x91b   :  { %v11690_v45 = vpop.f32.mrf.mxu1 }
 0x922   :  { %v11605_v63 = vpop.f32.mrf.mxu0 }
 0x923   :  { %v11689_v5 = vadd.f32 %v11688_v59, %v11605_v63 }
 0x924   :  { %v11607_v42 = vpop.f32.mrf.mxu0 }
 0x925   :  { %v11691_v22 = vadd.f32 %v11690_v45, %v11607_v42 }
 0x927   :  { %v11883_v16 = vcombine.low %v11689_v5, %v11691_v22  ;;  %v11884_v26 = vcombine.high %v11689_v5, %v11691_v22 }
 0x928   :  { %v11611_v61 = vpop.f32.mrf.mxu0 }
 0x929   :  { %v11694_v41 = vpop.f32.mrf.mxu1  ;;  %v11893_v51 = vrot.slane %v11883_v16, %v16549_v10  ;;  %v11900_v11 = vrot.slane %v11884_v26, %v16549_v10 }
 0x92a   :  { %v11613_v18 = vpop.f32.mrf.mxu0  ;;  %v11695_v1 = vadd.f32 %v11694_v41, %v11611_v61 }
 0x92b   :  { %v11696_v6 = vpop.f32.mrf.mxu1 }
 0x92c   :  { %v11697_v38 = vadd.f32 %v11696_v6, %v11613_v18 }
 0x92d   :  { %v11700_v9 = vpop.f32.mrf.mxu1 }
 0x92e   :  { %v11617_v8 = vpop.f32.mrf.mxu0  ;;  %v11951_v4 = vcombine.low %v11695_v1, %v11697_v38  ;;  %v11952_v2 = vcombine.high %v11695_v1, %v11697_v38 }
 0x92f   :  { %v11702_v17 = vpop.f32.mrf.mxu1  ;;  %v11701_v49 = vadd.f32 %v11700_v9, %v11617_v8 }
 0x930   :  { %v11619_v28 = vpop.f32.mrf.mxu0  ;;  %v11961_v20 = vrot.slane %v11951_v4, %v16549_v10  ;;  %v11968_v18 = vrot.slane %v11952_v2, %v16549_v10 }
 0x931   :  { %v11703_v62 = vadd.f32 %v11702_v17, %v11619_v28 }
 0x932   :  { %v11854_v23 = vpop.f32.mrf.mxu0 }
 0x933   :  { %v12019_v6 = vcombine.low %v11701_v49, %v11703_v62 }
 0x934   :  { %v11856_v46 = vpop.f32.mrf.mxu0 }
 0x953   :  { %v11860_v53 = vpop.f32.mrf.mxu0 }
 0x955   :  { %v11862_v44 = vpop.f32.mrf.mxu0 }
 0x958   :  { %v11866_v35 = vpop.f32.mrf.mxu0 }
 0x95a   :  { %v11868_v48 = vpop.f32.mrf.mxu0 }
 0x95e   :  { %v11771_v39 = vpop.f32.mrf.mxu1 }
 0x95f   :  { %v11855_v37 = vadd.f32 %v11854_v23, %v11771_v39 }
 0x960   :  { %v11773_v0 = vpop.f32.mrf.mxu1 }
 0x961   :  { %v11857_v60 = vadd.f32 %v11856_v46, %v11773_v0 }
 0x962   :  { %v11777_v25 = vpop.f32.mrf.mxu1 }
 0x963   :  { %v11885_v19 = vcombine.low %v11855_v37, %v11857_v60  ;;  %v11886_v7 = vcombine.high %v11855_v37, %v11857_v60  ;;  %v11861_v12 = vadd.f32 %v11860_v53, %v11777_v25 }
 0x964   :  { %v11779_v54 = vpop.f32.mrf.mxu1 }
 0x965   :  { %v11863_v57 = vadd.f32 %v11862_v44, %v11779_v54  ;;  %v11907_v24 = vrot.slane %v11885_v19, %v16549_v10  ;;  %v11914_v30 = vrot.slane %v11886_v7, %v16549_v10  ;;  %v12027_v54 = vrot.slane %v12019_v6, %v16549_v10 }
 0x967   :  { %v11783_v21 = vpop.f32.mrf.mxu1  ;;  %v11953_v13 = vcombine.low %v11861_v12, %v11863_v57  ;;  %v11954_v56 = vcombine.high %v11861_v12, %v11863_v57  ;;  %v11915_v33 = vcombine.low %v11893_v51, %v11907_v24  ;;  %v11916_v32 = vcombine.high %v11893_v51, %v11907_v24 }
 0x968   :  { %v11917_v40 = vcombine.low %v11900_v11, %v11914_v30  ;;  %v11918_v55 = vcombine.high %v11900_v11, %v11914_v30  ;;  %v11867_v59 = vadd.f32 %v11866_v35, %v11783_v21 }
 0x969   :  { %v11785_v34 = vpop.f32.mrf.mxu1  ;;  %v11975_v14 = vrot.slane %v11953_v13, %v16549_v10  ;;  %v11982_v3 = vrot.slane %v11954_v56, %v16549_v10  ;;  %v21076_v61 = vrot.slane %v11915_v33, %v16549_v10  ;;  %v21083_v41 = vrot.slane %v11916_v32, %v16549_v10 }
 0x96a   :  { %v11869_v47 = vadd.f32 %v11868_v48, %v11785_v34  ;;  %v21080_v45 = vrot.slane %v11917_v40, %v16549_v10  ;;  %v21086_v8 = vrot.slane %v11918_v55, %v16549_v10 }
 0x96b   :  { %v11983_v63 = vcombine.low %v11961_v20, %v11975_v14  ;;  %v11984_v23 = vcombine.high %v11961_v20, %v11975_v14  ;;  %v11985_v17 = vcombine.low %v11968_v18, %v11982_v3  ;;  %v11986_v46 = vcombine.high %v11968_v18, %v11982_v3 }
 0x96c   :  { %v21066_v50 = vpop.f32.mrf.mxu1  ;;  %v12020_v28 = vcombine.low %v11867_v59, %v11869_v47  ;;  %v21093_v0 = vcombine.high %v21076_v61, %v21076_v61  ;;  %v21097_v35 = vcombine.high %v21080_v45, %v21080_v45  ;;  %v21101_v25 = vcombine.high %v21083_v41, %v21083_v41 }
 0x96d   :  { %v21089_v39 = vrot.slane %v11983_v63, %v16549_v10  ;;  %v21105_v48 = vcombine.high %v21086_v8, %v21086_v8  ;;  %v12781_v21 = vrot.slane %v21083_v41, 2  ;;  %v21111_v22 = vrot.slane %v11985_v17, %v16549_v10 }
 0x96e   :  { %v12388_v52 = vpop.f32.mrf.mxu1  ;;  %v12034_v60 = vrot.slane %v12020_v28, %v16549_v10  ;;  %v21114_v37 = vrot.slane %v11984_v23, %v16549_v10  ;;  %v21117_v34 = vrot.slane %v11986_v46, %v16549_v10  ;;  %v12782_v19 = vrot.slane %v21093_v0, 2 }
 0x96f   :  { %v21121_v57 = vcombine.high %v21089_v39, %v21089_v39  ;;  %v12784_v1 = vrot.slane %v21080_v45, 2  ;;  %v12785_v38 = vrot.slane %v21086_v8, 2  ;;  %v12783_v16 = vrot.slane %v21101_v25, 2 }
 0x970   :  { %v12786_v26 = vrot.slane %v21097_v35, 2  ;;  %v12787_v13 = vrot.slane %v21105_v48, 2  ;;  %v12788_v24 = vrot.slane %v21089_v39, 2  ;;  %v12035_v4 = vcombine.low %v12027_v54, %v12034_v60 }
 0x971   :  { %v12392_v27 = vpop.f32.mrf.mxu1  ;;  %v12036_v30 = vcombine.high %v12027_v54, %v12034_v60  ;;  %v21135_v14 = vcombine.high %v21111_v22, %v21111_v22  ;;  %v12789_v2 = vrot.slane %v21121_v57, 2  ;;  %v12791_v40 = vrot.slane %v21111_v22, 2 }
 0x972   :  { %v12792_v47 = vrot.slane %v21117_v34, 2  ;;  %v21150_v3 = vrot.slane %v12035_v4, %v16549_v10 }
 0x973   :  { %v12394_v9 = vpop.f32.mrf.mxu1  ;;  %v21153_v63 = vrot.slane %v12036_v30, %v16549_v10 }
 0x976   :  { %v12398_v44 = vpop.f32.mrf.mxu1 }
 0x977   :  { %v21060_v58 = vpop.f32.mrf.mxu0 }
 0x978   :  { %v12400_v12 = vpop.f32.mrf.mxu1  ;;  %v12387_v51 = vadd.f32 %v21066_v50, %v21060_v58 }
 0x979   :  { %v21062_v29 = vpop.f32.mrf.mxu0 }
 0x97a   :  { %v12389_v7 = vadd.f32 %v12388_v52, %v21062_v29  ;;  %v21139_v29 = vcombine.high %v21114_v37, %v21114_v37  ;;  %v21143_v52 = vcombine.high %v21117_v34, %v21117_v34 }
 0x97b   :  { %v21064_v36 = vpop.f32.mrf.mxu0 }
 0x97c   :  { %v12581_v20 = vcombine.low %v12387_v51, %v12389_v7  ;;  %v12393_v58 = vadd.f32 %v12392_v27, %v21064_v36  ;;  %v12582_v55 = vcombine.high %v12387_v51, %v12389_v7  ;;  %v12790_v36 = vrot.slane %v21139_v29, 2 }
 0x97d   :  { %v12311_v15 = vpop.f32.mrf.mxu0  ;;  %v12795_v7 = vrot.slane %v21150_v3, 2 }
 0x97e   :  { %v12395_v11 = vadd.f32 %v12394_v9, %v12311_v15  ;;  %v12591_v9 = vrot.slane %v12581_v20, %v16549_v10 }
 0x980   :  { %v12315_v31 = vpop.f32.mrf.mxu0  ;;  %v12649_v59 = vcombine.low %v12393_v58, %v12395_v11  ;;  %v12650_v23 = vcombine.high %v12393_v58, %v12395_v11 }
 0x981   :  { %v12399_v50 = vadd.f32 %v12398_v44, %v12315_v31  ;;  %v12793_v31 = vrot.slane %v21135_v14, 2 }
 0x982   :  { %v12317_v42 = vpop.f32.mrf.mxu0  ;;  %v12659_v4 = vrot.slane %v12649_v59, %v16549_v10 }
 0x983   :  { %v12401_v15 = vadd.f32 %v12400_v12, %v12317_v42 }
 0x985   :  { %v12552_v53 = vpop.f32.mrf.mxu0  ;;  %v12717_v17 = vcombine.low %v12399_v50, %v12401_v15  ;;  %v12666_v50 = vrot.slane %v12650_v23, %v16549_v10 }
 0x987   :  { %v12554_v5 = vpop.f32.mrf.mxu0  ;;  %v21167_v15 = vrot.slane %v12717_v17, %v16549_v10 }
 0x989   :  { %v12558_v33 = vpop.f32.mrf.mxu0 }
 0x98b   :  { %v12560_v27 = vpop.f32.mrf.mxu0 }
 0x98d   :  { %v12564_v44 = vpop.f32.mrf.mxu0 }
 0x9af   :  { %v12469_v56 = vpop.f32.mrf.mxu1 }
 0x9b0   :  { %v12553_v49 = vadd.f32 %v12552_v53, %v12469_v56  ;;  %v12598_v53 = vrot.slane %v12582_v55, %v16549_v10 }
 0x9b1   :  { %v12471_v32 = vpop.f32.mrf.mxu1 }
 0x9b2   :  { %v12555_v62 = vadd.f32 %v12554_v5, %v12471_v32 }
 0x9b3   :  { %v12475_v18 = vpop.f32.mrf.mxu1 }
 0x9b4   :  { %v12583_v42 = vcombine.low %v12553_v49, %v12555_v62  ;;  %v12584_v6 = vcombine.high %v12553_v49, %v12555_v62  ;;  %v12559_v30 = vadd.f32 %v12558_v33, %v12475_v18  ;;  %v12566_v62 = vpop.f32.mrf.mxu0 }
 0x9b5   :  { %v12477_v46 = vpop.f32.mrf.mxu1 }
 0x9b6   :  { %v12605_v54 = vrot.slane %v12583_v42, %v16549_v10  ;;  %v12612_v60 = vrot.slane %v12584_v6, %v16549_v10  ;;  %v12561_v5 = vadd.f32 %v12560_v27, %v12477_v46 }
 0x9b7   :  { %v12481_v51 = vpop.f32.mrf.mxu1 }
 0x9b8   :  { %v12613_v56 = vcombine.low %v12591_v9, %v12605_v54  ;;  %v12614_v11 = vcombine.high %v12591_v9, %v12605_v54  ;;  %v12615_v20 = vcombine.low %v12598_v53, %v12612_v60  ;;  %v12616_v58 = vcombine.high %v12598_v53, %v12612_v60 }
 0x9b9   :  { %v12651_v32 = vcombine.low %v12559_v30, %v12561_v5  ;;  %v12652_v55 = vcombine.high %v12559_v30, %v12561_v5  ;;  %v12483_v49 = vpop.f32.mrf.mxu1  ;;  %v12565_v9 = vadd.f32 %v12564_v44, %v12481_v51 }
 0x9ba   :  { %v12623_v27 = vrot.slane %v12613_v56, %v16549_v10  ;;  %v21171_v42 = vrot.slane %v12615_v20, %v16549_v10  ;;  %v12637_v33 = vrot.slane %v12614_v11, %v16549_v10  ;;  %v21175_v59 = vrot.slane %v12616_v58, %v16549_v10 }
 0x9bb   :  { %v12673_v18 = vrot.slane %v12651_v32, %v16549_v10  ;;  %v12680_v6 = vrot.slane %v12652_v55, %v16549_v10  ;;  %v12567_v23 = vadd.f32 %v12566_v62, %v12483_v49 }
 0x9bc   :  { %v12645_v17 = vcombine.high %v12623_v27, %v12623_v27  ;;  %v21181_v46 = vcombine.high %v21171_v42, %v21171_v42  ;;  %v12647_v53 = vcombine.high %v12637_v33, %v12637_v33  ;;  %v21185_v54 = vcombine.high %v21175_v59, %v21175_v59 }
 0x9bd   :  { %v12765_v60 = vadd.f32 %v12623_v27, %v21076_v61  ;;  %v12766_v5 = vadd.f32 %v12637_v33, %v21083_v41  ;;  %v12769_v30 = vadd.f32 %v21171_v42, %v21080_v45  ;;  %v12770_v44 = vadd.f32 %v21175_v59, %v21086_v8 }
 0x9be   :  { %v12767_v51 = vadd.f32 %v12645_v17, %v21093_v0  ;;  %v12768_v56 = vadd.f32 %v12647_v53, %v21101_v25  ;;  %v12771_v11 = vadd.f32 %v21181_v46, %v21097_v35  ;;  %v12772_v20 = vadd.f32 %v21185_v54, %v21105_v48 }
 0x9bf   :  { %v12813_v61 = vadd.f32 %v12781_v21, %v12765_v60  ;;  %v12814_v58 = vadd.f32 %v12782_v19, %v12766_v5  ;;  %v12817_v32 = vadd.f32 %v12785_v38, %v12769_v30  ;;  %v12818_v55 = vadd.f32 %v12786_v26, %v12770_v44 }
 0x9c0   :  { %v12815_v49 = vadd.f32 %v12783_v16, %v12767_v51  ;;  %v12829_v62 = vrot.slane %v12637_v33, 2  ;;  %v12830_v27 = vrot.slane %v12645_v17, 2  ;;  %v12831_v12 = vrot.slane %v12647_v53, 2 }
 0x9c1   :  { %v12832_v28 = vrot.slane %v21171_v42, 2  ;;  %v12833_v41 = vrot.slane %v21175_v59, 2  ;;  %v12834_v21 = vrot.slane %v21181_v46, 2  ;;  %v12835_v0 = vrot.slane %v21185_v54, 2 }
 0x9c2   :  { %v12681_v19 = vcombine.low %v12659_v4, %v12673_v18  ;;  %v12682_v8 = vcombine.high %v12659_v4, %v12673_v18  ;;  %v12683_v38 = vcombine.low %v12666_v50, %v12680_v6  ;;  %v12684_v60 = vcombine.high %v12666_v50, %v12680_v6 }
 0x9c3   :  { %v12820_v35 = vadd.f32 %v12788_v24, %v12772_v20  ;;  %v12718_v25 = vcombine.low %v12565_v9, %v12567_v23  ;;  %v12816_v16 = vadd.f32 %v12784_v1, %v12768_v56  ;;  %v12819_v26 = vadd.f32 %v12787_v13, %v12771_v11 }
 0x9c4   :  { %v12691_v42 = vrot.slane %v12681_v19, %v16549_v10  ;;  %v12698_v33 = vrot.slane %v12683_v38, %v16549_v10  ;;  %v12705_v59 = vrot.slane %v12682_v8, %v16549_v10  ;;  %v12712_v4 = vrot.slane %v12684_v60, %v16549_v10 }
 0x9c5   :  { %v12732_v50 = vrot.slane %v12718_v25, %v16549_v10  ;;  %v21224_v18 = vadd.f32 %v12829_v62, %v12813_v61  ;;  %v21226_v39 = vadd.f32 %v12830_v27, %v12814_v58  ;;  %v21228_v24 = vadd.f32 %v12831_v12, %v12815_v49 }
 0x9c6   :  { %v12713_v45 = vcombine.high %v12691_v42, %v12691_v42  ;;  %v12714_v1 = vcombine.high %v12698_v33, %v12698_v33  ;;  %v12715_v48 = vcombine.high %v12705_v59, %v12705_v59  ;;  %v12716_v13 = vcombine.high %v12712_v4, %v12712_v4 }
 0x9c7   :  { %v12773_v6 = vadd.f32 %v12705_v59, %v21114_v37  ;;  %v12776_v9 = vadd.f32 %v12698_v33, %v21111_v22  ;;  %v12777_v23 = vadd.f32 %v12712_v4, %v21117_v34  ;;  %v12836_v17 = vrot.slane %v12691_v42, 2 }
 0x9c8   :  { %v12774_v46 = vadd.f32 %v12713_v45, %v21121_v57  ;;  %v12775_v53 = vadd.f32 %v12715_v48, %v21139_v29  ;;  %v12778_v54 = vadd.f32 %v12714_v1, %v21135_v14  ;;  %v12779_v12 = vadd.f32 %v12716_v13, %v21143_v52 }
 0x9c9   :  { %v12821_v5 = vadd.f32 %v12789_v2, %v12773_v6  ;;  %v12824_v30 = vadd.f32 %v12792_v47, %v12776_v9  ;;  %v12825_v37 = vadd.f32 %v12793_v31, %v12777_v23  ;;  %v12837_v44 = vrot.slane %v12713_v45, 2 }
 0x9ca   :  { %v12822_v51 = vadd.f32 %v12790_v36, %v12774_v46  ;;  %v12823_v56 = vadd.f32 %v12791_v40, %v12775_v53  ;;  %v12838_v11 = vrot.slane %v12715_v48, 2  ;;  %v12839_v20 = vrot.slane %v12698_v33, 2 }
 0x9cb   :  { %v12840_v61 = vrot.slane %v12712_v4, 2  ;;  %v12841_v58 = vrot.slane %v12714_v1, 2  ;;  %v12842_v49 = vrot.slane %v12716_v13, 2  ;;  %v21247_v57 = vadd.f32 %v12836_v17, %v12820_v35 }
 0x9cc   :  { %v12733_v34 = vcombine.low %v21167_v15, %v12732_v50  ;;  %v12734_v2 = vcombine.high %v21167_v15, %v12732_v50  ;;  %v12827_v14 = vadd.f32 %v12795_v7, %v12779_v12  ;;  %v21253_v47 = vadd.f32 %v12832_v28, %v12816_v16 }
 0x9cd   :  { %v21255_v29 = vadd.f32 %v12833_v41, %v12817_v32  ;;  %v21257_v22 = vadd.f32 %v12834_v21, %v12818_v55  ;;  %v21259_v40 = vadd.f32 %v12835_v0, %v12819_v26  ;;  %v12897_v36 = vcombine.low %v21224_v18, %v21226_v39 }
 0x9ce   :  { %v12741_v31 = vrot.slane %v12733_v34, %v16549_v10  ;;  %v12748_v62 = vrot.slane %v12734_v2, %v16549_v10  ;;  %v12898_v15 = vcombine.low %v21228_v24, %v21253_v47  ;;  %v23511_v7 = vrot.slane %v21143_v52, 2 }
 0x9cf   :  { %v12899_v32 = vcombine.low %v21255_v29, %v21257_v22  ;;  %v12900_v55 = vcombine.low %v21259_v40, %v21247_v57  ;;  %v12907_v27 = vrot.slane %v12897_v36, %v16549_v10  ;;  %v21274_v41 = vadd.f32 %v12837_v44, %v12821_v5 }
 0x9d0   :  { %v12826_v28 = vadd.f32 %v23511_v7, %v12778_v54  ;;  %v12780_v21 = vadd.f32 %v12741_v31, %v21150_v3  ;;  %v12843_v0 = vrot.slane %v12741_v31, 2  ;;  %v12844_v19 = vrot.slane %v12748_v62, 2 }
 0x9d1   :  { %v12914_v8 = vrot.slane %v12898_v15, %v16549_v10  ;;  %v12921_v38 = vrot.slane %v12899_v32, %v16549_v10  ;;  %v12928_v52 = vrot.slane %v12900_v55, %v16549_v10  ;;  %v21280_v60 = vadd.f32 %v12838_v11, %v12822_v51 }
 0x9d2   :  { %v21282_v35 = vadd.f32 %v12839_v20, %v12823_v56  ;;  %v23512_v25 = vrot.slane %v21153_v63, 2  ;;  %v21286_v26 = vadd.f32 %v12843_v0, %v12827_v14  ;;  %v21288_v4 = vadd.f32 %v12840_v61, %v12824_v30 }
 0x9d3   :  { %v12929_v42 = vcombine.low %v12907_v27, %v12914_v8  ;;  %v12930_v33 = vcombine.high %v12907_v27, %v12914_v8  ;;  %v12931_v3 = vcombine.low %v12921_v38, %v12928_v52  ;;  %v12932_v59 = vcombine.high %v12921_v38, %v12928_v52 }
 0x9d4   :  { %v12828_v16 = vadd.f32 %v23512_v25, %v12780_v21  ;;  %v21290_v50 = vadd.f32 %v12841_v58, %v12825_v37  ;;  %v21296_v13 = vadd.f32 %v12842_v49, %v12826_v28  ;;  %v12963_v9 = vcombine.low %v21274_v41, %v21280_v60 }
 0x9d5   :  { %v12939_v1 = vrot.slane %v12929_v42, %v16549_v10  ;;  %v12946_v48 = vrot.slane %v12930_v33, %v16549_v10  ;;  %v12953_v63 = vrot.slane %v12931_v3, %v16549_v10  ;;  %v12960_v6 = vrot.slane %v12932_v59, %v16549_v10 }
 0x9d6   :  { %v21292_v45 = vadd.f32 %v12844_v19, %v12828_v16  ;;  %v12964_v23 = vcombine.low %v21282_v35, %v21288_v4  ;;  %v12965_v17 = vcombine.low %v21290_v50, %v21296_v13  ;;  %v12973_v12 = vrot.slane %v12963_v9, %v16549_v10 }
 0x9d7   :  { %v12961_v53 = vcombine.low %v12939_v1, %v12953_v63  ;;  %v12962_v54 = vcombine.low %v12946_v48, %v12960_v6 }
 0x9d8   :  { %v12966_v46 = vcombine.low %v21286_v26, %v21292_v45  ;;  %v12980_v5 = vrot.slane %v12964_v23, %v16549_v10  ;;  %v12987_v30 = vrot.slane %v12965_v17, %v16549_v10 }
 0x9d9   :  { %v13033_v44 = vadd.f32 %v12962_v54, %v12961_v53 }
 0x9da   :  { %v12994_v37 = vrot.slane %v12966_v46, %v16549_v10  ;;  %v12995_v51 = vcombine.low %v12973_v12, %v12980_v5  ;;  %v12996_v56 = vcombine.high %v12973_v12, %v12980_v5 }
 0x9db   :  { %13034 = vadd.xlane.f32.xlu1 %v13033_v44 }
 0x9dc   :  { %v12997_v11 = vcombine.low %v12987_v30, %v12994_v37  ;;  %v12998_v20 = vcombine.high %v12987_v30, %v12994_v37  ;;  %v13005_v61 = vrot.slane %v12995_v51, %v16549_v10  ;;  %v13012_v58 = vrot.slane %v12996_v56, %v16549_v10 }
 0x9de   :  { %v13019_v49 = vrot.slane %v12997_v11, %v16549_v10  ;;  %v13026_v34 = vrot.slane %v12998_v20, %v16549_v10 }
 0x9e0   :  { %v13027_v2 = vcombine.low %v13005_v61, %v13019_v49  ;;  %v13028_v14 = vcombine.low %v13012_v58, %v13026_v34 }
 0x9e2   :  { %v13036_v36 = vadd.f32 %v13028_v14, %v13027_v2 }
 0x9e4   :  { %13037 = vadd.xlane.f32.xlu0 %v13036_v36 }
 0xa64   :  { %v13035_v31 = vpop.xlane.xlu1 %13034 }
 0xa65   :  { %v13039_v62 = vrot.slane %v13035_v31, 4 }
 0xa67   :  { %v13040_v15 = vadd.f32 %v13039_v62, %v13035_v31 }
 0xa69   :  { %v13041_v7 = vrot.slane %v13040_v15, 2 }
 0xa6b   :  { %v13042_v28 = vadd.f32 %v13041_v7, %v13040_v15 }
 0xa6d   :  { %v13038_v32 = vpop.xlane.xlu0 %13037  ;;  %v13043_v27 = vrot.slane %v13042_v28, 1 }
 0xa6e   :  { %v13045_v55 = vrot.slane %v13038_v32, 4 }
 0xa6f   :  { %v13044_v0 = vadd.f32 %v13043_v27, %v13042_v28 }
 0xa70   :  { %v13046_v21 = vadd.f32 %v13045_v55, %v13038_v32 }
 0xa71   :  { %v13051_v8 = vmul.f32 0.00048828125, %v13044_v0 }
 0xa72   :  { %v13047_v19 = vrot.slane %v13046_v21, 2 }
 0xa73   :  { %v21317_v52 = vsub.f32 %v21224_v18, %v13051_v8  ;;  %v21320_v25 = vsub.f32 %v21226_v39, %v13051_v8  ;;  %v21323_v16 = vsub.f32 %v21228_v24, %v13051_v8  ;;  %v21326_v42 = vsub.f32 %v21253_v47, %v13051_v8 }
 0xa74   :  { %v13048_v38 = vadd.f32 %v13047_v19, %v13046_v21  ;;  %v21329_v3 = vsub.f32 %v21255_v29, %v13051_v8  ;;  %v21332_v59 = vsub.f32 %v21257_v22, %v13051_v8  ;;  %v21335_v1 = vsub.f32 %v21259_v40, %v13051_v8 }
 0xa75   :  { %v21338_v18 = vsub.f32 %v21247_v57, %v13051_v8  ;;  %v13069_v39 = vmul.f32 %v21317_v52, %v21317_v52  ;;  %v13070_v24 = vmul.f32 %v21320_v25, %v21320_v25  ;;  %v13071_v47 = vmul.f32 %v21323_v16, %v21323_v16 }
 0xa76   :  { %v13049_v33 = vrot.slane %v13048_v38, 1  ;;  %v13072_v22 = vmul.f32 %v21326_v42, %v21326_v42  ;;  %v13073_v40 = vmul.f32 %v21329_v3, %v21329_v3  ;;  %v13074_v57 = vmul.f32 %v21332_v59, %v21332_v59 }
 0xa77   :  { %v13075_v48 = vmul.f32 %v21335_v1, %v21335_v1  ;;  %v13076_v63 = vmul.f32 %v21338_v18, %v21338_v18  ;;  %v13101_v6 = vcombine.low %v13069_v39, %v13070_v24 }
 0xa78   :  { %v13050_v29 = vadd.f32 %v13049_v33, %v13048_v38  ;;  %v13102_v23 = vcombine.low %v13071_v47, %v13072_v22  ;;  %v13103_v17 = vcombine.low %v13073_v40, %v13074_v57 }
 0xa79   :  { %v13104_v46 = vcombine.low %v13075_v48, %v13076_v63  ;;  %v13111_v53 = vrot.slane %v13101_v6, %v16549_v10 }
 0xa7a   :  { %v13052_v9 = vmul.f32 0.00048828125, %v13050_v29  ;;  %v13118_v61 = vrot.slane %v13102_v23, %v16549_v10  ;;  %v13125_v58 = vrot.slane %v13103_v17, %v16549_v10 }
 0xa7b   :  { %v13132_v2 = vrot.slane %v13104_v46, %v16549_v10 }
 0xa7c   :  { %v21358_v54 = vsub.f32 %v21274_v41, %v13052_v9  ;;  %v21361_v12 = vsub.f32 %v21280_v60, %v13052_v9  ;;  %v21364_v5 = vsub.f32 %v21282_v35, %v13052_v9  ;;  %v21367_v30 = vsub.f32 %v21288_v4, %v13052_v9 }
 0xa7d   :  { %v21370_v37 = vsub.f32 %v21290_v50, %v13052_v9  ;;  %v21373_v44 = vsub.f32 %v21296_v13, %v13052_v9  ;;  %v21376_v51 = vsub.f32 %v21286_v26, %v13052_v9  ;;  %v21379_v41 = vsub.f32 %v21292_v45, %v13052_v9 }
 0xa7e   :  { %v13077_v60 = vmul.f32 %v21358_v54, %v21358_v54  ;;  %v13078_v35 = vmul.f32 %v21361_v12, %v21361_v12  ;;  %v13079_v4 = vmul.f32 %v21364_v5, %v21364_v5  ;;  %v13080_v50 = vmul.f32 %v21367_v30, %v21367_v30 }
 0xa7f   :  { %v13081_v13 = vmul.f32 %v21370_v37, %v21370_v37  ;;  %v13082_v26 = vmul.f32 %v21373_v44, %v21373_v44  ;;  %v13083_v45 = vmul.f32 %v21376_v51, %v21376_v51  ;;  %v13084_v56 = vmul.f32 %v21379_v41, %v21379_v41 }
 0xa80   :  { %v13167_v11 = vcombine.low %v13077_v60, %v13078_v35  ;;  %v13168_v20 = vcombine.low %v13079_v4, %v13080_v50  ;;  %v13133_v31 = vcombine.low %v13111_v53, %v13118_v61  ;;  %v13134_v62 = vcombine.high %v13111_v53, %v13118_v61  ;;  %v16280_v61 = vld [vmem:[%s22874_s12 + $0x4] ss:$8 sps:$4 sm:$0xff]  }
 0xa81   :  { %v13169_v49 = vcombine.low %v13081_v13, %v13082_v26  ;;  %v13170_v34 = vcombine.low %v13083_v45, %v13084_v56  ;;  %v13135_v28 = vcombine.low %v13125_v58, %v13132_v2  ;;  %v13136_v32 = vcombine.high %v13125_v58, %v13132_v2  ;;  %v16281_v58 = vld [vmem:[%s22875_s13] ss:$8 sps:$4 sm:$0xff]  }
 0xa82   :  { %v13177_v14 = vrot.slane %v13167_v11, %v16549_v10  ;;  %v13184_v36 = vrot.slane %v13168_v20, %v16549_v10  ;;  %v13143_v38 = vrot.slane %v13133_v31, %v16549_v10  ;;  %v13150_v33 = vrot.slane %v13134_v62, %v16549_v10  ;;  %v16278_v20 = vld [vmem:[%s22874_s12] ss:$8 sps:$4 sm:$0xff]  }
 0xa83   :  { %v13191_v15 = vrot.slane %v13169_v49, %v16549_v10  ;;  %v13198_v7 = vrot.slane %v13170_v34, %v16549_v10  ;;  %v13157_v47 = vrot.slane %v13135_v28, %v16549_v10  ;;  %v13164_v29 = vrot.slane %v13136_v32, %v16549_v10  ;;  %v16283_v49 = vld [vmem:[%s22875_s13 + $0x4] ss:$8 sps:$4 sm:$0xff]  }
 0xa84   :  { %v13199_v55 = vcombine.low %v13177_v14, %v13184_v36  ;;  %v13200_v27 = vcombine.high %v13177_v14, %v13184_v36  ;;  %v13287_v36 = vrot.slane %v16278_v20, %v16549_v10  ;;  %v13294_v31 = vrot.slane %v16280_v61, %v16549_v10 }
 0xa85   :  { %v13201_v21 = vcombine.low %v13191_v15, %v13198_v7  ;;  %v13202_v0 = vcombine.high %v13191_v15, %v13198_v7  ;;  %v13165_v48 = vcombine.low %v13143_v38, %v13157_v47  ;;  %v13166_v63 = vcombine.low %v13150_v33, %v13164_v29 }
 0xa86   :  { %v13209_v19 = vrot.slane %v13199_v55, %v16549_v10  ;;  %v13216_v8 = vrot.slane %v13200_v27, %v16549_v10  ;;  %v13363_v62 = vrot.slane %v16281_v58, %v16549_v10  ;;  %v13370_v15 = vrot.slane %v16283_v49, %v16549_v10 }
 0xa87   :  { %v13223_v39 = vrot.slane %v13201_v21, %v16549_v10  ;;  %v13230_v24 = vrot.slane %v13202_v0, %v16549_v10  ;;  %v13237_v6 = vadd.f32 %v13166_v63, %v13165_v48  ;;  %v13295_v28 = vcombine.high %v13287_v36, %v13287_v36 }
 0xa88   :  { %v13296_v32 = vcombine.high %v13294_v31, %v13294_v31  ;;  %v13371_v55 = vcombine.high %v13363_v62, %v13363_v62  ;;  %v13372_v27 = vcombine.high %v13370_v15, %v13370_v15  ;;  %v21429_v21 = vrot.slane %v13287_v36, %v16549_v10 }
 0xa89   :  { %v13231_v22 = vcombine.low %v13209_v19, %v13223_v39  ;;  %v13232_v40 = vcombine.low %v13216_v8, %v13230_v24  ;;  %v21432_v0 = vrot.slane %v13294_v31, %v16549_v10  ;;  %v21435_v19 = vrot.slane %v13295_v28, %v16549_v10 }
 0xa8a   :  { %v21438_v8 = vrot.slane %v13296_v32, %v16549_v10  ;;  %v21441_v38 = vrot.slane %v13363_v62, %v16549_v10  ;;  %v21444_v33 = vrot.slane %v13370_v15, %v16549_v10  ;;  %v21447_v39 = vrot.slane %v13371_v55, %v16549_v10 }
 0xa8b   :  { %v13240_v57 = vadd.f32 %v13232_v40, %v13231_v22  ;;  %v21450_v24 = vrot.slane %v13372_v27, %v16549_v10  ;;  %v21454_v47 = vcombine.high %v21429_v21, %v21429_v21  ;;  %v21458_v29 = vcombine.high %v21432_v0, %v21432_v0 }
 0xa8c   :  { %v21462_v22 = vcombine.high %v21435_v19, %v21435_v19  ;;  %v21466_v40 = vcombine.high %v21438_v8, %v21438_v8  ;;  %v21470_v48 = vcombine.high %v21441_v38, %v21441_v38  ;;  %v21474_v63 = vcombine.high %v21444_v33, %v21444_v33 }
 0xa8d   :  { %13241 = vadd.xlane.f32.xlu0 %v13240_v57 }
 0xa91   :  { %13238 = vadd.xlane.f32.xlu0 %v13237_v6  ;;  %v21478_v6 = vcombine.high %v21447_v39, %v21447_v39 }
 0xb16   :  { %v13242_v9 = vpop.xlane.xlu0 %13241 }
 0xb17   :  { %v13249_v23 = vrot.slane %v13242_v9, 4 }
 0xb19   :  { %v13250_v17 = vadd.f32 %v13249_v23, %v13242_v9  ;;  %v21482_v9 = vcombine.high %v21450_v24, %v21450_v24 }
 0xb1a   :  { %v13239_v46 = vpop.xlane.xlu0 %13238 }
 0xb1b   :  { %v13251_v53 = vrot.slane %v13250_v17, 2  ;;  %v13243_v60 = vrot.slane %v13239_v46, 4 }
 0xb1d   :  { %v13252_v35 = vadd.f32 %v13251_v53, %v13250_v17  ;;  %v13244_v4 = vadd.f32 %v13243_v60, %v13239_v46 }
 0xb1f   :  { %v13253_v50 = vrot.slane %v13252_v35, 1  ;;  %v13245_v13 = vrot.slane %v13244_v4, 2 }
 0xb21   :  { %v13254_v26 = vadd.f32 %v13253_v50, %v13252_v35  ;;  %v13246_v45 = vadd.f32 %v13245_v13, %v13244_v4 }
 0xb23   :  { %v13256_v56 = vmul.f32 0.00048828125, %v13254_v26  ;;  %v13247_v11 = vrot.slane %v13246_v45, 1 }
 0xb25   :  { %v13258_v34 = vadd.f32 1e-05, %v13256_v56  ;;  %v13248_v2 = vadd.f32 %v13247_v11, %v13246_v45 }
 0xb27   :  { %16288 = vrsqrt.f32 %v13258_v34  ;;  %v13255_v14 = vmul.f32 0.00048828125, %v13248_v2 }
 0xb29   :  { %v13257_v7 = vadd.f32 1e-05, %v13255_v14 }
 0xb2b   :  { %16290 = vrsqrt.f32 %v13257_v7 }
 0xb34   :  { %v16289_v57 = vpop.eup %16288 }
 0xb35   :  { %v13269_v23 = vmul.f32 %v16289_v57, %v21358_v54  ;;  %v13270_v17 = vmul.f32 %v16289_v57, %v21361_v12  ;;  %v13271_v46 = vmul.f32 %v16289_v57, %v21364_v5  ;;  %v13272_v53 = vmul.f32 %v16289_v57, %v21367_v30 }
 0xb36   :  { %v13273_v60 = vmul.f32 %v16289_v57, %v21370_v37  ;;  %v13274_v35 = vmul.f32 %v16289_v57, %v21373_v44  ;;  %v13275_v4 = vmul.f32 %v16289_v57, %v21376_v51  ;;  %v13276_v50 = vmul.f32 %v16289_v57, %v21379_v41 }
 0xb37   :  { %v13345_v13 = vmul.f32 %v21429_v21, %v13269_v23  ;;  %v13346_v26 = vmul.f32 %v21435_v19, %v13270_v17  ;;  %v13347_v54 = vmul.f32 %v21454_v47, %v13271_v46  ;;  %v13348_v12 = vmul.f32 %v21462_v22, %v13272_v53 }
 0xb38   :  { %v13349_v5 = vmul.f32 %v21432_v0, %v13273_v60  ;;  %v13350_v30 = vmul.f32 %v21438_v8, %v13274_v35  ;;  %v13351_v37 = vmul.f32 %v21458_v29, %v13275_v4  ;;  %v13352_v44 = vmul.f32 %v21466_v40, %v13276_v50  ;;  %v16291_v11 = vpop.eup %16290 }
 0xb39   :  { %v13421_v51 = vadd.f32 %v21441_v38, %v13345_v13  ;;  %v13422_v41 = vadd.f32 %v21447_v39, %v13346_v26  ;;  %v13423_v45 = vadd.f32 %v21470_v48, %v13347_v54  ;;  %v13424_v56 = vadd.f32 %v21478_v6, %v13348_v12 }
 0xb3a   :  { %v13425_v20 = vadd.f32 %v21444_v33, %v13349_v5  ;;  %v13426_v61 = vadd.f32 %v21450_v24, %v13350_v30  ;;  %v13427_v58 = vadd.f32 %v21474_v63, %v13351_v37  ;;  %v13428_v49 = vadd.f32 %v21482_v9, %v13352_v44 }
 0xb3b   :  { %vm13437_vm15 = vcmp.gt.f32.partialorder %v13421_v51, 0.0  ;;  %vm13438_vm0 = vcmp.gt.f32.partialorder %v13422_v41, 0.0  ;;  %vm13439_vm1 = vcmp.gt.f32.partialorder %v13423_v45, 0.0  ;;  %vm13440_vm3 = vcmp.gt.f32.partialorder %v13424_v56, 0.0 }
 0xb3c   :  { %vm13441_vm4 = vcmp.gt.f32.partialorder %v13425_v20, 0.0  ;;  %vm13442_vm7 = vcmp.gt.f32.partialorder %v13426_v61, 0.0  ;;  %vm13443_vm8 = vcmp.gt.f32.partialorder %v13427_v58, 0.0  ;;  %vm13444_vm9 = vcmp.gt.f32.partialorder %v13428_v49, 0.0 }
 0xb3d   :  { %v13453_v34 = vmul.f32 0.2, %v13421_v51  ;;  %v13454_v2 = vmul.f32 0.2, %v13422_v41  ;;  %v13455_v14 = vmul.f32 0.2, %v13423_v45  ;;  %v13261_v36 = vmul.f32 %v16291_v11, %v21317_v52 }
 0xb3e   :  { %v13456_v31 = vmul.f32 0.2, %v13424_v56  ;;  %v13457_v62 = vmul.f32 0.2, %v13425_v20  ;;  %v13458_v15 = vmul.f32 0.2, %v13426_v61  ;;  %v13262_v7 = vmul.f32 %v16291_v11, %v21320_v25 }
 0xb3f   :  { %v13459_v28 = vmul.f32 0.2, %v13427_v58  ;;  %v13460_v32 = vmul.f32 0.2, %v13428_v49  ;;  %v13469_v55 = vsel %vm13437_vm15, %v13421_v51, %v13453_v34  ;;  %v13470_v27 = vsel %vm13438_vm0, %v13422_v41, %v13454_v2 }
 0xb40   :  { %v13471_v57 = vsel %vm13439_vm1, %v13423_v45, %v13455_v14  ;;  %v13472_v23 = vsel %vm13440_vm3, %v13424_v56, %v13456_v31  ;;  %v13473_v17 = vsel %vm13441_vm4, %v13425_v20, %v13457_v62  ;;  %v13474_v46 = vsel %vm13442_vm7, %v13426_v61, %v13458_v15  ;;  %vm16067_vm4 = vmneg %vm10564_vm14 }
 0xb41   :  { %v13475_v52 = vsel %vm13443_vm8, %v13427_v58, %v13459_v28  ;;  %v13476_v53 = vsel %vm13444_vm9, %v13428_v49, %v13460_v32  ;;  %v13562_v60 = vcombine.low %v13469_v55, %v13470_v27  ;;  %v13563_v25 = vcombine.low %v13471_v57, %v13472_v23 }
 0xb42   :  { %v13564_v35 = vcombine.low %v13473_v17, %v13474_v46  ;;  %v13565_v4 = vcombine.low %v13475_v52, %v13476_v53  ;;  %v13263_v50 = vmul.f32 %v16291_v11, %v21323_v16  ;;  %v13264_v13 = vmul.f32 %v16291_v11, %v21326_v42 }
 0xb43   :  { %v13572_v26 = vrot.slane %v13562_v60, %v16549_v10  ;;  %v13579_v54 = vrot.slane %v13563_v25, %v16549_v10  ;;  %v13265_v12 = vmul.f32 %v16291_v11, %v21329_v3  ;;  %v13266_v5 = vmul.f32 %v16291_v11, %v21332_v59 }
 0xb44   :  { %v13586_v30 = vrot.slane %v13564_v35, %v16549_v10  ;;  %v13593_v37 = vrot.slane %v13565_v4, %v16549_v10  ;;  %v13267_v44 = vmul.f32 %v16291_v11, %v21335_v1  ;;  %v13268_v51 = vmul.f32 %v16291_v11, %v21338_v18 }
 0xb45   :  { %v13595_v41 = vcombine.high %v13572_v26, %v13579_v54  ;;  %v13594_v16 = vcombine.low %v13572_v26, %v13579_v54  ;;  %v13337_v42 = vmul.f32 %v21429_v21, %v13261_v36  ;;  %v13338_v45 = vmul.f32 %v21435_v19, %v13262_v7 }
 0xb46   :  { %v13597_v56 = vcombine.high %v13586_v30, %v13593_v37  ;;  %v13596_v20 = vcombine.low %v13586_v30, %v13593_v37  ;;  %v13339_v3 = vmul.f32 %v21454_v47, %v13263_v50  ;;  %v13340_v59 = vmul.f32 %v21462_v22, %v13264_v13 }
 0xb47   :  { %v13611_v61 = vrot.slane %v13595_v41, %v16549_v10  ;;  %v13604_v58 = vrot.slane %v13594_v16, %v16549_v10  ;;  %v13341_v1 = vmul.f32 %v21432_v0, %v13265_v12  ;;  %v13342_v18 = vmul.f32 %v21438_v8, %v13266_v5 }
 0xb48   :  { %v13625_v11 = vrot.slane %v13597_v56, %v16549_v10  ;;  %v13618_v21 = vrot.slane %v13596_v20, %v16549_v10  ;;  %v13343_v19 = vmul.f32 %v21458_v29, %v13267_v44  ;;  %v13344_v49 = vmul.f32 %v21466_v40, %v13268_v51  ;;  %v13477_v56 = vld [vmem:[%s22876_s14] sm:$0xff]  ;;  %v13478_v20 = vld [vmem:[%s22876_s14 + $0x8] sm:$0xff] }
 0xb49   :  { %v13413_v47 = vadd.f32 %v21441_v38, %v13337_v42  ;;  %v13414_v22 = vadd.f32 %v21447_v39, %v13338_v45  ;;  %v13415_v34 = vadd.f32 %v21470_v48, %v13339_v3  ;;  %v13416_v2 = vadd.f32 %v21478_v6, %v13340_v59  ;;  %v14057_v3 = vld [vmem:[%s22877_s15 + $0x1e8] sm:$0xff]  ;;  %v13479_v59 = vld [vmem:[%s22876_s14 + $0x10] sm:$0xf] }
 0xb4a   :  { %v13627_v14 = vcombine.low %v13611_v61, %v13625_v11  ;;  %v13626_v0 = vcombine.low %v13604_v58, %v13618_v21  ;;  %v13417_v8 = vadd.f32 %v21444_v33, %v13341_v1  ;;  %v13418_v36 = vadd.f32 %v21450_v24, %v13342_v18  ;;  %v14056_v61 = vld [vmem:[%s22877_s15 + $0x1e0] sm:$0xff]  ;;  %v14053_v58 = vld [vmem:[%s22877_s15 + $0x1c8] sm:$0xff] }
 0xb4b   :  { %v13419_v31 = vadd.f32 %v21474_v63, %v13343_v19  ;;  %v13420_v29 = vadd.f32 %v21482_v9, %v13344_v49  ;;  %vm13429_vm10 = vcmp.gt.f32.partialorder %v13413_v47, 0.0  ;;  %vm13430_vm11 = vcmp.gt.f32.partialorder %v13414_v22, 0.0  ;;  %v14052_v1 = vld [vmem:[%s22877_s15 + $0x1c0] sm:$0xff]  ;;  %v14049_v18 = vld [vmem:[%s22877_s15 + $0x1a8] sm:$0xff] }
 0xb4c   :  { %13634 = vrot.lane.b32.xlu0 %v13627_v14, %s16405_s3  ;;  %13632 = vrot.lane.b32.xlu1 %v13626_v0, %s16405_s3  ;;  %vm13431_vm12 = vcmp.gt.f32.partialorder %v13415_v34, 0.0  ;;  %vm13432_vm13 = vcmp.gt.f32.partialorder %v13416_v2, 0.0  ;;  %vm13433_vm15 = vcmp.gt.f32.partialorder %v13417_v8, 0.0  ;;  %vm13434_vm0 = vcmp.gt.f32.partialorder %v13418_v36, 0.0  ;;  %v14048_v11 = vld [vmem:[%s22877_s15 + $0x1a0] sm:$0xff]  ;;  %v14045_v21 = vld [vmem:[%s22877_s15 + $0x188] sm:$0xff] }
 0xb4d   :  { %vm13435_vm1 = vcmp.gt.f32.partialorder %v13419_v31, 0.0  ;;  %vm13436_vm3 = vcmp.gt.f32.partialorder %v13420_v29, 0.0  ;;  %v13445_v38 = vmul.f32 0.2, %v13413_v47  ;;  %v13446_v33 = vmul.f32 0.2, %v13414_v22 }
 0xb4e   :  { %v13447_v39 = vmul.f32 0.2, %v13415_v34  ;;  %v13448_v24 = vmul.f32 0.2, %v13416_v2  ;;  %v13449_v40 = vmul.f32 0.2, %v13417_v8 }
 0xb4f   :  { %v13450_v48 = vmul.f32 0.2, %v13418_v36  ;;  %v13451_v63 = vmul.f32 0.2, %v13419_v31  ;;  %v13452_v6 = vmul.f32 0.2, %v13420_v29  ;;  %v13461_v9 = vsel %vm13429_vm10, %v13413_v47, %v13445_v38 }
 0xb50   :  { %v13462_v62 = vsel %vm13430_vm11, %v13414_v22, %v13446_v33  ;;  %v13463_v15 = vsel %vm13431_vm12, %v13415_v34, %v13447_v39  ;;  %v13464_v7 = vsel %vm13432_vm13, %v13416_v2, %v13448_v24  ;;  %v13465_v28 = vsel %vm13433_vm15, %v13417_v8, %v13449_v40  ;;  %v14044_v19 = vld [vmem:[%s22877_s15 + $0x180] sm:$0xff]  ;;  %v14041_v49 = vld [vmem:[%s22877_s15 + $0x168] sm:$0xff] }
 0xb51   :  { %v13466_v32 = vsel %vm13434_vm0, %v13418_v36, %v13450_v48  ;;  %v13467_v55 = vsel %vm13435_vm1, %v13419_v31, %v13451_v63  ;;  %v13468_v27 = vsel %vm13436_vm3, %v13420_v29, %v13452_v6  ;;  %v13496_v57 = vcombine.low %v13461_v9, %v13462_v62  ;;  %v14040_v47 = vld [vmem:[%s22877_s15 + $0x160] sm:$0xff]  ;;  %v14037_v22 = vld [vmem:[%s22877_s15 + $0x148] sm:$0xff] }
 0xb52   :  { %v13497_v23 = vcombine.low %v13463_v15, %v13464_v7  ;;  %v13498_v17 = vcombine.low %v13465_v28, %v13466_v32  ;;  %v13499_v46 = vcombine.low %v13467_v55, %v13468_v27  ;;  %v14036_v34 = vld [vmem:[%s22877_s15 + $0x140] sm:$0xff]  ;;  %v14033_v2 = vld [vmem:[%s22877_s15 + $0x128] sm:$0xff]  ;;  %vm15889_vm12 = vcmask 0  }
 0xb53   :  { %v13506_v52 = vrot.slane %v13496_v57, %v16549_v10  ;;  %v14032_v14 = vld [vmem:[%s22877_s15 + $0x120] sm:$0xff]  ;;  %v14029_v0 = vld [vmem:[%s22877_s15 + $0x108] sm:$0xff] }
 0xb54   :  { %v13513_v53 = vrot.slane %v13497_v23, %v16549_v10  ;;  %v13520_v60 = vrot.slane %v13498_v17, %v16549_v10  ;;  %v13527_v25 = vrot.slane %v13499_v46, %v16549_v10  ;;  %v14028_v8 = vld [vmem:[%s22877_s15 + $0x100] sm:$0xff]  ;;  %v14025_v36 = vld [vmem:[%s22877_s15 + $0xe8] sm:$0xff] }
 0xb55   :  { %v14024_v31 = vld [vmem:[%s22877_s15 + $0xe0] sm:$0xff]  ;;  %v14021_v29 = vld [vmem:[%s22877_s15 + $0xc8] sm:$0xff] }
 0xb56   :  { %v13528_v35 = vcombine.low %v13506_v52, %v13513_v53  ;;  %v13530_v4 = vcombine.low %v13520_v60, %v13527_v25  ;;  %v13529_v50 = vcombine.high %v13506_v52, %v13513_v53  ;;  %v13531_v13 = vcombine.high %v13520_v60, %v13527_v25  ;;  %v14020_v38 = vld [vmem:[%s22877_s15 + $0xc0] sm:$0xff]  ;;  %v14017_v33 = vld [vmem:[%s22877_s15 + $0xa8] sm:$0xff] }
 0xb57   :  { %v14016_v39 = vld [vmem:[%s22877_s15 + $0xa0] sm:$0xff]  ;;  %v14013_v24 = vld [vmem:[%s22877_s15 + $0x88] sm:$0xff] }
 0xb58   :  { %v13538_v26 = vrot.slane %v13528_v35, %v16549_v10  ;;  %v13552_v54 = vrot.slane %v13530_v4, %v16549_v10  ;;  %v13545_v5 = vrot.slane %v13529_v50, %v16549_v10  ;;  %v13559_v30 = vrot.slane %v13531_v13, %v16549_v10  ;;  %v14012_v40 = vld [vmem:[%s22877_s15 + $0x80] sm:$0xff]  ;;  %v14009_v48 = vld [vmem:[%s22877_s15 + $0x68] sm:$0xff] }
 0xb59   :  { %v14008_v63 = vld [vmem:[%s22877_s15 + $0x60] sm:$0xff]  ;;  %v14005_v6 = vld [vmem:[%s22877_s15 + $0x48] sm:$0xff] }
 0xb5a   :  { %v13560_v12 = vcombine.low %v13538_v26, %v13552_v54  ;;  %v13561_v37 = vcombine.low %v13545_v5, %v13559_v30  ;;  %v14004_v9 = vld [vmem:[%s22877_s15 + $0x40] sm:$0xff]  ;;  %v14001_v62 = vld [vmem:[%s22877_s15 + $0x28] sm:$0xff] }
 0xb5b   :  { %v14000_v15 = vld [vmem:[%s22877_s15 + $0x20] sm:$0xff]  ;;  %v13997_v7 = vld [vmem:[%s22877_s15 + $0x8] sm:$0xff] }
 0xb5c   :  { %13628 = vrot.lane.b32.xlu1 %v13560_v12, %s16405_s3  ;;  %v13996_v28 = vld [vmem:[%s22877_s15] sm:$0xff]  ;;  %v14121_v32 = vld [vmem:[%s22877_s15 + $0x3e8] sm:$0xff] }
 0xb5d   :  { %v14120_v55 = vld [vmem:[%s22877_s15 + $0x3e0] sm:$0xff]  ;;  %v14117_v27 = vld [vmem:[%s22877_s15 + $0x3c8] sm:$0xff] }
 0xb5e   :  { %v14116_v57 = vld [vmem:[%s22877_s15 + $0x3c0] sm:$0xff]  ;;  %v14113_v23 = vld [vmem:[%s22877_s15 + $0x3a8] sm:$0xff] }
 0xb5f   :  { %v14112_v17 = vld [vmem:[%s22877_s15 + $0x3a0] sm:$0xff]  ;;  %v14109_v46 = vld [vmem:[%s22877_s15 + $0x388] sm:$0xff] }
 0xb60   :  { %13630 = vrot.lane.b32.xlu1 %v13561_v37, %s16405_s3  ;;  %v14108_v52 = vld [vmem:[%s22877_s15 + $0x380] sm:$0xff]  ;;  %v14105_v53 = vld [vmem:[%s22877_s15 + $0x368] sm:$0xff] }
 0xb61   :  { %v14104_v60 = vld [vmem:[%s22877_s15 + $0x360] sm:$0xff]  ;;  %v14101_v25 = vld [vmem:[%s22877_s15 + $0x348] sm:$0xff] }
 0xb62   :  { %v14100_v35 = vld [vmem:[%s22877_s15 + $0x340] sm:$0xff]  ;;  %v14097_v4 = vld [vmem:[%s22877_s15 + $0x328] sm:$0xff] }
 0xb63   :  { %v14096_v50 = vld [vmem:[%s22877_s15 + $0x320] sm:$0xff]  ;;  %v14093_v13 = vld [vmem:[%s22877_s15 + $0x308] sm:$0xff] }
 0xb64   :  { %v14092_v26 = vld [vmem:[%s22877_s15 + $0x300] sm:$0xff]  ;;  %v14153_v54 = vld [vmem:[%s22877_s15 + $0x4e8] sm:$0xff] }
 0xb65   :  { %14508 = vmatprep.subr.mxu1 %v14153_v54  ;;  %v14089_v12 = vld [vmem:[%s22877_s15 + $0x2e8] sm:$0xff]  ;;  %v14152_v5 = vld [vmem:[%s22877_s15 + $0x4e0] sm:$0xff] }
 0xb66   :  { %14509 = vmatpush1.msra.mxu1 %v14152_v5  ;;  %v14088_v30 = vld [vmem:[%s22877_s15 + $0x2e0] sm:$0xff]  ;;  %v14149_v37 = vld [vmem:[%s22877_s15 + $0x4c8] sm:$0xff] }
 0xb67   :  { %14510 = vmatprep.subr.mxu1 %v14149_v37 }
 0xbbe   :  { %v13633_v44 = vpop.permute.xlu1 %13632  ;;  %v13635_v51 = vpop.permute.xlu0 %13634 }
 0xbbf   :  { %v13637_v41 = vsel %vm10564_vm14, %v13633_v44, %v13635_v51 }
 0xbc0   :  { %13685 = vmatprep.subr.mxu0 %v13637_v41  ;;  %v14084_v41 = vld [vmem:[%s22877_s15 + $0x2c0] sm:$0xff] }
 0xbc1   :  { %16068 = vmatpush1.msk.msra.mxu0 %vm16067_vm4, %v13633_v44  ;;  %v14085_v44 = vld [vmem:[%s22877_s15 + $0x2c8] sm:$0xff] }
 0xbce   :  { %v13629_v16 = vpop.permute.xlu1 %13628 }
 0xbd2   :  { %v13631_v42 = vpop.permute.xlu1 %13630 }
 0xbd3   :  { %v13636_v45 = vsel %vm10564_vm14, %v13629_v16, %v13631_v42 }
 0xbd4   :  { %13687 = vmatprep.subr.mxu0 %v13636_v45  ;;  %v14144_v45 = vld [vmem:[%s22877_s15 + $0x4a0] sm:$0xff] }
 0xbd5   :  { %16070 = vmatpush1.msk.msra.mxu0 %vm16067_vm4, %v13629_v16  ;;  %v14145_v16 = vld [vmem:[%s22877_s15 + $0x4a8] sm:$0xff] }
 0xbd6   :  { %16071 = vmatmul.mubr.msk.f32.vlgmr.msra.gmra.mxu0 %vm7032_vm6, %v13477_v56  ;;  %16189 = vmatprep.subr.mxu0 %v23510_v43 }
 0xbd7   :  { %16190 = vmatpush3.msk.msra.mxu0 %vm10564_vm14, %v13635_v51  ;;  %13727 = vmatprep.mubr.f32.mxu0 %v23510_v43  ;;  %v14148_v51 = vld [vmem:[%s22877_s15 + $0x4c0] sm:$0xff] }
 0xbd8   :  { %16191 = vmatprep.subr.mxu0 %v23510_v43  ;;  %14511 = vmatpush1.msra.mxu1 %v14148_v51 }
 0xbd9   :  { %16192 = vmatpush3.msk.msra.mxu0 %vm10564_vm14, %v13631_v42  ;;  %14512 = vmatprep.subr.mxu1 %v14145_v16  ;;  %v14081_v42 = vld [vmem:[%s22877_s15 + $0x2a8] sm:$0xff] }
 0xbda   :  { %16072 = vmatmul.mubr.msk.f32.gmra.mxu0 %vm7032_vm6, %v13478_v20  ;;  %14415 = vmatprep.subr.mxu0 %v14057_v3  ;;  %v14077_v3 = vld [vmem:[%s22877_s15 + $0x288] sm:$0xff] }
 0xbdb   :  { %13733 = vmatprep.mubr.f32.mxu0 %v23510_v43  ;;  %14513 = vmatpush1.msra.mxu1 %v14144_v45 }
 0xbde   :  { %16073 = vmatmul.mubr.msk.f32.gmra.mxu0 %vm7032_vm6, %v13479_v59 }
 0xbdf   :  { %16193 = vmatprep.mubr.msk.f32.mxu0 %vm16412_vm2, %v23510_v43 }
 0xbe2   :  { %16194 = vmatmul.mubr.msk.f32.vlgmr.msra.gmra.mxu0 %vm7032_vm6, %v13477_v56  ;;  %v14080_v56 = vld [vmem:[%s22877_s15 + $0x2a0] sm:$0xff] }
 0xbe3   :  { %16196 = vmatprep.mubr.msk.f32.mxu0 %vm16412_vm2, %v23510_v43  ;;  %14416 = vmatpush1.msra.mxu0 %v14056_v61  ;;  %v14076_v61 = vld [vmem:[%s22877_s15 + $0x280] sm:$0xff] }
 0xbe4   :  { %14417 = vmatprep.subr.mxu0 %v14053_v58  ;;  %v14137_v58 = vld [vmem:[%s22877_s15 + $0x468] sm:$0xff] }
 0xbe5   :  { %14418 = vmatpush1.msra.mxu0 %v14052_v1  ;;  %v14073_v1 = vld [vmem:[%s22877_s15 + $0x268] sm:$0xff] }
 0xbe6   :  { %16197 = vmatmul.mubr.msk.f32.gmra.mxu0 %vm7032_vm6, %v13478_v20  ;;  %14419 = vmatprep.subr.mxu0 %v14049_v18  ;;  %v14141_v20 = vld [vmem:[%s22877_s15 + $0x488] sm:$0xff]  ;;  %v14136_v18 = vld [vmem:[%s22877_s15 + $0x460] sm:$0xff] }
 0xbe7   :  { %16199 = vmatprep.mubr.msk.f32.mxu0 %vm16412_vm2, %v23510_v43  ;;  %14420 = vmatpush1.msra.mxu0 %v14048_v11  ;;  %v14072_v11 = vld [vmem:[%s22877_s15 + $0x260] sm:$0xff]  ;;  %vm15496_vm2 = vcmask 1043456  }
 0xbe8   :  { %14421 = vmatprep.subr.mxu0 %v14045_v21  ;;  %14514 = vmatprep.subr.mxu1 %v14141_v20  ;;  %v14133_v21 = vld [vmem:[%s22877_s15 + $0x448] sm:$0xff] }
 0xbe9   :  { %14422 = vmatpush1.msra.mxu0 %v14044_v19  ;;  %v14069_v19 = vld [vmem:[%s22877_s15 + $0x248] sm:$0xff] }
 0xbea   :  { %16200 = vmatmul.mubr.msk.f32.gmra.mxu0 %vm7032_vm6, %v13479_v59  ;;  %14423 = vmatprep.subr.mxu0 %v14041_v49  ;;  %v14140_v59 = vld [vmem:[%s22877_s15 + $0x480] sm:$0xff] }
 0xbeb   :  { %14424 = vmatpush1.msra.mxu0 %v14040_v47  ;;  %14515 = vmatpush1.msra.mxu1 %v14140_v59  ;;  %v14132_v49 = vld [vmem:[%s22877_s15 + $0x440] sm:$0xff] }
 0xbec   :  { %14425 = vmatprep.subr.mxu0 %v14037_v22  ;;  %14516 = vmatprep.subr.mxu1 %v14137_v58  ;;  %v14068_v47 = vld [vmem:[%s22877_s15 + $0x240] sm:$0xff]  ;;  %v14129_v22 = vld [vmem:[%s22877_s15 + $0x428] sm:$0xff] }
 0xbed   :  { %14426 = vmatpush1.msra.mxu0 %v14036_v34  ;;  %14517 = vmatpush1.msra.mxu1 %v14136_v18  ;;  %v14065_v34 = vld [vmem:[%s22877_s15 + $0x228] sm:$0xff] }
 0xbee   :  { %14427 = vmatprep.subr.mxu0 %v14033_v2  ;;  %14518 = vmatprep.subr.mxu1 %v14133_v21  ;;  %v14128_v2 = vld [vmem:[%s22877_s15 + $0x420] sm:$0xff] }
 0xbef   :  { %14428 = vmatpush1.msra.mxu0 %v14032_v14  ;;  %14519 = vmatpush1.msra.mxu1 %v14132_v49  ;;  %v14064_v14 = vld [vmem:[%s22877_s15 + $0x220] sm:$0xff] }
 0xbf0   :  { %14429 = vmatprep.subr.mxu0 %v14029_v0  ;;  %14520 = vmatprep.subr.mxu1 %v14129_v22  ;;  %v14125_v0 = vld [vmem:[%s22877_s15 + $0x408] sm:$0xff] }
 0xbf1   :  { %14430 = vmatpush1.msra.mxu0 %v14028_v8  ;;  %14521 = vmatpush1.msra.mxu1 %v14128_v2  ;;  %v14061_v8 = vld [vmem:[%s22877_s15 + $0x208] sm:$0xff] }
 0xbf2   :  { %14431 = vmatprep.subr.mxu0 %v14025_v36  ;;  %14522 = vmatprep.subr.mxu1 %v14125_v0  ;;  %v14124_v36 = vld [vmem:[%s22877_s15 + $0x400] sm:$0xff] }
 0xbf3   :  { %14432 = vmatpush1.msra.mxu0 %v14024_v31  ;;  %14523 = vmatpush1.msra.mxu1 %v14124_v36  ;;  %v14060_v31 = vld [vmem:[%s22877_s15 + $0x200] sm:$0xff] }
 0xbf4   :  { %14433 = vmatprep.subr.mxu0 %v14021_v29  ;;  %v14059_v29 = vld [vmem:[%s22877_s15 + $0x1f8] sm:$0xff] }
 0xbf5   :  { %14434 = vmatpush1.msra.mxu0 %v14020_v38  ;;  %14569 = vmatprep.subr.mxu1 %v14059_v29  ;;  %v14155_v38 = vld [vmem:[%s22877_s15 + $0x4f8] sm:$0xff] }
 0xbf6   :  { %14435 = vmatprep.subr.mxu0 %v14017_v33 }
 0xbf7   :  { %14436 = vmatpush1.msra.mxu0 %v14016_v39 }
 0xbf8   :  { %14437 = vmatprep.subr.mxu0 %v14013_v24 }
 0xbf9   :  { %14438 = vmatpush1.msra.mxu0 %v14012_v40 }
 0xbfa   :  { %14439 = vmatprep.subr.mxu0 %v14009_v48 }
 0xbfb   :  { %14440 = vmatpush1.msra.mxu0 %v14008_v63 }
 0xbfc   :  { %14441 = vmatprep.subr.mxu0 %v14005_v6 }
 0xbfd   :  { %14442 = vmatpush1.msra.mxu0 %v14004_v9 }
 0xbfe   :  { %14443 = vmatprep.subr.mxu0 %v14001_v62 }
 0xbff   :  { %14444 = vmatpush1.msra.mxu0 %v14000_v15 }
 0xc00   :  { %14445 = vmatprep.subr.mxu0 %v13997_v7 }
 0xc01   :  { %14446 = vmatpush1.msra.mxu0 %v13996_v28 }
 0xc02   :  { %14447 = vmatprep.subr.mxu0 %v14121_v32 }
 0xc03   :  { %14448 = vmatpush2.msra.mxu0 %v14120_v55 }
 0xc04   :  { %14449 = vmatprep.subr.mxu0 %v14117_v27 }
 0xc05   :  { %14450 = vmatpush2.msra.mxu0 %v14116_v57 }
 0xc06   :  { %14451 = vmatprep.subr.mxu0 %v14113_v23 }
 0xc07   :  { %14452 = vmatpush2.msra.mxu0 %v14112_v17 }
 0xc08   :  { %14453 = vmatprep.subr.mxu0 %v14109_v46 }
 0xc09   :  { %14454 = vmatpush2.msra.mxu0 %v14108_v52 }
 0xc0a   :  { %14455 = vmatprep.subr.mxu0 %v14105_v53 }
 0xc0b   :  { %14456 = vmatpush2.msra.mxu0 %v14104_v60 }
 0xc0c   :  { %14457 = vmatprep.subr.mxu0 %v14101_v25 }
 0xc0d   :  { %14458 = vmatpush2.msra.mxu0 %v14100_v35 }
 0xc0e   :  { %14459 = vmatprep.subr.mxu0 %v14097_v4 }
 0xc0f   :  { %14460 = vmatpush2.msra.mxu0 %v14096_v50 }
 0xc10   :  { %14461 = vmatprep.subr.mxu0 %v14093_v13 }
 0xc11   :  { %14462 = vmatpush2.msra.mxu0 %v14092_v26 }
 0xc12   :  { %14463 = vmatprep.subr.mxu0 %v14089_v12 }
 0xc13   :  { %14464 = vmatpush2.msra.mxu0 %v14088_v30 }
 0xc14   :  { %14465 = vmatprep.subr.mxu0 %v14085_v44 }
 0xc15   :  { %14466 = vmatpush2.msra.mxu0 %v14084_v41 }
 0xc16   :  { %14467 = vmatprep.subr.mxu0 %v14081_v42 }
 0xc17   :  { %14468 = vmatpush2.msra.mxu0 %v14080_v56 }
 0xc18   :  { %14469 = vmatprep.subr.mxu0 %v14077_v3 }
 0xc19   :  { %14470 = vmatpush2.msra.mxu0 %v14076_v61 }
 0xc1a   :  { %14471 = vmatprep.subr.mxu0 %v14073_v1 }
 0xc1b   :  { %14472 = vmatpush2.msra.mxu0 %v14072_v11 }
 0xc1c   :  { %14473 = vmatprep.subr.mxu0 %v14069_v19 }
 0xc1d   :  { %14474 = vmatpush2.msra.mxu0 %v14068_v47 }
 0xc1e   :  { %14475 = vmatprep.subr.mxu0 %v14065_v34 }
 0xc1f   :  { %14476 = vmatpush2.msra.mxu0 %v14064_v14 }
 0xc20   :  { %14477 = vmatprep.subr.mxu0 %v14061_v8 }
 0xc21   :  { %14478 = vmatpush2.msra.mxu0 %v14060_v31 }
 0xc22   :  { %14662 = vmatprep.subr.mxu0 %v14155_v38 }
 0xc96   :  { %v13723_v33 = vpop.f32.mrf.mxu0 }
 0xc98   :  { %v13725_v39 = vpop.f32.mrf.mxu0 }
 0xc99   :  { %v13829_v63 = vcombine.low %v13723_v33, %v13725_v39  ;;  %v13830_v28 = vcombine.high %v13723_v33, %v13725_v39 }
 0xc9a   :  { %v13729_v24 = vpop.f32.mrf.mxu0 }
 0xc9b   :  { %v13838_v62 = vrot.slane %v13829_v63, %v16549_v10  ;;  %v21852_v60 = vrot.slane %v13830_v28, %v16549_v10 }
 0xc9c   :  { %v13731_v40 = vpop.f32.mrf.mxu0 }
 0xc9d   :  { %v13896_v32 = vcombine.low %v13729_v24, %v13731_v40  ;;  %v13897_v27 = vcombine.high %v13729_v24, %v13731_v40 }
 0xc9e   :  { %v13735_v48 = vpop.f32.mrf.mxu0 }
 0xc9f   :  { %v13905_v25 = vrot.slane %v13896_v32, %v16549_v10  ;;  %v13912_v13 = vrot.slane %v13897_v27, %v16549_v10  ;;  %v14055_v32 = vld [vmem:[%s22877_s15 + $0x1d8] sm:$0xff] }
 0xca0   :  { %v13737_v6 = vpop.f32.mrf.mxu0 }
 0xca1   :  { %v13963_v26 = vcombine.low %v13735_v48, %v13737_v6 }
 0xca2   :  { %v13806_v9 = vpop.f32.mrf.mxu0 }
 0xca3   :  { %v13831_v15 = vcombine.high %v13806_v9, %v13806_v9  ;;  %v13852_v7 = vrot.slane %v13806_v9, %v16549_v10  ;;  %v13970_v20 = vrot.slane %v13963_v26, %v16549_v10  ;;  %v14146_v26 = vld [vmem:[%s22877_s15 + $0x4b0] sm:$0xff] }
 0xca4   :  { %v16195_v55 = vpop.f32.mrf.mxu0 }
 0xca5   :  { %v13860_v57 = vcombine.low %v13838_v62, %v13852_v7  ;;  %v13861_v23 = vcombine.high %v13838_v62, %v13852_v7  ;;  %v21847_v17 = vrot.slane %v13831_v15, %v16549_v10  ;;  %v14058_v7 = vld [vmem:[%s22877_s15 + $0x1f0] sm:$0xff] }
 0xca6   :  { %v13811_v46 = vpop.f32.mrf.mxu0  ;;  %v14154_v55 = vld [vmem:[%s22877_s15 + $0x4f0] sm:$0xff] }
 0xca7   :  { %v13870_v52 = vrot.slane %v13860_v57, %v16549_v10  ;;  %v13884_v53 = vrot.slane %v13861_v23, %v16549_v10  ;;  %v13898_v35 = vcombine.high %v13811_v46, %v13811_v46  ;;  %v13919_v4 = vrot.slane %v13811_v46, %v16549_v10  ;;  %v14054_v57 = vld [vmem:[%s22877_s15 + $0x1d0] sm:$0xff]  ;;  %v14151_v23 = vld [vmem:[%s22877_s15 + $0x4d8] sm:$0xff] }
 0xca8   :  { %v16198_v50 = vpop.f32.mrf.mxu0  ;;  %v13862_v5 = vcombine.low %v21852_v60, %v21847_v17  ;;  %v13863_v28 = vcombine.high %v21852_v60, %v21847_v17  ;;  %v14051_v46 = vld [vmem:[%s22877_s15 + $0x1b8] sm:$0xff] }
 0xca9   :  { %v14316_v54 = vcombine.low %v13870_v52, %v13884_v53  ;;  %v16079_v12 = vcombine.high %v13870_v52, %v13884_v53  ;;  %v13926_v30 = vrot.slane %v13898_v35, %v16549_v10  ;;  %v13927_v37 = vcombine.low %v13905_v25, %v13919_v4  ;;  %v14150_v52 = vld [vmem:[%s22877_s15 + $0x4d0] sm:$0xff] }
 0xcaa   :  { %v13928_v44 = vcombine.high %v13905_v25, %v13919_v4  ;;  %v13816_v51 = vpop.f32.mrf.mxu0  ;;  %v21871_v58 = vrot.slane %v13862_v5, %v16549_v10  ;;  %v13891_v53 = vrot.slane %v13863_v28, %v16549_v10  ;;  %v14147_v25 = vld [vmem:[%s22877_s15 + $0x4b8] sm:$0xff]  ;;  %v14050_v4 = vld [vmem:[%s22877_s15 + $0x1b0] sm:$0xff] }
 0xcab   :  { %v13929_v41 = vcombine.low %v13912_v13, %v13926_v30  ;;  %v13930_v16 = vcombine.high %v13912_v13, %v13926_v30  ;;  %v21861_v42 = vrot.slane %v13927_v37, %v16549_v10  ;;  %v14326_v3 = vrot.slane %v14316_v54, %v16549_v10  ;;  %v14047_v13 = vld [vmem:[%s22877_s15 + $0x198] sm:$0xff]  ;;  %v14046_v54 = vld [vmem:[%s22877_s15 + $0x190] sm:$0xff] }
 0xcac   :  { %v21864_v45 = vrot.slane %v13928_v44, %v16549_v10  ;;  %v16201_v56 = vpop.f32.mrf.mxu0  ;;  %v14333_v59 = vrot.slane %v16079_v12, %v16549_v10  ;;  %v13977_v61 = vrot.slane %v13816_v51, %v16549_v10  ;;  %v13893_v12 = vcombine.high %v21871_v58, %v21871_v58  ;;  %v14143_v30 = vld [vmem:[%s22877_s15 + $0x498] sm:$0xff]  ;;  %v14142_v44 = vld [vmem:[%s22877_s15 + $0x490] sm:$0xff] }
 0xcad   :  { %v13944_v1 = vrot.slane %v13929_v41, %v16549_v10  ;;  %v13959_v18 = vcombine.high %v21861_v42, %v21861_v42  ;;  %v21879_v49 = vrot.slane %v13930_v16, %v16549_v10  ;;  %v13895_v5 = vcombine.high %v13891_v53, %v13891_v53  ;;  %v14043_v37 = vld [vmem:[%s22877_s15 + $0x178] sm:$0xff]  ;;  %v14042_v51 = vld [vmem:[%s22877_s15 + $0x170] sm:$0xff] }
 0xcae   :  { %v13961_v11 = vcombine.high %v21864_v45, %v21864_v45  ;;  %v13978_v21 = vcombine.low %v13970_v20, %v13977_v61  ;;  %v13979_v19 = vcombine.high %v13970_v20, %v13977_v61  ;;  %v14348_v2 = vcombine.low %v14326_v3, %v14333_v59  ;;  %v14139_v56 = vld [vmem:[%s22877_s15 + $0x478] sm:$0xff] }
 0xcaf   :  { %v13960_v47 = vcombine.high %v13944_v1, %v13944_v1  ;;  %v14318_v22 = vcombine.low %v21871_v58, %v13959_v18  ;;  %v14349_v29 = vcombine.high %v14326_v3, %v14333_v59  ;;  %v13962_v50 = vcombine.high %v21879_v49, %v21879_v49  ;;  %v14039_v20 = vld [vmem:[%s22877_s15 + $0x158] sm:$0xff]  ;;  %v14138_v3 = vld [vmem:[%s22877_s15 + $0x470] sm:$0xff] }
 0xcb0   :  { %v14319_v34 = vcombine.low %v13961_v11, %v13944_v1  ;;  %v21883_v14 = vrot.slane %v13978_v21, %v16549_v10  ;;  %v21886_v0 = vrot.slane %v13979_v19, %v16549_v10  ;;  %v14358_v40 = vrot.slane %v14348_v2, %v16549_v10  ;;  %v14135_v58 = vld [vmem:[%s22877_s15 + $0x458] sm:$0xff]  ;;  %v14134_v18 = vld [vmem:[%s22877_s15 + $0x450] sm:$0xff] }
 0xcb1   :  { %v14383_v8 = vcombine.low %v21879_v49, %v13960_v47  ;;  %v14340_v36 = vrot.slane %v14318_v22, %v16549_v10  ;;  %v14365_v48 = vrot.slane %v14349_v29, %v16549_v10  ;;  %v14841_v41 = vcombine.low %v21864_v45, %v13962_v50  ;;  %v14038_v45 = vld [vmem:[%s22877_s15 + $0x150] sm:$0xff]  ;;  %v14035_v1 = vld [vmem:[%s22877_s15 + $0x138] sm:$0xff] }
 0xcb2   :  { %v14347_v31 = vrot.slane %v14319_v34, %v16549_v10  ;;  %v16084_v38 = vcombine.high %v21883_v14, %v21886_v0  ;;  %v14842_v16 = vcombine.low %v21883_v14, %v21886_v0  ;;  %v14839_v59 = vcombine.low %v13891_v53, %v13893_v12  ;;  %v14131_v19 = vld [vmem:[%s22877_s15 + $0x438] sm:$0xff]  ;;  %v14130_v47 = vld [vmem:[%s22877_s15 + $0x430] sm:$0xff]  ;;  %v14221_v14 = vld [vmem:[%s22878_s16 + $0x208] sm:$0xff] }
 0xcb3   :  { %v14390_v24 = vrot.slane %v14383_v8, %v16549_v10  ;;  %v14840_v61 = vcombine.low %v13895_v5, %v21861_v42  ;;  %v14034_v42 = vld [vmem:[%s22877_s15 + $0x130] sm:$0xff]  ;;  %v22004_v11 = vrot.slane %v14841_v41, %v16549_v10  ;;  %v14031_v49 = vld [vmem:[%s22877_s15 + $0x118] sm:$0xff]  ;;  %v14196_v5 = vld [vmem:[%s22878_s16 + $0x140] sm:$0xff] }
 0xcb4   :  { %v14350_v33 = vcombine.low %v14340_v36, %v14347_v31  ;;  %v14351_v39 = vcombine.high %v14340_v36, %v14347_v31  ;;  %v22007_v21 = vrot.slane %v14842_v16, %v16549_v10  ;;  %v14030_v22 = vld [vmem:[%s22877_s15 + $0x110] sm:$0xff]  ;;  %v14127_v2 = vld [vmem:[%s22877_s15 + $0x418] sm:$0xff]  ;;  %v22031_v36 = vrot.slane %v14839_v59, %v16549_v10  ;;  %v14189_v16 = vld [vmem:[%s22878_s16 + $0x108] sm:$0xff] }
 0xcb5   :  { %v14391_v27 = vcombine.high %v14390_v24, %v14390_v24  ;;  %v21922_v17 = vrot.slane %v14390_v24, %v16549_v10  ;;  %v22022_v34 = vrot.slane %v14840_v61, %v16549_v10  ;;  %v14027_v8 = vld [vmem:[%s22877_s15 + $0xf8] sm:$0xff]  ;;  %v14126_v31 = vld [vmem:[%s22877_s15 + $0x410] sm:$0xff]  ;;  %v14184_v61 = vld [vmem:[%s22878_s16 + $0xe0] sm:$0xff] }
 0xcb6   :  { %v14372_v63 = vrot.slane %v14350_v33, %v16549_v10  ;;  %v14379_v6 = vrot.slane %v14351_v39, %v16549_v10  ;;  %v14026_v29 = vld [vmem:[%s22877_s15 + $0xf0] sm:$0xff]  ;;  %v14874_v33 = vcombine.high %v22004_v11, %v22007_v21  ;;  %v14217_v39 = vld [vmem:[%s22878_s16 + $0x1e8] sm:$0xff]  ;;  %v14023_v24 = vld [vmem:[%s22877_s15 + $0xd8] sm:$0xff] }
 0xcb7   :  { %v21933_v60 = vrot.slane %v14391_v27, %v16549_v10  ;;  %v21941_v35 = vcombine.high %v21922_v17, %v21922_v17  ;;  %v14011_v53 = vld [vmem:[%s22877_s15 + $0x78] sm:$0xff]  ;;  %v13998_v41 = vld [vmem:[%s22877_s15 + $0x10] sm:$0xff] }
 0xcb8   :  { %v21898_v9 = vcombine.low %v14358_v40, %v14372_v63  ;;  %v21900_v62 = vcombine.high %v14358_v40, %v14372_v63  ;;  %v14382_v15 = vcombine.low %v14365_v48, %v14379_v6  ;;  %v14216_v40 = vld [vmem:[%s22878_s16 + $0x1e0] sm:$0xff]  ;;  %v14022_v48 = vld [vmem:[%s22877_s15 + $0xd0] sm:$0xff]  ;;  %v14872_v63 = vcombine.high %v22031_v36, %v22022_v34  ;;  %v14213_v6 = vld [vmem:[%s22878_s16 + $0x1c8] sm:$0xff] }
 0xcb9   :  { %v14902_v28 = vrot.slane %v14874_v33, %v16549_v10  ;;  %v14007_v50 = vld [vmem:[%s22877_s15 + $0x58] sm:$0xff]  ;;  %v14106_v33 = vld [vmem:[%s22877_s15 + $0x370] sm:$0xff] }
 0xcba   :  { %14479 = vmatprep.mubr.f32.mxu0 %v14382_v15  ;;  %16080 = vmatmul.mubr.msk.f32.vlgmr.msra.gmra.mxu1 %vm5605_vm5, %v21900_v62  ;;  %v14888_v27 = vrot.slane %v14872_v63, %v16549_v10  ;;  %v14003_v12 = vld [vmem:[%s22877_s15 + $0x38] sm:$0xff]  ;;  %v14165_v63 = vld [vmem:[%s22878_s16 + $0x48] sm:$0xff] }
 0xcbb   :  { %14570 = vmatpush1.msra.mxu1 %v14058_v7  ;;  %14480 = vmatmul.mubr.f32.vlgmr.msra.gmra.mxu0 %v21898_v9  ;;  %v14212_v7 = vld [vmem:[%s22878_s16 + $0x1c0] sm:$0xff]  ;;  %v14119_v59 = vld [vmem:[%s22877_s15 + $0x3d8] sm:$0xff] }
 0xcbc   :  { %14571 = vmatprep.subr.mxu1 %v14055_v32  ;;  %14663 = vmatpush1.msra.mxu0 %v14154_v55  ;;  %v14209_v32 = vld [vmem:[%s22878_s16 + $0x1a8] sm:$0xff]  ;;  %v14015_v55 = vld [vmem:[%s22877_s15 + $0x98] sm:$0xff] }
 0xcbd   :  { %14572 = vmatpush1.msra.mxu1 %v14054_v57  ;;  %14664 = vmatprep.subr.mxu0 %v14151_v23  ;;  %v14208_v57 = vld [vmem:[%s22878_s16 + $0x1a0] sm:$0xff]  ;;  %v22084_v23 = vcombine.low %v14888_v27, %v14902_v28  ;;  %v14161_v28 = vld [vmem:[%s22878_s16 + $0x28] sm:$0xff] }
 0xcbe   :  { %14562 = vmatprep.mubr.f32.mxu1 %v23510_v43  ;;  %14573 = vmatprep.subr.mxu1 %v14051_v46  ;;  %v14014_v46 = vld [vmem:[%s22877_s15 + $0x90] sm:$0xff]  ;;  %v14157_v27 = vld [vmem:[%s22878_s16 + $0x8] sm:$0xff] }
 0xcbf   :  { %14665 = vmatpush1.msra.mxu0 %v14150_v52  ;;  %14485 = vmatprep.mubr.f32.mxu0 %v21933_v60  ;;  %v14205_v52 = vld [vmem:[%s22878_s16 + $0x188] sm:$0xff] }
 0xcc0   :  { %16081 = vmatmul.mubr.msk.f32.gmra.mxu1 %vm5605_vm5, %v21941_v35  ;;  %14666 = vmatprep.subr.mxu0 %v14147_v25  ;;  %v14204_v25 = vld [vmem:[%s22878_s16 + $0x180] sm:$0xff] }
 0xcc1   :  { %14574 = vmatpush1.msra.mxu1 %v14050_v4  ;;  %14486 = vmatmul.mubr.f32.gmra.mxu0 %v21922_v17  ;;  %v14201_v4 = vld [vmem:[%s22878_s16 + $0x168] sm:$0xff] }
 0xcc2   :  { %14575 = vmatprep.subr.mxu1 %v14047_v13  ;;  %14633 = vmatprep.mubr.f32.mxu1 %v14382_v15  ;;  %v14019_v15 = vld [vmem:[%s22877_s15 + $0xb8] sm:$0xff]  ;;  %v14200_v13 = vld [vmem:[%s22878_s16 + $0x160] sm:$0xff] }
 0xcc3   :  { %14667 = vmatpush1.msra.mxu0 %v14146_v26  ;;  %14576 = vmatpush1.msra.mxu1 %v14046_v54  ;;  %v14006_v26 = vld [vmem:[%s22877_s15 + $0x50] sm:$0xff]  ;;  %v14197_v54 = vld [vmem:[%s22878_s16 + $0x148] sm:$0xff] }
 0xcc4   :  { %14668 = vmatprep.subr.mxu0 %v14143_v30  ;;  %14577 = vmatprep.subr.mxu1 %v14043_v37  ;;  %v14002_v30 = vld [vmem:[%s22877_s15 + $0x30] sm:$0xff]  ;;  %v14193_v37 = vld [vmem:[%s22878_s16 + $0x128] sm:$0xff] }
 0xcc5   :  { %14669 = vmatpush1.msra.mxu0 %v14142_v44  ;;  %14578 = vmatpush1.msra.mxu1 %v14042_v51  ;;  %v13999_v44 = vld [vmem:[%s22877_s15 + $0x18] sm:$0xff]  ;;  %v14192_v51 = vld [vmem:[%s22878_s16 + $0x120] sm:$0xff] }
 0xcc6   :  { %14670 = vmatprep.subr.mxu0 %v14139_v56  ;;  %14579 = vmatprep.subr.mxu1 %v14039_v20  ;;  %v14123_v56 = vld [vmem:[%s22877_s15 + $0x3f8] sm:$0xff]  ;;  %v14188_v20 = vld [vmem:[%s22878_s16 + $0x100] sm:$0xff] }
 0xcc7   :  { %14671 = vmatpush1.msra.mxu0 %v14138_v3  ;;  %14580 = vmatpush1.msra.mxu1 %v14038_v45  ;;  %v14122_v3 = vld [vmem:[%s22877_s15 + $0x3f0] sm:$0xff]  ;;  %v14185_v45 = vld [vmem:[%s22878_s16 + $0xe8] sm:$0xff] }
 0xcc8   :  { %14672 = vmatprep.subr.mxu0 %v14135_v58  ;;  %14581 = vmatprep.subr.mxu1 %v14035_v1  ;;  %v14118_v58 = vld [vmem:[%s22877_s15 + $0x3d0] sm:$0xff]  ;;  %v14181_v1 = vld [vmem:[%s22878_s16 + $0xc8] sm:$0xff] }
 0xcc9   :  { %14673 = vmatpush1.msra.mxu0 %v14134_v18  ;;  %14582 = vmatpush1.msra.mxu1 %v14034_v42  ;;  %v14115_v18 = vld [vmem:[%s22877_s15 + $0x3b8] sm:$0xff]  ;;  %v14180_v42 = vld [vmem:[%s22878_s16 + $0xc0] sm:$0xff] }
 0xcca   :  { %14674 = vmatprep.subr.mxu0 %v14131_v19  ;;  %14583 = vmatprep.subr.mxu1 %v14031_v49  ;;  %v14114_v19 = vld [vmem:[%s22877_s15 + $0x3b0] sm:$0xff]  ;;  %v14177_v49 = vld [vmem:[%s22878_s16 + $0xa8] sm:$0xff] }
 0xccb   :  { %14675 = vmatpush1.msra.mxu0 %v14130_v47  ;;  %14584 = vmatpush1.msra.mxu1 %v14030_v22  ;;  %v14111_v47 = vld [vmem:[%s22877_s15 + $0x398] sm:$0xff]  ;;  %v14176_v22 = vld [vmem:[%s22878_s16 + $0xa0] sm:$0xff] }
 0xccc   :  { %14676 = vmatprep.subr.mxu0 %v14127_v2  ;;  %14585 = vmatprep.subr.mxu1 %v14027_v8  ;;  %v14110_v2 = vld [vmem:[%s22877_s15 + $0x390] sm:$0xff]  ;;  %v14173_v8 = vld [vmem:[%s22878_s16 + $0x88] sm:$0xff] }
 0xccd   :  { %14677 = vmatpush1.msra.mxu0 %v14126_v31  ;;  %14710 = vmatprep.mubr.f32.mxu0 %v23510_v43  ;;  %v14107_v31 = vld [vmem:[%s22877_s15 + $0x378] sm:$0xff] }
 0xcce   :  { %14586 = vmatpush1.msra.mxu1 %v14026_v29  ;;  %16082 = vmatmul.mubr.msk.f32.vlgmr.msra.gmra.mxu0 %vm5605_vm5, %v21900_v62  ;;  %v14018_v62 = vld [vmem:[%s22877_s15 + $0xb0] sm:$0xff]  ;;  %v14172_v29 = vld [vmem:[%s22878_s16 + $0x80] sm:$0xff] }
 0xccf   :  { %14938 = vmatprep.subr.mxu0 %v14217_v39  ;;  %14587 = vmatprep.subr.mxu1 %v14023_v24  ;;  %v14169_v39 = vld [vmem:[%s22878_s16 + $0x68] sm:$0xff]  ;;  %v14103_v24 = vld [vmem:[%s22877_s15 + $0x358] sm:$0xff] }
 0xcd0   :  { %14939 = vmatpush1.msra.mxu0 %v14216_v40  ;;  %14588 = vmatpush1.msra.mxu1 %v14022_v48  ;;  %v14168_v40 = vld [vmem:[%s22878_s16 + $0x60] sm:$0xff]  ;;  %v14102_v48 = vld [vmem:[%s22877_s15 + $0x350] sm:$0xff] }
 0xcd1   :  { %14940 = vmatprep.subr.mxu0 %v14213_v6  ;;  %14589 = vmatprep.subr.mxu1 %v14019_v15  ;;  %v14099_v6 = vld [vmem:[%s22877_s15 + $0x338] sm:$0xff]  ;;  %v14164_v15 = vld [vmem:[%s22878_s16 + $0x40] sm:$0xff] }
 0xcd2   :  { %14716 = vmatprep.mubr.f32.mxu0 %v23510_v43  ;;  %14941 = vmatpush1.msra.mxu0 %v14212_v7  ;;  %v14098_v7 = vld [vmem:[%s22877_s15 + $0x330] sm:$0xff] }
 0xcd3   :  { %14590 = vmatpush1.msra.mxu1 %v14018_v62  ;;  %16083 = vmatmul.mubr.msk.f32.gmra.mxu0 %vm5605_vm5, %v21941_v35  ;;  %v14010_v35 = vld [vmem:[%s22877_s15 + $0x70] sm:$0xff]  ;;  %v14095_v62 = vld [vmem:[%s22877_s15 + $0x318] sm:$0xff] }
 0xcd4   :  { %14942 = vmatprep.subr.mxu0 %v14209_v32  ;;  %14591 = vmatprep.subr.mxu1 %v14015_v55  ;;  %v14160_v32 = vld [vmem:[%s22878_s16 + $0x20] sm:$0xff]  ;;  %v14094_v55 = vld [vmem:[%s22877_s15 + $0x310] sm:$0xff] }
 0xcd5   :  { %14943 = vmatpush1.msra.mxu0 %v14208_v57  ;;  %15002 = vmatprep.mubr.f32.mxu0 %v22084_v23  ;;  %v14091_v57 = vld [vmem:[%s22877_s15 + $0x2f8] sm:$0xff] }
 0xcd6   :  { %14592 = vmatpush1.msra.mxu1 %v14014_v46  ;;  %14944 = vmatprep.subr.mxu0 %v14205_v52  ;;  %v14156_v46 = vld [vmem:[%s22878_s16] sm:$0xff]  ;;  %v14090_v52 = vld [vmem:[%s22877_s15 + $0x2f0] sm:$0xff] }
 0xcd7   :  { %14593 = vmatprep.subr.mxu1 %v14011_v53  ;;  %14945 = vmatpush1.msra.mxu0 %v14204_v25  ;;  %v14281_v53 = vld [vmem:[%s22878_s16 + $0x3e8] sm:$0xff]  ;;  %v14087_v25 = vld [vmem:[%s22877_s15 + $0x2d8] sm:$0xff] }
 0xcd8   :  { %14594 = vmatpush1.msra.mxu1 %v14010_v35  ;;  %14946 = vmatprep.subr.mxu0 %v14201_v4  ;;  %v14280_v35 = vld [vmem:[%s22878_s16 + $0x3e0] sm:$0xff]  ;;  %v14086_v4 = vld [vmem:[%s22877_s15 + $0x2d0] sm:$0xff] }
 0xcd9   :  { %14595 = vmatprep.subr.mxu1 %v14007_v50  ;;  %14947 = vmatpush1.msra.mxu0 %v14200_v13  ;;  %v14277_v50 = vld [vmem:[%s22878_s16 + $0x3c8] sm:$0xff]  ;;  %v14083_v13 = vld [vmem:[%s22877_s15 + $0x2b8] sm:$0xff] }
 0xcda   :  { %14596 = vmatpush1.msra.mxu1 %v14006_v26  ;;  %14948 = vmatprep.subr.mxu0 %v14197_v54  ;;  %v14276_v26 = vld [vmem:[%s22878_s16 + $0x3c0] sm:$0xff]  ;;  %v14082_v54 = vld [vmem:[%s22877_s15 + $0x2b0] sm:$0xff] }
 0xcdb   :  { %14597 = vmatprep.subr.mxu1 %v14003_v12  ;;  %14949 = vmatpush1.msra.mxu0 %v14196_v5  ;;  %v14273_v12 = vld [vmem:[%s22878_s16 + $0x3a8] sm:$0xff]  ;;  %v14079_v5 = vld [vmem:[%s22877_s15 + $0x298] sm:$0xff] }
 0xcdc   :  { %14598 = vmatpush1.msra.mxu1 %v14002_v30  ;;  %14950 = vmatprep.subr.mxu0 %v14193_v37  ;;  %v14272_v30 = vld [vmem:[%s22878_s16 + $0x3a0] sm:$0xff]  ;;  %v14078_v37 = vld [vmem:[%s22877_s15 + $0x290] sm:$0xff] }
 0xcdd   :  { %14599 = vmatprep.subr.mxu1 %v13999_v44  ;;  %14951 = vmatpush1.msra.mxu0 %v14192_v51  ;;  %v14269_v44 = vld [vmem:[%s22878_s16 + $0x388] sm:$0xff]  ;;  %v14075_v51 = vld [vmem:[%s22877_s15 + $0x278] sm:$0xff] }
 0xcde   :  { %14600 = vmatpush1.msra.mxu1 %v13998_v41  ;;  %14952 = vmatprep.subr.mxu0 %v14189_v16  ;;  %v14268_v41 = vld [vmem:[%s22878_s16 + $0x380] sm:$0xff]  ;;  %v14074_v16 = vld [vmem:[%s22877_s15 + $0x270] sm:$0xff] }
 0xcdf   :  { %14601 = vmatprep.subr.mxu1 %v14123_v56  ;;  %14953 = vmatpush1.msra.mxu0 %v14188_v20  ;;  %v14265_v56 = vld [vmem:[%s22878_s16 + $0x368] sm:$0xff]  ;;  %v14071_v20 = vld [vmem:[%s22877_s15 + $0x258] sm:$0xff] }
 0xce0   :  { %14602 = vmatpush2.msra.mxu1 %v14122_v3  ;;  %14954 = vmatprep.subr.mxu0 %v14185_v45  ;;  %v14264_v3 = vld [vmem:[%s22878_s16 + $0x360] sm:$0xff]  ;;  %v14070_v45 = vld [vmem:[%s22877_s15 + $0x250] sm:$0xff] }
 0xce1   :  { %14603 = vmatprep.subr.mxu1 %v14119_v59  ;;  %14955 = vmatpush1.msra.mxu0 %v14184_v61  ;;  %v14261_v59 = vld [vmem:[%s22878_s16 + $0x348] sm:$0xff]  ;;  %v14067_v61 = vld [vmem:[%s22877_s15 + $0x238] sm:$0xff] }
 0xce2   :  { %14604 = vmatpush2.msra.mxu1 %v14118_v58  ;;  %14956 = vmatprep.subr.mxu0 %v14181_v1  ;;  %v14260_v58 = vld [vmem:[%s22878_s16 + $0x340] sm:$0xff]  ;;  %v14066_v1 = vld [vmem:[%s22877_s15 + $0x230] sm:$0xff] }
 0xce3   :  { %14605 = vmatprep.subr.mxu1 %v14115_v18  ;;  %14957 = vmatpush1.msra.mxu0 %v14180_v42  ;;  %v14257_v18 = vld [vmem:[%s22878_s16 + $0x328] sm:$0xff]  ;;  %v14063_v42 = vld [vmem:[%s22877_s15 + $0x218] sm:$0xff] }
 0xce4   :  { %14606 = vmatpush2.msra.mxu1 %v14114_v19  ;;  %14958 = vmatprep.subr.mxu0 %v14177_v49  ;;  %v14256_v19 = vld [vmem:[%s22878_s16 + $0x320] sm:$0xff]  ;;  %v14062_v49 = vld [vmem:[%s22877_s15 + $0x210] sm:$0xff] }
 0xce5   :  { %14607 = vmatprep.subr.mxu1 %v14111_v47  ;;  %14959 = vmatpush1.msra.mxu0 %v14176_v22  ;;  %v14253_v47 = vld [vmem:[%s22878_s16 + $0x308] sm:$0xff]  ;;  %v14252_v22 = vld [vmem:[%s22878_s16 + $0x300] sm:$0xff] }
 0xce6   :  { %14608 = vmatpush2.msra.mxu1 %v14110_v2  ;;  %14960 = vmatprep.subr.mxu0 %v14173_v8  ;;  %v14313_v2 = vld [vmem:[%s22878_s16 + $0x4e8] sm:$0xff] }
 0xce7   :  { %14609 = vmatprep.subr.mxu1 %v14107_v31  ;;  %14961 = vmatpush1.msra.mxu0 %v14172_v29  ;;  %v14249_v8 = vld [vmem:[%s22878_s16 + $0x2e8] sm:$0xff]  ;;  %v14312_v31 = vld [vmem:[%s22878_s16 + $0x4e0] sm:$0xff] }
 0xce8   :  { %14610 = vmatpush2.msra.mxu1 %v14106_v33  ;;  %14962 = vmatprep.subr.mxu0 %v14169_v39  ;;  %v14248_v29 = vld [vmem:[%s22878_s16 + $0x2e0] sm:$0xff]  ;;  %v14309_v33 = vld [vmem:[%s22878_s16 + $0x4c8] sm:$0xff] }
 0xce9   :  { %14611 = vmatprep.subr.mxu1 %v14103_v24  ;;  %14963 = vmatpush1.msra.mxu0 %v14168_v40  ;;  %v14245_v39 = vld [vmem:[%s22878_s16 + $0x2c8] sm:$0xff]  ;;  %v14244_v24 = vld [vmem:[%s22878_s16 + $0x2c0] sm:$0xff] }
 0xcea   :  { %14612 = vmatpush2.msra.mxu1 %v14102_v48  ;;  %14964 = vmatprep.subr.mxu0 %v14165_v63  ;;  %v14241_v40 = vld [vmem:[%s22878_s16 + $0x2a8] sm:$0xff]  ;;  %v14304_v48 = vld [vmem:[%s22878_s16 + $0x4a0] sm:$0xff] }
 0xceb   :  { %14613 = vmatprep.subr.mxu1 %v14099_v6  ;;  %14965 = vmatpush1.msra.mxu0 %v14164_v15  ;;  %v14240_v63 = vld [vmem:[%s22878_s16 + $0x2a0] sm:$0xff]  ;;  %v14301_v6 = vld [vmem:[%s22878_s16 + $0x488] sm:$0xff] }
 0xcec   :  { %14614 = vmatpush2.msra.mxu1 %v14098_v7  ;;  %14966 = vmatprep.subr.mxu0 %v14161_v28  ;;  %v14237_v15 = vld [vmem:[%s22878_s16 + $0x288] sm:$0xff]  ;;  %v14300_v7 = vld [vmem:[%s22878_s16 + $0x480] sm:$0xff] }
 0xced   :  { %14615 = vmatprep.subr.mxu1 %v14095_v62  ;;  %14967 = vmatpush1.msra.mxu0 %v14160_v32  ;;  %v14236_v28 = vld [vmem:[%s22878_s16 + $0x280] sm:$0xff]  ;;  %v14233_v62 = vld [vmem:[%s22878_s16 + $0x268] sm:$0xff]  ;;  %v14873_v32 = vcombine.low %v22004_v11, %v22007_v21  ;;  %v14871_v21 = vcombine.low %v22031_v36, %v22022_v34  ;;  %v14913_v36 = vrot.slane %v16084_v38, %v16549_v10 }
 0xcee   :  { %14616 = vmatpush2.msra.mxu1 %v14094_v55  ;;  %14968 = vmatprep.subr.mxu0 %v14157_v27  ;;  %v14296_v55 = vld [vmem:[%s22878_s16 + $0x460] sm:$0xff]  ;;  %v14229_v11 = vld [vmem:[%s22878_s16 + $0x248] sm:$0xff] }
 0xcef   :  { %14617 = vmatprep.subr.mxu1 %v14091_v57  ;;  %14969 = vmatpush1.msra.mxu0 %v14156_v46  ;;  %v14232_v27 = vld [vmem:[%s22878_s16 + $0x260] sm:$0xff]  ;;  %v14293_v57 = vld [vmem:[%s22878_s16 + $0x448] sm:$0xff]  ;;  %v14881_v0 = vrot.slane %v14871_v21, %v16549_v10  ;;  %v14166_v21 = vld [vmem:[%s22878_s16 + $0x50] sm:$0xff] }
 0xcf0   :  { %14618 = vmatpush2.msra.mxu1 %v14090_v52  ;;  %14970 = vmatprep.subr.mxu0 %v14281_v53  ;;  %v14292_v46 = vld [vmem:[%s22878_s16 + $0x440] sm:$0xff]  ;;  %v14289_v53 = vld [vmem:[%s22878_s16 + $0x428] sm:$0xff] }
 0xcf1   :  { %14619 = vmatprep.subr.mxu1 %v14087_v25  ;;  %14971 = vmatpush2.msra.mxu0 %v14280_v35  ;;  %v14228_v52 = vld [vmem:[%s22878_s16 + $0x240] sm:$0xff]  ;;  %v14225_v34 = vld [vmem:[%s22878_s16 + $0x228] sm:$0xff]  ;;  %v14895_v25 = vrot.slane %v14873_v32, %v16549_v10  ;;  %v14178_v32 = vld [vmem:[%s22878_s16 + $0xb0] sm:$0xff] }
 0xcf2   :  { %14620 = vmatpush2.msra.mxu1 %v14086_v4  ;;  %14972 = vmatprep.subr.mxu0 %v14277_v50  ;;  %v14288_v35 = vld [vmem:[%s22878_s16 + $0x420] sm:$0xff]  ;;  %v14285_v50 = vld [vmem:[%s22878_s16 + $0x408] sm:$0xff] }
 0xcf3   :  { %14621 = vmatprep.subr.mxu1 %v14083_v13  ;;  %14973 = vmatpush2.msra.mxu0 %v14276_v26  ;;  %v14224_v4 = vld [vmem:[%s22878_s16 + $0x220] sm:$0xff]  ;;  %v14914_v26 = vcombine.high %v14913_v36, %v14913_v36 }
 0xcf4   :  { %14622 = vmatpush2.msra.mxu1 %v14082_v54  ;;  %14974 = vmatprep.subr.mxu0 %v14273_v12  ;;  %v14284_v38 = vld [vmem:[%s22878_s16 + $0x400] sm:$0xff]  ;;  %v22445_v54 = vcombine.high %v14881_v0, %v14895_v25  ;;  %v14219_v12 = vld [vmem:[%s22878_s16 + $0x1f8] sm:$0xff] }
 0xcf5   :  { %14623 = vmatprep.subr.mxu1 %v14079_v5  ;;  %14975 = vmatpush2.msra.mxu0 %v14272_v30  ;;  %v14220_v13 = vld [vmem:[%s22878_s16 + $0x200] sm:$0xff]  ;;  %v22450_v5 = vcombine.low %v14881_v0, %v14895_v25  ;;  %v14218_v30 = vld [vmem:[%s22878_s16 + $0x1f0] sm:$0xff]  ;;  %v14271_v0 = vld [vmem:[%s22878_s16 + $0x398] sm:$0xff] }
 0xcf6   :  { %14624 = vmatpush2.msra.mxu1 %v14078_v37  ;;  %14976 = vmatprep.subr.mxu0 %v14269_v44  ;;  %v14315_v37 = vld [vmem:[%s22878_s16 + $0x4f8] sm:$0xff]  ;;  %v22462_v44 = vrot.slane %v14913_v36, %v16549_v10  ;;  %v14282_v25 = vld [vmem:[%s22878_s16 + $0x3f0] sm:$0xff] }
 0xcf7   :  { %14625 = vmatprep.subr.mxu1 %v14075_v51  ;;  %14977 = vmatpush2.msra.mxu0 %v14268_v41  ;;  %v14215_v51 = vld [vmem:[%s22878_s16 + $0x1d8] sm:$0xff]  ;;  %v22469_v41 = vrot.slane %v14914_v26, %v16549_v10  ;;  %v14266_v26 = vld [vmem:[%s22878_s16 + $0x370] sm:$0xff] }
 0xcf8   :  { %14626 = vmatpush2.msra.mxu1 %v14074_v16  ;;  %14978 = vmatprep.subr.mxu0 %v14265_v56  ;;  %v14314_v16 = vld [vmem:[%s22878_s16 + $0x4f0] sm:$0xff]  ;;  %v14283_v36 = vld [vmem:[%s22878_s16 + $0x3f8] sm:$0xff] }
 0xcf9   :  { %14627 = vmatprep.subr.mxu1 %v14071_v20  ;;  %14979 = vmatpush2.msra.mxu0 %v14264_v3  ;;  %v14214_v56 = vld [vmem:[%s22878_s16 + $0x1d0] sm:$0xff]  ;;  %v14311_v20 = vld [vmem:[%s22878_s16 + $0x4d8] sm:$0xff] }
 0xcfa   :  { %14628 = vmatpush2.msra.mxu1 %v14070_v45  ;;  %14980 = vmatprep.subr.mxu0 %v14261_v59  ;;  %v14211_v3 = vld [vmem:[%s22878_s16 + $0x1b8] sm:$0xff]  ;;  %v22487_v45 = vcombine.high %v22462_v44, %v22462_v44  ;;  %v14310_v59 = vld [vmem:[%s22878_s16 + $0x4d0] sm:$0xff] }
 0xcfb   :  { %14629 = vmatprep.subr.mxu1 %v14067_v61  ;;  %14981 = vmatpush2.msra.mxu0 %v14260_v58  ;;  %v14210_v61 = vld [vmem:[%s22878_s16 + $0x1b0] sm:$0xff]  ;;  %v14307_v58 = vld [vmem:[%s22878_s16 + $0x4b8] sm:$0xff] }
 0xcfc   :  { %14630 = vmatpush2.msra.mxu1 %v14066_v1  ;;  %14982 = vmatprep.subr.mxu0 %v14257_v18  ;;  %v14207_v1 = vld [vmem:[%s22878_s16 + $0x198] sm:$0xff]  ;;  %v14306_v18 = vld [vmem:[%s22878_s16 + $0x4b0] sm:$0xff] }
 0xcfd   :  { %14631 = vmatprep.subr.mxu1 %v14063_v42  ;;  %14983 = vmatpush2.msra.mxu0 %v14256_v19  ;;  %v14206_v42 = vld [vmem:[%s22878_s16 + $0x190] sm:$0xff]  ;;  %v14303_v19 = vld [vmem:[%s22878_s16 + $0x498] sm:$0xff] }
 0xcfe   :  { %14632 = vmatpush2.msra.mxu1 %v14062_v49  ;;  %14984 = vmatprep.subr.mxu0 %v14253_v47  ;;  %v14203_v49 = vld [vmem:[%s22878_s16 + $0x178] sm:$0xff]  ;;  %v14302_v47 = vld [vmem:[%s22878_s16 + $0x490] sm:$0xff] }
 0xcff   :  { %14634 = vmatmul.mubr.f32.vlgmr.msra.gmra.mxu1 %v21898_v9  ;;  %14985 = vmatpush2.msra.mxu0 %v14252_v22  ;;  %v14308_v9 = vld [vmem:[%s22878_s16 + $0x4c0] sm:$0xff]  ;;  %v14202_v22 = vld [vmem:[%s22878_s16 + $0x170] sm:$0xff] }
 0xd00   :  { %15031 = vmatprep.subr.mxu1 %v14313_v2  ;;  %14639 = vmatprep.mubr.f32.mxu1 %v21933_v60  ;;  %v14305_v60 = vld [vmem:[%s22878_s16 + $0x4a8] sm:$0xff]  ;;  %v14199_v2 = vld [vmem:[%s22878_s16 + $0x158] sm:$0xff] }
 0xd01   :  { %14986 = vmatprep.subr.mxu0 %v14249_v8  ;;  %15032 = vmatpush1.msra.mxu1 %v14312_v31  ;;  %v14298_v8 = vld [vmem:[%s22878_s16 + $0x470] sm:$0xff] }
 0xd02   :  { %14987 = vmatpush2.msra.mxu0 %v14248_v29  ;;  %15033 = vmatprep.subr.mxu1 %v14309_v33  ;;  %v14198_v31 = vld [vmem:[%s22878_s16 + $0x150] sm:$0xff]  ;;  %v14295_v29 = vld [vmem:[%s22878_s16 + $0x458] sm:$0xff] }
 0xd03   :  { %14988 = vmatprep.subr.mxu0 %v14245_v39  ;;  %15034 = vmatpush1.msra.mxu1 %v14308_v9  ;;  %v14195_v33 = vld [vmem:[%s22878_s16 + $0x138] sm:$0xff]  ;;  %v14294_v39 = vld [vmem:[%s22878_s16 + $0x450] sm:$0xff] }
 0xd04   :  { %14640 = vmatmul.mubr.f32.gmra.mxu1 %v21922_v17  ;;  %14989 = vmatpush2.msra.mxu0 %v14244_v24  ;;  %v14297_v17 = vld [vmem:[%s22878_s16 + $0x468] sm:$0xff]  ;;  %v14194_v9 = vld [vmem:[%s22878_s16 + $0x130] sm:$0xff]  ;;  %v14291_v24 = vld [vmem:[%s22878_s16 + $0x438] sm:$0xff] }
 0xd05   :  { %15035 = vmatprep.subr.mxu1 %v14305_v60  ;;  %14990 = vmatprep.subr.mxu0 %v14241_v40  ;;  %v14191_v60 = vld [vmem:[%s22878_s16 + $0x118] sm:$0xff]  ;;  %v14290_v40 = vld [vmem:[%s22878_s16 + $0x430] sm:$0xff] }
 0xd06   :  { %15036 = vmatpush1.msra.mxu1 %v14304_v48  ;;  %14991 = vmatpush2.msra.mxu0 %v14240_v63  ;;  %v14190_v48 = vld [vmem:[%s22878_s16 + $0x110] sm:$0xff]  ;;  %v14287_v63 = vld [vmem:[%s22878_s16 + $0x418] sm:$0xff] }
 0xd07   :  { %15037 = vmatprep.subr.mxu1 %v14301_v6  ;;  %14992 = vmatprep.subr.mxu0 %v14237_v15  ;;  %v14187_v6 = vld [vmem:[%s22878_s16 + $0xf8] sm:$0xff]  ;;  %v14286_v15 = vld [vmem:[%s22878_s16 + $0x410] sm:$0xff] }
 0xd08   :  { %15038 = vmatpush1.msra.mxu1 %v14300_v7  ;;  %14993 = vmatpush2.msra.mxu0 %v14236_v28  ;;  %v14186_v7 = vld [vmem:[%s22878_s16 + $0xf0] sm:$0xff]  ;;  %v14183_v28 = vld [vmem:[%s22878_s16 + $0xd8] sm:$0xff] }
 0xd09   :  { %15039 = vmatprep.subr.mxu1 %v14297_v17  ;;  %14994 = vmatprep.subr.mxu0 %v14233_v62  ;;  %v14182_v17 = vld [vmem:[%s22878_s16 + $0xd0] sm:$0xff]  ;;  %v14179_v62 = vld [vmem:[%s22878_s16 + $0xb8] sm:$0xff] }
 0xd0a   :  { %15040 = vmatpush1.msra.mxu1 %v14296_v55  ;;  %14995 = vmatpush2.msra.mxu0 %v14232_v27  ;;  %v14175_v55 = vld [vmem:[%s22878_s16 + $0x98] sm:$0xff]  ;;  %v14174_v27 = vld [vmem:[%s22878_s16 + $0x90] sm:$0xff] }
 0xd0b   :  { %15041 = vmatprep.subr.mxu1 %v14293_v57  ;;  %14996 = vmatprep.subr.mxu0 %v14229_v11  ;;  %v14170_v57 = vld [vmem:[%s22878_s16 + $0x70] sm:$0xff]  ;;  %v14167_v11 = vld [vmem:[%s22878_s16 + $0x58] sm:$0xff] }
 0xd0c   :  { %15042 = vmatpush1.msra.mxu1 %v14292_v46  ;;  %14997 = vmatpush2.msra.mxu0 %v14228_v52  ;;  %v14163_v46 = vld [vmem:[%s22878_s16 + $0x38] sm:$0xff]  ;;  %v14162_v52 = vld [vmem:[%s22878_s16 + $0x30] sm:$0xff] }
 0xd0d   :  { %15043 = vmatprep.subr.mxu1 %v14289_v53  ;;  %14998 = vmatprep.subr.mxu0 %v14225_v34  ;;  %v14159_v53 = vld [vmem:[%s22878_s16 + $0x18] sm:$0xff]  ;;  %v14158_v34 = vld [vmem:[%s22878_s16 + $0x10] sm:$0xff] }
 0xd0e   :  { %15044 = vmatpush1.msra.mxu1 %v14288_v35  ;;  %14999 = vmatpush2.msra.mxu0 %v14224_v4  ;;  %v14279_v35 = vld [vmem:[%s22878_s16 + $0x3d8] sm:$0xff]  ;;  %v14278_v4 = vld [vmem:[%s22878_s16 + $0x3d0] sm:$0xff] }
 0xd0f   :  { %15045 = vmatprep.subr.mxu1 %v14285_v50  ;;  %15000 = vmatprep.subr.mxu0 %v14221_v14  ;;  %v14275_v50 = vld [vmem:[%s22878_s16 + $0x3b8] sm:$0xff]  ;;  %v14274_v14 = vld [vmem:[%s22878_s16 + $0x3b0] sm:$0xff] }
 0xd10   :  { %15046 = vmatpush1.msra.mxu1 %v14284_v38  ;;  %15079 = vmatprep.mubr.f32.mxu1 %v23510_v43  ;;  %v14270_v38 = vld [vmem:[%s22878_s16 + $0x390] sm:$0xff] }
 0xd11   :  { %15001 = vmatpush2.msra.mxu0 %v14220_v13  ;;  %16085 = vmatmul.mubr.msk.f32.vlgmr.msra.gmra.mxu1 %vm5605_vm5, %v22445_v54  ;;  %v14267_v13 = vld [vmem:[%s22878_s16 + $0x378] sm:$0xff] }
 0xd12   :  { %15092 = vmatprep.subr.mxu1 %v14219_v12  ;;  %15003 = vmatmul.mubr.f32.vlgmr.msra.gmra.mxu0 %v22450_v5  ;;  %v14262_v12 = vld [vmem:[%s22878_s16 + $0x350] sm:$0xff] }
 0xd13   :  { %15093 = vmatpush1.msra.mxu1 %v14218_v30  ;;  %15185 = vmatprep.subr.mxu0 %v14315_v37  ;;  %v14259_v30 = vld [vmem:[%s22878_s16 + $0x338] sm:$0xff]  ;;  %v14258_v37 = vld [vmem:[%s22878_s16 + $0x330] sm:$0xff] }
 0xd14   :  { %15008 = vmatprep.mubr.f32.mxu0 %v22469_v41  ;;  %15094 = vmatprep.subr.mxu1 %v14215_v51  ;;  %v14255_v51 = vld [vmem:[%s22878_s16 + $0x318] sm:$0xff] }
 0xd15   :  { %15186 = vmatpush1.msra.mxu0 %v14314_v16  ;;  %15085 = vmatprep.mubr.f32.mxu1 %v23510_v43  ;;  %v14254_v16 = vld [vmem:[%s22878_s16 + $0x310] sm:$0xff] }
 0xd16   :  { %15095 = vmatpush1.msra.mxu1 %v14214_v56  ;;  %15187 = vmatprep.subr.mxu0 %v14311_v20  ;;  %v14251_v56 = vld [vmem:[%s22878_s16 + $0x2f8] sm:$0xff]  ;;  %v14250_v20 = vld [vmem:[%s22878_s16 + $0x2f0] sm:$0xff] }
 0xd17   :  { %16086 = vmatmul.mubr.msk.f32.gmra.mxu1 %vm5605_vm5, %v22487_v45  ;;  %15096 = vmatprep.subr.mxu1 %v14211_v3  ;;  %v14247_v3 = vld [vmem:[%s22878_s16 + $0x2d8] sm:$0xff] }
 0xd18   :  { %15188 = vmatpush1.msra.mxu0 %v14310_v59  ;;  %15097 = vmatpush1.msra.mxu1 %v14210_v61  ;;  %v14243_v59 = vld [vmem:[%s22878_s16 + $0x2b8] sm:$0xff]  ;;  %v14242_v61 = vld [vmem:[%s22878_s16 + $0x2b0] sm:$0xff] }
 0xd19   :  { %15009 = vmatmul.mubr.f32.gmra.mxu0 %v22462_v44  ;;  %15156 = vmatprep.mubr.f32.mxu1 %v22084_v23  ;;  %v14299_v23 = vld [vmem:[%s22878_s16 + $0x478] sm:$0xff] }
 0xd1a   :  { %15189 = vmatprep.subr.mxu0 %v14307_v58  ;;  %15098 = vmatprep.subr.mxu1 %v14207_v1  ;;  %v14239_v58 = vld [vmem:[%s22878_s16 + $0x298] sm:$0xff]  ;;  %v14238_v1 = vld [vmem:[%s22878_s16 + $0x290] sm:$0xff] }
 0xd1b   :  { %15190 = vmatpush1.msra.mxu0 %v14306_v18  ;;  %15099 = vmatpush1.msra.mxu1 %v14206_v42  ;;  %v14235_v18 = vld [vmem:[%s22878_s16 + $0x278] sm:$0xff]  ;;  %v14234_v42 = vld [vmem:[%s22878_s16 + $0x270] sm:$0xff] }
 0xd1c   :  { %15191 = vmatprep.subr.mxu0 %v14303_v19  ;;  %15100 = vmatprep.subr.mxu1 %v14203_v49  ;;  %v14231_v19 = vld [vmem:[%s22878_s16 + $0x258] sm:$0xff]  ;;  %v14230_v49 = vld [vmem:[%s22878_s16 + $0x250] sm:$0xff] }
 0xd1d   :  { %15192 = vmatpush1.msra.mxu0 %v14302_v47  ;;  %15101 = vmatpush1.msra.mxu1 %v14202_v22  ;;  %v14227_v47 = vld [vmem:[%s22878_s16 + $0x238] sm:$0xff]  ;;  %v14226_v22 = vld [vmem:[%s22878_s16 + $0x230] sm:$0xff] }
 0xd1e   :  { %15193 = vmatprep.subr.mxu0 %v14299_v23  ;;  %15102 = vmatprep.subr.mxu1 %v14199_v2  ;;  %v14223_v23 = vld [vmem:[%s22878_s16 + $0x218] sm:$0xff]  ;;  %v14222_v2 = vld [vmem:[%s22878_s16 + $0x210] sm:$0xff] }
 0xd1f   :  { %15194 = vmatpush1.msra.mxu0 %v14298_v8  ;;  %15103 = vmatpush1.msra.mxu1 %v14198_v31 }
 0xd20   :  { %15195 = vmatprep.subr.mxu0 %v14295_v29  ;;  %15104 = vmatprep.subr.mxu1 %v14195_v33 }
 0xd21   :  { %15196 = vmatpush1.msra.mxu0 %v14294_v39  ;;  %15105 = vmatpush1.msra.mxu1 %v14194_v9 }
 0xd22   :  { %15197 = vmatprep.subr.mxu0 %v14291_v24  ;;  %15106 = vmatprep.subr.mxu1 %v14191_v60 }
 0xd23   :  { %15198 = vmatpush1.msra.mxu0 %v14290_v40  ;;  %15107 = vmatpush1.msra.mxu1 %v14190_v48 }
 0xd24   :  { %15199 = vmatprep.subr.mxu0 %v14287_v63  ;;  %15108 = vmatprep.subr.mxu1 %v14187_v6 }
 0xd25   :  { %15200 = vmatpush1.msra.mxu0 %v14286_v15  ;;  %15233 = vmatprep.mubr.f32.mxu0 %v23510_v43 }
 0xd26   :  { %15109 = vmatpush1.msra.mxu1 %v14186_v7  ;;  %16087 = vmatmul.mubr.msk.f32.vlgmr.msra.gmra.mxu0 %vm5605_vm5, %v22445_v54  ;;  %v14263_v54 = vld [vmem:[%s22878_s16 + $0x358] sm:$0xff] }
 0xd27   :  { %15110 = vmatprep.subr.mxu1 %v14183_v28  ;;  %15239 = vmatprep.mubr.f32.mxu0 %v23510_v43  ;;  %v14171_v43 = vld [vmem:[%s22878_s16 + $0x78] sm:$0xff] }
 0xd28   :  { %15111 = vmatpush1.msra.mxu1 %v14182_v17 }
 0xd29   :  { %15112 = vmatprep.subr.mxu1 %v14179_v62 }
 0xd2a   :  { %15113 = vmatpush1.msra.mxu1 %v14178_v32  ;;  %16088 = vmatmul.mubr.msk.f32.gmra.mxu0 %vm5605_vm5, %v22487_v45  ;;  %v14246_v45 = vld [vmem:[%s22878_s16 + $0x2d0] sm:$0xff] }
 0xd2b   :  { %15114 = vmatprep.subr.mxu1 %v14175_v55 }
 0xd2c   :  { %15115 = vmatpush1.msra.mxu1 %v14174_v27 }
 0xd2d   :  { %15116 = vmatprep.subr.mxu1 %v14171_v43 }
 0xd2e   :  { %15117 = vmatpush1.msra.mxu1 %v14170_v57 }
 0xd2f   :  { %15118 = vmatprep.subr.mxu1 %v14167_v11 }
 0xd30   :  { %15119 = vmatpush1.msra.mxu1 %v14166_v21 }
 0xd31   :  { %15120 = vmatprep.subr.mxu1 %v14163_v46 }
 0xd32   :  { %15121 = vmatpush1.msra.mxu1 %v14162_v52 }
 0xd33   :  { %15122 = vmatprep.subr.mxu1 %v14159_v53 }
 0xd34   :  { %15123 = vmatpush1.msra.mxu1 %v14158_v34 }
 0xd35   :  { %15124 = vmatprep.subr.mxu1 %v14283_v36 }
 0xd36   :  { %15125 = vmatpush2.msra.mxu1 %v14282_v25 }
 0xd37   :  { %15126 = vmatprep.subr.mxu1 %v14279_v35 }
 0xd38   :  { %15127 = vmatpush2.msra.mxu1 %v14278_v4 }
 0xd39   :  { %15128 = vmatprep.subr.mxu1 %v14275_v50 }
 0xd3a   :  { %15129 = vmatpush2.msra.mxu1 %v14274_v14 }
 0xd3b   :  { %15130 = vmatprep.subr.mxu1 %v14271_v0 }
 0xd3c   :  { %15131 = vmatpush2.msra.mxu1 %v14270_v38 }
 0xd3d   :  { %15132 = vmatprep.subr.mxu1 %v14267_v13 }
 0xd3e   :  { %15133 = vmatpush2.msra.mxu1 %v14266_v26 }
 0xd3f   :  { %15134 = vmatprep.subr.mxu1 %v14263_v54 }
 0xd40   :  { %15135 = vmatpush2.msra.mxu1 %v14262_v12 }
 0xd41   :  { %15136 = vmatprep.subr.mxu1 %v14259_v30 }
 0xd42   :  { %15137 = vmatpush2.msra.mxu1 %v14258_v37 }
 0xd43   :  { %15138 = vmatprep.subr.mxu1 %v14255_v51 }
 0xd44   :  { %15139 = vmatpush2.msra.mxu1 %v14254_v16 }
 0xd45   :  { %15140 = vmatprep.subr.mxu1 %v14251_v56 }
 0xd46   :  { %15141 = vmatpush2.msra.mxu1 %v14250_v20 }
 0xd47   :  { %15142 = vmatprep.subr.mxu1 %v14247_v3 }
 0xd48   :  { %15143 = vmatpush2.msra.mxu1 %v14246_v45 }
 0xd49   :  { %15144 = vmatprep.subr.mxu1 %v14243_v59 }
 0xd4a   :  { %15145 = vmatpush2.msra.mxu1 %v14242_v61 }
 0xd4b   :  { %15146 = vmatprep.subr.mxu1 %v14239_v58 }
 0xd4c   :  { %15147 = vmatpush2.msra.mxu1 %v14238_v1 }
 0xd4d   :  { %15148 = vmatprep.subr.mxu1 %v14235_v18 }
 0xd4e   :  { %15149 = vmatpush2.msra.mxu1 %v14234_v42 }
 0xd4f   :  { %15150 = vmatprep.subr.mxu1 %v14231_v19 }
 0xd50   :  { %15151 = vmatpush2.msra.mxu1 %v14230_v49 }
 0xd51   :  { %15152 = vmatprep.subr.mxu1 %v14227_v47 }
 0xd52   :  { %15153 = vmatpush2.msra.mxu1 %v14226_v22 }
 0xd53   :  { %15154 = vmatprep.subr.mxu1 %v14223_v23 }
 0xd54   :  { %15155 = vmatpush2.msra.mxu1 %v14222_v2 }
 0xd55   :  { %15157 = vmatmul.mubr.f32.vlgmr.msra.gmra.mxu1 %v22450_v5 }
 0xd56   :  { %15162 = vmatprep.mubr.f32.mxu1 %v22469_v41 }
 0xd59   :  { %15163 = vmatmul.mubr.f32.gmra.mxu1 %v22462_v44 }
 0xd7a   :  { %v14558_v29 = vpop.f32.mrf.mxu1 }
 0xd7b   :  { %v14481_v8 = vpop.f32.mrf.mxu0 }
 0xd7c   :  { %v14560_v39 = vpop.f32.mrf.mxu1  ;;  %v14559_v27 = vadd.f32 %v14558_v29, %v14481_v8 }
 0xd7d   :  { %v14483_v31 = vpop.f32.mrf.mxu0 }
 0xd7e   :  { %v14561_v44 = vadd.f32 %v14560_v39, %v14483_v31 }
 0xd80   :  { %v14564_v24 = vpop.f32.mrf.mxu1  ;;  %v14731_v21 = vcombine.low %v14559_v27, %v14561_v44  ;;  %v14732_v46 = vcombine.high %v14559_v27, %v14561_v44 }
 0xd81   :  { %v14487_v33 = vpop.f32.mrf.mxu0 }
 0xd82   :  { %v14566_v40 = vpop.f32.mrf.mxu1  ;;  %v14741_v35 = vrot.slane %v14731_v21, %v16549_v10  ;;  %v14748_v4 = vrot.slane %v14732_v46, %v16549_v10  ;;  %v14565_v26 = vadd.f32 %v14564_v24, %v14487_v33 }
 0xd83   :  { %v14489_v9 = vpop.f32.mrf.mxu0 }
 0xd84   :  { %v14567_v50 = vadd.f32 %v14566_v40, %v14489_v9 }
 0xd86   :  { %v14799_v51 = vcombine.low %v14565_v26, %v14567_v50 }
 0xd88   :  { %v14807_v42 = vrot.slane %v14799_v51, %v16549_v10 }
 0xd8e   :  { %v14712_v60 = vpop.f32.mrf.mxu0 }
 0xd90   :  { %v14714_v48 = vpop.f32.mrf.mxu0 }
 0xd93   :  { %v14718_v6 = vpop.f32.mrf.mxu0 }
 0xd95   :  { %v14720_v7 = vpop.f32.mrf.mxu0 }
 0xdbf   :  { %v14635_v63 = vpop.f32.mrf.mxu1 }
 0xdc0   :  { %v14713_v32 = vadd.f32 %v14712_v60, %v14635_v63 }
 0xdc1   :  { %v14637_v15 = vpop.f32.mrf.mxu1 }
 0xdc2   :  { %v14715_v17 = vadd.f32 %v14714_v48, %v14637_v15 }
 0xdc4   :  { %v14641_v28 = vpop.f32.mrf.mxu1  ;;  %v14733_v43 = vcombine.low %v14713_v32, %v14715_v17  ;;  %v14734_v57 = vcombine.high %v14713_v32, %v14715_v17 }
 0xdc5   :  { %v14719_v14 = vadd.f32 %v14718_v6, %v14641_v28 }
 0xdc6   :  { %v14643_v41 = vpop.f32.mrf.mxu1  ;;  %v14755_v53 = vrot.slane %v14733_v43, %v16549_v10  ;;  %v14762_v34 = vrot.slane %v14734_v57, %v16549_v10 }
 0xdc7   :  { %v14721_v36 = vadd.f32 %v14720_v7, %v14643_v41 }
 0xdc8   :  { %v14763_v13 = vcombine.low %v14741_v35, %v14755_v53  ;;  %v14764_v54 = vcombine.high %v14741_v35, %v14755_v53  ;;  %v14765_v12 = vcombine.low %v14748_v4, %v14762_v34  ;;  %v14766_v37 = vcombine.high %v14748_v4, %v14762_v34 }
 0xdc9   :  { %v14800_v30 = vcombine.low %v14719_v14, %v14721_v36 }
 0xdca   :  { %v14773_v3 = vrot.slane %v14763_v13, %v16549_v10  ;;  %v22724_v45 = vrot.slane %v14765_v12, %v16549_v10  ;;  %v22727_v59 = vrot.slane %v14764_v54, %v16549_v10  ;;  %v14794_v18 = vrot.slane %v14766_v37, %v16549_v10 }
 0xdcb   :  { %v14814_v61 = vrot.slane %v14800_v30, %v16549_v10 }
 0xdcc   :  { %v14795_v8 = vcombine.high %v14773_v3, %v14773_v3  ;;  %v14796_v31 = vcombine.high %v22724_v45, %v22724_v45  ;;  %v14797_v29 = vcombine.high %v22727_v59, %v22727_v59  ;;  %v14798_v9 = vcombine.high %v14794_v18, %v14794_v18 }
 0xdcd   :  { %v14815_v33 = vcombine.low %v14807_v42, %v14814_v61  ;;  %v15370_v24 = vrot.slane %v22727_v59, 2  ;;  %v15373_v48 = vrot.slane %v22724_v45, 2  ;;  %v14816_v63 = vcombine.high %v14807_v42, %v14814_v61 }
 0xdce   :  { %v15371_v44 = vrot.slane %v14795_v8, 2  ;;  %v15374_v53 = vrot.slane %v14796_v31, 2  ;;  %v15375_v14 = vrot.slane %v14798_v9, 2 }
 0xdcf   :  { %v14823_v32 = vrot.slane %v14815_v33, %v16549_v10 }
 0xdd1   :  { %v15081_v55 = vpop.f32.mrf.mxu1 }
 0xdd2   :  { %v15004_v5 = vpop.f32.mrf.mxu0 }
 0xdd3   :  { %v15083_v52 = vpop.f32.mrf.mxu1  ;;  %v15082_v58 = vadd.f32 %v15081_v55, %v15004_v5 }
 0xdd4   :  { %v15006_v62 = vpop.f32.mrf.mxu0 }
 0xdd5   :  { %v15084_v16 = vadd.f32 %v15083_v52, %v15006_v62  ;;  %v15372_v52 = vrot.slane %v14797_v29, 2 }
 0xdd7   :  { %v15087_v0 = vpop.f32.mrf.mxu1  ;;  %v15254_v19 = vcombine.low %v15082_v58, %v15084_v16  ;;  %v15255_v22 = vcombine.high %v15082_v58, %v15084_v16 }
 0xdd9   :  { %v15010_v11 = vpop.f32.mrf.mxu0  ;;  %v15089_v56 = vpop.f32.mrf.mxu1  ;;  %v15264_v6 = vrot.slane %v15254_v19, %v16549_v10  ;;  %v15271_v5 = vrot.slane %v15255_v22, %v16549_v10 }
 0xdda   :  { %v15088_v55 = vadd.f32 %v15087_v0, %v15010_v11  ;;  %v14830_v11 = vrot.slane %v14816_v63, %v16549_v10  ;;  %v15376_v0 = vrot.slane %v14823_v32, 2 }
 0xddb   :  { %v15012_v25 = vpop.f32.mrf.mxu0 }
 0xddc   :  { %v15090_v15 = vadd.f32 %v15089_v56, %v15012_v25 }
 0xdde   :  { %v15322_v34 = vcombine.low %v15088_v55, %v15090_v15 }
 0xde0   :  { %v15330_v30 = vrot.slane %v15322_v34, %v16549_v10 }
 0xde6   :  { %v15235_v38 = vpop.f32.mrf.mxu0 }
 0xde8   :  { %v15237_v20 = vpop.f32.mrf.mxu0 }
 0xdea   :  { %v15241_v49 = vpop.f32.mrf.mxu0 }
 0xdec   :  { %v15243_v7 = vpop.f32.mrf.mxu0 }
 0xe15   :  { %v15158_v1 = vpop.f32.mrf.mxu1 }
 0xe16   :  { %v15236_v23 = vadd.f32 %v15235_v38, %v15158_v1 }
 0xe17   :  { %v15160_v47 = vpop.f32.mrf.mxu1 }
 0xe18   :  { %v15238_v2 = vadd.f32 %v15237_v20, %v15160_v47 }
 0xe19   :  { %v15164_v39 = vpop.f32.mrf.mxu1 }
 0xe1a   :  { %v15256_v60 = vcombine.low %v15236_v23, %v15238_v2  ;;  %v15257_v40 = vcombine.high %v15236_v23, %v15238_v2  ;;  %v15242_v27 = vadd.f32 %v15241_v49, %v15164_v39 }
 0xe1b   :  { %v15166_v28 = vpop.f32.mrf.mxu1 }
 0xe1c   :  { %v15278_v17 = vrot.slane %v15256_v60, %v16549_v10  ;;  %v15285_v41 = vrot.slane %v15257_v40, %v16549_v10  ;;  %v15244_v62 = vadd.f32 %v15243_v7, %v15166_v28  ;;  %v15377_v40 = vrot.slane %v14830_v11, 2 }
 0xe1e   :  { %v15286_v43 = vcombine.low %v15264_v6, %v15278_v17  ;;  %v15287_v57 = vcombine.high %v15264_v6, %v15278_v17  ;;  %v15288_v21 = vcombine.low %v15271_v5, %v15285_v41  ;;  %v15289_v46 = vcombine.high %v15271_v5, %v15285_v41 }
 0xe1f   :  { %v15323_v36 = vcombine.low %v15242_v27, %v15244_v62 }
 0xe20   :  { %v15296_v25 = vrot.slane %v15286_v43, %v16549_v10  ;;  %v15303_v35 = vrot.slane %v15288_v21, %v16549_v10  ;;  %v15310_v4 = vrot.slane %v15287_v57, %v16549_v10  ;;  %v15317_v50 = vrot.slane %v15289_v46, %v16549_v10 }
 0xe21   :  { %v15337_v38 = vrot.slane %v15323_v36, %v16549_v10 }
 0xe22   :  { %v15318_v13 = vcombine.high %v15296_v25, %v15296_v25  ;;  %v15319_v26 = vcombine.high %v15303_v35, %v15303_v35  ;;  %v15320_v54 = vcombine.high %v15310_v4, %v15310_v4  ;;  %v15321_v12 = vcombine.high %v15317_v50, %v15317_v50 }
 0xe23   :  { %v15362_v37 = vadd.f32 %v15296_v25, %v14773_v3  ;;  %v15363_v51 = vadd.f32 %v15310_v4, %v22727_v59  ;;  %v15366_v16 = vadd.f32 %v15317_v50, %v14794_v18  ;;  %v15394_v61 = vrot.slane %v15310_v4, 2 }
 0xe24   :  { %v15364_v56 = vadd.f32 %v15318_v13, %v14795_v8  ;;  %v15365_v20 = vadd.f32 %v15320_v54, %v14797_v29  ;;  %v15367_v45 = vadd.f32 %v15319_v26, %v14796_v31  ;;  %v15368_v58 = vadd.f32 %v15321_v12, %v14798_v9 }
 0xe25   :  { %v15386_v1 = vadd.f32 %v15370_v24, %v15362_v37  ;;  %v15390_v42 = vadd.f32 %v15374_v53, %v15366_v16  ;;  %v15395_v19 = vrot.slane %v15318_v13, 2  ;;  %v15397_v49 = vrot.slane %v15303_v35, 2 }
 0xe26   :  { %v15398_v47 = vrot.slane %v15319_v26, 2  ;;  %v15338_v22 = vcombine.low %v15330_v30, %v15337_v38  ;;  %v15339_v23 = vcombine.high %v15330_v30, %v15337_v38  ;;  %v15387_v2 = vadd.f32 %v15371_v44, %v15363_v51 }
 0xe27   :  { %v15388_v33 = vadd.f32 %v15372_v52, %v15364_v56  ;;  %v15389_v39 = vadd.f32 %v15373_v48, %v15365_v20  ;;  %v15396_v60 = vrot.slane %v15320_v54, 2  ;;  %v15410_v18 = vadd.f32 %v15394_v61, %v15386_v1 }
 0xe28   :  { %v15346_v3 = vrot.slane %v15338_v22, %v16549_v10  ;;  %v15353_v59 = vrot.slane %v15339_v23, %v16549_v10  ;;  %v15391_v8 = vadd.f32 %v15375_v14, %v15367_v45  ;;  %v15399_v31 = vrot.slane %v15321_v12, 2 }
 0xe29   :  { %v15411_v29 = vadd.f32 %v15395_v19, %v15387_v2  ;;  %v15412_v9 = vadd.f32 %v15396_v60, %v15388_v33  ;;  %v15413_v24 = vadd.f32 %v15397_v49, %v15389_v39  ;;  %v15392_v15 = vadd.f32 %v15376_v0, %v15368_v58 }
 0xe2a   :  { %v15369_v63 = vadd.f32 %v15346_v3, %v14823_v32  ;;  %v15400_v6 = vrot.slane %v15346_v3, 2  ;;  %v15415_v5 = vadd.f32 %v15399_v31, %v15391_v8  ;;  %v15401_v48 = vrot.slane %v15353_v59, 2 }
 0xe2b   :  { %v15428_v7 = vcombine.low %v15410_v18, %v15411_v29  ;;  %v15429_v28 = vcombine.low %v15412_v9, %v15413_v24  ;;  %v15414_v41 = vadd.f32 %v15398_v47, %v15390_v42 }
 0xe2c   :  { %v15393_v17 = vadd.f32 %v15377_v40, %v15369_v63  ;;  %v15416_v27 = vadd.f32 %v15400_v6, %v15392_v15 }
 0xe2d   :  { %v15436_v62 = vrot.slane %v15428_v7, %v16549_v10  ;;  %v15443_v44 = vrot.slane %v15429_v28, %v16549_v10  ;;  %v15460_v43 = vcombine.low %v15414_v41, %v15415_v5 }
 0xe2e   :  { %v15417_v55 = vadd.f32 %v15401_v48, %v15393_v17 }
 0xe2f   :  { %v15444_v57 = vcombine.low %v15436_v62, %v15443_v44  ;;  %v15445_v21 = vcombine.high %v15436_v62, %v15443_v44  ;;  %v15468_v53 = vrot.slane %v15460_v43, %v16549_v10 }
 0xe30   :  { %v15461_v46 = vcombine.low %v15416_v27, %v15417_v55 }
 0xe31   :  { %v15452_v32 = vrot.slane %v15444_v57, %v16549_v10  ;;  %v15459_v52 = vrot.slane %v15445_v21, %v16549_v10 }
 0xe32   :  { %v15475_v34 = vrot.slane %v15461_v46, %v16549_v10 }
 0xe33   :  { %v15497_v36 = vsel %vm15496_vm2, %v15452_v32, 0.0  ;;  %v15498_v25 = vsel %vm15496_vm2, %v15459_v52, 0.0 }
 0xe34   :  { %v15499_v35 = vadd.f32 %v15498_v25, %v15497_v36  ;;  %v15476_v4 = vcombine.low %v15468_v53, %v15475_v34  ;;  %v15477_v50 = vcombine.high %v15468_v53, %v15475_v34 }
 0xe36   :  { %15500 = vadd.xlane.f32.xlu0 %v15499_v35  ;;  %v15484_v14 = vrot.slane %v15476_v4, %v16549_v10  ;;  %v15491_v11 = vrot.slane %v15477_v50, %v16549_v10 }
 0xe38   :  { %v15502_v0 = vsel %vm15496_vm2, %v15484_v14, 0.0  ;;  %v15503_v38 = vsel %vm15496_vm2, %v15491_v11, 0.0 }
 0xe39   :  { %v15504_v13 = vadd.f32 %v15503_v38, %v15502_v0 }
 0xe3b   :  { %15505 = vadd.xlane.f32.xlu1 %v15504_v13 }
 0xebf   :  { %v15501_v26 = vpop.xlane.xlu0 %15500 }
 0xec0   :  { %v15507_v54 = vsel %vm15496_vm2, %v15501_v26, 0.0 }
 0xec1   :  { %v15508_v12 = vrot.slane %v15507_v54, 4 }
 0xec3   :  { %v15509_v30 = vadd.f32 %v15508_v12, %v15507_v54 }
 0xec4   :  { %v15506_v37 = vpop.xlane.xlu1 %15505 }
 0xec5   :  { %v15510_v51 = vrot.slane %v15509_v30, 2  ;;  %v15514_v16 = vsel %vm15496_vm2, %v15506_v37, 0.0 }
 0xec6   :  { %v15515_v56 = vrot.slane %v15514_v16, 4 }
 0xec7   :  { %v15511_v20 = vadd.f32 %v15510_v51, %v15509_v30 }
 0xec8   :  { %v15516_v45 = vadd.f32 %v15515_v56, %v15514_v16 }
 0xec9   :  { %v15512_v61 = vrot.slane %v15511_v20, 1 }
 0xeca   :  { %v15517_v58 = vrot.slane %v15516_v45, 2 }
 0xecb   :  { %v15513_v1 = vadd.f32 %v15512_v61, %v15511_v20 }
 0xecc   :  { %v15518_v42 = vadd.f32 %v15517_v58, %v15516_v45 }
 0xecd   :  { %v15521_v19 = vmul.f32 0.0009765625, %v15513_v1  ;;  %v16089_v1 = vld.sshfl [vmem:[%s22879_s17] sm:$0xff pattern:$0x75316420] }
 0xece   :  { %v15519_v49 = vrot.slane %v15518_v42, 1 }
 0xecf   :  { %v22767_v47 = vsub.f32 %v15410_v18, %v15521_v19  ;;  %v22769_v22 = vsub.f32 %v15411_v29, %v15521_v19  ;;  %v22771_v23 = vsub.f32 %v15412_v9, %v15521_v19  ;;  %v22773_v2 = vsub.f32 %v15413_v24, %v15521_v19 }
 0xed0   :  { %v15520_v33 = vadd.f32 %v15519_v49, %v15518_v42  ;;  %v16090_v42 = vld.sshfl [vmem:[%s22880_s18] sm:$0xff pattern:$0x75316420]  ;;  %v15661_v49 = vcombine.high %v16089_v1, %v16089_v1 }
 0xed1   :  { %v15531_v39 = vmul.f32 %v22767_v47, %v22767_v47  ;;  %v15532_v60 = vmul.f32 %v22769_v22, %v22769_v22  ;;  %v15533_v3 = vmul.f32 %v22771_v23, %v22771_v23  ;;  %v15534_v59 = vmul.f32 %v22773_v2, %v22773_v2 }
 0xed2   :  { %v15522_v18 = vmul.f32 0.0009765625, %v15520_v33  ;;  %v15698_v33 = vcombine.high %v16090_v42, %v16090_v42 }
 0xed3   :  { %v15547_v8 = vcombine.low %v15531_v39, %v15532_v60  ;;  %v15548_v31 = vcombine.low %v15533_v3, %v15534_v59  ;;  %v16091_v39 = vld.sshfl [vmem:[%s22881_s19] sm:$0xff pattern:$0x75316420]  ;;  %v15668_v60 = vrot.slane %v16089_v1, %v16549_v10  ;;  %v15675_v3 = vrot.slane %v15661_v49, %v16549_v10 }
 0xed4   :  { %v22783_v29 = vsub.f32 %v15414_v41, %v15522_v18  ;;  %v22785_v9 = vsub.f32 %v15415_v5, %v15522_v18  ;;  %v22787_v24 = vsub.f32 %v15416_v27, %v15522_v18  ;;  %v22789_v40 = vsub.f32 %v15417_v55, %v15522_v18 }
 0xed5   :  { %v15555_v63 = vrot.slane %v15547_v8, %v16549_v10  ;;  %v15562_v6 = vrot.slane %v15548_v31, %v16549_v10  ;;  %v15705_v59 = vrot.slane %v16090_v42, %v16549_v10  ;;  %v15712_v18 = vrot.slane %v15698_v33, %v16549_v10 }
 0xed6   :  { %v15535_v15 = vmul.f32 %v22783_v29, %v22783_v29  ;;  %v15536_v7 = vmul.f32 %v22785_v9, %v22785_v9  ;;  %v15537_v28 = vmul.f32 %v22787_v24, %v22787_v24  ;;  %v15538_v5 = vmul.f32 %v22789_v40, %v22789_v40 }
 0xed7   :  { %v15563_v17 = vcombine.low %v15555_v63, %v15562_v6  ;;  %v15564_v48 = vcombine.high %v15555_v63, %v15562_v6  ;;  %v15760_v8 = vcombine.high %v16091_v39, %v16091_v39  ;;  %v15676_v31 = vcombine.high %v15668_v60, %v15668_v60 }
 0xed8   :  { %v15579_v41 = vcombine.low %v15535_v15, %v15536_v7  ;;  %v15580_v62 = vcombine.low %v15537_v28, %v15538_v5  ;;  %v15677_v63 = vcombine.high %v15675_v3, %v15675_v3  ;;  %v15713_v15 = vcombine.high %v15705_v59, %v15705_v59 }
 0xed9   :  { %v15571_v44 = vrot.slane %v15563_v17, %v16549_v10  ;;  %v15578_v55 = vrot.slane %v15564_v48, %v16549_v10  ;;  %v15714_v7 = vcombine.high %v15712_v18, %v15712_v18  ;;  %v15767_v28 = vrot.slane %v16091_v39, %v16549_v10 }
 0xeda   :  { %v15587_v27 = vrot.slane %v15579_v41, %v16549_v10  ;;  %v15594_v43 = vrot.slane %v15580_v62, %v16549_v10  ;;  %v22828_v5 = vrot.slane %v15760_v8, %v16549_v10 }
 0xedb   :  { %v15615_v57 = vsel %vm15496_vm2, %v15571_v44, 0.0  ;;  %v15616_v21 = vsel %vm15496_vm2, %v15578_v55, 0.0 }
 0xedc   :  { %v15617_v46 = vadd.f32 %v15616_v21, %v15615_v57  ;;  %v15595_v32 = vcombine.low %v15587_v27, %v15594_v43  ;;  %v15596_v52 = vcombine.high %v15587_v27, %v15594_v43  ;;  %v15775_v57 = vcombine.high %v15767_v28, %v15767_v28 }
 0xedd   :  { %v15776_v21 = vcombine.high %v22828_v5, %v22828_v5 }
 0xede   :  { %15618 = vadd.xlane.f32.xlu0 %v15617_v46  ;;  %v15603_v53 = vrot.slane %v15595_v32, %v16549_v10  ;;  %v15610_v34 = vrot.slane %v15596_v52, %v16549_v10 }
 0xee0   :  { %v15620_v36 = vsel %vm15496_vm2, %v15603_v53, 0.0  ;;  %v15621_v25 = vsel %vm15496_vm2, %v15610_v34, 0.0 }
 0xee1   :  { %v15622_v35 = vadd.f32 %v15621_v25, %v15620_v36 }
 0xee3   :  { %15623 = vadd.xlane.f32.xlu0 %v15622_v35 }
 0xf67   :  { %v15619_v4 = vpop.xlane.xlu0 %15618 }
 0xf68   :  { %v15625_v50 = vsel %vm15496_vm2, %v15619_v4, 0.0 }
 0xf69   :  { %v15626_v14 = vrot.slane %v15625_v50, 4 }
 0xf6b   :  { %v15627_v11 = vadd.f32 %v15626_v14, %v15625_v50 }
 0xf6c   :  { %v15624_v0 = vpop.xlane.xlu0 %15623 }
 0xf6d   :  { %v15628_v38 = vrot.slane %v15627_v11, 2  ;;  %v15632_v13 = vsel %vm15496_vm2, %v15624_v0, 0.0 }
 0xf6e   :  { %v15633_v26 = vrot.slane %v15632_v13, 4 }
 0xf6f   :  { %v15629_v54 = vadd.f32 %v15628_v38, %v15627_v11 }
 0xf70   :  { %v15634_v12 = vadd.f32 %v15633_v26, %v15632_v13 }
 0xf71   :  { %v15630_v30 = vrot.slane %v15629_v54, 1 }
 0xf72   :  { %v15635_v37 = vrot.slane %v15634_v12, 2 }
 0xf73   :  { %v15631_v51 = vadd.f32 %v15630_v30, %v15629_v54 }
 0xf74   :  { %v15636_v16 = vadd.f32 %v15635_v37, %v15634_v12 }
 0xf75   :  { %v15639_v56 = vmul.f32 0.0009765625, %v15631_v51 }
 0xf76   :  { %v15637_v20 = vrot.slane %v15636_v16, 1 }
 0xf77   :  { %v15641_v45 = vadd.f32 1e-05, %v15639_v56 }
 0xf78   :  { %v15638_v61 = vadd.f32 %v15637_v20, %v15636_v16 }
 0xf79   :  { %16292 = vrsqrt.f32 %v15641_v45 }
 0xf7a   :  { %v15640_v58 = vmul.f32 0.0009765625, %v15638_v61 }
 0xf7c   :  { %v15642_v19 = vadd.f32 1e-05, %v15640_v58 }
 0xf7e   :  { %16294 = vrsqrt.f32 %v15642_v19 }
 0xf86   :  { %v16293_v6 = vpop.eup %16292 }
 0xf87   :  { %v15645_v17 = vmul.f32 %v16293_v6, %v22767_v47  ;;  %v15646_v48 = vmul.f32 %v16293_v6, %v22769_v22  ;;  %v15647_v41 = vmul.f32 %v16293_v6, %v22771_v23  ;;  %v15648_v62 = vmul.f32 %v16293_v6, %v22773_v2 }
 0xf89   :  { %v15682_v44 = vmul.f32 %v15668_v60, %v15645_v17  ;;  %v15683_v55 = vmul.f32 %v15675_v3, %v15646_v48  ;;  %v15684_v27 = vmul.f32 %v15676_v31, %v15647_v41  ;;  %v15685_v43 = vmul.f32 %v15677_v63, %v15648_v62 }
 0xf8b   :  { %v16295_v46 = vpop.eup %16294  ;;  %v15719_v32 = vadd.f32 %v15705_v59, %v15682_v44  ;;  %v15720_v52 = vadd.f32 %v15712_v18, %v15683_v55  ;;  %v15721_v53 = vadd.f32 %v15713_v15, %v15684_v27  ;;  %v15722_v34 = vadd.f32 %v15714_v7, %v15685_v43 }
 0xf8c   :  { %v15649_v47 = vmul.f32 %v16295_v46, %v22783_v29  ;;  %v15650_v22 = vmul.f32 %v16295_v46, %v22785_v9  ;;  %v15651_v23 = vmul.f32 %v16295_v46, %v22787_v24  ;;  %v15652_v2 = vmul.f32 %v16295_v46, %v22789_v40 }
 0xf8d   :  { %vm15727_vm5 = vcmp.gt.f32.partialorder %v15719_v32, 0.0  ;;  %vm15728_vm6 = vcmp.gt.f32.partialorder %v15720_v52, 0.0  ;;  %vm15729_vm14 = vcmp.gt.f32.partialorder %v15721_v53, 0.0  ;;  %vm15730_vm7 = vcmp.gt.f32.partialorder %v15722_v34, 0.0 }
 0xf8e   :  { %v15735_v36 = vmul.f32 0.2, %v15719_v32  ;;  %v15736_v25 = vmul.f32 0.2, %v15720_v52  ;;  %v15737_v35 = vmul.f32 0.2, %v15721_v53  ;;  %v15686_v4 = vmul.f32 %v15668_v60, %v15649_v47 }
 0xf8f   :  { %v15738_v50 = vmul.f32 0.2, %v15722_v34  ;;  %v15687_v14 = vmul.f32 %v15675_v3, %v15650_v22  ;;  %v15688_v11 = vmul.f32 %v15676_v31, %v15651_v23  ;;  %v15689_v0 = vmul.f32 %v15677_v63, %v15652_v2 }
 0xf90   :  { %v15743_v38 = vsel %vm15727_vm5, %v15719_v32, %v15735_v36  ;;  %v15744_v29 = vsel %vm15728_vm6, %v15720_v52, %v15736_v25  ;;  %v15745_v13 = vsel %vm15729_vm14, %v15721_v53, %v15737_v35  ;;  %v15723_v9 = vadd.f32 %v15705_v59, %v15686_v4 }
 0xf91   :  { %v15746_v26 = vsel %vm15730_vm7, %v15722_v34, %v15738_v50  ;;  %v15781_v24 = vmul.f32 %v15767_v28, %v15743_v38  ;;  %v15782_v40 = vmul.f32 %v22828_v5, %v15744_v29  ;;  %v15783_v54 = vmul.f32 %v15775_v57, %v15745_v13 }
 0xf92   :  { %v15784_v12 = vmul.f32 %v15776_v21, %v15746_v26  ;;  %v15724_v30 = vadd.f32 %v15712_v18, %v15687_v14  ;;  %v15725_v37 = vadd.f32 %v15713_v15, %v15688_v11  ;;  %v15726_v51 = vadd.f32 %v15714_v7, %v15689_v0 }
 0xf93   :  { %v15797_v16 = vcombine.low %v15781_v24, %v15782_v40  ;;  %vm15731_vm8 = vcmp.gt.f32.partialorder %v15723_v9, 0.0  ;;  %v15739_v56 = vmul.f32 0.2, %v15723_v9 }
 0xf94   :  { %v15798_v20 = vcombine.low %v15783_v54, %v15784_v12  ;;  %vm15732_vm9 = vcmp.gt.f32.partialorder %v15724_v30, 0.0  ;;  %vm15733_vm10 = vcmp.gt.f32.partialorder %v15725_v37, 0.0  ;;  %vm15734_vm11 = vcmp.gt.f32.partialorder %v15726_v51, 0.0 }
 0xf95   :  { %v15805_v45 = vrot.slane %v15797_v16, %v16549_v10  ;;  %v15740_v61 = vmul.f32 0.2, %v15724_v30  ;;  %v15741_v58 = vmul.f32 0.2, %v15725_v37  ;;  %v15742_v1 = vmul.f32 0.2, %v15726_v51 }
 0xf96   :  { %v15812_v42 = vrot.slane %v15798_v20, %v16549_v10  ;;  %v15747_v19 = vsel %vm15731_vm8, %v15723_v9, %v15739_v56 }
 0xf97   :  { %v15748_v49 = vsel %vm15732_vm9, %v15724_v30, %v15740_v61  ;;  %v15749_v33 = vsel %vm15733_vm10, %v15725_v37, %v15741_v58  ;;  %v15750_v39 = vsel %vm15734_vm11, %v15726_v51, %v15742_v1  ;;  %v15785_v60 = vmul.f32 %v15767_v28, %v15747_v19 }
 0xf98   :  { %v15813_v3 = vcombine.low %v15805_v45, %v15812_v42  ;;  %v15814_v59 = vcombine.high %v15805_v45, %v15812_v42  ;;  %v15786_v18 = vmul.f32 %v22828_v5, %v15748_v49  ;;  %v15787_v8 = vmul.f32 %v15775_v57, %v15749_v33 }
 0xf99   :  { %v15788_v31 = vmul.f32 %v15776_v21, %v15750_v39 }
 0xf9a   :  { %v15821_v63 = vrot.slane %v15813_v3, %v16549_v10  ;;  %v15828_v6 = vrot.slane %v15814_v59, %v16549_v10  ;;  %v15829_v15 = vcombine.low %v15785_v60, %v15786_v18 }
 0xf9b   :  { %v15830_v7 = vcombine.low %v15787_v8, %v15788_v31 }
 0xf9c   :  { %v15865_v17 = vsel %vm15496_vm2, %v15821_v63, 0.0  ;;  %v15866_v48 = vsel %vm15496_vm2, %v15828_v6, 0.0  ;;  %v15837_v41 = vrot.slane %v15829_v15, %v16549_v10 }
 0xf9d   :  { %v15867_v62 = vadd.f32 %v15866_v48, %v15865_v17  ;;  %v15844_v28 = vrot.slane %v15830_v7, %v16549_v10 }
 0xf9f   :  { %15868 = vadd.xlane.f32.xlu1 %v15867_v62  ;;  %v15845_v44 = vcombine.low %v15837_v41, %v15844_v28  ;;  %v15846_v5 = vcombine.high %v15837_v41, %v15844_v28 }
 0xfa1   :  { %v15853_v55 = vrot.slane %v15845_v44, %v16549_v10  ;;  %v15860_v27 = vrot.slane %v15846_v5, %v16549_v10 }
 0xfa3   :  { %v15870_v43 = vsel %vm15496_vm2, %v15853_v55, 0.0  ;;  %v15871_v57 = vsel %vm15496_vm2, %v15860_v27, 0.0 }
 0xfa4   :  { %v15872_v21 = vadd.f32 %v15871_v57, %v15870_v43 }
 0xfa6   :  { %15873 = vadd.xlane.f32.xlu0 %v15872_v21 }
0x1028   :  { %v15869_v46 = vpop.xlane.xlu1 %15868 }
0x1029   :  { %v15875_v32 = vsel %vm15496_vm2, %v15869_v46, 0.0 }
0x102a   :  { %v15876_v52 = vrot.slane %v15875_v32, 4 }
0x102c   :  { %v15877_v53 = vadd.f32 %v15876_v52, %v15875_v32 }
0x102e   :  { %v15878_v34 = vrot.slane %v15877_v53, 2 }
0x102f   :  { %v15874_v47 = vpop.xlane.xlu0 %15873 }
0x1030   :  { %v15879_v22 = vadd.f32 %v15878_v34, %v15877_v53  ;;  %v15882_v23 = vsel %vm15496_vm2, %v15874_v47, 0.0 }
0x1031   :  { %v15883_v2 = vrot.slane %v15882_v23, 4 }
0x1032   :  { %v15880_v36 = vrot.slane %v15879_v22, 1 }
0x1033   :  { %v15884_v10 = vadd.f32 %v15883_v2, %v15882_v23 }
0x1034   :  { %v15881_v25 = vadd.f32 %v15880_v36, %v15879_v22 }
0x1035   :  { %v15885_v35 = vrot.slane %v15884_v10, 2 }
0x1036   :  { %15890 = vst.msk [vmem:[%s22882_s20] sm:$0x1] %vm15889_vm12, %v15881_v25 }
0x1037   :  { %v15886_v4 = vadd.f32 %v15885_v35, %v15884_v10 }
0x1039   :  { %v15887_v50 = vrot.slane %v15886_v4, 1 }
0x103b   :  { %v15888_v14 = vadd.f32 %v15887_v50, %v15886_v4 }
0x103d   :  { %15891 = vst.msk [vmem:[%s22882_s20 + $0x1] sm:$0x1] %vm15889_vm12, %v15888_v14 }
0x103e   :  { %15896 = vsyncpa [#allocation3], 1 }
0x103f   :  { %15897 = vsyncpa [#allocation5], 1 }
0x1040   :  { %15898 = vsyncpa [#allocation8], 1 }

</bundles_post_ra>
